<compile_context>
chip_gen: v7x
topology: tpu7x:2x2x1
jax: 0.10.0
libtpu: 0.0.40
codegen_flags: <defaults>
</compile_context>

<pallas_src>
import jax
import jax.numpy as jnp
from jax.experimental import pallas as pl
from jax.experimental.pallas import tpu as pltpu

HIDDEN = 256


def mlp_kernel(x_ref, w1_ref, b1_ref, w2_ref, b2_ref,
               w3_ref, b3_ref, w4_ref, b4_ref, o_ref):
    # x tile: (1, tm) f32 -- batch lives on the lane axis.
    x = x_ref[...]

    # fc1: K=1 contraction -> VPU broadcast multiply-add (no degenerate MXU
    # pass). (256,1)*(1,tm) + (256,1) -> (256,tm); cast once for the MXU.
    h = jnp.maximum(w1_ref[...] * x + b1_ref[...], 0.0).astype(w2_ref.dtype)

    # fc2 / fc3: lane-dense (256,256)@(256,tm) MXU matmuls with f32
    # accumulation.  Bias add + ReLU + down-cast are a single fused
    # expression: one materialised (256,tm) pass per layer, biases stay f32
    # (v5e VPU has no bf16; on v6e/v7x the cast halves the stored activation).
    h = jnp.maximum(
        jnp.dot(w2_ref[...], h, preferred_element_type=jnp.float32)
        + b2_ref[...], 0.0).astype(w3_ref.dtype)
    h = jnp.maximum(
        jnp.dot(w3_ref[...], h, preferred_element_type=jnp.float32)
        + b3_ref[...], 0.0)                     # stays f32 for the VPU fc4

    # fc4 (M=1): OFF the MXU.  out[0,:] = sum_k w4[k] * h[k,:] + b4
    # -> VPU elementwise multiply + XLU sublane reduction (slots with slack).
    out = jnp.sum(w4_ref[...] * h, axis=0, keepdims=True) + b4_ref[...]

    o_ref[...] = out.astype(o_ref.dtype)


def _round_up(v, m):
    return ((v + m - 1) // m) * m


def _chip_caps():
    """(num_tensorcores, tm_cap, vmem_limit_bytes) for the attached TPU."""
    try:
        kind = jax.devices()[0].device_kind.lower()
    except Exception:
        kind = ""
    if "7" in kind:
        # v7x: 2 TensorCores/chip, 64 MiB VMEM per TC -> even split, tighter budget.
        return 2, 4096, 40 * 1024 * 1024
    # v5e / v6e: 1 TensorCore, 128 MiB VMEM -> one big tile.
    return 1, 8192, 96 * 1024 * 1024


def _weight_spec(shape, single_buffer):
    # Grid-invariant block: single-buffer it when the jax version supports it.
    if single_buffer:
        return pl.BlockSpec(shape, lambda i: (0, 0), pipeline_mode=pl.Buffered(1))
    return pl.BlockSpec(shape, lambda i: (0, 0))


def _run_pallas(x_t, weights, n_steps, tm, n_pad, vmem_limit, cost, single_buffer):
    wspec = lambda s: _weight_spec(s, single_buffer)
    return pl.pallas_call(
        mlp_kernel,
        out_shape=jax.ShapeDtypeStruct((1, n_pad), jnp.float32),
        grid_spec=pltpu.PrefetchScalarGridSpec(
            num_scalar_prefetch=0,
            grid=(n_steps,),
            in_specs=[
                pl.BlockSpec((1, tm), lambda i: (0, i)),   # x tile (lane-dense)
                wspec((HIDDEN, 1)),        # w1  (256,1)  f32, VPU path
                wspec((HIDDEN, 1)),        # b1
                wspec((HIDDEN, HIDDEN)),   # w2  (256,256) compute_dtype
                wspec((HIDDEN, 1)),        # b2  f32
                wspec((HIDDEN, HIDDEN)),   # w3  (256,256) compute_dtype
                wspec((HIDDEN, 1)),        # b3  f32
                wspec((HIDDEN, 1)),        # w4  (256,1)  f32, VPU/XLU path
                wspec((1, 1)),             # b4
            ],
            out_specs=pl.BlockSpec((1, tm), lambda i: (0, i)),  # lane-dense out
        ),
        compiler_params=pltpu.CompilerParams(
            dimension_semantics=("parallel",),
            vmem_limit_bytes=vmem_limit,
        ),
        cost_estimate=cost,
    )(x_t, *weights)


def net_forward(x, params, *, tm=None, compute_dtype=jnp.bfloat16):
    """x: (N, 1) float32.  params in PyTorch layout: W (out,in), b (out,).

    Returns (N, 1) float32.  fc2/fc3 weights are stored/fed to the MXU in
    `compute_dtype` (default bf16) with f32 accumulation; fc1/fc4/biases and
    all elementwise work stay in f32.
    """
    (w1, b1), (w2, b2), (w3, b3), (w4, b4) = params
    N = int(x.shape[0])

    n_cores, tm_cap, vmem_limit = _chip_caps()
    if tm is None:
        if n_cores > 1:
            # Step count a multiple of the TC count so the "parallel" batch
            # axis splits evenly across both v7x TensorCores.
            n_steps = max(n_cores, _round_up(pl.cdiv(N, tm_cap), n_cores))
            tm = max(128, _round_up(pl.cdiv(N, n_steps), 128))
        else:
            # Single TC: one big tile amortises the ~0.35us per-step overhead.
            tm = min(tm_cap, max(128, _round_up(N, 128)))
    else:
        tm = max(128, _round_up(int(tm), 128))

    n_steps = pl.cdiv(N, tm)
    n_pad = n_steps * tm

    # Feature-major presentation: batch on the lane axis.
    x_t = x.reshape(1, N).astype(jnp.float32)
    if n_pad != N:
        x_t = jnp.pad(x_t, ((0, 0), (0, n_pad - N)))

    # Weights in PyTorch (out, in) layout; biases as column vectors.
    w1c = w1.astype(jnp.float32)                          # (256, 1)   VPU
    b1c = b1.reshape(HIDDEN, 1).astype(jnp.float32)
    w2c = w2.astype(compute_dtype)                        # (256, 256) MXU
    b2c = b2.reshape(HIDDEN, 1).astype(jnp.float32)
    w3c = w3.astype(compute_dtype)                        # (256, 256) MXU
    b3c = b3.reshape(HIDDEN, 1).astype(jnp.float32)
    w4c = w4.reshape(HIDDEN, 1).astype(jnp.float32)       # (256, 1)   VPU/XLU
    b4c = b4.reshape(1, 1).astype(jnp.float32)
    weights = (w1c, b1c, w2c, b2c, w3c, b3c, w4c, b4c)

    param_bytes = sum(int(a.size) * a.dtype.itemsize for a in weights)
    flops_per_elem = 2 * HIDDEN * (2 * HIDDEN + 2)        # fc2+fc3 + fc1+fc4
    cost = pl.CostEstimate(
        flops=n_pad * flops_per_elem,
        transcendentals=0,
        bytes_accessed=param_bytes + 2 * n_pad * 4,
    )

    try:
        out_t = _run_pallas(x_t, weights, n_steps, tm, n_pad, vmem_limit,
                            cost, single_buffer=True)
    except Exception:
        # pipeline_mode / pl.Buffered not supported on this jax version.
        out_t = _run_pallas(x_t, weights, n_steps, tm, n_pad, vmem_limit,
                            cost, single_buffer=False)

    return out_t[0, :N].reshape(N, 1)


def init_params(key):
    """PyTorch nn.Linear layout: W (out,in), b (out,), U(-1/sqrt(fan_in), ..)."""
    dims = [(1, HIDDEN), (HIDDEN, HIDDEN), (HIDDEN, HIDDEN), (HIDDEN, 1)]
    params = []
    for fan_in, fan_out in dims:
        key, kw, kb = jax.random.split(key, 3)
        bound = 1.0 / jnp.sqrt(float(fan_in))
        w = jax.random.uniform(kw, (fan_out, fan_in), jnp.float32, -bound, bound)
        b = jax.random.uniform(kb, (fan_out,), jnp.float32, -bound, bound)
        params.append((w, b))
    return params


def net_forward_ref(x, params, compute_dtype=jnp.bfloat16):
    """Pure-JAX reference (batch-major) with the same cast points as the kernel."""
    (w1, b1), (w2, b2), (w3, b3), (w4, b4) = params
    cd = compute_dtype
    h = jnp.maximum(x @ w1.T + b1, 0.0)                              # fc1 f32
    h = jnp.maximum(
        jnp.dot(h.astype(cd), w2.astype(cd).T,
                preferred_element_type=jnp.float32) + b2, 0.0)
    h = jnp.maximum(
        jnp.dot(h.astype(cd), w3.astype(cd).T,
                preferred_element_type=jnp.float32) + b3, 0.0)
    # fc4 as an f32 elementwise multiply + reduce, matching the kernel's path.
    return jnp.sum(h * w4.astype(jnp.float32), axis=-1, keepdims=True) + b4


if __name__ == "__main__":
    key = jax.random.PRNGKey(0)
    params = init_params(key)

    # Input analogous to np.linspace(1, 16, ...) reshaped to (N, 1); kept small.
    N = 512
    x = jnp.linspace(1.0, 16.0, num=N, dtype=jnp.float32).reshape(N, 1)

    # Default path: bf16 weights on the MXU layers, f32 accumulation.
    out = jax.block_until_ready(net_forward(x, params))
    ref_bf16 = net_forward_ref(x, params, compute_dtype=jnp.bfloat16)
    assert out.shape == (N, 1)
    assert jnp.allclose(out, ref_bf16, atol=2e-2, rtol=2e-2)

    # Full-f32 weight path.
    out_f32 = jax.block_until_ready(
        net_forward(x, params, compute_dtype=jnp.float32))
    ref_f32 = net_forward_ref(x, params, compute_dtype=jnp.float32)
    assert jnp.allclose(out_f32, ref_f32, atol=1e-4, rtol=1e-4)

    # Ragged batch (exercises the lane-axis padding path).
    M = 300
    out_r = jax.block_until_ready(net_forward(x[:M], params))
    assert jnp.allclose(out_r, ref_bf16[:M], atol=2e-2, rtol=2e-2)

    print("KERNEL_OK")
</pallas_src>

<mosaic_0001>
module attributes {stable_mosaic.version = 11 : i64} {
  func.func @mlp_kernel(%arg0: i32, %arg1: memref<1x512xf32, #tpu.memory_space<vmem>>, %arg2: memref<256x1xf32, #tpu.memory_space<vmem>>, %arg3: memref<256x1xf32, #tpu.memory_space<vmem>>, %arg4: memref<256x256xbf16, #tpu.memory_space<vmem>>, %arg5: memref<256x1xf32, #tpu.memory_space<vmem>>, %arg6: memref<256x256xbf16, #tpu.memory_space<vmem>>, %arg7: memref<256x1xf32, #tpu.memory_space<vmem>>, %arg8: memref<256x1xf32, #tpu.memory_space<vmem>>, %arg9: memref<1x1xf32, #tpu.memory_space<vmem>>, %arg10: memref<1x512xf32, #tpu.memory_space<vmem>>) attributes {dimension_semantics = [#tpu.dimension_semantics<parallel>], iteration_bounds = array<i64: 1>, scalar_prefetch = 0 : i64, scratch_operands = 0 : i64, tpu.core_type = #tpu.core_type<tc>, window_params = [{transform_indices = @transform_0, window_bounds = array<i64: 1, 512>}, {pipeline_mode = #tpu.pipeline_mode<synchronous>, transform_indices = @transform_1, window_bounds = array<i64: 256, 1>}, {pipeline_mode = #tpu.pipeline_mode<synchronous>, transform_indices = @transform_2, window_bounds = array<i64: 256, 1>}, {pipeline_mode = #tpu.pipeline_mode<synchronous>, transform_indices = @transform_3, window_bounds = array<i64: 256, 256>}, {pipeline_mode = #tpu.pipeline_mode<synchronous>, transform_indices = @transform_4, window_bounds = array<i64: 256, 1>}, {pipeline_mode = #tpu.pipeline_mode<synchronous>, transform_indices = @transform_5, window_bounds = array<i64: 256, 256>}, {pipeline_mode = #tpu.pipeline_mode<synchronous>, transform_indices = @transform_6, window_bounds = array<i64: 256, 1>}, {pipeline_mode = #tpu.pipeline_mode<synchronous>, transform_indices = @transform_7, window_bounds = array<i64: 256, 1>}, {pipeline_mode = #tpu.pipeline_mode<synchronous>, transform_indices = @transform_8, window_bounds = array<i64: 1, 1>}, {transform_indices = @transform_9, window_bounds = array<i64: 1, 512>}]} {
    %c0 = arith.constant 0 : index
    %c0_0 = arith.constant 0 : index
    %0 = vector.load %arg1[%c0, %c0_0] : memref<1x512xf32, #tpu.memory_space<vmem>>, vector<1x512xf32>
    %c0_1 = arith.constant 0 : index
    %c0_2 = arith.constant 0 : index
    %1 = vector.load %arg2[%c0_1, %c0_2] : memref<256x1xf32, #tpu.memory_space<vmem>>, vector<256x1xf32>
    %2 = vector.broadcast %1 : vector<256x1xf32> to vector<256x512xf32>
    %3 = vector.broadcast %0 : vector<1x512xf32> to vector<256x512xf32>
    %4 = arith.mulf %2, %3 : vector<256x512xf32>
    %c0_3 = arith.constant 0 : index
    %c0_4 = arith.constant 0 : index
    %5 = vector.load %arg3[%c0_3, %c0_4] : memref<256x1xf32, #tpu.memory_space<vmem>>, vector<256x1xf32>
    %6 = vector.broadcast %5 : vector<256x1xf32> to vector<256x512xf32>
    %7 = arith.addf %4, %6 : vector<256x512xf32>
    %cst = arith.constant 0.000000e+00 : f32
    %8 = vector.broadcast %cst : f32 to vector<256x512xf32>
    %9 = arith.maximumf %7, %8 : vector<256x512xf32>
    %10 = arith.truncf %9 : vector<256x512xf32> to vector<256x512xbf16>
    %c0_5 = arith.constant 0 : index
    %c0_6 = arith.constant 0 : index
    %11 = vector.load %arg4[%c0_5, %c0_6] : memref<256x256xbf16, #tpu.memory_space<vmem>>, vector<256x256xbf16>
    %cst_7 = arith.constant dense<0.000000e+00> : vector<256x512xf32>
    %12 = tpu.matmul %11, %10, %cst_7 {dimension_numbers = #tpu.dot_dimension_numbers<[1], [0], [0], [1], [0, 0, 1, 1], [], []>} : vector<256x256xbf16>, vector<256x512xbf16>, vector<256x512xf32> -> vector<256x512xf32>
    %c0_8 = arith.constant 0 : index
    %c0_9 = arith.constant 0 : index
    %13 = vector.load %arg5[%c0_8, %c0_9] : memref<256x1xf32, #tpu.memory_space<vmem>>, vector<256x1xf32>
    %14 = vector.broadcast %13 : vector<256x1xf32> to vector<256x512xf32>
    %15 = arith.addf %12, %14 : vector<256x512xf32>
    %cst_10 = arith.constant 0.000000e+00 : f32
    %16 = vector.broadcast %cst_10 : f32 to vector<256x512xf32>
    %17 = arith.maximumf %15, %16 : vector<256x512xf32>
    %18 = arith.truncf %17 : vector<256x512xf32> to vector<256x512xbf16>
    %c0_11 = arith.constant 0 : index
    %c0_12 = arith.constant 0 : index
    %19 = vector.load %arg6[%c0_11, %c0_12] : memref<256x256xbf16, #tpu.memory_space<vmem>>, vector<256x256xbf16>
    %cst_13 = arith.constant dense<0.000000e+00> : vector<256x512xf32>
    %20 = tpu.matmul %19, %18, %cst_13 {dimension_numbers = #tpu.dot_dimension_numbers<[1], [0], [0], [1], [0, 0, 1, 1], [], []>} : vector<256x256xbf16>, vector<256x512xbf16>, vector<256x512xf32> -> vector<256x512xf32>
    %c0_14 = arith.constant 0 : index
    %c0_15 = arith.constant 0 : index
    %21 = vector.load %arg7[%c0_14, %c0_15] : memref<256x1xf32, #tpu.memory_space<vmem>>, vector<256x1xf32>
    %22 = vector.broadcast %21 : vector<256x1xf32> to vector<256x512xf32>
    %23 = arith.addf %20, %22 : vector<256x512xf32>
    %cst_16 = arith.constant 0.000000e+00 : f32
    %24 = vector.broadcast %cst_16 : f32 to vector<256x512xf32>
    %25 = arith.maximumf %23, %24 : vector<256x512xf32>
    %c0_17 = arith.constant 0 : index
    %c0_18 = arith.constant 0 : index
    %26 = vector.load %arg8[%c0_17, %c0_18] : memref<256x1xf32, #tpu.memory_space<vmem>>, vector<256x1xf32>
    %27 = vector.broadcast %26 : vector<256x1xf32> to vector<256x512xf32>
    %28 = arith.mulf %27, %25 : vector<256x512xf32>
    %cst_19 = arith.constant dense<0.000000e+00> : vector<512xf32>
    %29 = vector.multi_reduction <add>, %28, %cst_19 [0] : vector<256x512xf32> to vector<512xf32>
    %30 = vector.shape_cast %29 : vector<512xf32> to vector<1x512xf32>
    %c0_20 = arith.constant 0 : index
    %c0_21 = arith.constant 0 : index
    %31 = vector.load %arg9[%c0_20, %c0_21] : memref<1x1xf32, #tpu.memory_space<vmem>>, vector<1x1xf32>
    %32 = vector.broadcast %31 : vector<1x1xf32> to vector<1x512xf32>
    %33 = arith.addf %30, %32 : vector<1x512xf32>
    %c0_22 = arith.constant 0 : index
    %c0_23 = arith.constant 0 : index
    %34 = vector.load %arg10[%c0_22, %c0_23] : memref<1x512xf32, #tpu.memory_space<vmem>>, vector<1x512xf32>
    tpu.vector_store %arg10[%c0_22, %c0_23], %33 {strides = array<i32>} : memref<1x512xf32, #tpu.memory_space<vmem>>, vector<1x512xf32>,
    return
  }
  func.func @transform_0(%arg0: i32) -> (i32, i32) {
    %c0_i32 = arith.constant 0 : i32
    %c0_i32_0 = arith.constant 0 : i32
    return %c0_i32, %arg0 : i32, i32
  }
  func.func @transform_1(%arg0: i32) -> (i32, i32) {
    %c0_i32 = arith.constant 0 : i32
    %c0_i32_0 = arith.constant 0 : i32
    %c0_i32_1 = arith.constant 0 : i32
    return %c0_i32, %c0_i32_0 : i32, i32
  }
  func.func @transform_2(%arg0: i32) -> (i32, i32) {
    %c0_i32 = arith.constant 0 : i32
    %c0_i32_0 = arith.constant 0 : i32
    %c0_i32_1 = arith.constant 0 : i32
    return %c0_i32, %c0_i32_0 : i32, i32
  }
  func.func @transform_3(%arg0: i32) -> (i32, i32) {
    %c0_i32 = arith.constant 0 : i32
    %c0_i32_0 = arith.constant 0 : i32
    %c0_i32_1 = arith.constant 0 : i32
    return %c0_i32, %c0_i32_0 : i32, i32
  }
  func.func @transform_4(%arg0: i32) -> (i32, i32) {
    %c0_i32 = arith.constant 0 : i32
    %c0_i32_0 = arith.constant 0 : i32
    %c0_i32_1 = arith.constant 0 : i32
    return %c0_i32, %c0_i32_0 : i32, i32
  }
  func.func @transform_5(%arg0: i32) -> (i32, i32) {
    %c0_i32 = arith.constant 0 : i32
    %c0_i32_0 = arith.constant 0 : i32
    %c0_i32_1 = arith.constant 0 : i32
    return %c0_i32, %c0_i32_0 : i32, i32
  }
  func.func @transform_6(%arg0: i32) -> (i32, i32) {
    %c0_i32 = arith.constant 0 : i32
    %c0_i32_0 = arith.constant 0 : i32
    %c0_i32_1 = arith.constant 0 : i32
    return %c0_i32, %c0_i32_0 : i32, i32
  }
  func.func @transform_7(%arg0: i32) -> (i32, i32) {
    %c0_i32 = arith.constant 0 : i32
    %c0_i32_0 = arith.constant 0 : i32
    %c0_i32_1 = arith.constant 0 : i32
    return %c0_i32, %c0_i32_0 : i32, i32
  }
  func.func @transform_8(%arg0: i32) -> (i32, i32) {
    %c0_i32 = arith.constant 0 : i32
    %c0_i32_0 = arith.constant 0 : i32
    %c0_i32_1 = arith.constant 0 : i32
    return %c0_i32, %c0_i32_0 : i32, i32
  }
  func.func @transform_9(%arg0: i32) -> (i32, i32) {
    %c0_i32 = arith.constant 0 : i32
    %c0_i32_0 = arith.constant 0 : i32
    return %c0_i32, %arg0 : i32, i32
  }
}

module attributes {stable_mosaic.version = 11 : i64} {
  func.func @mlp_kernel(%arg0: i32, %arg1: memref<1x512xf32, #tpu.memory_space<vmem>>, %arg2: memref<256x1xf32, #tpu.memory_space<vmem>>, %arg3: memref<256x1xf32, #tpu.memory_space<vmem>>, %arg4: memref<256x256xbf16, #tpu.memory_space<vmem>>, %arg5: memref<256x1xf32, #tpu.memory_space<vmem>>, %arg6: memref<256x256xbf16, #tpu.memory_space<vmem>>, %arg7: memref<256x1xf32, #tpu.memory_space<vmem>>, %arg8: memref<256x1xf32, #tpu.memory_space<vmem>>, %arg9: memref<1x1xf32, #tpu.memory_space<vmem>>, %arg10: memref<1x512xf32, #tpu.memory_space<vmem>>) attributes {dimension_semantics = [#tpu.dimension_semantics<parallel>], iteration_bounds = array<i64: 1>, scalar_prefetch = 0 : i64, scratch_operands = 0 : i64, tpu.core_type = #tpu.core_type<tc>, window_params = [{transform_indices = @transform_0, window_bounds = array<i64: 1, 512>}, {pipeline_mode = #tpu.pipeline_mode<synchronous>, transform_indices = @transform_1, window_bounds = array<i64: 256, 1>}, {pipeline_mode = #tpu.pipeline_mode<synchronous>, transform_indices = @transform_2, window_bounds = array<i64: 256, 1>}, {pipeline_mode = #tpu.pipeline_mode<synchronous>, transform_indices = @transform_3, window_bounds = array<i64: 256, 256>}, {pipeline_mode = #tpu.pipeline_mode<synchronous>, transform_indices = @transform_4, window_bounds = array<i64: 256, 1>}, {pipeline_mode = #tpu.pipeline_mode<synchronous>, transform_indices = @transform_5, window_bounds = array<i64: 256, 256>}, {pipeline_mode = #tpu.pipeline_mode<synchronous>, transform_indices = @transform_6, window_bounds = array<i64: 256, 1>}, {pipeline_mode = #tpu.pipeline_mode<synchronous>, transform_indices = @transform_7, window_bounds = array<i64: 256, 1>}, {pipeline_mode = #tpu.pipeline_mode<synchronous>, transform_indices = @transform_8, window_bounds = array<i64: 1, 1>}, {transform_indices = @transform_9, window_bounds = array<i64: 1, 512>}]} {
    %c0 = arith.constant 0 : index
    %c0_0 = arith.constant 0 : index
    %0 = vector.load %arg1[%c0, %c0_0] : memref<1x512xf32, #tpu.memory_space<vmem>>, vector<1x512xf32>
    %c0_1 = arith.constant 0 : index
    %c0_2 = arith.constant 0 : index
    %1 = vector.load %arg2[%c0_1, %c0_2] : memref<256x1xf32, #tpu.memory_space<vmem>>, vector<256x1xf32>
    %2 = vector.broadcast %1 : vector<256x1xf32> to vector<256x512xf32>
    %3 = vector.broadcast %0 : vector<1x512xf32> to vector<256x512xf32>
    %4 = arith.mulf %2, %3 : vector<256x512xf32>
    %c0_3 = arith.constant 0 : index
    %c0_4 = arith.constant 0 : index
    %5 = vector.load %arg3[%c0_3, %c0_4] : memref<256x1xf32, #tpu.memory_space<vmem>>, vector<256x1xf32>
    %6 = vector.broadcast %5 : vector<256x1xf32> to vector<256x512xf32>
    %7 = arith.addf %4, %6 : vector<256x512xf32>
    %cst = arith.constant 0.000000e+00 : f32
    %8 = vector.broadcast %cst : f32 to vector<256x512xf32>
    %9 = arith.maximumf %7, %8 : vector<256x512xf32>
    %10 = arith.truncf %9 : vector<256x512xf32> to vector<256x512xbf16>
    %c0_5 = arith.constant 0 : index
    %c0_6 = arith.constant 0 : index
    %11 = vector.load %arg4[%c0_5, %c0_6] : memref<256x256xbf16, #tpu.memory_space<vmem>>, vector<256x256xbf16>
    %cst_7 = arith.constant dense<0.000000e+00> : vector<256x512xf32>
    %12 = tpu.matmul %11, %10, %cst_7 {dimension_numbers = #tpu.dot_dimension_numbers<[1], [0], [0], [1], [0, 0, 1, 1], [], []>} : vector<256x256xbf16>, vector<256x512xbf16>, vector<256x512xf32> -> vector<256x512xf32>
    %c0_8 = arith.constant 0 : index
    %c0_9 = arith.constant 0 : index
    %13 = vector.load %arg5[%c0_8, %c0_9] : memref<256x1xf32, #tpu.memory_space<vmem>>, vector<256x1xf32>
    %14 = vector.broadcast %13 : vector<256x1xf32> to vector<256x512xf32>
    %15 = arith.addf %12, %14 : vector<256x512xf32>
    %cst_10 = arith.constant 0.000000e+00 : f32
    %16 = vector.broadcast %cst_10 : f32 to vector<256x512xf32>
    %17 = arith.maximumf %15, %16 : vector<256x512xf32>
    %18 = arith.truncf %17 : vector<256x512xf32> to vector<256x512xbf16>
    %c0_11 = arith.constant 0 : index
    %c0_12 = arith.constant 0 : index
    %19 = vector.load %arg6[%c0_11, %c0_12] : memref<256x256xbf16, #tpu.memory_space<vmem>>, vector<256x256xbf16>
    %cst_13 = arith.constant dense<0.000000e+00> : vector<256x512xf32>
    %20 = tpu.matmul %19, %18, %cst_13 {dimension_numbers = #tpu.dot_dimension_numbers<[1], [0], [0], [1], [0, 0, 1, 1], [], []>} : vector<256x256xbf16>, vector<256x512xbf16>, vector<256x512xf32> -> vector<256x512xf32>
    %c0_14 = arith.constant 0 : index
    %c0_15 = arith.constant 0 : index
    %21 = vector.load %arg7[%c0_14, %c0_15] : memref<256x1xf32, #tpu.memory_space<vmem>>, vector<256x1xf32>
    %22 = vector.broadcast %21 : vector<256x1xf32> to vector<256x512xf32>
    %23 = arith.addf %20, %22 : vector<256x512xf32>
    %cst_16 = arith.constant 0.000000e+00 : f32
    %24 = vector.broadcast %cst_16 : f32 to vector<256x512xf32>
    %25 = arith.maximumf %23, %24 : vector<256x512xf32>
    %c0_17 = arith.constant 0 : index
    %c0_18 = arith.constant 0 : index
    %26 = vector.load %arg8[%c0_17, %c0_18] : memref<256x1xf32, #tpu.memory_space<vmem>>, vector<256x1xf32>
    %27 = vector.broadcast %26 : vector<256x1xf32> to vector<256x512xf32>
    %28 = arith.mulf %27, %25 : vector<256x512xf32>
    %cst_19 = arith.constant dense<0.000000e+00> : vector<512xf32>
    %29 = vector.multi_reduction <add>, %28, %cst_19 [0] : vector<256x512xf32> to vector<512xf32>
    %30 = vector.shape_cast %29 : vector<512xf32> to vector<1x512xf32>
    %c0_20 = arith.constant 0 : index
    %c0_21 = arith.constant 0 : index
    %31 = vector.load %arg9[%c0_20, %c0_21] : memref<1x1xf32, #tpu.memory_space<vmem>>, vector<1x1xf32>
    %32 = vector.broadcast %31 : vector<1x1xf32> to vector<1x512xf32>
    %33 = arith.addf %30, %32 : vector<1x512xf32>
    %c0_22 = arith.constant 0 : index
    %c0_23 = arith.constant 0 : index
    %34 = vector.load %arg10[%c0_22, %c0_23] : memref<1x512xf32, #tpu.memory_space<vmem>>, vector<1x512xf32>
    tpu.vector_store %arg10[%c0_22, %c0_23], %33 {strides = array<i32>} : memref<1x512xf32, #tpu.memory_space<vmem>>, vector<1x512xf32>,
    return
  }
  func.func @transform_0(%arg0: i32) -> (i32, i32) {
    %c0_i32 = arith.constant 0 : i32
    %c0_i32_0 = arith.constant 0 : i32
    return %c0_i32, %arg0 : i32, i32
  }
  func.func @transform_1(%arg0: i32) -> (i32, i32) {
    %c0_i32 = arith.constant 0 : i32
    %c0_i32_0 = arith.constant 0 : i32
    %c0_i32_1 = arith.constant 0 : i32
    return %c0_i32, %c0_i32_0 : i32, i32
  }
  func.func @transform_2(%arg0: i32) -> (i32, i32) {
    %c0_i32 = arith.constant 0 : i32
    %c0_i32_0 = arith.constant 0 : i32
    %c0_i32_1 = arith.constant 0 : i32
    return %c0_i32, %c0_i32_0 : i32, i32
  }
  func.func @transform_3(%arg0: i32) -> (i32, i32) {
    %c0_i32 = arith.constant 0 : i32
    %c0_i32_0 = arith.constant 0 : i32
    %c0_i32_1 = arith.constant 0 : i32
    return %c0_i32, %c0_i32_0 : i32, i32
  }
  func.func @transform_4(%arg0: i32) -> (i32, i32) {
    %c0_i32 = arith.constant 0 : i32
    %c0_i32_0 = arith.constant 0 : i32
    %c0_i32_1 = arith.constant 0 : i32
    return %c0_i32, %c0_i32_0 : i32, i32
  }
  func.func @transform_5(%arg0: i32) -> (i32, i32) {
    %c0_i32 = arith.constant 0 : i32
    %c0_i32_0 = arith.constant 0 : i32
    %c0_i32_1 = arith.constant 0 : i32
    return %c0_i32, %c0_i32_0 : i32, i32
  }
  func.func @transform_6(%arg0: i32) -> (i32, i32) {
    %c0_i32 = arith.constant 0 : i32
    %c0_i32_0 = arith.constant 0 : i32
    %c0_i32_1 = arith.constant 0 : i32
    return %c0_i32, %c0_i32_0 : i32, i32
  }
  func.func @transform_7(%arg0: i32) -> (i32, i32) {
    %c0_i32 = arith.constant 0 : i32
    %c0_i32_0 = arith.constant 0 : i32
    %c0_i32_1 = arith.constant 0 : i32
    return %c0_i32, %c0_i32_0 : i32, i32
  }
  func.func @transform_8(%arg0: i32) -> (i32, i32) {
    %c0_i32 = arith.constant 0 : i32
    %c0_i32_0 = arith.constant 0 : i32
    %c0_i32_1 = arith.constant 0 : i32
    return %c0_i32, %c0_i32_0 : i32, i32
  }
  func.func @transform_9(%arg0: i32) -> (i32, i32) {
    %c0_i32 = arith.constant 0 : i32
    %c0_i32_0 = arith.constant 0 : i32
    return %c0_i32, %arg0 : i32, i32
  }
}

</mosaic_0001>

<bundles_post_ra>
// kernel: tpu_custom_call.1
= control target key start
LH: loop header
LB: loop body
LE: loop exit
PB: predicated region body
PF: predicated region fallthrough
CT: control target
= control target key end

     0   :  { %s4438_s0 = inlined_call_operand.hbm [shape: f32[1,512], index: 0, kind: input, shape index: {}]   ;;  %s4439_s1 = inlined_call_operand.hbm [shape: f32[256,1], index: 1, kind: input, shape index: {}]   ;;  %s4440_s2 = inlined_call_operand.hbm [shape: f32[256,1], index: 2, kind: input, shape index: {}]   ;;  %s4441_s3 = inlined_call_operand.hbm [shape: bf16[256,256], index: 3, kind: input, shape index: {}]   ;;  %s4442_s4 = inlined_call_operand.hbm [shape: f32[256,1], index: 4, kind: input, shape index: {}]   ;;  %s4443_s5 = inlined_call_operand.hbm [shape: bf16[256,256], index: 5, kind: input, shape index: {}]   ;;  %s4444_s6 = inlined_call_operand.hbm [shape: f32[256,1], index: 6, kind: input, shape index: {}]   ;;  %s4445_s7 = inlined_call_operand.hbm [shape: f32[256,1], index: 7, kind: input, shape index: {}]   ;;  %s4446_s8 = inlined_call_operand.<no memory space> [shape: f32[1,1], index: 8, kind: input, shape index: {}]   ;;  %s4447_s9 = inlined_call_operand.hbm [shape: f32[1,512], index: 9, kind: output, shape index: {}]  }
   0x1   :  { %v14_v0 = vstv %s4446_s8 }
   0x2   :  { %15 = vst [vmem:[#allocation2] sm:$0x1] %v14_v0 }
   0x3   :  { %16 = vsyncpa [#allocation4], 0 }
   0x4   :  { %17 = vsyncpa [#allocation7], 0 }
   0x5   :  { %18 = vsyncpa [#allocation10], 0 }
   0x6   :  { %19 = vsyncpa [#allocation13], 0 }
   0x7   :  { %20 = vsyncpa [#allocation16], 0 }
   0x8   :  { %21 = vsyncpa [#allocation5], 0  ;;  %s3776_s11 = smov [#allocation6]   ;;  %s3566_s15 = scalar_lea.hbm %s4439_s1, 4096 }
   0x9   :  { %s37_s12 = sshll.u32 %s3776_s11, 4  ;;  %p3567_p0 = scmp.ne.s32.totalorder %s4439_s1, %s3566_s15  ;;  %s38_s12 = int_to_ptr.vmem [resolvable:$true] %s37_s12 }
   0xa   :  { %p3570_p1 = scmp.lt.u32.totalorder %s3566_s15, %s4439_s1 }
   0xc   :  { %p3572_p2 = pnand %p3570_p1, %p3567_p0 }
   0xe   :  { %3575 = shalt.err (!%p3572_p2)
}
   0xf   :  { %s3576_s19 = scalar_lea.vmem %s38_s12, 4096  ;;  %p3581_p4 = scmp.lt.s32.totalorder %s38_s12, %s38_s12 }
  0x10   :  { %p3577_p3 = scmp.ne.s32.totalorder %s38_s12, %s3576_s19  ;;  %p3582_p5 = scmp.lt.s32.totalorder %s3576_s19, %s3576_s19 }
  0x12   :  { %p3583_p6 = por %p3582_p5, %p3581_p4 }
  0x14   :  { %p3584_p7 = pnand %p3583_p6, %p3577_p3 }
  0x16   :  { %3587 = shalt.err (!%p3584_p7)
}
  0x17   :  { %s3777_s20 = smov 128   ;;  %s3778_s21 = smov 8  }
  0x18   :  { %43 = dma.hbm_to_vmem [thread:$0]  %s4439_s1, 4096, %s38_s12, [#allocation7], %s3777_s20, %s3777_s20, %s3778_s21  }
  0x19   :  { %s3779_s24 = smov [#allocation9]   ;;  %s3780_s26 = smov [#allocation12]  }
  0x1a   :  { %s61_s25 = sshll.u32 %s3779_s24, 4  ;;  %s85_s27 = sshll.u32 %s3780_s26, 4  ;;  %s62_s25 = int_to_ptr.vmem [resolvable:$true] %s61_s25  ;;  %s86_s27 = int_to_ptr.vmem [resolvable:$true] %s85_s27 }
  0x1b   :  { %s3588_s30 = scalar_lea.hbm %s4441_s3, 4096 }
  0x1c   :  { %p3589_p8 = scmp.ne.s32.totalorder %s4441_s3, %s3588_s30  ;;  %p3592_p9 = scmp.lt.u32.totalorder %s3588_s30, %s4441_s3 }
  0x1e   :  { %p3594_p10 = pnand %p3592_p9, %p3589_p8 }
  0x20   :  { %3597 = shalt.err (!%p3594_p10)
}
  0x21   :  { %s3598_s1 = scalar_lea.vmem %s62_s25, 4096  ;;  %p3603_p12 = scmp.lt.s32.totalorder %s62_s25, %s62_s25 }
  0x22   :  { %p3599_p11 = scmp.ne.s32.totalorder %s62_s25, %s3598_s1  ;;  %p3604_p13 = scmp.lt.s32.totalorder %s3598_s1, %s3598_s1 }
  0x24   :  { %p3605_p0 = por %p3604_p13, %p3603_p12 }
  0x26   :  { %p3606_p1 = pnand %p3605_p0, %p3599_p11 }
  0x28   :  { %3609 = shalt.err (!%p3606_p1)
}
  0x29   :  { %67 = dma.hbm_to_vmem [thread:$0]  %s4441_s3, 4096, %s62_s25, [#allocation10], %s3777_s20, %s3777_s20, %s3778_s21  }
  0x2a   :  { %s3610_s18 = scalar_lea.hbm %s4443_s5, 4096 }
  0x2b   :  { %p3611_p2 = scmp.ne.s32.totalorder %s4443_s5, %s3610_s18  ;;  %p3614_p3 = scmp.lt.u32.totalorder %s3610_s18, %s4443_s5 }
  0x2d   :  { %p3616_p4 = pnand %p3614_p3, %p3611_p2 }
  0x2f   :  { %3619 = shalt.err (!%p3616_p4)
}
  0x30   :  { %s3620_s24 = scalar_lea.vmem %s86_s27, 4096  ;;  %p3625_p6 = scmp.lt.s32.totalorder %s86_s27, %s86_s27 }
  0x31   :  { %p3621_p5 = scmp.ne.s32.totalorder %s86_s27, %s3620_s24  ;;  %p3626_p7 = scmp.lt.s32.totalorder %s3620_s24, %s3620_s24 }
  0x33   :  { %p3627_p8 = por %p3626_p7, %p3625_p6 }
  0x35   :  { %p3628_p9 = pnand %p3627_p8, %p3621_p5 }
  0x37   :  { %3631 = shalt.err (!%p3628_p9)
}
  0x38   :  { %91 = dma.hbm_to_vmem [thread:$0]  %s4443_s5, 4096, %s86_s27, [#allocation13], %s3777_s20, %s3777_s20, %s3778_s21  }
  0x39   :  { %s3781_s26 = smov [#allocation3]   ;;  %s3782_s29 = smov [#allocation8]  }
  0x3a   :  { %s28_s28 = sshll.u32 %s3781_s26, 4  ;;  %s49_s30 = sshll.u32 %s3782_s29, 4  ;;  %s29_s28 = int_to_ptr.vmem [resolvable:$true] %s28_s28  ;;  %s50_s30 = int_to_ptr.vmem [resolvable:$true] %s49_s30 }
  0x3b   :  { %s3632_s13 = scalar_lea.hbm %s4438_s0, 64 }
  0x3c   :  { %p3633_p10 = scmp.ne.s32.totalorder %s4438_s0, %s3632_s13  ;;  %p3636_p11 = scmp.lt.u32.totalorder %s3632_s13, %s4438_s0 }
  0x3e   :  { %p3638_p12 = pnand %p3636_p11, %p3633_p10 }
  0x40   :  { %3641 = shalt.err (!%p3638_p12)
}
  0x41   :  { %s3642_s5 = scalar_lea.vmem %s29_s28, 64  ;;  %p3647_p0 = scmp.lt.s32.totalorder %s29_s28, %s29_s28 }
  0x42   :  { %p3643_p13 = scmp.ne.s32.totalorder %s29_s28, %s3642_s5  ;;  %p3648_p1 = scmp.lt.s32.totalorder %s3642_s5, %s3642_s5 }
  0x44   :  { %p3649_p2 = por %p3648_p1, %p3647_p0 }
  0x46   :  { %p3650_p3 = pnand %p3649_p2, %p3643_p13 }
  0x48   :  { %3653 = shalt.err (!%p3650_p3)
}
  0x49   :  { %31 = dma.hbm_to_vmem [thread:$0]  %s4438_s0, 64, %s29_s28, [#allocation4]  }
  0x4a   :  { %s3654_s8 = scalar_lea.hbm %s4440_s2, 4096 }
  0x4b   :  { %p3655_p4 = scmp.ne.s32.totalorder %s4440_s2, %s3654_s8  ;;  %p3658_p5 = scmp.lt.u32.totalorder %s3654_s8, %s4440_s2 }
  0x4d   :  { %p3660_p6 = pnand %p3658_p5, %p3655_p4 }
  0x4f   :  { %3663 = shalt.err (!%p3660_p6)
}
  0x50   :  { %s3664_s3 = scalar_lea.vmem %s50_s30, 4096  ;;  %p3669_p8 = scmp.lt.s32.totalorder %s50_s30, %s50_s30 }
  0x51   :  { %p3665_p7 = scmp.ne.s32.totalorder %s50_s30, %s3664_s3  ;;  %p3670_p9 = scmp.lt.s32.totalorder %s3664_s3, %s3664_s3 }
  0x53   :  { %p3671_p10 = por %p3670_p9, %p3669_p8 }
  0x55   :  { %p3672_p11 = pnand %p3671_p10, %p3665_p7 }
  0x57   :  { %3675 = shalt.err (!%p3672_p11)
}
  0x58   :  { %55 = dma.hbm_to_vmem [thread:$0]  %s4440_s2, 4096, %s50_s30, [#allocation7], %s3777_s20, %s3777_s20, %s3778_s21  }
  0x59   :  { %s3783_s26 = smov [#allocation11]   ;;  %s3784_s29 = smov [#allocation14]  }
  0x5a   :  { %s73_s28 = sshll.u32 %s3783_s26, 4  ;;  %s97_s10 = sshll.u32 %s3784_s29, 4  ;;  %s74_s28 = int_to_ptr.vmem [resolvable:$true] %s73_s28  ;;  %s98_s10 = int_to_ptr.vmem [resolvable:$true] %s97_s10 }
  0x5b   :  { %s3676_s14 = scalar_lea.hbm %s4442_s4, 4096 }
  0x5c   :  { %p3677_p12 = scmp.ne.s32.totalorder %s4442_s4, %s3676_s14  ;;  %p3680_p13 = scmp.lt.u32.totalorder %s3676_s14, %s4442_s4 }
  0x5e   :  { %p3682_p0 = pnand %p3680_p13, %p3677_p12 }
  0x60   :  { %3685 = shalt.err (!%p3682_p0)
}
  0x61   :  { %s3686_s2 = scalar_lea.vmem %s74_s28, 4096  ;;  %p3691_p2 = scmp.lt.s32.totalorder %s74_s28, %s74_s28 }
  0x62   :  { %p3687_p1 = scmp.ne.s32.totalorder %s74_s28, %s3686_s2  ;;  %p3692_p3 = scmp.lt.s32.totalorder %s3686_s2, %s3686_s2 }
  0x64   :  { %p3693_p4 = por %p3692_p3, %p3691_p2 }
  0x66   :  { %p3694_p5 = pnand %p3693_p4, %p3687_p1 }
  0x68   :  { %3697 = shalt.err (!%p3694_p5)
}
  0x69   :  { %79 = dma.hbm_to_vmem [thread:$0]  %s4442_s4, 4096, %s74_s28, [#allocation10], %s3777_s20, %s3777_s20, %s3778_s21  }
  0x6a   :  { %s3698_s18 = scalar_lea.hbm %s4444_s6, 4096 }
  0x6b   :  { %p3699_p6 = scmp.ne.s32.totalorder %s4444_s6, %s3698_s18  ;;  %p3702_p7 = scmp.lt.u32.totalorder %s3698_s18, %s4444_s6 }
  0x6d   :  { %p3704_p8 = pnand %p3702_p7, %p3699_p6 }
  0x6f   :  { %3707 = shalt.err (!%p3704_p8)
}
  0x70   :  { %s3708_s24 = scalar_lea.vmem %s98_s10, 4096  ;;  %p3713_p10 = scmp.lt.s32.totalorder %s98_s10, %s98_s10 }
  0x71   :  { %p3709_p9 = scmp.ne.s32.totalorder %s98_s10, %s3708_s24  ;;  %p3714_p11 = scmp.lt.s32.totalorder %s3708_s24, %s3708_s24 }
  0x73   :  { %p3715_p12 = por %p3714_p11, %p3713_p10 }
  0x75   :  { %p3716_p13 = pnand %p3715_p12, %p3709_p9 }
  0x77   :  { %3719 = shalt.err (!%p3716_p13)
}
  0x78   :  { %103 = dma.hbm_to_vmem [thread:$0]  %s4444_s6, 4096, %s98_s10, [#allocation13], %s3777_s20, %s3777_s20, %s3778_s21  }
  0x79   :  { %s3785_s0 = smov [#allocation15]   ;;  %s3720_s29 = scalar_lea.hbm %s4445_s7, 4096 }
  0x7a   :  { %s109_s25 = sshll.u32 %s3785_s0, 4  ;;  %p3721_p0 = scmp.ne.s32.totalorder %s4445_s7, %s3720_s29  ;;  %s110_s25 = int_to_ptr.vmem [resolvable:$true] %s109_s25 }
  0x7b   :  { %p3724_p1 = scmp.lt.u32.totalorder %s3720_s29, %s4445_s7 }
  0x7d   :  { %p3726_p2 = pnand %p3724_p1, %p3721_p0 }
  0x7f   :  { %3729 = shalt.err (!%p3726_p2)
}
  0x80   :  { %s3730_s12 = scalar_lea.vmem %s110_s25, 4096  ;;  %p3735_p4 = scmp.lt.s32.totalorder %s110_s25, %s110_s25 }
  0x81   :  { %p3731_p3 = scmp.ne.s32.totalorder %s110_s25, %s3730_s12  ;;  %p3736_p5 = scmp.lt.s32.totalorder %s3730_s12, %s3730_s12 }
  0x83   :  { %p3737_p6 = por %p3736_p5, %p3735_p4 }
  0x85   :  { %p3738_p7 = pnand %p3737_p6, %p3731_p3 }
  0x87   :  { %3741 = shalt.err (!%p3738_p7)
}
  0x88   :  { %115 = dma.hbm_to_vmem [thread:$0]  %s4445_s7, 4096, %s110_s25, [#allocation16], %s3777_s20, %s3777_s20, %s3778_s21  }
  0x89   :  { %3764 = dma.done.wait [#allocation4], 64  }
  0x8a   :  { %3765 = vsyncadd [#allocation4], 4294967232 }
  0x8b   :  { %3766 = dma.done.wait [#allocation7], 8192  }
  0x8c   :  { %3767 = vsyncadd [#allocation7], 4294959104 }
  0x8d   :  { %3768 = dma.done.wait [#allocation10], 8192  }
  0x8e   :  { %3769 = vsyncadd [#allocation10], 4294959104 }
  0x8f   :  { %3770 = dma.done.wait [#allocation13], 8192  }
  0x90   :  { %3771 = vsyncadd [#allocation13], 4294959104 }
  0x91   :  { %3772 = dma.done.wait [#allocation16], 4096  }
  0x92   :  { %3773 = vsyncadd [#allocation16], 4294963200  ;;  %v3786_v1 = vmov 0   ;;  %v484_v2 = vld [vmem:[#allocation8] sm:$0xff]  ;;  %v485_v4 = vld [vmem:[#allocation8 + $0x8] sm:$0xff]  ;;  %v336_v60 = vlaneseq  ;;  %s3788_s7 = smov [#allocation17]  }
  0x93   :  { %3469 = vset.pattern.permute.xlu1 %v3786_v1  ;;  %3468 = vset.pattern.permute.xlu0 %v3786_v1  ;;  %v143_v3 = vld [vmem:[#allocation6] sm:$0xff]  ;;  %v144_v5 = vld [vmem:[#allocation6 + $0x8] sm:$0xff]  ;;  %v146_v6 = vld [vmem:[#allocation6 + $0x18] sm:$0xff]  ;;  %s3378_s20 = sshll.u32 %s3788_s7, 4  ;;  %s3379_s20 = int_to_ptr.vmem [resolvable:$true] %s3378_s20 }
  0x94   :  { %518 = vperm.xlu1 %3469, %v484_v2   ;;  %177 = vperm.xlu0 %3468, %v143_v3   ;;  %v145_v7 = vld [vmem:[#allocation6 + $0x10] sm:$0xff]  ;;  %v487_v8 = vld [vmem:[#allocation8 + $0x18] sm:$0xff]  ;;  %v148_v10 = vld [vmem:[#allocation6 + $0x28] sm:$0xff]  ;;  %v3960_v63 = vshrl.u32 %v336_v60, 7  ;;  %vm3369_vm0 = vcmp.lt.s32.totalorder %v336_v60, 512  ;;  %s3742_s21 = scalar_lea.vmem %s3379_s20, 64  ;;  %p3747_p9 = scmp.lt.s32.totalorder %s3379_s20, %s3379_s20 }
  0x95   :  { %v486_v9 = vld [vmem:[#allocation8 + $0x10] sm:$0xff]  ;;  %v147_v11 = vld [vmem:[#allocation6 + $0x20] sm:$0xff]  ;;  %v489_v12 = vld [vmem:[#allocation8 + $0x28] sm:$0xff]  ;;  %p3743_p8 = scmp.ne.s32.totalorder %s3379_s20, %s3742_s21  ;;  %p3748_p10 = scmp.lt.s32.totalorder %s3742_s21, %s3742_s21 }
  0x96   :  { %v488_v13 = vld [vmem:[#allocation8 + $0x20] sm:$0xff]  ;;  %v150_v14 = vld [vmem:[#allocation6 + $0x38] sm:$0xff]  ;;  %v149_v15 = vld [vmem:[#allocation6 + $0x30] sm:$0xff]  ;;  %v342_v2 = vsub.s32 1, %v3960_v63  ;;  %v350_v3 = vsub.s32 3, %v3960_v63 }
  0x97   :  { %v491_v16 = vld [vmem:[#allocation8 + $0x38] sm:$0xff]  ;;  %v490_v17 = vld [vmem:[#allocation8 + $0x30] sm:$0xff]  ;;  %v152_v18 = vld [vmem:[#allocation6 + $0x48] sm:$0xff]  ;;  %p3749_p11 = por %p3748_p10, %p3747_p9 }
  0x98   :  { %523 = vperm.xlu1 %3469, %v485_v4   ;;  %182 = vperm.xlu0 %3468, %v144_v5   ;;  %v151_v19 = vld [vmem:[#allocation6 + $0x40] sm:$0xff]  ;;  %v493_v20 = vld [vmem:[#allocation8 + $0x48] sm:$0xff]  ;;  %v154_v22 = vld [vmem:[#allocation6 + $0x58] sm:$0xff]  ;;  %v338_v4 = vsub.s32 0, %v3960_v63 }
  0x99   :  { %v492_v21 = vld [vmem:[#allocation8 + $0x40] sm:$0xff]  ;;  %v153_v23 = vld [vmem:[#allocation6 + $0x50] sm:$0xff]  ;;  %v495_v24 = vld [vmem:[#allocation8 + $0x58] sm:$0xff]  ;;  %p3750_p12 = pnand %p3749_p11, %p3743_p8 }
  0x9a   :  { %v494_v25 = vld [vmem:[#allocation8 + $0x50] sm:$0xff]  ;;  %v156_v26 = vld [vmem:[#allocation6 + $0x68] sm:$0xff]  ;;  %v155_v27 = vld [vmem:[#allocation6 + $0x60] sm:$0xff] }
  0x9b   :  { %v497_v28 = vld [vmem:[#allocation8 + $0x68] sm:$0xff]  ;;  %v496_v29 = vld [vmem:[#allocation8 + $0x60] sm:$0xff]  ;;  %v158_v30 = vld [vmem:[#allocation6 + $0x78] sm:$0xff] }
  0x9c   :  { %192 = vperm.xlu1 %3469, %v146_v6   ;;  %187 = vperm.xlu0 %3468, %v145_v7   ;;  %v157_v31 = vld [vmem:[#allocation6 + $0x70] sm:$0xff]  ;;  %v499_v32 = vld [vmem:[#allocation8 + $0x78] sm:$0xff]  ;;  %v160_v34 = vld [vmem:[#allocation6 + $0x88] sm:$0xff] }
  0x9d   :  { %v498_v33 = vld [vmem:[#allocation8 + $0x70] sm:$0xff]  ;;  %v159_v35 = vld [vmem:[#allocation6 + $0x80] sm:$0xff]  ;;  %v501_v36 = vld [vmem:[#allocation8 + $0x88] sm:$0xff] }
  0x9e   :  { %v500_v37 = vld [vmem:[#allocation8 + $0x80] sm:$0xff]  ;;  %v162_v38 = vld [vmem:[#allocation6 + $0x98] sm:$0xff]  ;;  %v161_v39 = vld [vmem:[#allocation6 + $0x90] sm:$0xff] }
  0x9f   :  { %v503_v40 = vld [vmem:[#allocation8 + $0x98] sm:$0xff]  ;;  %v502_v41 = vld [vmem:[#allocation8 + $0x90] sm:$0xff]  ;;  %v164_v42 = vld [vmem:[#allocation6 + $0xa8] sm:$0xff] }
  0xa0   :  { %533 = vperm.xlu1 %3469, %v487_v8   ;;  %528 = vperm.xlu0 %3468, %v486_v9   ;;  %v163_v43 = vld [vmem:[#allocation6 + $0xa0] sm:$0xff]  ;;  %v505_v44 = vld [vmem:[#allocation8 + $0xa8] sm:$0xff]  ;;  %v166_v46 = vld [vmem:[#allocation6 + $0xb8] sm:$0xff]  ;;  %v346_v8 = vsub.s32 2, %v3960_v63 }
  0xa1   :  { %v504_v45 = vld [vmem:[#allocation8 + $0xa0] sm:$0xff]  ;;  %v165_v47 = vld [vmem:[#allocation6 + $0xb0] sm:$0xff]  ;;  %v507_v48 = vld [vmem:[#allocation8 + $0xb8] sm:$0xff] }
  0xa2   :  { %v506_v49 = vld [vmem:[#allocation8 + $0xb0] sm:$0xff]  ;;  %v168_v50 = vld [vmem:[#allocation6 + $0xc8] sm:$0xff]  ;;  %v167_v51 = vld [vmem:[#allocation6 + $0xc0] sm:$0xff] }
  0xa3   :  { %v509_v52 = vld [vmem:[#allocation8 + $0xc8] sm:$0xff]  ;;  %v508_v53 = vld [vmem:[#allocation8 + $0xc0] sm:$0xff]  ;;  %v170_v54 = vld [vmem:[#allocation6 + $0xd8] sm:$0xff] }
  0xa4   :  { %202 = vperm.xlu1 %3469, %v148_v10   ;;  %197 = vperm.xlu0 %3468, %v147_v11   ;;  %v169_v55 = vld [vmem:[#allocation6 + $0xd0] sm:$0xff]  ;;  %v511_v56 = vld [vmem:[#allocation8 + $0xd8] sm:$0xff]  ;;  %v172_v58 = vld [vmem:[#allocation6 + $0xe8] sm:$0xff] }
  0xa5   :  { %v510_v57 = vld [vmem:[#allocation8 + $0xd0] sm:$0xff]  ;;  %v171_v59 = vld [vmem:[#allocation6 + $0xe0] sm:$0xff]  ;;  %v513_v61 = vld [vmem:[#allocation8 + $0xe8] sm:$0xff] }
  0xa6   :  { %v512_v62 = vld [vmem:[#allocation8 + $0xe0] sm:$0xff]  ;;  %v174_v0 = vld [vmem:[#allocation6 + $0xf8] sm:$0xff]  ;;  %v173_v1 = vld [vmem:[#allocation6 + $0xf0] sm:$0xff] }
  0xa7   :  { %v515_v5 = vld [vmem:[#allocation8 + $0xf8] sm:$0xff]  ;;  %v514_v6 = vld [vmem:[#allocation8 + $0xf0] sm:$0xff] }
  0xa8   :  { %543 = vperm.xlu1 %3469, %v489_v12   ;;  %538 = vperm.xlu0 %3468, %v488_v13   ;;  %v142_v7 = vld [vmem:[#allocation3] sm:$0xf]  ;;  %v1029_v12 = vld [vmem:[#allocation11 + $0x8] sm:$0xff]  ;;  %v1028_v13 = vld [vmem:[#allocation11] sm:$0xff] }
  0xa9   :  { %v3966_v9 = vrot.slane %v142_v7, %v342_v2  ;;  %v3968_v10 = vrot.slane %v142_v7, %v350_v3  ;;  %v3972_v11 = vrot.slane %v142_v7, %v338_v4 }
  0xac   :  { %212 = vperm.xlu1 %3469, %v150_v14   ;;  %207 = vperm.xlu0 %3468, %v149_v15   ;;  %v3974_v14 = vrot.slane %v142_v7, %v346_v8  ;;  %v1037_v8 = vld [vmem:[#allocation11 + $0x48] sm:$0xff] }
  0xb0   :  { %553 = vperm.xlu1 %3469, %v491_v16   ;;  %548 = vperm.xlu0 %3468, %v490_v17  }
  0xb4   :  { %222 = vperm.xlu1 %3469, %v152_v18   ;;  %217 = vperm.xlu0 %3468, %v151_v19  }
  0xb8   :  { %563 = vperm.xlu1 %3469, %v493_v20   ;;  %558 = vperm.xlu0 %3468, %v492_v21   ;;  %v1031_v20 = vld [vmem:[#allocation11 + $0x18] sm:$0xff]  ;;  %v1030_v21 = vld [vmem:[#allocation11 + $0x10] sm:$0xff] }
  0xbc   :  { %232 = vperm.xlu1 %3469, %v154_v22   ;;  %227 = vperm.xlu0 %3468, %v153_v23  }
  0xc0   :  { %573 = vperm.xlu1 %3469, %v495_v24   ;;  %568 = vperm.xlu0 %3468, %v494_v25  }
  0xc4   :  { %242 = vperm.xlu1 %3469, %v156_v26   ;;  %237 = vperm.xlu0 %3468, %v155_v27  }
  0xc8   :  { %583 = vperm.xlu1 %3469, %v497_v28   ;;  %578 = vperm.xlu0 %3468, %v496_v29  }
  0xcc   :  { %252 = vperm.xlu1 %3469, %v158_v30   ;;  %247 = vperm.xlu0 %3468, %v157_v31   ;;  %v1033_v31 = vld [vmem:[#allocation11 + $0x28] sm:$0xff] }
  0xd0   :  { %593 = vperm.xlu1 %3469, %v499_v32   ;;  %588 = vperm.xlu0 %3468, %v498_v33   ;;  %v1032_v32 = vld [vmem:[#allocation11 + $0x20] sm:$0xff] }
  0xd4   :  { %262 = vperm.xlu1 %3469, %v160_v34   ;;  %257 = vperm.xlu0 %3468, %v159_v35  }
  0xd8   :  { %603 = vperm.xlu1 %3469, %v501_v36   ;;  %598 = vperm.xlu0 %3468, %v500_v37  }
  0xdc   :  { %272 = vperm.xlu1 %3469, %v162_v38   ;;  %267 = vperm.xlu0 %3468, %v161_v39   ;;  %v3472_v39 = vld [vmem:[#allocation9 + $0x4] ss:$8 sps:$4 sm:$0xff]  }
  0xdd   :  { %1412 = vmatprep.mubr.bf16.mxu0 %v3472_v39  ;;  %1605 = vmatprep.mubr.bf16.mxu1 %v3472_v39 }
  0xe0   :  { %613 = vperm.xlu1 %3469, %v503_v40   ;;  %608 = vperm.xlu0 %3468, %v502_v41  }
  0xe4   :  { %282 = vperm.xlu1 %3469, %v164_v42   ;;  %277 = vperm.xlu0 %3468, %v163_v43  }
  0xe8   :  { %623 = vperm.xlu1 %3469, %v505_v44   ;;  %618 = vperm.xlu0 %3468, %v504_v45  }
  0xec   :  { %292 = vperm.xlu1 %3469, %v166_v46   ;;  %287 = vperm.xlu0 %3468, %v165_v47  }
  0xf0   :  { %633 = vperm.xlu1 %3469, %v507_v48   ;;  %628 = vperm.xlu0 %3468, %v506_v49  }
  0xf4   :  { %302 = vperm.xlu1 %3469, %v168_v50   ;;  %297 = vperm.xlu0 %3468, %v167_v51   ;;  %v1035_v50 = vld [vmem:[#allocation11 + $0x38] sm:$0xff]  ;;  %v1034_v51 = vld [vmem:[#allocation11 + $0x30] sm:$0xff] }
  0xf8   :  { %643 = vperm.xlu1 %3469, %v509_v52   ;;  %638 = vperm.xlu0 %3468, %v508_v53  }
  0xfc   :  { %312 = vperm.xlu1 %3469, %v170_v54   ;;  %307 = vperm.xlu0 %3468, %v169_v55  }
 0x100   :  { %653 = vperm.xlu1 %3469, %v511_v56   ;;  %648 = vperm.xlu0 %3468, %v510_v57  }
 0x104   :  { %322 = vperm.xlu1 %3469, %v172_v58   ;;  %317 = vperm.xlu0 %3468, %v171_v59  }
 0x108   :  { %663 = vperm.xlu1 %3469, %v513_v61   ;;  %658 = vperm.xlu0 %3468, %v512_v62  }
 0x10c   :  { %332 = vperm.xlu1 %3469, %v174_v0   ;;  %327 = vperm.xlu0 %3468, %v173_v1  }
 0x110   :  { %673 = vperm.xlu1 %3469, %v515_v5   ;;  %668 = vperm.xlu0 %3468, %v514_v6  }
 0x113   :  { %v519_v15 = vpop.permute.xlu1 %518  ;;  %v178_v16 = vpop.permute.xlu0 %177 }
 0x114   :  { %1067 = vperm.xlu1 %3469, %v1029_v12   ;;  %1062 = vperm.xlu0 %3468, %v1028_v13   ;;  %v357_v17 = vmul.f32 %v3966_v9, %v178_v16  ;;  %v359_v18 = vmul.f32 %v3968_v10, %v178_v16  ;;  %v356_v19 = vmul.f32 %v3972_v11, %v178_v16  ;;  %v1036_v12 = vld [vmem:[#allocation11 + $0x40] sm:$0xff] }
 0x115   :  { %v358_v22 = vmul.f32 %v3974_v14, %v178_v16 }
 0x116   :  { %v677_v23 = vadd.f32 %v519_v15, %v357_v17  ;;  %v679_v24 = vadd.f32 %v519_v15, %v359_v18  ;;  %v676_v27 = vadd.f32 %v519_v15, %v356_v19 }
 0x117   :  { %v524_v25 = vpop.permute.xlu1 %523  ;;  %v183_v26 = vpop.permute.xlu0 %182  ;;  %v678_v28 = vadd.f32 %v519_v15, %v358_v22 }
 0x118   :  { %1077 = vperm.xlu1 %3469, %v1031_v20   ;;  %1072 = vperm.xlu0 %3468, %v1030_v21   ;;  %v361_v29 = vmul.f32 %v3966_v9, %v183_v26  ;;  %v363_v30 = vmul.f32 %v3968_v10, %v183_v26  ;;  %v360_v33 = vmul.f32 %v3972_v11, %v183_v26  ;;  %v805_v36 = vmax.f32 %v677_v23, 0.0 }
 0x119   :  { %v362_v34 = vmul.f32 %v3974_v14, %v183_v26  ;;  %v807_v38 = vmax.f32 %v679_v24, 0.0  ;;  %v804_v43 = vmax.f32 %v676_v27, 0.0  ;;  %v806_v45 = vmax.f32 %v678_v28, 0.0 }
 0x11a   :  { %v681_v35 = vadd.f32 %v524_v25, %v361_v29  ;;  %v683_v37 = vadd.f32 %v524_v25, %v363_v30  ;;  %v680_v42 = vadd.f32 %v524_v25, %v360_v33  ;;  %v1039_v33 = vld [vmem:[#allocation11 + $0x58] sm:$0xff] }
 0x11b   :  { %v193_v40 = vpop.permute.xlu1 %192  ;;  %v188_v41 = vpop.permute.xlu0 %187  ;;  %v682_v44 = vadd.f32 %v524_v25, %v362_v34  ;;  %v1038_v34 = vld [vmem:[#allocation11 + $0x50] sm:$0xff] }
 0x11c   :  { %1087 = vperm.xlu1 %3469, %v1033_v31   ;;  %1082 = vperm.xlu0 %3468, %v1032_v32   ;;  %v809_v46 = vmax.f32 %v681_v35, 0.0  ;;  %v811_v47 = vmax.f32 %v683_v37, 0.0  ;;  %v365_v48 = vmul.f32 %v3966_v9, %v188_v41  ;;  %v369_v49 = vmul.f32 %v3966_v9, %v193_v40 }
 0x11d   :  { %v808_v52 = vmax.f32 %v680_v42, 0.0  ;;  %v810_v53 = vmax.f32 %v682_v44, 0.0  ;;  %v367_v54 = vmul.f32 %v3968_v10, %v188_v41  ;;  %v371_v55 = vmul.f32 %v3968_v10, %v193_v40 }
 0x11e   :  { %v933_v56 = vpack.c.bf16 %v809_v46, %v805_v36  ;;  %v935_v57 = vpack.c.bf16 %v811_v47, %v807_v38  ;;  %v364_v58 = vmul.f32 %v3972_v11, %v188_v41  ;;  %v368_v59 = vmul.f32 %v3972_v11, %v193_v40 }
 0x11f   :  { %v534_v61 = vpop.permute.xlu1 %533  ;;  %v529_v62 = vpop.permute.xlu0 %528  ;;  %v932_v0 = vpack.c.bf16 %v808_v52, %v804_v43  ;;  %v934_v1 = vpack.c.bf16 %v810_v53, %v806_v45  ;;  %v366_v2 = vmul.f32 %v3974_v14, %v188_v41  ;;  %v370_v3 = vmul.f32 %v3974_v14, %v193_v40 }
 0x120   :  { %1097 = vperm.xlu1 %3469, %v1035_v50   ;;  %1092 = vperm.xlu0 %3468, %v1034_v51   ;;  %v685_v5 = vadd.f32 %v529_v62, %v365_v48  ;;  %v689_v6 = vadd.f32 %v534_v61, %v369_v49  ;;  %v687_v7 = vadd.f32 %v529_v62, %v367_v54  ;;  %v1041_v48 = vld [vmem:[#allocation11 + $0x68] sm:$0xff]  ;;  %v1040_v49 = vld [vmem:[#allocation11 + $0x60] sm:$0xff] }
 0x121   :  { %1380 = vmatprep.subr.bf16.mxu0 %v933_v56  ;;  %1573 = vmatprep.subr.bf16.mxu1 %v935_v57  ;;  %v691_v13 = vadd.f32 %v534_v61, %v371_v55  ;;  %v684_v15 = vadd.f32 %v529_v62, %v364_v58  ;;  %v688_v16 = vadd.f32 %v534_v61, %v368_v59 }
 0x122   :  { %1381 = vmatpush1.bf16.msra.mxu0 %v932_v0  ;;  %1574 = vmatpush1.bf16.msra.mxu1 %v934_v1  ;;  %v813_v17 = vmax.f32 %v685_v5, 0.0  ;;  %v817_v18 = vmax.f32 %v689_v6, 0.0  ;;  %v815_v19 = vmax.f32 %v687_v7, 0.0  ;;  %v686_v20 = vadd.f32 %v529_v62, %v366_v2  ;;  %v1043_v7 = vld [vmem:[#allocation11 + $0x78] sm:$0xff] }
 0x123   :  { %v203_v21 = vpop.permute.xlu1 %202  ;;  %v198_v22 = vpop.permute.xlu0 %197  ;;  %v819_v23 = vmax.f32 %v691_v13, 0.0  ;;  %v812_v24 = vmax.f32 %v684_v15, 0.0  ;;  %v816_v25 = vmax.f32 %v688_v16, 0.0  ;;  %v690_v26 = vadd.f32 %v534_v61, %v370_v3  ;;  %v1042_v15 = vld [vmem:[#allocation11 + $0x70] sm:$0xff] }
 0x124   :  { %1107 = vperm.xlu1 %3469, %v1037_v8   ;;  %1102 = vperm.xlu0 %3468, %v1036_v12   ;;  %v937_v27 = vpack.c.bf16 %v817_v18, %v813_v17  ;;  %v814_v28 = vmax.f32 %v686_v20, 0.0  ;;  %v373_v29 = vmul.f32 %v3966_v9, %v198_v22  ;;  %v377_v35 = vmul.f32 %v3966_v9, %v203_v21 }
 0x125   :  { %v939_v30 = vpack.c.bf16 %v819_v23, %v815_v19  ;;  %v936_v31 = vpack.c.bf16 %v816_v25, %v812_v24  ;;  %v818_v32 = vmax.f32 %v690_v26, 0.0  ;;  %v375_v36 = vmul.f32 %v3968_v10, %v198_v22 }
 0x126   :  { %1382 = vmatprep.subr.bf16.mxu0 %v937_v27  ;;  %v379_v37 = vmul.f32 %v3968_v10, %v203_v21  ;;  %v372_v38 = vmul.f32 %v3972_v11, %v198_v22  ;;  %v376_v39 = vmul.f32 %v3972_v11, %v203_v21  ;;  %v374_v43 = vmul.f32 %v3974_v14, %v198_v22  ;;  %v1045_v27 = vld [vmem:[#allocation11 + $0x88] sm:$0xff] }
 0x127   :  { %1575 = vmatprep.subr.bf16.mxu1 %v939_v30  ;;  %v544_v40 = vpop.permute.xlu1 %543  ;;  %v539_v41 = vpop.permute.xlu0 %538  ;;  %1383 = vmatpush1.bf16.msra.mxu0 %v936_v31  ;;  %v938_v42 = vpack.c.bf16 %v818_v32, %v814_v28  ;;  %v378_v44 = vmul.f32 %v3974_v14, %v203_v21  ;;  %v1044_v32 = vld [vmem:[#allocation11 + $0x80] sm:$0xff] }
 0x128   :  { %1117 = vperm.xlu1 %3469, %v1039_v33   ;;  %1112 = vperm.xlu0 %3468, %v1038_v34   ;;  %v693_v45 = vadd.f32 %v539_v41, %v373_v29  ;;  %v697_v46 = vadd.f32 %v544_v40, %v377_v35  ;;  %v695_v47 = vadd.f32 %v539_v41, %v375_v36 }
 0x129   :  { %1576 = vmatpush1.bf16.msra.mxu1 %v938_v42  ;;  %v699_v50 = vadd.f32 %v544_v40, %v379_v37  ;;  %v692_v51 = vadd.f32 %v539_v41, %v372_v38  ;;  %v696_v52 = vadd.f32 %v544_v40, %v376_v39  ;;  %v694_v53 = vadd.f32 %v539_v41, %v374_v43 }
 0x12a   :  { %v821_v54 = vmax.f32 %v693_v45, 0.0  ;;  %v825_v55 = vmax.f32 %v697_v46, 0.0  ;;  %v823_v56 = vmax.f32 %v695_v47, 0.0  ;;  %v698_v57 = vadd.f32 %v544_v40, %v378_v44  ;;  %v1047_v47 = vld [vmem:[#allocation11 + $0x98] sm:$0xff] }
 0x12b   :  { %v213_v58 = vpop.permute.xlu1 %212  ;;  %v208_v59 = vpop.permute.xlu0 %207  ;;  %v827_v61 = vmax.f32 %v699_v50, 0.0  ;;  %v820_v62 = vmax.f32 %v692_v51, 0.0  ;;  %v824_v0 = vmax.f32 %v696_v52, 0.0  ;;  %v822_v1 = vmax.f32 %v694_v53, 0.0  ;;  %v1046_v51 = vld [vmem:[#allocation11 + $0x90] sm:$0xff] }
 0x12c   :  { %1127 = vperm.xlu1 %3469, %v1041_v48   ;;  %1122 = vperm.xlu0 %3468, %v1040_v49   ;;  %v941_v2 = vpack.c.bf16 %v825_v55, %v821_v54  ;;  %v826_v3 = vmax.f32 %v698_v57, 0.0  ;;  %v381_v8 = vmul.f32 %v3966_v9, %v208_v59  ;;  %v385_v12 = vmul.f32 %v3966_v9, %v213_v58 }
 0x12d   :  { %v943_v5 = vpack.c.bf16 %v827_v61, %v823_v56  ;;  %v940_v6 = vpack.c.bf16 %v824_v0, %v820_v62  ;;  %v383_v16 = vmul.f32 %v3968_v10, %v208_v59  ;;  %v387_v17 = vmul.f32 %v3968_v10, %v213_v58 }
 0x12e   :  { %1384 = vmatprep.subr.bf16.mxu0 %v941_v2  ;;  %v942_v13 = vpack.c.bf16 %v826_v3, %v822_v1  ;;  %v380_v18 = vmul.f32 %v3972_v11, %v208_v59  ;;  %v384_v21 = vmul.f32 %v3972_v11, %v213_v58  ;;  %v382_v22 = vmul.f32 %v3974_v14, %v208_v59  ;;  %v1049_v1 = vld [vmem:[#allocation11 + $0xa8] sm:$0xff] }
 0x12f   :  { %1577 = vmatprep.subr.bf16.mxu1 %v943_v5  ;;  %v554_v19 = vpop.permute.xlu1 %553  ;;  %v549_v20 = vpop.permute.xlu0 %548  ;;  %1385 = vmatpush1.bf16.msra.mxu0 %v940_v6  ;;  %v386_v23 = vmul.f32 %v3974_v14, %v213_v58 }
 0x130   :  { %1578 = vmatpush1.bf16.msra.mxu1 %v942_v13  ;;  %1137 = vperm.xlu1 %3469, %v1043_v7   ;;  %v701_v24 = vadd.f32 %v549_v20, %v381_v8  ;;  %v705_v25 = vadd.f32 %v554_v19, %v385_v12  ;;  %v703_v26 = vadd.f32 %v549_v20, %v383_v16  ;;  %v1048_v7 = vld [vmem:[#allocation11 + $0xa0] sm:$0xff] }
 0x131   :  { %1132 = vperm.xlu0 %3468, %v1042_v15   ;;  %v707_v28 = vadd.f32 %v554_v19, %v387_v17  ;;  %v700_v29 = vadd.f32 %v549_v20, %v380_v18  ;;  %v704_v30 = vadd.f32 %v554_v19, %v384_v21  ;;  %v702_v31 = vadd.f32 %v549_v20, %v382_v22 }
 0x132   :  { %v829_v33 = vmax.f32 %v701_v24, 0.0  ;;  %v833_v34 = vmax.f32 %v705_v25, 0.0  ;;  %v831_v35 = vmax.f32 %v703_v26, 0.0  ;;  %v706_v36 = vadd.f32 %v554_v19, %v386_v23  ;;  %v1051_v26 = vld [vmem:[#allocation11 + $0xb8] sm:$0xff] }
 0x133   :  { %v223_v37 = vpop.permute.xlu1 %222  ;;  %v218_v38 = vpop.permute.xlu0 %217  ;;  %v835_v39 = vmax.f32 %v707_v28, 0.0  ;;  %v828_v40 = vmax.f32 %v700_v29, 0.0  ;;  %v832_v41 = vmax.f32 %v704_v30, 0.0  ;;  %v830_v42 = vmax.f32 %v702_v31, 0.0  ;;  %v1050_v30 = vld [vmem:[#allocation11 + $0xb0] sm:$0xff] }
 0x134   :  { %1147 = vperm.xlu1 %3469, %v1045_v27   ;;  %v945_v43 = vpack.c.bf16 %v833_v34, %v829_v33  ;;  %v834_v44 = vmax.f32 %v706_v36, 0.0  ;;  %v389_v48 = vmul.f32 %v3966_v9, %v218_v38  ;;  %v393_v49 = vmul.f32 %v3966_v9, %v223_v37 }
 0x135   :  { %1142 = vperm.xlu0 %3468, %v1044_v32   ;;  %v947_v45 = vpack.c.bf16 %v835_v39, %v831_v35  ;;  %v944_v46 = vpack.c.bf16 %v832_v41, %v828_v40  ;;  %v391_v52 = vmul.f32 %v3968_v10, %v218_v38  ;;  %v395_v53 = vmul.f32 %v3968_v10, %v223_v37 }
 0x136   :  { %1386 = vmatprep.subr.bf16.mxu0 %v945_v43  ;;  %v946_v50 = vpack.c.bf16 %v834_v44, %v830_v42  ;;  %v388_v54 = vmul.f32 %v3972_v11, %v218_v38  ;;  %v392_v57 = vmul.f32 %v3972_v11, %v223_v37  ;;  %v390_v58 = vmul.f32 %v3974_v14, %v218_v38  ;;  %v1053_v42 = vld [vmem:[#allocation11 + $0xc8] sm:$0xff] }
 0x137   :  { %1579 = vmatprep.subr.bf16.mxu1 %v947_v45  ;;  %v564_v55 = vpop.permute.xlu1 %563  ;;  %v559_v56 = vpop.permute.xlu0 %558  ;;  %1387 = vmatpush1.bf16.msra.mxu0 %v944_v46  ;;  %v394_v59 = vmul.f32 %v3974_v14, %v223_v37 }
 0x138   :  { %1580 = vmatpush1.bf16.msra.mxu1 %v946_v50  ;;  %1157 = vperm.xlu1 %3469, %v1047_v47   ;;  %v709_v61 = vadd.f32 %v559_v56, %v389_v48  ;;  %v713_v62 = vadd.f32 %v564_v55, %v393_v49  ;;  %v711_v0 = vadd.f32 %v559_v56, %v391_v52  ;;  %v1052_v47 = vld [vmem:[#allocation11 + $0xc0] sm:$0xff] }
 0x139   :  { %1152 = vperm.xlu0 %3468, %v1046_v51   ;;  %v715_v2 = vadd.f32 %v564_v55, %v395_v53  ;;  %v708_v3 = vadd.f32 %v559_v56, %v388_v54  ;;  %v712_v5 = vadd.f32 %v564_v55, %v392_v57  ;;  %v710_v6 = vadd.f32 %v559_v56, %v390_v58 }
 0x13a   :  { %v837_v8 = vmax.f32 %v709_v61, 0.0  ;;  %v841_v12 = vmax.f32 %v713_v62, 0.0  ;;  %v839_v13 = vmax.f32 %v711_v0, 0.0  ;;  %v714_v15 = vadd.f32 %v564_v55, %v394_v59  ;;  %v1055_v0 = vld [vmem:[#allocation11 + $0xd8] sm:$0xff] }
 0x13b   :  { %v233_v16 = vpop.permute.xlu1 %232  ;;  %v228_v17 = vpop.permute.xlu0 %227  ;;  %v843_v18 = vmax.f32 %v715_v2, 0.0  ;;  %v836_v19 = vmax.f32 %v708_v3, 0.0  ;;  %v840_v20 = vmax.f32 %v712_v5, 0.0  ;;  %v838_v21 = vmax.f32 %v710_v6, 0.0  ;;  %v1054_v5 = vld [vmem:[#allocation11 + $0xd0] sm:$0xff] }
 0x13c   :  { %1167 = vperm.xlu1 %3469, %v1049_v1   ;;  %v949_v22 = vpack.c.bf16 %v841_v12, %v837_v8  ;;  %v842_v23 = vmax.f32 %v714_v15, 0.0  ;;  %v397_v27 = vmul.f32 %v3966_v9, %v228_v17  ;;  %v401_v28 = vmul.f32 %v3966_v9, %v233_v16 }
 0x13d   :  { %1162 = vperm.xlu0 %3468, %v1048_v7   ;;  %v951_v24 = vpack.c.bf16 %v843_v18, %v839_v13  ;;  %v948_v25 = vpack.c.bf16 %v840_v20, %v836_v19  ;;  %v399_v31 = vmul.f32 %v3968_v10, %v228_v17  ;;  %v403_v32 = vmul.f32 %v3968_v10, %v233_v16 }
 0x13e   :  { %1388 = vmatprep.subr.bf16.mxu0 %v949_v22  ;;  %v950_v29 = vpack.c.bf16 %v842_v23, %v838_v21  ;;  %v396_v33 = vmul.f32 %v3972_v11, %v228_v17  ;;  %v400_v36 = vmul.f32 %v3972_v11, %v233_v16  ;;  %v398_v37 = vmul.f32 %v3974_v14, %v228_v17  ;;  %v1057_v21 = vld [vmem:[#allocation11 + $0xe8] sm:$0xff] }
 0x13f   :  { %1581 = vmatprep.subr.bf16.mxu1 %v951_v24  ;;  %v574_v34 = vpop.permute.xlu1 %573  ;;  %v569_v35 = vpop.permute.xlu0 %568  ;;  %1389 = vmatpush1.bf16.msra.mxu0 %v948_v25  ;;  %v402_v38 = vmul.f32 %v3974_v14, %v233_v16 }
 0x140   :  { %1582 = vmatpush1.bf16.msra.mxu1 %v950_v29  ;;  %1177 = vperm.xlu1 %3469, %v1051_v26   ;;  %v717_v39 = vadd.f32 %v569_v35, %v397_v27  ;;  %v721_v40 = vadd.f32 %v574_v34, %v401_v28  ;;  %v719_v41 = vadd.f32 %v569_v35, %v399_v31  ;;  %v1056_v26 = vld [vmem:[#allocation11 + $0xe0] sm:$0xff] }
 0x141   :  { %1172 = vperm.xlu0 %3468, %v1050_v30   ;;  %v723_v43 = vadd.f32 %v574_v34, %v403_v32  ;;  %v716_v44 = vadd.f32 %v569_v35, %v396_v33  ;;  %v720_v45 = vadd.f32 %v574_v34, %v400_v36  ;;  %v718_v46 = vadd.f32 %v569_v35, %v398_v37 }
 0x142   :  { %v845_v48 = vmax.f32 %v717_v39, 0.0  ;;  %v849_v49 = vmax.f32 %v721_v40, 0.0  ;;  %v847_v50 = vmax.f32 %v719_v41, 0.0  ;;  %v722_v51 = vadd.f32 %v574_v34, %v402_v38  ;;  %v1059_v41 = vld [vmem:[#allocation11 + $0xf8] sm:$0xff] }
 0x143   :  { %v243_v52 = vpop.permute.xlu1 %242  ;;  %v238_v53 = vpop.permute.xlu0 %237  ;;  %v851_v54 = vmax.f32 %v723_v43, 0.0  ;;  %v844_v55 = vmax.f32 %v716_v44, 0.0  ;;  %v848_v56 = vmax.f32 %v720_v45, 0.0  ;;  %v846_v57 = vmax.f32 %v718_v46, 0.0  ;;  %v1058_v45 = vld [vmem:[#allocation11 + $0xf0] sm:$0xff] }
 0x144   :  { %1187 = vperm.xlu1 %3469, %v1053_v42   ;;  %v953_v58 = vpack.c.bf16 %v849_v49, %v845_v48  ;;  %v850_v59 = vmax.f32 %v722_v51, 0.0  ;;  %v405_v1 = vmul.f32 %v3966_v9, %v238_v53  ;;  %v409_v2 = vmul.f32 %v3966_v9, %v243_v52 }
 0x145   :  { %1182 = vperm.xlu0 %3468, %v1052_v47   ;;  %v955_v61 = vpack.c.bf16 %v851_v54, %v847_v50  ;;  %v952_v62 = vpack.c.bf16 %v848_v56, %v844_v55  ;;  %v407_v6 = vmul.f32 %v3968_v10, %v238_v53  ;;  %v411_v7 = vmul.f32 %v3968_v10, %v243_v52 }
 0x146   :  { %1390 = vmatprep.subr.bf16.mxu0 %v953_v58  ;;  %v954_v3 = vpack.c.bf16 %v850_v59, %v846_v57  ;;  %v404_v8 = vmul.f32 %v3972_v11, %v238_v53  ;;  %v408_v15 = vmul.f32 %v3972_v11, %v243_v52  ;;  %v406_v16 = vmul.f32 %v3974_v14, %v238_v53  ;;  %v1991_v57 = vld [vmem:[#allocation14 + $0x8] sm:$0xff] }
 0x147   :  { %1583 = vmatprep.subr.bf16.mxu1 %v955_v61  ;;  %v584_v12 = vpop.permute.xlu1 %583  ;;  %v579_v13 = vpop.permute.xlu0 %578  ;;  %1391 = vmatpush1.bf16.msra.mxu0 %v952_v62  ;;  %v410_v17 = vmul.f32 %v3974_v14, %v243_v52 }
 0x148   :  { %1584 = vmatpush1.bf16.msra.mxu1 %v954_v3  ;;  %1197 = vperm.xlu1 %3469, %v1055_v0   ;;  %v725_v18 = vadd.f32 %v579_v13, %v405_v1  ;;  %v729_v19 = vadd.f32 %v584_v12, %v409_v2  ;;  %v727_v20 = vadd.f32 %v579_v13, %v407_v6  ;;  %v1990_v0 = vld [vmem:[#allocation14] sm:$0xff] }
 0x149   :  { %1192 = vperm.xlu0 %3468, %v1054_v5   ;;  %v731_v22 = vadd.f32 %v584_v12, %v411_v7  ;;  %v724_v23 = vadd.f32 %v579_v13, %v404_v8  ;;  %v728_v24 = vadd.f32 %v584_v12, %v408_v15  ;;  %v726_v25 = vadd.f32 %v579_v13, %v406_v16 }
 0x14a   :  { %v853_v27 = vmax.f32 %v725_v18, 0.0  ;;  %v857_v28 = vmax.f32 %v729_v19, 0.0  ;;  %v855_v29 = vmax.f32 %v727_v20, 0.0  ;;  %v730_v30 = vadd.f32 %v584_v12, %v410_v17  ;;  %v1993_v20 = vld [vmem:[#allocation14 + $0x18] sm:$0xff] }
 0x14b   :  { %v253_v31 = vpop.permute.xlu1 %252  ;;  %v248_v32 = vpop.permute.xlu0 %247  ;;  %v859_v33 = vmax.f32 %v731_v22, 0.0  ;;  %v852_v34 = vmax.f32 %v724_v23, 0.0  ;;  %v856_v35 = vmax.f32 %v728_v24, 0.0  ;;  %v854_v36 = vmax.f32 %v726_v25, 0.0  ;;  %v1992_v24 = vld [vmem:[#allocation14 + $0x10] sm:$0xff] }
 0x14c   :  { %1207 = vperm.xlu1 %3469, %v1057_v21   ;;  %v957_v37 = vpack.c.bf16 %v857_v28, %v853_v27  ;;  %v858_v38 = vmax.f32 %v730_v30, 0.0  ;;  %v413_v42 = vmul.f32 %v3966_v9, %v248_v32  ;;  %v417_v43 = vmul.f32 %v3966_v9, %v253_v31 }
 0x14d   :  { %1202 = vperm.xlu0 %3468, %v1056_v26   ;;  %v959_v39 = vpack.c.bf16 %v859_v33, %v855_v29  ;;  %v956_v40 = vpack.c.bf16 %v856_v35, %v852_v34  ;;  %v415_v46 = vmul.f32 %v3968_v10, %v248_v32  ;;  %v419_v47 = vmul.f32 %v3968_v10, %v253_v31 }
 0x14e   :  { %1392 = vmatprep.subr.bf16.mxu0 %v957_v37  ;;  %v958_v44 = vpack.c.bf16 %v858_v38, %v854_v36  ;;  %v412_v48 = vmul.f32 %v3972_v11, %v248_v32  ;;  %v416_v51 = vmul.f32 %v3972_v11, %v253_v31  ;;  %v414_v52 = vmul.f32 %v3974_v14, %v248_v32  ;;  %v1995_v36 = vld [vmem:[#allocation14 + $0x28] sm:$0xff] }
 0x14f   :  { %1585 = vmatprep.subr.bf16.mxu1 %v959_v39  ;;  %v594_v49 = vpop.permute.xlu1 %593  ;;  %v589_v50 = vpop.permute.xlu0 %588  ;;  %1393 = vmatpush1.bf16.msra.mxu0 %v956_v40  ;;  %v418_v53 = vmul.f32 %v3974_v14, %v253_v31 }
 0x150   :  { %1586 = vmatpush1.bf16.msra.mxu1 %v958_v44  ;;  %1217 = vperm.xlu1 %3469, %v1059_v41   ;;  %v733_v54 = vadd.f32 %v589_v50, %v413_v42  ;;  %v737_v55 = vadd.f32 %v594_v49, %v417_v43  ;;  %v735_v56 = vadd.f32 %v589_v50, %v415_v46  ;;  %v1994_v41 = vld [vmem:[#allocation14 + $0x20] sm:$0xff] }
 0x151   :  { %1212 = vperm.xlu0 %3468, %v1058_v45   ;;  %v739_v58 = vadd.f32 %v594_v49, %v419_v47  ;;  %v732_v59 = vadd.f32 %v589_v50, %v412_v48  ;;  %v736_v61 = vadd.f32 %v594_v49, %v416_v51  ;;  %v734_v62 = vadd.f32 %v589_v50, %v414_v52 }
 0x152   :  { %v861_v1 = vmax.f32 %v733_v54, 0.0  ;;  %v865_v2 = vmax.f32 %v737_v55, 0.0  ;;  %v863_v3 = vmax.f32 %v735_v56, 0.0  ;;  %v738_v5 = vadd.f32 %v594_v49, %v418_v53  ;;  %v1997_v56 = vld [vmem:[#allocation14 + $0x38] sm:$0xff] }
 0x153   :  { %v263_v6 = vpop.permute.xlu1 %262  ;;  %v258_v7 = vpop.permute.xlu0 %257  ;;  %v867_v8 = vmax.f32 %v739_v58, 0.0  ;;  %v860_v12 = vmax.f32 %v732_v59, 0.0  ;;  %v864_v13 = vmax.f32 %v736_v61, 0.0  ;;  %v862_v15 = vmax.f32 %v734_v62, 0.0  ;;  %v1996_v61 = vld [vmem:[#allocation14 + $0x30] sm:$0xff] }
 0x154   :  { %2029 = vperm.xlu1 %3469, %v1991_v57   ;;  %v961_v16 = vpack.c.bf16 %v865_v2, %v861_v1  ;;  %v866_v17 = vmax.f32 %v738_v5, 0.0  ;;  %v421_v21 = vmul.f32 %v3966_v9, %v258_v7  ;;  %v425_v22 = vmul.f32 %v3966_v9, %v263_v6 }
 0x155   :  { %2024 = vperm.xlu0 %3468, %v1990_v0   ;;  %v963_v18 = vpack.c.bf16 %v867_v8, %v863_v3  ;;  %v960_v19 = vpack.c.bf16 %v864_v13, %v860_v12  ;;  %v423_v25 = vmul.f32 %v3968_v10, %v258_v7  ;;  %v427_v26 = vmul.f32 %v3968_v10, %v263_v6 }
 0x156   :  { %1394 = vmatprep.subr.bf16.mxu0 %v961_v16  ;;  %v962_v23 = vpack.c.bf16 %v866_v17, %v862_v15  ;;  %v420_v27 = vmul.f32 %v3972_v11, %v258_v7  ;;  %v424_v30 = vmul.f32 %v3972_v11, %v263_v6  ;;  %v422_v31 = vmul.f32 %v3974_v14, %v258_v7  ;;  %v1999_v15 = vld [vmem:[#allocation14 + $0x48] sm:$0xff] }
 0x157   :  { %1587 = vmatprep.subr.bf16.mxu1 %v963_v18  ;;  %v604_v28 = vpop.permute.xlu1 %603  ;;  %v599_v29 = vpop.permute.xlu0 %598  ;;  %1395 = vmatpush1.bf16.msra.mxu0 %v960_v19  ;;  %v426_v32 = vmul.f32 %v3974_v14, %v263_v6 }
 0x158   :  { %1588 = vmatpush1.bf16.msra.mxu1 %v962_v23  ;;  %2039 = vperm.xlu1 %3469, %v1993_v20   ;;  %v741_v33 = vadd.f32 %v599_v29, %v421_v21  ;;  %v745_v34 = vadd.f32 %v604_v28, %v425_v22  ;;  %v743_v35 = vadd.f32 %v599_v29, %v423_v25  ;;  %v1998_v20 = vld [vmem:[#allocation14 + $0x40] sm:$0xff] }
 0x159   :  { %2034 = vperm.xlu0 %3468, %v1992_v24   ;;  %v747_v37 = vadd.f32 %v604_v28, %v427_v26  ;;  %v740_v38 = vadd.f32 %v599_v29, %v420_v27  ;;  %v744_v39 = vadd.f32 %v604_v28, %v424_v30  ;;  %v742_v40 = vadd.f32 %v599_v29, %v422_v31 }
 0x15a   :  { %v869_v42 = vmax.f32 %v741_v33, 0.0  ;;  %v873_v43 = vmax.f32 %v745_v34, 0.0  ;;  %v871_v44 = vmax.f32 %v743_v35, 0.0  ;;  %v746_v45 = vadd.f32 %v604_v28, %v426_v32  ;;  %v2001_v35 = vld [vmem:[#allocation14 + $0x58] sm:$0xff] }
 0x15b   :  { %v273_v46 = vpop.permute.xlu1 %272  ;;  %v268_v47 = vpop.permute.xlu0 %267  ;;  %v875_v48 = vmax.f32 %v747_v37, 0.0  ;;  %v868_v49 = vmax.f32 %v740_v38, 0.0  ;;  %v872_v50 = vmax.f32 %v744_v39, 0.0  ;;  %v870_v51 = vmax.f32 %v742_v40, 0.0  ;;  %v2000_v39 = vld [vmem:[#allocation14 + $0x50] sm:$0xff] }
 0x15c   :  { %2049 = vperm.xlu1 %3469, %v1995_v36   ;;  %v965_v52 = vpack.c.bf16 %v873_v43, %v869_v42  ;;  %v874_v53 = vmax.f32 %v746_v45, 0.0  ;;  %v429_v57 = vmul.f32 %v3966_v9, %v268_v47  ;;  %v433_v58 = vmul.f32 %v3966_v9, %v273_v46 }
 0x15d   :  { %2044 = vperm.xlu0 %3468, %v1994_v41   ;;  %v967_v54 = vpack.c.bf16 %v875_v48, %v871_v44  ;;  %v964_v55 = vpack.c.bf16 %v872_v50, %v868_v49  ;;  %v431_v62 = vmul.f32 %v3968_v10, %v268_v47  ;;  %v435_v0 = vmul.f32 %v3968_v10, %v273_v46 }
 0x15e   :  { %1396 = vmatprep.subr.bf16.mxu0 %v965_v52  ;;  %v966_v59 = vpack.c.bf16 %v874_v53, %v870_v51  ;;  %v428_v1 = vmul.f32 %v3972_v11, %v268_v47  ;;  %v432_v5 = vmul.f32 %v3972_v11, %v273_v46  ;;  %v430_v6 = vmul.f32 %v3974_v14, %v268_v47  ;;  %v2003_v51 = vld [vmem:[#allocation14 + $0x68] sm:$0xff] }
 0x15f   :  { %1589 = vmatprep.subr.bf16.mxu1 %v967_v54  ;;  %v614_v2 = vpop.permute.xlu1 %613  ;;  %v609_v3 = vpop.permute.xlu0 %608  ;;  %1397 = vmatpush1.bf16.msra.mxu0 %v964_v55  ;;  %v434_v7 = vmul.f32 %v3974_v14, %v273_v46 }
 0x160   :  { %1590 = vmatpush1.bf16.msra.mxu1 %v966_v59  ;;  %2059 = vperm.xlu1 %3469, %v1997_v56   ;;  %v749_v8 = vadd.f32 %v609_v3, %v429_v57  ;;  %v753_v12 = vadd.f32 %v614_v2, %v433_v58  ;;  %v751_v13 = vadd.f32 %v609_v3, %v431_v62  ;;  %v2002_v56 = vld [vmem:[#allocation14 + $0x60] sm:$0xff] }
 0x161   :  { %2054 = vperm.xlu0 %3468, %v1996_v61   ;;  %v755_v16 = vadd.f32 %v614_v2, %v435_v0  ;;  %v748_v17 = vadd.f32 %v609_v3, %v428_v1  ;;  %v752_v18 = vadd.f32 %v614_v2, %v432_v5  ;;  %v750_v19 = vadd.f32 %v609_v3, %v430_v6 }
 0x162   :  { %v877_v21 = vmax.f32 %v749_v8, 0.0  ;;  %v881_v22 = vmax.f32 %v753_v12, 0.0  ;;  %v879_v23 = vmax.f32 %v751_v13, 0.0  ;;  %v754_v24 = vadd.f32 %v614_v2, %v434_v7  ;;  %v2005_v13 = vld [vmem:[#allocation14 + $0x78] sm:$0xff] }
 0x163   :  { %v283_v25 = vpop.permute.xlu1 %282  ;;  %v278_v26 = vpop.permute.xlu0 %277  ;;  %v883_v27 = vmax.f32 %v755_v16, 0.0  ;;  %v876_v28 = vmax.f32 %v748_v17, 0.0  ;;  %v880_v29 = vmax.f32 %v752_v18, 0.0  ;;  %v878_v30 = vmax.f32 %v750_v19, 0.0  ;;  %v2004_v18 = vld [vmem:[#allocation14 + $0x70] sm:$0xff] }
 0x164   :  { %2069 = vperm.xlu1 %3469, %v1999_v15   ;;  %v969_v31 = vpack.c.bf16 %v881_v22, %v877_v21  ;;  %v882_v32 = vmax.f32 %v754_v24, 0.0  ;;  %v437_v36 = vmul.f32 %v3966_v9, %v278_v26  ;;  %v441_v37 = vmul.f32 %v3966_v9, %v283_v25 }
 0x165   :  { %2064 = vperm.xlu0 %3468, %v1998_v20   ;;  %v971_v33 = vpack.c.bf16 %v883_v27, %v879_v23  ;;  %v968_v34 = vpack.c.bf16 %v880_v29, %v876_v28  ;;  %v439_v40 = vmul.f32 %v3968_v10, %v278_v26  ;;  %v443_v41 = vmul.f32 %v3968_v10, %v283_v25 }
 0x166   :  { %1398 = vmatprep.subr.bf16.mxu0 %v969_v31  ;;  %v970_v38 = vpack.c.bf16 %v882_v32, %v878_v30  ;;  %v436_v42 = vmul.f32 %v3972_v11, %v278_v26  ;;  %v440_v45 = vmul.f32 %v3972_v11, %v283_v25  ;;  %v438_v46 = vmul.f32 %v3974_v14, %v278_v26  ;;  %v2007_v30 = vld [vmem:[#allocation14 + $0x88] sm:$0xff] }
 0x167   :  { %1591 = vmatprep.subr.bf16.mxu1 %v971_v33  ;;  %v624_v43 = vpop.permute.xlu1 %623  ;;  %v619_v44 = vpop.permute.xlu0 %618  ;;  %1399 = vmatpush1.bf16.msra.mxu0 %v968_v34  ;;  %v442_v47 = vmul.f32 %v3974_v14, %v283_v25 }
 0x168   :  { %1592 = vmatpush1.bf16.msra.mxu1 %v970_v38  ;;  %2079 = vperm.xlu1 %3469, %v2001_v35   ;;  %v757_v48 = vadd.f32 %v619_v44, %v437_v36  ;;  %v761_v49 = vadd.f32 %v624_v43, %v441_v37  ;;  %v759_v50 = vadd.f32 %v619_v44, %v439_v40  ;;  %v2006_v35 = vld [vmem:[#allocation14 + $0x80] sm:$0xff] }
 0x169   :  { %2074 = vperm.xlu0 %3468, %v2000_v39   ;;  %v763_v52 = vadd.f32 %v624_v43, %v443_v41  ;;  %v756_v53 = vadd.f32 %v619_v44, %v436_v42  ;;  %v760_v54 = vadd.f32 %v624_v43, %v440_v45  ;;  %v758_v55 = vadd.f32 %v619_v44, %v438_v46 }
 0x16a   :  { %v885_v57 = vmax.f32 %v757_v48, 0.0  ;;  %v889_v58 = vmax.f32 %v761_v49, 0.0  ;;  %v887_v59 = vmax.f32 %v759_v50, 0.0  ;;  %v762_v61 = vadd.f32 %v624_v43, %v442_v47  ;;  %v2009_v50 = vld [vmem:[#allocation14 + $0x98] sm:$0xff] }
 0x16b   :  { %v293_v62 = vpop.permute.xlu1 %292  ;;  %v288_v0 = vpop.permute.xlu0 %287  ;;  %v891_v1 = vmax.f32 %v763_v52, 0.0  ;;  %v884_v2 = vmax.f32 %v756_v53, 0.0  ;;  %v888_v3 = vmax.f32 %v760_v54, 0.0  ;;  %v886_v5 = vmax.f32 %v758_v55, 0.0  ;;  %v2008_v54 = vld [vmem:[#allocation14 + $0x90] sm:$0xff] }
 0x16c   :  { %2089 = vperm.xlu1 %3469, %v2003_v51   ;;  %v973_v6 = vpack.c.bf16 %v889_v58, %v885_v57  ;;  %v890_v7 = vmax.f32 %v762_v61, 0.0  ;;  %v445_v15 = vmul.f32 %v3966_v9, %v288_v0  ;;  %v449_v16 = vmul.f32 %v3966_v9, %v293_v62 }
 0x16d   :  { %2084 = vperm.xlu0 %3468, %v2002_v56   ;;  %v975_v8 = vpack.c.bf16 %v891_v1, %v887_v59  ;;  %v972_v12 = vpack.c.bf16 %v888_v3, %v884_v2  ;;  %v447_v19 = vmul.f32 %v3968_v10, %v288_v0  ;;  %v451_v20 = vmul.f32 %v3968_v10, %v293_v62 }
 0x16e   :  { %1400 = vmatprep.subr.bf16.mxu0 %v973_v6  ;;  %v974_v17 = vpack.c.bf16 %v890_v7, %v886_v5  ;;  %v444_v21 = vmul.f32 %v3972_v11, %v288_v0  ;;  %v448_v24 = vmul.f32 %v3972_v11, %v293_v62  ;;  %v446_v25 = vmul.f32 %v3974_v14, %v288_v0  ;;  %v2011_v5 = vld [vmem:[#allocation14 + $0xa8] sm:$0xff] }
 0x16f   :  { %1593 = vmatprep.subr.bf16.mxu1 %v975_v8  ;;  %v634_v22 = vpop.permute.xlu1 %633  ;;  %v629_v23 = vpop.permute.xlu0 %628  ;;  %1401 = vmatpush1.bf16.msra.mxu0 %v972_v12  ;;  %v450_v26 = vmul.f32 %v3974_v14, %v293_v62 }
 0x170   :  { %1594 = vmatpush1.bf16.msra.mxu1 %v974_v17  ;;  %2099 = vperm.xlu1 %3469, %v2005_v13   ;;  %v765_v27 = vadd.f32 %v629_v23, %v445_v15  ;;  %v769_v28 = vadd.f32 %v634_v22, %v449_v16  ;;  %v767_v29 = vadd.f32 %v629_v23, %v447_v19  ;;  %v2010_v13 = vld [vmem:[#allocation14 + $0xa0] sm:$0xff] }
 0x171   :  { %2094 = vperm.xlu0 %3468, %v2004_v18   ;;  %v771_v31 = vadd.f32 %v634_v22, %v451_v20  ;;  %v764_v32 = vadd.f32 %v629_v23, %v444_v21  ;;  %v768_v33 = vadd.f32 %v634_v22, %v448_v24  ;;  %v766_v34 = vadd.f32 %v629_v23, %v446_v25 }
 0x172   :  { %v893_v36 = vmax.f32 %v765_v27, 0.0  ;;  %v897_v37 = vmax.f32 %v769_v28, 0.0  ;;  %v895_v38 = vmax.f32 %v767_v29, 0.0  ;;  %v770_v39 = vadd.f32 %v634_v22, %v450_v26  ;;  %v2013_v29 = vld [vmem:[#allocation14 + $0xb8] sm:$0xff] }
 0x173   :  { %v303_v40 = vpop.permute.xlu1 %302  ;;  %v298_v41 = vpop.permute.xlu0 %297  ;;  %v899_v42 = vmax.f32 %v771_v31, 0.0  ;;  %v892_v43 = vmax.f32 %v764_v32, 0.0  ;;  %v896_v44 = vmax.f32 %v768_v33, 0.0  ;;  %v894_v45 = vmax.f32 %v766_v34, 0.0  ;;  %v2012_v33 = vld [vmem:[#allocation14 + $0xb0] sm:$0xff] }
 0x174   :  { %2109 = vperm.xlu1 %3469, %v2007_v30   ;;  %v977_v46 = vpack.c.bf16 %v897_v37, %v893_v36  ;;  %v898_v47 = vmax.f32 %v770_v39, 0.0  ;;  %v453_v51 = vmul.f32 %v3966_v9, %v298_v41  ;;  %v457_v52 = vmul.f32 %v3966_v9, %v303_v40 }
 0x175   :  { %2104 = vperm.xlu0 %3468, %v2006_v35   ;;  %v979_v48 = vpack.c.bf16 %v899_v42, %v895_v38  ;;  %v976_v49 = vpack.c.bf16 %v896_v44, %v892_v43  ;;  %v455_v55 = vmul.f32 %v3968_v10, %v298_v41  ;;  %v459_v56 = vmul.f32 %v3968_v10, %v303_v40 }
 0x176   :  { %1402 = vmatprep.subr.bf16.mxu0 %v977_v46  ;;  %v978_v53 = vpack.c.bf16 %v898_v47, %v894_v45  ;;  %v452_v57 = vmul.f32 %v3972_v11, %v298_v41  ;;  %v456_v61 = vmul.f32 %v3972_v11, %v303_v40  ;;  %v454_v62 = vmul.f32 %v3974_v14, %v298_v41  ;;  %v2015_v45 = vld [vmem:[#allocation14 + $0xc8] sm:$0xff] }
 0x177   :  { %1595 = vmatprep.subr.bf16.mxu1 %v979_v48  ;;  %v644_v58 = vpop.permute.xlu1 %643  ;;  %v639_v59 = vpop.permute.xlu0 %638  ;;  %1403 = vmatpush1.bf16.msra.mxu0 %v976_v49  ;;  %v458_v0 = vmul.f32 %v3974_v14, %v303_v40 }
 0x178   :  { %1596 = vmatpush1.bf16.msra.mxu1 %v978_v53  ;;  %2119 = vperm.xlu1 %3469, %v2009_v50   ;;  %v773_v1 = vadd.f32 %v639_v59, %v453_v51  ;;  %v777_v2 = vadd.f32 %v644_v58, %v457_v52  ;;  %v775_v3 = vadd.f32 %v639_v59, %v455_v55  ;;  %v2014_v50 = vld [vmem:[#allocation14 + $0xc0] sm:$0xff] }
 0x179   :  { %2114 = vperm.xlu0 %3468, %v2008_v54   ;;  %v779_v6 = vadd.f32 %v644_v58, %v459_v56  ;;  %v772_v7 = vadd.f32 %v639_v59, %v452_v57  ;;  %v776_v8 = vadd.f32 %v644_v58, %v456_v61  ;;  %v774_v12 = vadd.f32 %v639_v59, %v454_v62 }
 0x17a   :  { %v901_v15 = vmax.f32 %v773_v1, 0.0  ;;  %v905_v16 = vmax.f32 %v777_v2, 0.0  ;;  %v903_v17 = vmax.f32 %v775_v3, 0.0  ;;  %v778_v18 = vadd.f32 %v644_v58, %v458_v0  ;;  %v2856_v3 = vld [vmem:[#allocation15] sm:$0xff] }
 0x17b   :  { %v313_v19 = vpop.permute.xlu1 %312  ;;  %v308_v20 = vpop.permute.xlu0 %307  ;;  %v907_v21 = vmax.f32 %v779_v6, 0.0  ;;  %v900_v22 = vmax.f32 %v772_v7, 0.0  ;;  %v904_v23 = vmax.f32 %v776_v8, 0.0  ;;  %v902_v24 = vmax.f32 %v774_v12, 0.0  ;;  %v2016_v8 = vld [vmem:[#allocation14 + $0xd0] sm:$0xff] }
 0x17c   :  { %2129 = vperm.xlu1 %3469, %v2011_v5   ;;  %v981_v25 = vpack.c.bf16 %v905_v16, %v901_v15  ;;  %v906_v26 = vmax.f32 %v778_v18, 0.0  ;;  %v461_v30 = vmul.f32 %v3966_v9, %v308_v20  ;;  %v465_v31 = vmul.f32 %v3966_v9, %v313_v19 }
 0x17d   :  { %2124 = vperm.xlu0 %3468, %v2010_v13   ;;  %v983_v27 = vpack.c.bf16 %v907_v21, %v903_v17  ;;  %v980_v28 = vpack.c.bf16 %v904_v23, %v900_v22  ;;  %v463_v34 = vmul.f32 %v3968_v10, %v308_v20  ;;  %v467_v35 = vmul.f32 %v3968_v10, %v313_v19 }
 0x17e   :  { %1404 = vmatprep.subr.bf16.mxu0 %v981_v25  ;;  %v982_v32 = vpack.c.bf16 %v906_v26, %v902_v24  ;;  %v460_v36 = vmul.f32 %v3972_v11, %v308_v20  ;;  %v464_v39 = vmul.f32 %v3972_v11, %v313_v19  ;;  %v462_v40 = vmul.f32 %v3974_v14, %v308_v20  ;;  %v2858_v24 = vld [vmem:[#allocation15 + $0x10] sm:$0xff] }
 0x17f   :  { %1597 = vmatprep.subr.bf16.mxu1 %v983_v27  ;;  %v654_v37 = vpop.permute.xlu1 %653  ;;  %v649_v38 = vpop.permute.xlu0 %648  ;;  %1405 = vmatpush1.bf16.msra.mxu0 %v980_v28  ;;  %v466_v41 = vmul.f32 %v3974_v14, %v313_v19 }
 0x180   :  { %1598 = vmatpush1.bf16.msra.mxu1 %v982_v32  ;;  %2139 = vperm.xlu1 %3469, %v2013_v29   ;;  %v781_v42 = vadd.f32 %v649_v38, %v461_v30  ;;  %v785_v43 = vadd.f32 %v654_v37, %v465_v31  ;;  %v783_v44 = vadd.f32 %v649_v38, %v463_v34  ;;  %v2857_v29 = vld [vmem:[#allocation15 + $0x8] sm:$0xff] }
 0x181   :  { %2134 = vperm.xlu0 %3468, %v2012_v33   ;;  %v787_v46 = vadd.f32 %v654_v37, %v467_v35  ;;  %v780_v47 = vadd.f32 %v649_v38, %v460_v36  ;;  %v784_v48 = vadd.f32 %v654_v37, %v464_v39  ;;  %v782_v49 = vadd.f32 %v649_v38, %v462_v40 }
 0x182   :  { %v909_v51 = vmax.f32 %v781_v42, 0.0  ;;  %v913_v52 = vmax.f32 %v785_v43, 0.0  ;;  %v911_v53 = vmax.f32 %v783_v44, 0.0  ;;  %v786_v54 = vadd.f32 %v654_v37, %v466_v41 }
 0x183   :  { %v323_v55 = vpop.permute.xlu1 %322  ;;  %v318_v56 = vpop.permute.xlu0 %317  ;;  %v915_v57 = vmax.f32 %v787_v46, 0.0  ;;  %v908_v58 = vmax.f32 %v780_v47, 0.0  ;;  %v912_v59 = vmax.f32 %v784_v48, 0.0  ;;  %v910_v61 = vmax.f32 %v782_v49, 0.0  ;;  %v2860_v46 = vld [vmem:[#allocation15 + $0x20] sm:$0xff]  ;;  %v2859_v49 = vld [vmem:[#allocation15 + $0x18] sm:$0xff] }
 0x184   :  { %2149 = vperm.xlu1 %3469, %v2015_v45   ;;  %v985_v62 = vpack.c.bf16 %v913_v52, %v909_v51  ;;  %v914_v0 = vmax.f32 %v786_v54, 0.0  ;;  %v469_v5 = vmul.f32 %v3966_v9, %v318_v56  ;;  %v473_v6 = vmul.f32 %v3966_v9, %v323_v55 }
 0x185   :  { %2144 = vperm.xlu0 %3468, %v2014_v50   ;;  %v987_v1 = vpack.c.bf16 %v915_v57, %v911_v53  ;;  %v984_v2 = vpack.c.bf16 %v912_v59, %v908_v58  ;;  %v471_v12 = vmul.f32 %v3968_v10, %v318_v56  ;;  %v475_v13 = vmul.f32 %v3968_v10, %v323_v55 }
 0x186   :  { %1406 = vmatprep.subr.bf16.mxu0 %v985_v62  ;;  %v986_v7 = vpack.c.bf16 %v914_v0, %v910_v61  ;;  %v468_v15 = vmul.f32 %v3972_v11, %v318_v56  ;;  %v472_v18 = vmul.f32 %v3972_v11, %v323_v55  ;;  %v470_v19 = vmul.f32 %v3974_v14, %v318_v56  ;;  %v2862_v62 = vld [vmem:[#allocation15 + $0x30] sm:$0xff] }
 0x187   :  { %1599 = vmatprep.subr.bf16.mxu1 %v987_v1  ;;  %v664_v16 = vpop.permute.xlu1 %663  ;;  %v659_v17 = vpop.permute.xlu0 %658  ;;  %1407 = vmatpush1.bf16.msra.mxu0 %v984_v2  ;;  %v474_v20 = vmul.f32 %v3974_v14, %v323_v55  ;;  %v2861_v1 = vld [vmem:[#allocation15 + $0x28] sm:$0xff] }
 0x188   :  { %1600 = vmatpush1.bf16.msra.mxu1 %v986_v7  ;;  %2890 = vperm.xlu1 %3469, %v2856_v3   ;;  %v789_v21 = vadd.f32 %v659_v17, %v469_v5  ;;  %v793_v22 = vadd.f32 %v664_v16, %v473_v6  ;;  %v791_v23 = vadd.f32 %v659_v17, %v471_v12 }
 0x189   :  { %2154 = vperm.xlu0 %3468, %v2016_v8   ;;  %v795_v25 = vadd.f32 %v664_v16, %v475_v13  ;;  %v788_v26 = vadd.f32 %v659_v17, %v468_v15  ;;  %v792_v27 = vadd.f32 %v664_v16, %v472_v18  ;;  %v790_v28 = vadd.f32 %v659_v17, %v470_v19  ;;  %v2864_v18 = vld [vmem:[#allocation15 + $0x40] sm:$0xff]  ;;  %v2863_v19 = vld [vmem:[#allocation15 + $0x38] sm:$0xff] }
 0x18a   :  { %v917_v30 = vmax.f32 %v789_v21, 0.0  ;;  %v921_v31 = vmax.f32 %v793_v22, 0.0  ;;  %v919_v32 = vmax.f32 %v791_v23, 0.0  ;;  %v794_v33 = vadd.f32 %v664_v16, %v474_v20  ;;  %v3470_v20 = vld [vmem:[#allocation9] ss:$8 sps:$4 sm:$0xff]   ;;  %v2866_v22 = vld [vmem:[#allocation15 + $0x50] sm:$0xff] }
 0x18b   :  { %v333_v34 = vpop.permute.xlu1 %332  ;;  %v328_v35 = vpop.permute.xlu0 %327  ;;  %v923_v36 = vmax.f32 %v795_v25, 0.0  ;;  %v916_v37 = vmax.f32 %v788_v26, 0.0  ;;  %v920_v38 = vmax.f32 %v792_v27, 0.0  ;;  %v918_v39 = vmax.f32 %v790_v28, 0.0  ;;  %v3473_v21 = vld [vmem:[#allocation9 + $0x14] ss:$8 sps:$4 sm:$0xff]  }
 0x18c   :  { %2900 = vperm.xlu1 %3469, %v2858_v24   ;;  %v989_v40 = vpack.c.bf16 %v921_v31, %v917_v30  ;;  %v480_v41 = vmul.f32 %v3972_v11, %v333_v34  ;;  %v481_v43 = vmul.f32 %v3966_v9, %v333_v34  ;;  %v922_v45 = vmax.f32 %v794_v33, 0.0  ;;  %v2865_v23 = vld [vmem:[#allocation15 + $0x48] sm:$0xff]  ;;  %v2868_v24 = vld [vmem:[#allocation15 + $0x60] sm:$0xff]  ;;  %v2867_v25 = vld [vmem:[#allocation15 + $0x58] sm:$0xff] }
 0x18d   :  { %2895 = vperm.xlu0 %3468, %v2857_v29   ;;  %v991_v42 = vpack.c.bf16 %v923_v36, %v919_v32  ;;  %v988_v44 = vpack.c.bf16 %v920_v38, %v916_v37  ;;  %v482_v47 = vmul.f32 %v3974_v14, %v333_v34  ;;  %v483_v48 = vmul.f32 %v3968_v10, %v333_v34  ;;  %v3475_v26 = vld [vmem:[#allocation9 + $0x10] ss:$8 sps:$4 sm:$0xff]   ;;  %v3476_v27 = vld [vmem:[#allocation9 + $0x24] ss:$8 sps:$4 sm:$0xff]   ;;  %v3478_v32 = vld [vmem:[#allocation9 + $0x20] ss:$8 sps:$4 sm:$0xff]  }
 0x18e   :  { %1408 = vmatprep.subr.bf16.mxu0 %v989_v40  ;;  %v477_v50 = vmul.f32 %v3966_v9, %v328_v35  ;;  %v479_v51 = vmul.f32 %v3968_v10, %v328_v35  ;;  %v990_v54 = vpack.c.bf16 %v922_v45, %v918_v39  ;;  %v476_v55 = vmul.f32 %v3972_v11, %v328_v35  ;;  %v2870_v28 = vld [vmem:[#allocation15 + $0x70] sm:$0xff]  ;;  %v2869_v29 = vld [vmem:[#allocation15 + $0x68] sm:$0xff]  ;;  %v2872_v30 = vld [vmem:[#allocation15 + $0x80] sm:$0xff] }
 0x18f   :  { %1601 = vmatprep.subr.bf16.mxu1 %v991_v42  ;;  %v674_v52 = vpop.permute.xlu1 %673  ;;  %v669_v53 = vpop.permute.xlu0 %668  ;;  %1409 = vmatpush1.bf16.msra.mxu0 %v988_v44  ;;  %v478_v56 = vmul.f32 %v3974_v14, %v328_v35  ;;  %v2871_v31 = vld [vmem:[#allocation15 + $0x78] sm:$0xff]  ;;  %v2874_v34 = vld [vmem:[#allocation15 + $0x90] sm:$0xff]  ;;  %v2873_v35 = vld [vmem:[#allocation15 + $0x88] sm:$0xff] }
 0x190   :  { %v800_v57 = vadd.f32 %v674_v52, %v480_v41  ;;  %v801_v58 = vadd.f32 %v674_v52, %v481_v43  ;;  %v802_v59 = vadd.f32 %v674_v52, %v482_v47  ;;  %v803_v61 = vadd.f32 %v674_v52, %v483_v48  ;;  %2910 = vperm.xlu1 %3469, %v2860_v46   ;;  %v3479_v33 = vld [vmem:[#allocation9 + $0x34] ss:$8 sps:$4 sm:$0xff]   ;;  %v2876_v36 = vld [vmem:[#allocation15 + $0xa0] sm:$0xff]  ;;  %v3481_v38 = vld [vmem:[#allocation9 + $0x30] ss:$8 sps:$4 sm:$0xff]  }
 0x191   :  { %1602 = vmatpush1.bf16.msra.mxu1 %v990_v54  ;;  %2905 = vperm.xlu0 %3468, %v2859_v49   ;;  %v797_v9 = vadd.f32 %v669_v53, %v477_v50  ;;  %v799_v0 = vadd.f32 %v669_v53, %v479_v51  ;;  %v796_v10 = vadd.f32 %v669_v53, %v476_v55  ;;  %v2875_v37 = vld [vmem:[#allocation15 + $0x98] sm:$0xff]  ;;  %v3482_v39 = vld [vmem:[#allocation9 + $0x44] ss:$8 sps:$4 sm:$0xff]   ;;  %v2878_v40 = vld [vmem:[#allocation15 + $0xb0] sm:$0xff] }
 0x192   :  { %v929_v2 = vmax.f32 %v801_v58, 0.0  ;;  %v931_v3 = vmax.f32 %v803_v61, 0.0  ;;  %v928_v5 = vmax.f32 %v800_v57, 0.0  ;;  %v798_v6 = vadd.f32 %v669_v53, %v478_v56  ;;  %v2877_v41 = vld [vmem:[#allocation15 + $0xa8] sm:$0xff]  ;;  %v2880_v42 = vld [vmem:[#allocation15 + $0xc0] sm:$0xff]  ;;  %v2879_v43 = vld [vmem:[#allocation15 + $0xb8] sm:$0xff] }
 0x193   :  { %v925_v7 = vmax.f32 %v797_v9, 0.0  ;;  %v927_v11 = vmax.f32 %v799_v0, 0.0  ;;  %v924_v8 = vmax.f32 %v796_v10, 0.0  ;;  %v930_v14 = vmax.f32 %v802_v59, 0.0  ;;  %v3484_v44 = vld [vmem:[#allocation9 + $0x40] ss:$8 sps:$4 sm:$0xff]  }
 0x194   :  { %2920 = vperm.xlu1 %3469, %v2862_v62   ;;  %v926_v12 = vmax.f32 %v798_v6, 0.0  ;;  %v3485_v45 = vld [vmem:[#allocation9 + $0x54] ss:$8 sps:$4 sm:$0xff]   ;;  %v2881_v46 = vld [vmem:[#allocation15 + $0xc8] sm:$0xff]  ;;  %v2018_v49 = vld [vmem:[#allocation14 + $0xe0] sm:$0xff] }
 0x195   :  { %2915 = vperm.xlu0 %3468, %v2861_v1   ;;  %v993_v13 = vpack.c.bf16 %v929_v2, %v925_v7  ;;  %v995_v15 = vpack.c.bf16 %v931_v3, %v927_v11  ;;  %v992_v16 = vpack.c.bf16 %v928_v5, %v924_v8  ;;  %v2017_v47 = vld [vmem:[#allocation14 + $0xd8] sm:$0xff]  ;;  %v2882_v48 = vld [vmem:[#allocation15 + $0xd0] sm:$0xff]  ;;  %v3488_v51 = vld [vmem:[#allocation9 + $0x64] ss:$8 sps:$4 sm:$0xff]  }
 0x196   :  { %v994_v17 = vpack.c.bf16 %v930_v14, %v926_v12  ;;  %v3487_v50 = vld [vmem:[#allocation9 + $0x50] ss:$8 sps:$4 sm:$0xff]   ;;  %v2019_v53 = vld [vmem:[#allocation14 + $0xe8] sm:$0xff]  ;;  %v2884_v54 = vld [vmem:[#allocation15 + $0xe0] sm:$0xff] }
 0x197   :  { %1410 = vmatprep.subr.bf16.mxu0 %v993_v13  ;;  %1603 = vmatprep.subr.bf16.mxu1 %v995_v15  ;;  %v2883_v52 = vld [vmem:[#allocation15 + $0xd8] sm:$0xff]  ;;  %v2020_v55 = vld [vmem:[#allocation14 + $0xf0] sm:$0xff]  ;;  %v3490_v56 = vld [vmem:[#allocation9 + $0x60] ss:$8 sps:$4 sm:$0xff]  }
 0x198   :  { %1411 = vmatpush1.bf16.msra.mxu0 %v992_v16  ;;  %1604 = vmatpush1.bf16.msra.mxu1 %v994_v17  ;;  %v3491_v57 = vld [vmem:[#allocation9 + $0x74] ss:$8 sps:$4 sm:$0xff]   ;;  %v2885_v58 = vld [vmem:[#allocation15 + $0xe8] sm:$0xff]  ;;  %v3493_v9 = vld [vmem:[#allocation9 + $0x70] ss:$8 sps:$4 sm:$0xff]  }
 0x199   :  { %2930 = vperm.xlu1 %3469, %v2864_v18   ;;  %2925 = vperm.xlu0 %3468, %v2863_v19   ;;  %v2021_v59 = vld [vmem:[#allocation14 + $0xf8] sm:$0xff]  ;;  %v2886_v62 = vld [vmem:[#allocation15 + $0xf0] sm:$0xff]  ;;  %v3494_v0 = vld [vmem:[#allocation9 + $0x84] ss:$8 sps:$4 sm:$0xff]   ;;  %v1068_v19 = vpop.permute.xlu1 %1067 }
 0x19a   :  { %v2887_v61 = vld [vmem:[#allocation15 + $0xf8] sm:$0xff]  ;;  %v3496_v1 = vld [vmem:[#allocation9 + $0x80] ss:$8 sps:$4 sm:$0xff]   ;;  %v3500_v5 = vld [vmem:[#allocation9 + $0xa4] ss:$8 sps:$4 sm:$0xff]  }
 0x19b   :  { %1413 = vmatmul.mubr.bf16.vlgmr.msra.gmra.mrb[0].mxu0 %v3470_v20  ;;  %1606 = vmatmul.mubr.bf16.vlgmr.msra.gmra.mrb[0].mxu1 %v3470_v20  ;;  %v3324_v10 = vld [vmem:[#allocation2] sm:$0x1]  ;;  %v3497_v2 = vld [vmem:[#allocation9 + $0x94] ss:$8 sps:$4 sm:$0xff]   ;;  %v3502_v6 = vld [vmem:[#allocation9 + $0xa0] ss:$8 sps:$4 sm:$0xff]   ;;  %v1063_v20 = vpop.permute.xlu0 %1062 }
 0x19c   :  { %1422 = vmatprep.mubr.bf16.mxu0 %v3473_v21  ;;  %1615 = vmatprep.mubr.bf16.mxu1 %v3473_v21  ;;  %v3499_v3 = vld [vmem:[#allocation9 + $0x90] ss:$8 sps:$4 sm:$0xff]   ;;  %v3503_v7 = vld [vmem:[#allocation9 + $0xb4] ss:$8 sps:$4 sm:$0xff]   ;;  %v3506_v8 = vld [vmem:[#allocation9 + $0xc4] ss:$8 sps:$4 sm:$0xff]  }
 0x19d   :  { %2940 = vperm.xlu1 %3469, %v2866_v22   ;;  %2935 = vperm.xlu0 %3468, %v2865_v23   ;;  %v3505_v11 = vld [vmem:[#allocation9 + $0xb0] ss:$8 sps:$4 sm:$0xff]   ;;  %v3508_v14 = vld [vmem:[#allocation9 + $0xc0] ss:$8 sps:$4 sm:$0xff]   ;;  %v3509_v12 = vld [vmem:[#allocation9 + $0xd4] ss:$8 sps:$4 sm:$0xff]  }
 0x19e   :  { %v3511_v13 = vld [vmem:[#allocation9 + $0xd0] ss:$8 sps:$4 sm:$0xff]   ;;  %v3512_v15 = vld [vmem:[#allocation9 + $0xe4] ss:$8 sps:$4 sm:$0xff]   ;;  %v3514_v16 = vld [vmem:[#allocation9 + $0xe0] ss:$8 sps:$4 sm:$0xff]  }
 0x19f   :  { %v3515_v17 = vld [vmem:[#allocation9 + $0xf4] ss:$8 sps:$4 sm:$0xff]   ;;  %v3517_v18 = vld [vmem:[#allocation9 + $0xf0] ss:$8 sps:$4 sm:$0xff]  }
 0x1a1   :  { %2950 = vperm.xlu1 %3469, %v2868_v24   ;;  %2945 = vperm.xlu0 %3468, %v2867_v25  }
 0x1a3   :  { %1423 = vmatmul.mubr.bf16.gmra.mrb[4].mxu0 %v3475_v26  ;;  %1616 = vmatmul.mubr.bf16.gmra.mrb[4].mxu1 %v3475_v26 }
 0x1a4   :  { %1432 = vmatprep.mubr.bf16.mxu0 %v3476_v27  ;;  %1625 = vmatprep.mubr.bf16.mxu1 %v3476_v27 }
 0x1a5   :  { %2960 = vperm.xlu1 %3469, %v2870_v28   ;;  %2955 = vperm.xlu0 %3468, %v2869_v29  }
 0x1a9   :  { %2970 = vperm.xlu1 %3469, %v2872_v30   ;;  %2965 = vperm.xlu0 %3468, %v2871_v31  }
 0x1ab   :  { %1433 = vmatmul.mubr.bf16.gmra.mrb[8].mxu0 %v3478_v32  ;;  %1626 = vmatmul.mubr.bf16.gmra.mrb[8].mxu1 %v3478_v32 }
 0x1ac   :  { %1442 = vmatprep.mubr.bf16.mxu0 %v3479_v33  ;;  %1635 = vmatprep.mubr.bf16.mxu1 %v3479_v33 }
 0x1ad   :  { %2980 = vperm.xlu1 %3469, %v2874_v34   ;;  %2975 = vperm.xlu0 %3468, %v2873_v35  }
 0x1b1   :  { %2990 = vperm.xlu1 %3469, %v2876_v36   ;;  %2985 = vperm.xlu0 %3468, %v2875_v37   ;;  %v3520_v37 = vld [vmem:[#allocation12 + $0x4] ss:$8 sps:$4 sm:$0xff]  }
 0x1b3   :  { %1443 = vmatmul.mubr.bf16.gmra.mrb[12].mxu0 %v3481_v38  ;;  %1636 = vmatmul.mubr.bf16.gmra.mrb[12].mxu1 %v3481_v38 }
 0x1b4   :  { %1452 = vmatprep.mubr.bf16.mxu0 %v3482_v39  ;;  %1645 = vmatprep.mubr.bf16.mxu1 %v3482_v39 }
 0x1b5   :  { %3000 = vperm.xlu1 %3469, %v2878_v40   ;;  %2995 = vperm.xlu0 %3468, %v2877_v41  }
 0x1b9   :  { %3010 = vperm.xlu1 %3469, %v2880_v42   ;;  %3005 = vperm.xlu0 %3468, %v2879_v43  }
 0x1bb   :  { %1453 = vmatmul.mubr.bf16.gmra.mrb[16].mxu0 %v3484_v44  ;;  %1646 = vmatmul.mubr.bf16.gmra.mrb[16].mxu1 %v3484_v44 }
 0x1bc   :  { %1462 = vmatprep.mubr.bf16.mxu0 %v3485_v45  ;;  %1655 = vmatprep.mubr.bf16.mxu1 %v3485_v45 }
 0x1bd   :  { %3015 = vperm.xlu1 %3469, %v2881_v46   ;;  %2159 = vperm.xlu0 %3468, %v2017_v47   ;;  %v1078_v46 = vpop.permute.xlu1 %1077  ;;  %v1073_v47 = vpop.permute.xlu0 %1072 }
 0x1c1   :  { %3020 = vperm.xlu1 %3469, %v2882_v48   ;;  %2164 = vperm.xlu0 %3468, %v2018_v49  }
 0x1c3   :  { %1463 = vmatmul.mubr.bf16.gmra.mrb[20].mxu0 %v3487_v50  ;;  %1656 = vmatmul.mubr.bf16.gmra.mrb[20].mxu1 %v3487_v50 }
 0x1c4   :  { %1472 = vmatprep.mubr.bf16.mxu0 %v3488_v51  ;;  %1665 = vmatprep.mubr.bf16.mxu1 %v3488_v51 }
 0x1c5   :  { %3025 = vperm.xlu1 %3469, %v2883_v52   ;;  %2169 = vperm.xlu0 %3468, %v2019_v53  }
 0x1c9   :  { %3030 = vperm.xlu1 %3469, %v2884_v54   ;;  %2174 = vperm.xlu0 %3468, %v2020_v55  }
 0x1cb   :  { %1473 = vmatmul.mubr.bf16.gmra.mrb[24].mxu0 %v3490_v56  ;;  %1666 = vmatmul.mubr.bf16.gmra.mrb[24].mxu1 %v3490_v56 }
 0x1cc   :  { %1482 = vmatprep.mubr.bf16.mxu0 %v3491_v57  ;;  %1675 = vmatprep.mubr.bf16.mxu1 %v3491_v57 }
 0x1cd   :  { %3035 = vperm.xlu1 %3469, %v2885_v58   ;;  %2179 = vperm.xlu0 %3468, %v2021_v59  }
 0x1d1   :  { %3045 = vperm.xlu1 %3469, %v2887_v61   ;;  %3040 = vperm.xlu0 %3468, %v2886_v62  }
 0x1d3   :  { %1483 = vmatmul.mubr.bf16.gmra.mrb[28].mxu0 %v3493_v9  ;;  %1676 = vmatmul.mubr.bf16.gmra.mrb[28].mxu1 %v3493_v9 }
 0x1d4   :  { %1492 = vmatprep.mubr.bf16.mxu0 %v3494_v0  ;;  %1685 = vmatprep.mubr.bf16.mxu1 %v3494_v0 }
 0x1d5   :  { %3327 = vperm.xlu0 %3468, %v3324_v10  }
 0x1db   :  { %1493 = vmatmul.mubr.bf16.gmra.mrb[32].mxu0 %v3496_v1  ;;  %1686 = vmatmul.mubr.bf16.gmra.mrb[32].mxu1 %v3496_v1 }
 0x1dc   :  { %1502 = vmatprep.mubr.bf16.mxu0 %v3497_v2  ;;  %1695 = vmatprep.mubr.bf16.mxu1 %v3497_v2 }
 0x1e3   :  { %1503 = vmatmul.mubr.bf16.gmra.mrb[36].mxu0 %v3499_v3  ;;  %1696 = vmatmul.mubr.bf16.gmra.mrb[36].mxu1 %v3499_v3 }
 0x1e4   :  { %1512 = vmatprep.mubr.bf16.mxu0 %v3500_v5  ;;  %1705 = vmatprep.mubr.bf16.mxu1 %v3500_v5 }
 0x1eb   :  { %1513 = vmatmul.mubr.bf16.gmra.mrb[40].mxu0 %v3502_v6  ;;  %1706 = vmatmul.mubr.bf16.gmra.mrb[40].mxu1 %v3502_v6 }
 0x1ec   :  { %1522 = vmatprep.mubr.bf16.mxu0 %v3503_v7  ;;  %1715 = vmatprep.mubr.bf16.mxu1 %v3503_v7 }
 0x1f3   :  { %1523 = vmatmul.mubr.bf16.gmra.mrb[44].mxu0 %v3505_v11  ;;  %1716 = vmatmul.mubr.bf16.gmra.mrb[44].mxu1 %v3505_v11 }
 0x1f4   :  { %1532 = vmatprep.mubr.bf16.mxu0 %v3506_v8  ;;  %1725 = vmatprep.mubr.bf16.mxu1 %v3506_v8 }
 0x1fb   :  { %1533 = vmatmul.mubr.bf16.gmra.mrb[48].mxu0 %v3508_v14  ;;  %1726 = vmatmul.mubr.bf16.gmra.mrb[48].mxu1 %v3508_v14 }
 0x1fc   :  { %1542 = vmatprep.mubr.bf16.mxu0 %v3509_v12  ;;  %1735 = vmatprep.mubr.bf16.mxu1 %v3509_v12 }
 0x203   :  { %1543 = vmatmul.mubr.bf16.gmra.mrb[52].mxu0 %v3511_v13  ;;  %1736 = vmatmul.mubr.bf16.gmra.mrb[52].mxu1 %v3511_v13 }
 0x204   :  { %1552 = vmatprep.mubr.bf16.mxu0 %v3512_v15  ;;  %1745 = vmatprep.mubr.bf16.mxu1 %v3512_v15  ;;  %v1088_v15 = vpop.permute.xlu1 %1087 }
 0x20b   :  { %1553 = vmatmul.mubr.bf16.gmra.mrb[56].mxu0 %v3514_v16  ;;  %1746 = vmatmul.mubr.bf16.gmra.mrb[56].mxu1 %v3514_v16  ;;  %v1083_v16 = vpop.permute.xlu0 %1082 }
 0x20c   :  { %1562 = vmatprep.mubr.bf16.mxu0 %v3515_v17  ;;  %1755 = vmatprep.mubr.bf16.mxu1 %v3515_v17 }
 0x213   :  { %1563 = vmatmul.mubr.bf16.gmra.mrb[60].mxu0 %v3517_v18  ;;  %1756 = vmatmul.mubr.bf16.gmra.mrb[60].mxu1 %v3517_v18 }
 0x214   :  { %2374 = vmatprep.mubr.bf16.mxu0 %v3520_v37  ;;  %2567 = vmatprep.mubr.bf16.mxu1 %v3520_v37 }
 0x26e   :  { %v1414_v21 = vpop.f32.mrb[0].mxu0  ;;  %v1607_v22 = vpop.f32.mrb[0].mxu1 }
 0x26f   :  { %v1415_v23 = vadd.f32 %v1414_v21, %v1063_v20  ;;  %v1608_v24 = vadd.f32 %v1607_v22, %v1063_v20  ;;  %v1416_v25 = vpop.f32.mrb[1].mxu0  ;;  %v1609_v26 = vpop.f32.mrb[1].mxu1 }
 0x270   :  { %v1417_v27 = vadd.f32 %v1416_v25, %v1063_v20  ;;  %v1610_v28 = vadd.f32 %v1609_v26, %v1063_v20  ;;  %v1418_v29 = vpop.f32.mrb[2].mxu0  ;;  %v1611_v30 = vpop.f32.mrb[2].mxu1 }
 0x271   :  { %v1419_v31 = vadd.f32 %v1418_v29, %v1068_v19  ;;  %v1612_v32 = vadd.f32 %v1611_v30, %v1068_v19  ;;  %v1420_v33 = vpop.f32.mrb[3].mxu0  ;;  %v1613_v34 = vpop.f32.mrb[3].mxu1  ;;  %v1766_v38 = vmax.f32 %v1415_v23, 0.0  ;;  %v1768_v39 = vmax.f32 %v1608_v24, 0.0 }
 0x272   :  { %v1421_v35 = vadd.f32 %v1420_v33, %v1068_v19  ;;  %v1614_v36 = vadd.f32 %v1613_v34, %v1068_v19  ;;  %v1767_v42 = vmax.f32 %v1417_v27, 0.0  ;;  %v1769_v43 = vmax.f32 %v1610_v28, 0.0 }
 0x273   :  { %v1770_v40 = vmax.f32 %v1419_v31, 0.0  ;;  %v1772_v41 = vmax.f32 %v1612_v32, 0.0 }
 0x274   :  { %v1771_v44 = vmax.f32 %v1421_v35, 0.0  ;;  %v1773_v45 = vmax.f32 %v1614_v36, 0.0 }
 0x275   :  { %v1894_v48 = vpack.c.bf16 %v1770_v40, %v1766_v38  ;;  %v1896_v49 = vpack.c.bf16 %v1772_v41, %v1768_v39 }
 0x276   :  { %v1895_v50 = vpack.c.bf16 %v1771_v44, %v1767_v42  ;;  %v1897_v51 = vpack.c.bf16 %v1773_v45, %v1769_v43  ;;  %v1424_v52 = vpop.f32.mrb[4].mxu0  ;;  %v1617_v53 = vpop.f32.mrb[4].mxu1 }
 0x277   :  { %v1425_v54 = vadd.f32 %v1424_v52, %v1073_v47  ;;  %v1618_v55 = vadd.f32 %v1617_v53, %v1073_v47  ;;  %v1426_v56 = vpop.f32.mrb[5].mxu0  ;;  %v1619_v57 = vpop.f32.mrb[5].mxu1 }
 0x278   :  { %v1427_v58 = vadd.f32 %v1426_v56, %v1073_v47  ;;  %v1620_v59 = vadd.f32 %v1619_v57, %v1073_v47  ;;  %v1428_v61 = vpop.f32.mrb[6].mxu0  ;;  %v1621_v62 = vpop.f32.mrb[6].mxu1  ;;  %2342 = vmatprep.subr.bf16.mxu0 %v1895_v50  ;;  %2535 = vmatprep.subr.bf16.mxu1 %v1897_v51 }
 0x279   :  { %v1429_v9 = vadd.f32 %v1428_v61, %v1078_v46  ;;  %v1622_v0 = vadd.f32 %v1621_v62, %v1078_v46  ;;  %v1430_v10 = vpop.f32.mrb[7].mxu0  ;;  %v1623_v1 = vpop.f32.mrb[7].mxu1  ;;  %2343 = vmatpush1.bf16.msra.mxu0 %v1894_v48  ;;  %2536 = vmatpush1.bf16.msra.mxu1 %v1896_v49  ;;  %v1774_v5 = vmax.f32 %v1425_v54, 0.0  ;;  %v1776_v6 = vmax.f32 %v1618_v55, 0.0 }
 0x27a   :  { %v1431_v2 = vadd.f32 %v1430_v10, %v1078_v46  ;;  %v1624_v3 = vadd.f32 %v1623_v1, %v1078_v46  ;;  %v1775_v8 = vmax.f32 %v1427_v58, 0.0  ;;  %v1777_v14 = vmax.f32 %v1620_v59, 0.0  ;;  %v1098_v45 = vpop.permute.xlu1 %1097  ;;  %v1093_v46 = vpop.permute.xlu0 %1092 }
 0x27b   :  { %v1778_v7 = vmax.f32 %v1429_v9, 0.0  ;;  %v1780_v11 = vmax.f32 %v1622_v0, 0.0 }
 0x27c   :  { %v1779_v12 = vmax.f32 %v1431_v2, 0.0  ;;  %v1781_v13 = vmax.f32 %v1624_v3, 0.0 }
 0x27d   :  { %v1898_v17 = vpack.c.bf16 %v1778_v7, %v1774_v5  ;;  %v1900_v18 = vpack.c.bf16 %v1780_v11, %v1776_v6 }
 0x27e   :  { %v1899_v19 = vpack.c.bf16 %v1779_v12, %v1775_v8  ;;  %v1901_v20 = vpack.c.bf16 %v1781_v13, %v1777_v14  ;;  %v1434_v21 = vpop.f32.mrb[8].mxu0  ;;  %v1627_v22 = vpop.f32.mrb[8].mxu1 }
 0x27f   :  { %v1435_v23 = vadd.f32 %v1434_v21, %v1083_v16  ;;  %v1628_v24 = vadd.f32 %v1627_v22, %v1083_v16  ;;  %v1436_v25 = vpop.f32.mrb[9].mxu0  ;;  %v1629_v26 = vpop.f32.mrb[9].mxu1 }
 0x280   :  { %v1437_v27 = vadd.f32 %v1436_v25, %v1083_v16  ;;  %v1630_v28 = vadd.f32 %v1629_v26, %v1083_v16  ;;  %v1438_v29 = vpop.f32.mrb[10].mxu0  ;;  %v1631_v30 = vpop.f32.mrb[10].mxu1  ;;  %2344 = vmatprep.subr.bf16.mxu0 %v1899_v19  ;;  %2537 = vmatprep.subr.bf16.mxu1 %v1901_v20 }
 0x281   :  { %v1439_v31 = vadd.f32 %v1438_v29, %v1088_v15  ;;  %v1632_v32 = vadd.f32 %v1631_v30, %v1088_v15  ;;  %v1440_v33 = vpop.f32.mrb[11].mxu0  ;;  %v1633_v34 = vpop.f32.mrb[11].mxu1  ;;  %2345 = vmatpush1.bf16.msra.mxu0 %v1898_v17  ;;  %2538 = vmatpush1.bf16.msra.mxu1 %v1900_v18  ;;  %v1782_v37 = vmax.f32 %v1435_v23, 0.0  ;;  %v1784_v38 = vmax.f32 %v1628_v24, 0.0 }
 0x282   :  { %v1441_v35 = vadd.f32 %v1440_v33, %v1088_v15  ;;  %v1634_v36 = vadd.f32 %v1633_v34, %v1088_v15  ;;  %v1783_v41 = vmax.f32 %v1437_v27, 0.0  ;;  %v1785_v42 = vmax.f32 %v1630_v28, 0.0  ;;  %v1108_v13 = vpop.permute.xlu1 %1107  ;;  %v1103_v15 = vpop.permute.xlu0 %1102 }
 0x283   :  { %v1786_v39 = vmax.f32 %v1439_v31, 0.0  ;;  %v1788_v40 = vmax.f32 %v1632_v32, 0.0 }
 0x284   :  { %v1787_v43 = vmax.f32 %v1441_v35, 0.0  ;;  %v1789_v44 = vmax.f32 %v1634_v36, 0.0 }
 0x285   :  { %v1902_v47 = vpack.c.bf16 %v1786_v39, %v1782_v37  ;;  %v1904_v48 = vpack.c.bf16 %v1788_v40, %v1784_v38 }
 0x286   :  { %v1903_v49 = vpack.c.bf16 %v1787_v43, %v1783_v41  ;;  %v1905_v50 = vpack.c.bf16 %v1789_v44, %v1785_v42  ;;  %v1444_v51 = vpop.f32.mrb[12].mxu0  ;;  %v1637_v52 = vpop.f32.mrb[12].mxu1 }
 0x287   :  { %v1445_v53 = vadd.f32 %v1444_v51, %v1093_v46  ;;  %v1638_v54 = vadd.f32 %v1637_v52, %v1093_v46  ;;  %v1446_v55 = vpop.f32.mrb[13].mxu0  ;;  %v1639_v56 = vpop.f32.mrb[13].mxu1 }
 0x288   :  { %v1447_v57 = vadd.f32 %v1446_v55, %v1093_v46  ;;  %v1640_v58 = vadd.f32 %v1639_v56, %v1093_v46  ;;  %v1448_v59 = vpop.f32.mrb[14].mxu0  ;;  %v1641_v61 = vpop.f32.mrb[14].mxu1  ;;  %2346 = vmatprep.subr.bf16.mxu0 %v1903_v49  ;;  %2539 = vmatprep.subr.bf16.mxu1 %v1905_v50 }
 0x289   :  { %v1449_v62 = vadd.f32 %v1448_v59, %v1098_v45  ;;  %v1642_v9 = vadd.f32 %v1641_v61, %v1098_v45  ;;  %v1450_v0 = vpop.f32.mrb[15].mxu0  ;;  %v1643_v10 = vpop.f32.mrb[15].mxu1  ;;  %2347 = vmatpush1.bf16.msra.mxu0 %v1902_v47  ;;  %2540 = vmatpush1.bf16.msra.mxu1 %v1904_v48  ;;  %v1790_v3 = vmax.f32 %v1445_v53, 0.0  ;;  %v1792_v5 = vmax.f32 %v1638_v54, 0.0 }
 0x28a   :  { %v1451_v1 = vadd.f32 %v1450_v0, %v1098_v45  ;;  %v1644_v2 = vadd.f32 %v1643_v10, %v1098_v45  ;;  %v1791_v11 = vmax.f32 %v1447_v57, 0.0  ;;  %v1793_v8 = vmax.f32 %v1640_v58, 0.0  ;;  %v1118_v44 = vpop.permute.xlu1 %1117  ;;  %v1113_v45 = vpop.permute.xlu0 %1112 }
 0x28b   :  { %v1794_v6 = vmax.f32 %v1449_v62, 0.0  ;;  %v1796_v7 = vmax.f32 %v1642_v9, 0.0 }
 0x28c   :  { %v1795_v14 = vmax.f32 %v1451_v1, 0.0  ;;  %v1797_v12 = vmax.f32 %v1644_v2, 0.0 }
 0x28d   :  { %v1906_v16 = vpack.c.bf16 %v1794_v6, %v1790_v3  ;;  %v1908_v17 = vpack.c.bf16 %v1796_v7, %v1792_v5 }
 0x28e   :  { %v1907_v18 = vpack.c.bf16 %v1795_v14, %v1791_v11  ;;  %v1909_v19 = vpack.c.bf16 %v1797_v12, %v1793_v8  ;;  %v1454_v20 = vpop.f32.mrb[16].mxu0  ;;  %v1647_v21 = vpop.f32.mrb[16].mxu1 }
 0x28f   :  { %v1455_v22 = vadd.f32 %v1454_v20, %v1103_v15  ;;  %v1648_v23 = vadd.f32 %v1647_v21, %v1103_v15  ;;  %v1456_v24 = vpop.f32.mrb[17].mxu0  ;;  %v1649_v25 = vpop.f32.mrb[17].mxu1 }
 0x290   :  { %v1457_v26 = vadd.f32 %v1456_v24, %v1103_v15  ;;  %v1650_v27 = vadd.f32 %v1649_v25, %v1103_v15  ;;  %v1458_v28 = vpop.f32.mrb[18].mxu0  ;;  %v1651_v29 = vpop.f32.mrb[18].mxu1  ;;  %2348 = vmatprep.subr.bf16.mxu0 %v1907_v18  ;;  %2541 = vmatprep.subr.bf16.mxu1 %v1909_v19 }
 0x291   :  { %v1459_v30 = vadd.f32 %v1458_v28, %v1108_v13  ;;  %v1652_v31 = vadd.f32 %v1651_v29, %v1108_v13  ;;  %v1460_v32 = vpop.f32.mrb[19].mxu0  ;;  %v1653_v33 = vpop.f32.mrb[19].mxu1  ;;  %2349 = vmatpush1.bf16.msra.mxu0 %v1906_v16  ;;  %2542 = vmatpush1.bf16.msra.mxu1 %v1908_v17  ;;  %v1798_v36 = vmax.f32 %v1455_v22, 0.0  ;;  %v1800_v37 = vmax.f32 %v1648_v23, 0.0 }
 0x292   :  { %v1461_v34 = vadd.f32 %v1460_v32, %v1108_v13  ;;  %v1654_v35 = vadd.f32 %v1653_v33, %v1108_v13  ;;  %v1799_v40 = vmax.f32 %v1457_v26, 0.0  ;;  %v1801_v41 = vmax.f32 %v1650_v27, 0.0  ;;  %v1128_v12 = vpop.permute.xlu1 %1127  ;;  %v1123_v13 = vpop.permute.xlu0 %1122 }
 0x293   :  { %v1802_v38 = vmax.f32 %v1459_v30, 0.0  ;;  %v1804_v39 = vmax.f32 %v1652_v31, 0.0 }
 0x294   :  { %v1803_v42 = vmax.f32 %v1461_v34, 0.0  ;;  %v1805_v43 = vmax.f32 %v1654_v35, 0.0 }
 0x295   :  { %v1910_v46 = vpack.c.bf16 %v1802_v38, %v1798_v36  ;;  %v1912_v47 = vpack.c.bf16 %v1804_v39, %v1800_v37 }
 0x296   :  { %v1911_v48 = vpack.c.bf16 %v1803_v42, %v1799_v40  ;;  %v1913_v49 = vpack.c.bf16 %v1805_v43, %v1801_v41  ;;  %v1464_v50 = vpop.f32.mrb[20].mxu0  ;;  %v1657_v51 = vpop.f32.mrb[20].mxu1 }
 0x297   :  { %v1465_v52 = vadd.f32 %v1464_v50, %v1113_v45  ;;  %v1658_v53 = vadd.f32 %v1657_v51, %v1113_v45  ;;  %v1466_v54 = vpop.f32.mrb[21].mxu0  ;;  %v1659_v55 = vpop.f32.mrb[21].mxu1 }
 0x298   :  { %v1467_v56 = vadd.f32 %v1466_v54, %v1113_v45  ;;  %v1660_v57 = vadd.f32 %v1659_v55, %v1113_v45  ;;  %v1468_v58 = vpop.f32.mrb[22].mxu0  ;;  %v1661_v59 = vpop.f32.mrb[22].mxu1  ;;  %2350 = vmatprep.subr.bf16.mxu0 %v1911_v48  ;;  %2543 = vmatprep.subr.bf16.mxu1 %v1913_v49 }
 0x299   :  { %v1469_v61 = vadd.f32 %v1468_v58, %v1118_v44  ;;  %v1662_v62 = vadd.f32 %v1661_v59, %v1118_v44  ;;  %v1470_v9 = vpop.f32.mrb[23].mxu0  ;;  %v1663_v0 = vpop.f32.mrb[23].mxu1  ;;  %2351 = vmatpush1.bf16.msra.mxu0 %v1910_v46  ;;  %2544 = vmatpush1.bf16.msra.mxu1 %v1912_v47  ;;  %v1806_v2 = vmax.f32 %v1465_v52, 0.0  ;;  %v1808_v3 = vmax.f32 %v1658_v53, 0.0 }
 0x29a   :  { %v1471_v10 = vadd.f32 %v1470_v9, %v1118_v44  ;;  %v1664_v1 = vadd.f32 %v1663_v0, %v1118_v44  ;;  %v1807_v7 = vmax.f32 %v1467_v56, 0.0  ;;  %v1809_v11 = vmax.f32 %v1660_v57, 0.0  ;;  %v1138_v43 = vpop.permute.xlu1 %1137  ;;  %v1133_v44 = vpop.permute.xlu0 %1132 }
 0x29b   :  { %v1810_v5 = vmax.f32 %v1469_v61, 0.0  ;;  %v1812_v6 = vmax.f32 %v1662_v62, 0.0 }
 0x29c   :  { %v1811_v8 = vmax.f32 %v1471_v10, 0.0  ;;  %v1813_v14 = vmax.f32 %v1664_v1, 0.0 }
 0x29d   :  { %v1914_v15 = vpack.c.bf16 %v1810_v5, %v1806_v2  ;;  %v1916_v16 = vpack.c.bf16 %v1812_v6, %v1808_v3 }
 0x29e   :  { %v1915_v17 = vpack.c.bf16 %v1811_v8, %v1807_v7  ;;  %v1917_v18 = vpack.c.bf16 %v1813_v14, %v1809_v11  ;;  %v1474_v19 = vpop.f32.mrb[24].mxu0  ;;  %v1667_v20 = vpop.f32.mrb[24].mxu1 }
 0x29f   :  { %v1475_v21 = vadd.f32 %v1474_v19, %v1123_v13  ;;  %v1668_v22 = vadd.f32 %v1667_v20, %v1123_v13  ;;  %v1476_v23 = vpop.f32.mrb[25].mxu0  ;;  %v1669_v24 = vpop.f32.mrb[25].mxu1 }
 0x2a0   :  { %v1477_v25 = vadd.f32 %v1476_v23, %v1123_v13  ;;  %v1670_v26 = vadd.f32 %v1669_v24, %v1123_v13  ;;  %v1478_v27 = vpop.f32.mrb[26].mxu0  ;;  %v1671_v28 = vpop.f32.mrb[26].mxu1  ;;  %2352 = vmatprep.subr.bf16.mxu0 %v1915_v17  ;;  %2545 = vmatprep.subr.bf16.mxu1 %v1917_v18 }
 0x2a1   :  { %v1479_v29 = vadd.f32 %v1478_v27, %v1128_v12  ;;  %v1672_v30 = vadd.f32 %v1671_v28, %v1128_v12  ;;  %v1480_v31 = vpop.f32.mrb[27].mxu0  ;;  %v1673_v32 = vpop.f32.mrb[27].mxu1  ;;  %2353 = vmatpush1.bf16.msra.mxu0 %v1914_v15  ;;  %2546 = vmatpush1.bf16.msra.mxu1 %v1916_v16  ;;  %v1814_v35 = vmax.f32 %v1475_v21, 0.0  ;;  %v1816_v36 = vmax.f32 %v1668_v22, 0.0 }
 0x2a2   :  { %v1481_v33 = vadd.f32 %v1480_v31, %v1128_v12  ;;  %v1674_v34 = vadd.f32 %v1673_v32, %v1128_v12  ;;  %v1815_v39 = vmax.f32 %v1477_v25, 0.0  ;;  %v1817_v40 = vmax.f32 %v1670_v26, 0.0  ;;  %v1148_v14 = vpop.permute.xlu1 %1147  ;;  %v1143_v12 = vpop.permute.xlu0 %1142 }
 0x2a3   :  { %v1818_v37 = vmax.f32 %v1479_v29, 0.0  ;;  %v1820_v38 = vmax.f32 %v1672_v30, 0.0 }
 0x2a4   :  { %v1819_v41 = vmax.f32 %v1481_v33, 0.0  ;;  %v1821_v42 = vmax.f32 %v1674_v34, 0.0 }
 0x2a5   :  { %v1918_v45 = vpack.c.bf16 %v1818_v37, %v1814_v35  ;;  %v1920_v46 = vpack.c.bf16 %v1820_v38, %v1816_v36 }
 0x2a6   :  { %v1919_v47 = vpack.c.bf16 %v1819_v41, %v1815_v39  ;;  %v1921_v48 = vpack.c.bf16 %v1821_v42, %v1817_v40  ;;  %v1484_v49 = vpop.f32.mrb[28].mxu0  ;;  %v1677_v50 = vpop.f32.mrb[28].mxu1 }
 0x2a7   :  { %v1485_v51 = vadd.f32 %v1484_v49, %v1133_v44  ;;  %v1678_v52 = vadd.f32 %v1677_v50, %v1133_v44  ;;  %v1486_v53 = vpop.f32.mrb[29].mxu0  ;;  %v1679_v54 = vpop.f32.mrb[29].mxu1 }
 0x2a8   :  { %v1487_v55 = vadd.f32 %v1486_v53, %v1133_v44  ;;  %v1680_v56 = vadd.f32 %v1679_v54, %v1133_v44  ;;  %v1488_v57 = vpop.f32.mrb[30].mxu0  ;;  %v1681_v58 = vpop.f32.mrb[30].mxu1  ;;  %2354 = vmatprep.subr.bf16.mxu0 %v1919_v47  ;;  %2547 = vmatprep.subr.bf16.mxu1 %v1921_v48 }
 0x2a9   :  { %v1489_v59 = vadd.f32 %v1488_v57, %v1138_v43  ;;  %v1682_v61 = vadd.f32 %v1681_v58, %v1138_v43  ;;  %v1490_v62 = vpop.f32.mrb[31].mxu0  ;;  %v1683_v9 = vpop.f32.mrb[31].mxu1  ;;  %2355 = vmatpush1.bf16.msra.mxu0 %v1918_v45  ;;  %2548 = vmatpush1.bf16.msra.mxu1 %v1920_v46  ;;  %v1822_v1 = vmax.f32 %v1485_v51, 0.0  ;;  %v1824_v2 = vmax.f32 %v1678_v52, 0.0 }
 0x2aa   :  { %v1491_v0 = vadd.f32 %v1490_v62, %v1138_v43  ;;  %v1684_v10 = vadd.f32 %v1683_v9, %v1138_v43  ;;  %v1823_v6 = vmax.f32 %v1487_v55, 0.0  ;;  %v1825_v7 = vmax.f32 %v1680_v56, 0.0  ;;  %v1158_v42 = vpop.permute.xlu1 %1157  ;;  %v1153_v43 = vpop.permute.xlu0 %1152 }
 0x2ab   :  { %v1826_v3 = vmax.f32 %v1489_v59, 0.0  ;;  %v1828_v5 = vmax.f32 %v1682_v61, 0.0 }
 0x2ac   :  { %v1827_v11 = vmax.f32 %v1491_v0, 0.0  ;;  %v1829_v8 = vmax.f32 %v1684_v10, 0.0 }
 0x2ad   :  { %v1922_v13 = vpack.c.bf16 %v1826_v3, %v1822_v1  ;;  %v1924_v15 = vpack.c.bf16 %v1828_v5, %v1824_v2 }
 0x2ae   :  { %v1923_v16 = vpack.c.bf16 %v1827_v11, %v1823_v6  ;;  %v1925_v17 = vpack.c.bf16 %v1829_v8, %v1825_v7  ;;  %v1494_v18 = vpop.f32.mrb[32].mxu0  ;;  %v1687_v19 = vpop.f32.mrb[32].mxu1 }
 0x2af   :  { %v1495_v20 = vadd.f32 %v1494_v18, %v1143_v12  ;;  %v1688_v21 = vadd.f32 %v1687_v19, %v1143_v12  ;;  %v1496_v22 = vpop.f32.mrb[33].mxu0  ;;  %v1689_v23 = vpop.f32.mrb[33].mxu1 }
 0x2b0   :  { %v1497_v24 = vadd.f32 %v1496_v22, %v1143_v12  ;;  %v1690_v25 = vadd.f32 %v1689_v23, %v1143_v12  ;;  %v1498_v26 = vpop.f32.mrb[34].mxu0  ;;  %v1691_v27 = vpop.f32.mrb[34].mxu1  ;;  %2356 = vmatprep.subr.bf16.mxu0 %v1923_v16  ;;  %2549 = vmatprep.subr.bf16.mxu1 %v1925_v17 }
 0x2b1   :  { %v1499_v28 = vadd.f32 %v1498_v26, %v1148_v14  ;;  %v1692_v29 = vadd.f32 %v1691_v27, %v1148_v14  ;;  %v1500_v30 = vpop.f32.mrb[35].mxu0  ;;  %v1693_v31 = vpop.f32.mrb[35].mxu1  ;;  %2357 = vmatpush1.bf16.msra.mxu0 %v1922_v13  ;;  %2550 = vmatpush1.bf16.msra.mxu1 %v1924_v15  ;;  %v1830_v34 = vmax.f32 %v1495_v20, 0.0  ;;  %v1832_v35 = vmax.f32 %v1688_v21, 0.0 }
 0x2b2   :  { %v1501_v32 = vadd.f32 %v1500_v30, %v1148_v14  ;;  %v1694_v33 = vadd.f32 %v1693_v31, %v1148_v14  ;;  %v1831_v38 = vmax.f32 %v1497_v24, 0.0  ;;  %v1833_v39 = vmax.f32 %v1690_v25, 0.0  ;;  %v1168_v8 = vpop.permute.xlu1 %1167  ;;  %v1163_v14 = vpop.permute.xlu0 %1162 }
 0x2b3   :  { %v1834_v36 = vmax.f32 %v1499_v28, 0.0  ;;  %v1836_v37 = vmax.f32 %v1692_v29, 0.0 }
 0x2b4   :  { %v1835_v40 = vmax.f32 %v1501_v32, 0.0  ;;  %v1837_v41 = vmax.f32 %v1694_v33, 0.0 }
 0x2b5   :  { %v1926_v44 = vpack.c.bf16 %v1834_v36, %v1830_v34  ;;  %v1928_v45 = vpack.c.bf16 %v1836_v37, %v1832_v35 }
 0x2b6   :  { %v1927_v46 = vpack.c.bf16 %v1835_v40, %v1831_v38  ;;  %v1929_v47 = vpack.c.bf16 %v1837_v41, %v1833_v39  ;;  %v1504_v48 = vpop.f32.mrb[36].mxu0  ;;  %v1697_v49 = vpop.f32.mrb[36].mxu1 }
 0x2b7   :  { %v1505_v50 = vadd.f32 %v1504_v48, %v1153_v43  ;;  %v1698_v51 = vadd.f32 %v1697_v49, %v1153_v43  ;;  %v1506_v52 = vpop.f32.mrb[37].mxu0  ;;  %v1699_v53 = vpop.f32.mrb[37].mxu1 }
 0x2b8   :  { %v1507_v54 = vadd.f32 %v1506_v52, %v1153_v43  ;;  %v1700_v55 = vadd.f32 %v1699_v53, %v1153_v43  ;;  %v1508_v56 = vpop.f32.mrb[38].mxu0  ;;  %v1701_v57 = vpop.f32.mrb[38].mxu1  ;;  %2358 = vmatprep.subr.bf16.mxu0 %v1927_v46  ;;  %2551 = vmatprep.subr.bf16.mxu1 %v1929_v47 }
 0x2b9   :  { %v1509_v58 = vadd.f32 %v1508_v56, %v1158_v42  ;;  %v1702_v59 = vadd.f32 %v1701_v57, %v1158_v42  ;;  %v1510_v61 = vpop.f32.mrb[39].mxu0  ;;  %v1703_v62 = vpop.f32.mrb[39].mxu1  ;;  %2359 = vmatpush1.bf16.msra.mxu0 %v1926_v44  ;;  %2552 = vmatpush1.bf16.msra.mxu1 %v1928_v45  ;;  %v1838_v10 = vmax.f32 %v1505_v50, 0.0  ;;  %v1840_v1 = vmax.f32 %v1698_v51, 0.0 }
 0x2ba   :  { %v1511_v9 = vadd.f32 %v1510_v61, %v1158_v42  ;;  %v1704_v0 = vadd.f32 %v1703_v62, %v1158_v42  ;;  %v1839_v5 = vmax.f32 %v1507_v54, 0.0  ;;  %v1841_v6 = vmax.f32 %v1700_v55, 0.0  ;;  %v1178_v41 = vpop.permute.xlu1 %1177  ;;  %v1173_v42 = vpop.permute.xlu0 %1172 }
 0x2bb   :  { %v1842_v2 = vmax.f32 %v1509_v58, 0.0  ;;  %v1844_v3 = vmax.f32 %v1702_v59, 0.0 }
 0x2bc   :  { %v1843_v7 = vmax.f32 %v1511_v9, 0.0  ;;  %v1845_v11 = vmax.f32 %v1704_v0, 0.0 }
 0x2bd   :  { %v1930_v12 = vpack.c.bf16 %v1842_v2, %v1838_v10  ;;  %v1932_v13 = vpack.c.bf16 %v1844_v3, %v1840_v1 }
 0x2be   :  { %v1931_v15 = vpack.c.bf16 %v1843_v7, %v1839_v5  ;;  %v1933_v16 = vpack.c.bf16 %v1845_v11, %v1841_v6  ;;  %v1514_v17 = vpop.f32.mrb[40].mxu0  ;;  %v1707_v18 = vpop.f32.mrb[40].mxu1 }
 0x2bf   :  { %v1515_v19 = vadd.f32 %v1514_v17, %v1163_v14  ;;  %v1708_v20 = vadd.f32 %v1707_v18, %v1163_v14  ;;  %v1516_v21 = vpop.f32.mrb[41].mxu0  ;;  %v1709_v22 = vpop.f32.mrb[41].mxu1 }
 0x2c0   :  { %v1517_v23 = vadd.f32 %v1516_v21, %v1163_v14  ;;  %v1710_v24 = vadd.f32 %v1709_v22, %v1163_v14  ;;  %v1518_v25 = vpop.f32.mrb[42].mxu0  ;;  %v1711_v26 = vpop.f32.mrb[42].mxu1  ;;  %2360 = vmatprep.subr.bf16.mxu0 %v1931_v15  ;;  %2553 = vmatprep.subr.bf16.mxu1 %v1933_v16 }
 0x2c1   :  { %v1519_v27 = vadd.f32 %v1518_v25, %v1168_v8  ;;  %v1712_v28 = vadd.f32 %v1711_v26, %v1168_v8  ;;  %v1520_v29 = vpop.f32.mrb[43].mxu0  ;;  %v1713_v30 = vpop.f32.mrb[43].mxu1  ;;  %2361 = vmatpush1.bf16.msra.mxu0 %v1930_v12  ;;  %2554 = vmatpush1.bf16.msra.mxu1 %v1932_v13  ;;  %v1846_v33 = vmax.f32 %v1515_v19, 0.0  ;;  %v1848_v34 = vmax.f32 %v1708_v20, 0.0 }
 0x2c2   :  { %v1521_v31 = vadd.f32 %v1520_v29, %v1168_v8  ;;  %v1714_v32 = vadd.f32 %v1713_v30, %v1168_v8  ;;  %v1847_v37 = vmax.f32 %v1517_v23, 0.0  ;;  %v1849_v38 = vmax.f32 %v1710_v24, 0.0  ;;  %v1188_v11 = vpop.permute.xlu1 %1187  ;;  %v1183_v8 = vpop.permute.xlu0 %1182 }
 0x2c3   :  { %v1850_v35 = vmax.f32 %v1519_v27, 0.0  ;;  %v1852_v36 = vmax.f32 %v1712_v28, 0.0 }
 0x2c4   :  { %v1851_v39 = vmax.f32 %v1521_v31, 0.0  ;;  %v1853_v40 = vmax.f32 %v1714_v32, 0.0 }
 0x2c5   :  { %v1934_v43 = vpack.c.bf16 %v1850_v35, %v1846_v33  ;;  %v1936_v44 = vpack.c.bf16 %v1852_v36, %v1848_v34 }
 0x2c6   :  { %v1935_v45 = vpack.c.bf16 %v1851_v39, %v1847_v37  ;;  %v1937_v46 = vpack.c.bf16 %v1853_v40, %v1849_v38  ;;  %v1524_v47 = vpop.f32.mrb[44].mxu0  ;;  %v1717_v48 = vpop.f32.mrb[44].mxu1 }
 0x2c7   :  { %v1525_v49 = vadd.f32 %v1524_v47, %v1173_v42  ;;  %v1718_v50 = vadd.f32 %v1717_v48, %v1173_v42  ;;  %v1526_v51 = vpop.f32.mrb[45].mxu0  ;;  %v1719_v52 = vpop.f32.mrb[45].mxu1 }
 0x2c8   :  { %v1527_v53 = vadd.f32 %v1526_v51, %v1173_v42  ;;  %v1720_v54 = vadd.f32 %v1719_v52, %v1173_v42  ;;  %v1528_v55 = vpop.f32.mrb[46].mxu0  ;;  %v1721_v56 = vpop.f32.mrb[46].mxu1  ;;  %2362 = vmatprep.subr.bf16.mxu0 %v1935_v45  ;;  %2555 = vmatprep.subr.bf16.mxu1 %v1937_v46 }
 0x2c9   :  { %v1529_v57 = vadd.f32 %v1528_v55, %v1178_v41  ;;  %v1722_v58 = vadd.f32 %v1721_v56, %v1178_v41  ;;  %v1530_v59 = vpop.f32.mrb[47].mxu0  ;;  %v1723_v61 = vpop.f32.mrb[47].mxu1  ;;  %2363 = vmatpush1.bf16.msra.mxu0 %v1934_v43  ;;  %2556 = vmatpush1.bf16.msra.mxu1 %v1936_v44  ;;  %v1854_v0 = vmax.f32 %v1525_v49, 0.0  ;;  %v1856_v10 = vmax.f32 %v1718_v50, 0.0 }
 0x2ca   :  { %v1531_v62 = vadd.f32 %v1530_v59, %v1178_v41  ;;  %v1724_v9 = vadd.f32 %v1723_v61, %v1178_v41  ;;  %v1855_v3 = vmax.f32 %v1527_v53, 0.0  ;;  %v1857_v5 = vmax.f32 %v1720_v54, 0.0  ;;  %v1198_v40 = vpop.permute.xlu1 %1197  ;;  %v1193_v41 = vpop.permute.xlu0 %1192 }
 0x2cb   :  { %v1858_v1 = vmax.f32 %v1529_v57, 0.0  ;;  %v1860_v2 = vmax.f32 %v1722_v58, 0.0 }
 0x2cc   :  { %v1859_v6 = vmax.f32 %v1531_v62, 0.0  ;;  %v1861_v7 = vmax.f32 %v1724_v9, 0.0 }
 0x2cd   :  { %v1938_v14 = vpack.c.bf16 %v1858_v1, %v1854_v0  ;;  %v1940_v12 = vpack.c.bf16 %v1860_v2, %v1856_v10 }
 0x2ce   :  { %v1939_v13 = vpack.c.bf16 %v1859_v6, %v1855_v3  ;;  %v1941_v15 = vpack.c.bf16 %v1861_v7, %v1857_v5  ;;  %v1534_v16 = vpop.f32.mrb[48].mxu0  ;;  %v1727_v17 = vpop.f32.mrb[48].mxu1 }
 0x2cf   :  { %v1535_v18 = vadd.f32 %v1534_v16, %v1183_v8  ;;  %v1728_v19 = vadd.f32 %v1727_v17, %v1183_v8  ;;  %v1536_v20 = vpop.f32.mrb[49].mxu0  ;;  %v1729_v21 = vpop.f32.mrb[49].mxu1 }
 0x2d0   :  { %v1537_v22 = vadd.f32 %v1536_v20, %v1183_v8  ;;  %v1730_v23 = vadd.f32 %v1729_v21, %v1183_v8  ;;  %v1538_v24 = vpop.f32.mrb[50].mxu0  ;;  %v1731_v25 = vpop.f32.mrb[50].mxu1  ;;  %2364 = vmatprep.subr.bf16.mxu0 %v1939_v13  ;;  %2557 = vmatprep.subr.bf16.mxu1 %v1941_v15 }
 0x2d1   :  { %v1539_v26 = vadd.f32 %v1538_v24, %v1188_v11  ;;  %v1732_v27 = vadd.f32 %v1731_v25, %v1188_v11  ;;  %v1540_v28 = vpop.f32.mrb[51].mxu0  ;;  %v1733_v29 = vpop.f32.mrb[51].mxu1  ;;  %2365 = vmatpush1.bf16.msra.mxu0 %v1938_v14  ;;  %2558 = vmatpush1.bf16.msra.mxu1 %v1940_v12  ;;  %v1862_v32 = vmax.f32 %v1535_v18, 0.0  ;;  %v1864_v33 = vmax.f32 %v1728_v19, 0.0 }
 0x2d2   :  { %v1541_v30 = vadd.f32 %v1540_v28, %v1188_v11  ;;  %v1734_v31 = vadd.f32 %v1733_v29, %v1188_v11  ;;  %v1863_v36 = vmax.f32 %v1537_v22, 0.0  ;;  %v1865_v37 = vmax.f32 %v1730_v23, 0.0  ;;  %v1208_v7 = vpop.permute.xlu1 %1207  ;;  %v1203_v11 = vpop.permute.xlu0 %1202 }
 0x2d3   :  { %v1866_v34 = vmax.f32 %v1539_v26, 0.0  ;;  %v1868_v35 = vmax.f32 %v1732_v27, 0.0 }
 0x2d4   :  { %v1867_v38 = vmax.f32 %v1541_v30, 0.0  ;;  %v1869_v39 = vmax.f32 %v1734_v31, 0.0 }
 0x2d5   :  { %v1942_v42 = vpack.c.bf16 %v1866_v34, %v1862_v32  ;;  %v1944_v43 = vpack.c.bf16 %v1868_v35, %v1864_v33 }
 0x2d6   :  { %v1943_v44 = vpack.c.bf16 %v1867_v38, %v1863_v36  ;;  %v1945_v45 = vpack.c.bf16 %v1869_v39, %v1865_v37  ;;  %v1544_v46 = vpop.f32.mrb[52].mxu0  ;;  %v1737_v47 = vpop.f32.mrb[52].mxu1 }
 0x2d7   :  { %v1545_v48 = vadd.f32 %v1544_v46, %v1193_v41  ;;  %v1738_v49 = vadd.f32 %v1737_v47, %v1193_v41  ;;  %v1546_v50 = vpop.f32.mrb[53].mxu0  ;;  %v1739_v51 = vpop.f32.mrb[53].mxu1 }
 0x2d8   :  { %v1547_v52 = vadd.f32 %v1546_v50, %v1193_v41  ;;  %v1740_v53 = vadd.f32 %v1739_v51, %v1193_v41  ;;  %v1548_v54 = vpop.f32.mrb[54].mxu0  ;;  %v1741_v55 = vpop.f32.mrb[54].mxu1  ;;  %2366 = vmatprep.subr.bf16.mxu0 %v1943_v44  ;;  %2559 = vmatprep.subr.bf16.mxu1 %v1945_v45 }
 0x2d9   :  { %v1549_v56 = vadd.f32 %v1548_v54, %v1198_v40  ;;  %v1742_v57 = vadd.f32 %v1741_v55, %v1198_v40  ;;  %v1550_v58 = vpop.f32.mrb[55].mxu0  ;;  %v1743_v59 = vpop.f32.mrb[55].mxu1  ;;  %2367 = vmatpush1.bf16.msra.mxu0 %v1942_v42  ;;  %2560 = vmatpush1.bf16.msra.mxu1 %v1944_v43  ;;  %v1870_v9 = vmax.f32 %v1545_v48, 0.0  ;;  %v1872_v0 = vmax.f32 %v1738_v49, 0.0 }
 0x2da   :  { %v1551_v61 = vadd.f32 %v1550_v58, %v1198_v40  ;;  %v1744_v62 = vadd.f32 %v1743_v59, %v1198_v40  ;;  %v1871_v2 = vmax.f32 %v1547_v52, 0.0  ;;  %v1873_v3 = vmax.f32 %v1740_v53, 0.0  ;;  %v1218_v39 = vpop.permute.xlu1 %1217  ;;  %v1213_v40 = vpop.permute.xlu0 %1212 }
 0x2db   :  { %v1874_v10 = vmax.f32 %v1549_v56, 0.0  ;;  %v1876_v1 = vmax.f32 %v1742_v57, 0.0 }
 0x2dc   :  { %v1875_v5 = vmax.f32 %v1551_v61, 0.0  ;;  %v1877_v6 = vmax.f32 %v1744_v62, 0.0 }
 0x2dd   :  { %v1946_v8 = vpack.c.bf16 %v1874_v10, %v1870_v9  ;;  %v1948_v14 = vpack.c.bf16 %v1876_v1, %v1872_v0 }
 0x2de   :  { %v1947_v12 = vpack.c.bf16 %v1875_v5, %v1871_v2  ;;  %v1949_v13 = vpack.c.bf16 %v1877_v6, %v1873_v3  ;;  %v1554_v15 = vpop.f32.mrb[56].mxu0  ;;  %v1747_v16 = vpop.f32.mrb[56].mxu1 }
 0x2df   :  { %v1555_v17 = vadd.f32 %v1554_v15, %v1203_v11  ;;  %v1748_v18 = vadd.f32 %v1747_v16, %v1203_v11  ;;  %v1556_v19 = vpop.f32.mrb[57].mxu0  ;;  %v1749_v20 = vpop.f32.mrb[57].mxu1  ;;  %v3524_v15 = vld [vmem:[#allocation12 + $0x24] ss:$8 sps:$4 sm:$0xff]   ;;  %v3526_v16 = vld [vmem:[#allocation12 + $0x20] ss:$8 sps:$4 sm:$0xff]  }
 0x2e0   :  { %v1557_v21 = vadd.f32 %v1556_v19, %v1203_v11  ;;  %v1750_v22 = vadd.f32 %v1749_v20, %v1203_v11  ;;  %v1558_v23 = vpop.f32.mrb[58].mxu0  ;;  %v1751_v24 = vpop.f32.mrb[58].mxu1  ;;  %2368 = vmatprep.subr.bf16.mxu0 %v1947_v12  ;;  %2561 = vmatprep.subr.bf16.mxu1 %v1949_v13  ;;  %v3521_v12 = vld [vmem:[#allocation12 + $0x14] ss:$8 sps:$4 sm:$0xff]   ;;  %v3523_v13 = vld [vmem:[#allocation12 + $0x10] ss:$8 sps:$4 sm:$0xff]  }
 0x2e1   :  { %v1559_v25 = vadd.f32 %v1558_v23, %v1208_v7  ;;  %v1752_v26 = vadd.f32 %v1751_v24, %v1208_v7  ;;  %v1560_v27 = vpop.f32.mrb[59].mxu0  ;;  %v1753_v28 = vpop.f32.mrb[59].mxu1  ;;  %2369 = vmatpush1.bf16.msra.mxu0 %v1946_v8  ;;  %2562 = vmatpush1.bf16.msra.mxu1 %v1948_v14  ;;  %v1878_v31 = vmax.f32 %v1555_v17, 0.0  ;;  %v1880_v32 = vmax.f32 %v1748_v18, 0.0  ;;  %v3518_v14 = vld [vmem:[#allocation12] ss:$8 sps:$4 sm:$0xff]  }
 0x2e2   :  { %v1561_v29 = vadd.f32 %v1560_v27, %v1208_v7  ;;  %v1754_v30 = vadd.f32 %v1753_v28, %v1208_v7  ;;  %v1879_v35 = vmax.f32 %v1557_v21, 0.0  ;;  %v1881_v36 = vmax.f32 %v1750_v22, 0.0  ;;  %v3527_v17 = vld [vmem:[#allocation12 + $0x34] ss:$8 sps:$4 sm:$0xff]   ;;  %v3529_v18 = vld [vmem:[#allocation12 + $0x30] ss:$8 sps:$4 sm:$0xff]  }
 0x2e3   :  { %v1882_v33 = vmax.f32 %v1559_v25, 0.0  ;;  %v1884_v34 = vmax.f32 %v1752_v26, 0.0  ;;  %v3530_v19 = vld [vmem:[#allocation12 + $0x44] ss:$8 sps:$4 sm:$0xff]   ;;  %v3532_v20 = vld [vmem:[#allocation12 + $0x40] ss:$8 sps:$4 sm:$0xff]  }
 0x2e4   :  { %v1883_v37 = vmax.f32 %v1561_v29, 0.0  ;;  %v1885_v38 = vmax.f32 %v1754_v30, 0.0  ;;  %v3533_v21 = vld [vmem:[#allocation12 + $0x54] ss:$8 sps:$4 sm:$0xff]   ;;  %v3535_v22 = vld [vmem:[#allocation12 + $0x50] ss:$8 sps:$4 sm:$0xff]  }
 0x2e5   :  { %v1950_v41 = vpack.c.bf16 %v1882_v33, %v1878_v31  ;;  %v1952_v42 = vpack.c.bf16 %v1884_v34, %v1880_v32  ;;  %v3536_v23 = vld [vmem:[#allocation12 + $0x64] ss:$8 sps:$4 sm:$0xff]   ;;  %v3538_v24 = vld [vmem:[#allocation12 + $0x60] ss:$8 sps:$4 sm:$0xff]   ;;  %v3539_v25 = vld [vmem:[#allocation12 + $0x74] ss:$8 sps:$4 sm:$0xff]  }
 0x2e6   :  { %v1951_v43 = vpack.c.bf16 %v1883_v37, %v1879_v35  ;;  %v1953_v44 = vpack.c.bf16 %v1885_v38, %v1881_v36  ;;  %v1564_v45 = vpop.f32.mrb[60].mxu0  ;;  %v1757_v46 = vpop.f32.mrb[60].mxu1  ;;  %v3541_v26 = vld [vmem:[#allocation12 + $0x70] ss:$8 sps:$4 sm:$0xff]   ;;  %v3542_v27 = vld [vmem:[#allocation12 + $0x84] ss:$8 sps:$4 sm:$0xff]  }
 0x2e7   :  { %v1565_v47 = vadd.f32 %v1564_v45, %v1213_v40  ;;  %v1758_v48 = vadd.f32 %v1757_v46, %v1213_v40  ;;  %v1566_v49 = vpop.f32.mrb[61].mxu0  ;;  %v1759_v50 = vpop.f32.mrb[61].mxu1  ;;  %v3544_v28 = vld [vmem:[#allocation12 + $0x80] ss:$8 sps:$4 sm:$0xff]   ;;  %v3545_v29 = vld [vmem:[#allocation12 + $0x94] ss:$8 sps:$4 sm:$0xff]  }
 0x2e8   :  { %v1567_v51 = vadd.f32 %v1566_v49, %v1213_v40  ;;  %v1760_v52 = vadd.f32 %v1759_v50, %v1213_v40  ;;  %v1568_v53 = vpop.f32.mrb[62].mxu0  ;;  %v1761_v54 = vpop.f32.mrb[62].mxu1  ;;  %2370 = vmatprep.subr.bf16.mxu0 %v1951_v43  ;;  %2563 = vmatprep.subr.bf16.mxu1 %v1953_v44  ;;  %v3547_v30 = vld [vmem:[#allocation12 + $0x90] ss:$8 sps:$4 sm:$0xff]   ;;  %v3548_v31 = vld [vmem:[#allocation12 + $0xa4] ss:$8 sps:$4 sm:$0xff]  }
 0x2e9   :  { %v1569_v55 = vadd.f32 %v1568_v53, %v1218_v39  ;;  %v1762_v56 = vadd.f32 %v1761_v54, %v1218_v39  ;;  %v1570_v57 = vpop.f32.mrb[63].mxu0  ;;  %v1763_v58 = vpop.f32.mrb[63].mxu1  ;;  %2371 = vmatpush1.bf16.msra.mxu0 %v1950_v41  ;;  %2564 = vmatpush1.bf16.msra.mxu1 %v1952_v42  ;;  %v1886_v62 = vmax.f32 %v1565_v47, 0.0  ;;  %v1888_v9 = vmax.f32 %v1758_v48, 0.0  ;;  %v3550_v32 = vld [vmem:[#allocation12 + $0xa0] ss:$8 sps:$4 sm:$0xff]  }
 0x2ea   :  { %v1571_v59 = vadd.f32 %v1570_v57, %v1218_v39  ;;  %v1764_v61 = vadd.f32 %v1763_v58, %v1218_v39  ;;  %v1887_v1 = vmax.f32 %v1567_v51, 0.0  ;;  %v1889_v2 = vmax.f32 %v1760_v52, 0.0  ;;  %v3551_v33 = vld [vmem:[#allocation12 + $0xb4] ss:$8 sps:$4 sm:$0xff]   ;;  %v3553_v34 = vld [vmem:[#allocation12 + $0xb0] ss:$8 sps:$4 sm:$0xff]   ;;  %v2030_v43 = vpop.permute.xlu1 %2029  ;;  %v2025_v44 = vpop.permute.xlu0 %2024 }
 0x2eb   :  { %v1890_v0 = vmax.f32 %v1569_v55, 0.0  ;;  %v1892_v10 = vmax.f32 %v1762_v56, 0.0  ;;  %v3554_v35 = vld [vmem:[#allocation12 + $0xc4] ss:$8 sps:$4 sm:$0xff]   ;;  %v3556_v36 = vld [vmem:[#allocation12 + $0xc0] ss:$8 sps:$4 sm:$0xff]  }
 0x2ec   :  { %v1891_v3 = vmax.f32 %v1571_v59, 0.0  ;;  %v1893_v5 = vmax.f32 %v1764_v61, 0.0  ;;  %v3557_v37 = vld [vmem:[#allocation12 + $0xd4] ss:$8 sps:$4 sm:$0xff]   ;;  %v3559_v38 = vld [vmem:[#allocation12 + $0xd0] ss:$8 sps:$4 sm:$0xff]  }
 0x2ed   :  { %v1954_v6 = vpack.c.bf16 %v1890_v0, %v1886_v62  ;;  %v1956_v7 = vpack.c.bf16 %v1892_v10, %v1888_v9  ;;  %v3560_v39 = vld [vmem:[#allocation12 + $0xe4] ss:$8 sps:$4 sm:$0xff]   ;;  %v3562_v40 = vld [vmem:[#allocation12 + $0xe0] ss:$8 sps:$4 sm:$0xff]   ;;  %v3563_v41 = vld [vmem:[#allocation12 + $0xf4] ss:$8 sps:$4 sm:$0xff]  }
 0x2ee   :  { %v1955_v11 = vpack.c.bf16 %v1891_v3, %v1887_v1  ;;  %v1957_v8 = vpack.c.bf16 %v1893_v5, %v1889_v2  ;;  %v3565_v42 = vld [vmem:[#allocation12 + $0xf0] ss:$8 sps:$4 sm:$0xff]   ;;  %v4104_v45 = vpop.permute.xlu1 %2039  ;;  %v4106_v46 = vpop.permute.xlu0 %2034 }
 0x2f0   :  { %2372 = vmatprep.subr.bf16.mxu0 %v1955_v11  ;;  %2565 = vmatprep.subr.bf16.mxu1 %v1957_v8 }
 0x2f1   :  { %2373 = vmatpush1.bf16.msra.mxu0 %v1954_v6  ;;  %2566 = vmatpush1.bf16.msra.mxu1 %v1956_v7 }
 0x2f2   :  { %v4108_v47 = vpop.permute.xlu1 %2049  ;;  %v4110_v48 = vpop.permute.xlu0 %2044 }
 0x2f4   :  { %2375 = vmatmul.mubr.bf16.vlgmr.msra.gmra.mrb[64].mxu0 %v3518_v14  ;;  %2568 = vmatmul.mubr.bf16.vlgmr.msra.gmra.mrb[64].mxu1 %v3518_v14 }
 0x2f5   :  { %2384 = vmatprep.mubr.bf16.mxu0 %v3521_v12  ;;  %2577 = vmatprep.mubr.bf16.mxu1 %v3521_v12 }
 0x2f6   :  { %v4112_v49 = vpop.permute.xlu1 %2059  ;;  %v4114_v50 = vpop.permute.xlu0 %2054 }
 0x2fa   :  { %v4116_v51 = vpop.permute.xlu1 %2069  ;;  %v4118_v52 = vpop.permute.xlu0 %2064 }
 0x2fc   :  { %2385 = vmatmul.mubr.bf16.gmra.mrb[68].mxu0 %v3523_v13  ;;  %2578 = vmatmul.mubr.bf16.gmra.mrb[68].mxu1 %v3523_v13 }
 0x2fd   :  { %2394 = vmatprep.mubr.bf16.mxu0 %v3524_v15  ;;  %2587 = vmatprep.mubr.bf16.mxu1 %v3524_v15 }
 0x2fe   :  { %v4120_v53 = vpop.permute.xlu1 %2079  ;;  %v4122_v54 = vpop.permute.xlu0 %2074 }
 0x302   :  { %v4124_v55 = vpop.permute.xlu1 %2089  ;;  %v4126_v56 = vpop.permute.xlu0 %2084 }
 0x304   :  { %2395 = vmatmul.mubr.bf16.gmra.mrb[72].mxu0 %v3526_v16  ;;  %2588 = vmatmul.mubr.bf16.gmra.mrb[72].mxu1 %v3526_v16 }
 0x305   :  { %2404 = vmatprep.mubr.bf16.mxu0 %v3527_v17  ;;  %2597 = vmatprep.mubr.bf16.mxu1 %v3527_v17 }
 0x306   :  { %v4128_v57 = vpop.permute.xlu1 %2099  ;;  %v4130_v58 = vpop.permute.xlu0 %2094 }
 0x30a   :  { %v4132_v59 = vpop.permute.xlu1 %2109  ;;  %v4134_v61 = vpop.permute.xlu0 %2104 }
 0x30c   :  { %2405 = vmatmul.mubr.bf16.gmra.mrb[76].mxu0 %v3529_v18  ;;  %2598 = vmatmul.mubr.bf16.gmra.mrb[76].mxu1 %v3529_v18 }
 0x30d   :  { %2414 = vmatprep.mubr.bf16.mxu0 %v3530_v19  ;;  %2607 = vmatprep.mubr.bf16.mxu1 %v3530_v19 }
 0x30e   :  { %v4136_v62 = vpop.permute.xlu1 %2119  ;;  %v4138_v9 = vpop.permute.xlu0 %2114 }
 0x312   :  { %v4140_v0 = vpop.permute.xlu1 %2129  ;;  %v4142_v10 = vpop.permute.xlu0 %2124 }
 0x314   :  { %2415 = vmatmul.mubr.bf16.gmra.mrb[80].mxu0 %v3532_v20  ;;  %2608 = vmatmul.mubr.bf16.gmra.mrb[80].mxu1 %v3532_v20 }
 0x315   :  { %2424 = vmatprep.mubr.bf16.mxu0 %v3533_v21  ;;  %2617 = vmatprep.mubr.bf16.mxu1 %v3533_v21 }
 0x316   :  { %v4144_v1 = vpop.permute.xlu1 %2139  ;;  %v4146_v2 = vpop.permute.xlu0 %2134 }
 0x31a   :  { %v4148_v3 = vpop.permute.xlu1 %2149  ;;  %v4150_v5 = vpop.permute.xlu0 %2144 }
 0x31c   :  { %2425 = vmatmul.mubr.bf16.gmra.mrb[84].mxu0 %v3535_v22  ;;  %2618 = vmatmul.mubr.bf16.gmra.mrb[84].mxu1 %v3535_v22 }
 0x31d   :  { %2434 = vmatprep.mubr.bf16.mxu0 %v3536_v23  ;;  %2627 = vmatprep.mubr.bf16.mxu1 %v3536_v23 }
 0x31e   :  { %v2891_v6 = vpop.permute.xlu1 %2890  ;;  %v4152_v7 = vpop.permute.xlu0 %2154 }
 0x322   :  { %v4154_v11 = vpop.permute.xlu1 %2900  ;;  %v2896_v8 = vpop.permute.xlu0 %2895 }
 0x324   :  { %2435 = vmatmul.mubr.bf16.gmra.mrb[88].mxu0 %v3538_v24  ;;  %2628 = vmatmul.mubr.bf16.gmra.mrb[88].mxu1 %v3538_v24 }
 0x325   :  { %2444 = vmatprep.mubr.bf16.mxu0 %v3539_v25  ;;  %2637 = vmatprep.mubr.bf16.mxu1 %v3539_v25 }
 0x326   :  { %v4156_v14 = vpop.permute.xlu1 %2910  ;;  %v4158_v12 = vpop.permute.xlu0 %2905 }
 0x32c   :  { %2445 = vmatmul.mubr.bf16.gmra.mrb[92].mxu0 %v3541_v26  ;;  %2638 = vmatmul.mubr.bf16.gmra.mrb[92].mxu1 %v3541_v26 }
 0x32d   :  { %2454 = vmatprep.mubr.bf16.mxu0 %v3542_v27  ;;  %2647 = vmatprep.mubr.bf16.mxu1 %v3542_v27 }
 0x334   :  { %2455 = vmatmul.mubr.bf16.gmra.mrb[96].mxu0 %v3544_v28  ;;  %2648 = vmatmul.mubr.bf16.gmra.mrb[96].mxu1 %v3544_v28 }
 0x335   :  { %2464 = vmatprep.mubr.bf16.mxu0 %v3545_v29  ;;  %2657 = vmatprep.mubr.bf16.mxu1 %v3545_v29 }
 0x33c   :  { %2465 = vmatmul.mubr.bf16.gmra.mrb[100].mxu0 %v3547_v30  ;;  %2658 = vmatmul.mubr.bf16.gmra.mrb[100].mxu1 %v3547_v30 }
 0x33d   :  { %2474 = vmatprep.mubr.bf16.mxu0 %v3548_v31  ;;  %2667 = vmatprep.mubr.bf16.mxu1 %v3548_v31 }
 0x344   :  { %2475 = vmatmul.mubr.bf16.gmra.mrb[104].mxu0 %v3550_v32  ;;  %2668 = vmatmul.mubr.bf16.gmra.mrb[104].mxu1 %v3550_v32 }
 0x345   :  { %2484 = vmatprep.mubr.bf16.mxu0 %v3551_v33  ;;  %2677 = vmatprep.mubr.bf16.mxu1 %v3551_v33 }
 0x34c   :  { %2485 = vmatmul.mubr.bf16.gmra.mrb[108].mxu0 %v3553_v34  ;;  %2678 = vmatmul.mubr.bf16.gmra.mrb[108].mxu1 %v3553_v34 }
 0x34d   :  { %2494 = vmatprep.mubr.bf16.mxu0 %v3554_v35  ;;  %2687 = vmatprep.mubr.bf16.mxu1 %v3554_v35 }
 0x354   :  { %2495 = vmatmul.mubr.bf16.gmra.mrb[112].mxu0 %v3556_v36  ;;  %2688 = vmatmul.mubr.bf16.gmra.mrb[112].mxu1 %v3556_v36 }
 0x355   :  { %2504 = vmatprep.mubr.bf16.mxu0 %v3557_v37  ;;  %2697 = vmatprep.mubr.bf16.mxu1 %v3557_v37 }
 0x35c   :  { %2505 = vmatmul.mubr.bf16.gmra.mrb[116].mxu0 %v3559_v38  ;;  %2698 = vmatmul.mubr.bf16.gmra.mrb[116].mxu1 %v3559_v38  ;;  %v4160_v38 = vpop.permute.xlu1 %2920 }
 0x35d   :  { %2514 = vmatprep.mubr.bf16.mxu0 %v3560_v39  ;;  %2707 = vmatprep.mubr.bf16.mxu1 %v3560_v39  ;;  %v4162_v39 = vpop.permute.xlu0 %2915 }
 0x364   :  { %2515 = vmatmul.mubr.bf16.gmra.mrb[120].mxu0 %v3562_v40  ;;  %2708 = vmatmul.mubr.bf16.gmra.mrb[120].mxu1 %v3562_v40 }
 0x365   :  { %2524 = vmatprep.mubr.bf16.mxu0 %v3563_v41  ;;  %2717 = vmatprep.mubr.bf16.mxu1 %v3563_v41 }
 0x36c   :  { %2525 = vmatmul.mubr.bf16.gmra.mrb[124].mxu0 %v3565_v42  ;;  %2718 = vmatmul.mubr.bf16.gmra.mrb[124].mxu1 %v3565_v42 }
 0x3c7   :  { %v2376_v13 = vpop.f32.mrb[64].mxu0  ;;  %v2569_v15 = vpop.f32.mrb[64].mxu1 }
 0x3c8   :  { %v2377_v16 = vadd.f32 %v2376_v13, %v2025_v44  ;;  %v2570_v17 = vadd.f32 %v2569_v15, %v2025_v44  ;;  %v2378_v18 = vpop.f32.mrb[65].mxu0  ;;  %v2571_v19 = vpop.f32.mrb[65].mxu1 }
 0x3c9   :  { %v2379_v20 = vadd.f32 %v2378_v18, %v2025_v44  ;;  %v2572_v21 = vadd.f32 %v2571_v19, %v2025_v44  ;;  %v2380_v22 = vpop.f32.mrb[66].mxu0  ;;  %v2573_v23 = vpop.f32.mrb[66].mxu1 }
 0x3ca   :  { %v2728_v24 = vmax.f32 %v2377_v16, 0.0  ;;  %v2730_v25 = vmax.f32 %v2570_v17, 0.0  ;;  %v2381_v26 = vadd.f32 %v2380_v22, %v2030_v43  ;;  %v2574_v27 = vadd.f32 %v2573_v23, %v2030_v43  ;;  %v2382_v28 = vpop.f32.mrb[67].mxu0  ;;  %v2575_v29 = vpop.f32.mrb[67].mxu1 }
 0x3cb   :  { %v2729_v30 = vmax.f32 %v2379_v20, 0.0  ;;  %v2731_v31 = vmax.f32 %v2572_v21, 0.0  ;;  %v2383_v32 = vadd.f32 %v2382_v28, %v2030_v43  ;;  %v2576_v33 = vadd.f32 %v2575_v29, %v2030_v43 }
 0x3cc   :  { %v2732_v34 = vmax.f32 %v2381_v26, 0.0  ;;  %v2734_v35 = vmax.f32 %v2574_v27, 0.0  ;;  %v3048_v40 = vmul.f32 %v2891_v6, %v2728_v24  ;;  %v3050_v41 = vmul.f32 %v2891_v6, %v2730_v25 }
 0x3cd   :  { %v2733_v36 = vmax.f32 %v2383_v32, 0.0  ;;  %v2735_v37 = vmax.f32 %v2576_v33, 0.0  ;;  %v3049_v13 = vmul.f32 %v2891_v6, %v2729_v30  ;;  %v3051_v15 = vmul.f32 %v2891_v6, %v2731_v31 }
 0x3ce   :  { %v3052_v42 = vmul.f32 %v2896_v8, %v2732_v34  ;;  %v3054_v44 = vmul.f32 %v2896_v8, %v2734_v35 }
 0x3cf   :  { %v3053_v16 = vmul.f32 %v2896_v8, %v2733_v36  ;;  %v3055_v17 = vmul.f32 %v2896_v8, %v2735_v37  ;;  %v2386_v18 = vpop.f32.mrb[68].mxu0  ;;  %v2579_v19 = vpop.f32.mrb[68].mxu1 }
 0x3d0   :  { %v3176_v20 = vadd.f32 %v3052_v42, %v3048_v40  ;;  %v3250_v43 = vadd.f32 %v3054_v44, %v3050_v41  ;;  %v2387_v21 = vadd.f32 %v2386_v18, %v4106_v46  ;;  %v2580_v22 = vadd.f32 %v2579_v19, %v4106_v46  ;;  %v2388_v23 = vpop.f32.mrb[69].mxu0  ;;  %v2581_v26 = vpop.f32.mrb[69].mxu1 }
 0x3d1   :  { %v3213_v27 = vadd.f32 %v3053_v16, %v3049_v13  ;;  %v3287_v28 = vadd.f32 %v3055_v17, %v3051_v15  ;;  %v2389_v24 = vadd.f32 %v2388_v23, %v4106_v46  ;;  %v2582_v25 = vadd.f32 %v2581_v26, %v4106_v46  ;;  %v2390_v29 = vpop.f32.mrb[70].mxu0  ;;  %v2583_v6 = vpop.f32.mrb[70].mxu1 }
 0x3d2   :  { %v2736_v30 = vmax.f32 %v2387_v21, 0.0  ;;  %v2738_v8 = vmax.f32 %v2580_v22, 0.0  ;;  %v2391_v31 = vadd.f32 %v2390_v29, %v4104_v45  ;;  %v2584_v32 = vadd.f32 %v2583_v6, %v4104_v45  ;;  %v2392_v33 = vpop.f32.mrb[71].mxu0  ;;  %v2585_v34 = vpop.f32.mrb[71].mxu1 }
 0x3d3   :  { %v2737_v35 = vmax.f32 %v2389_v24, 0.0  ;;  %v2739_v36 = vmax.f32 %v2582_v25, 0.0  ;;  %v2393_v37 = vadd.f32 %v2392_v33, %v4104_v45  ;;  %v2586_v40 = vadd.f32 %v2585_v34, %v4104_v45  ;;  %v4176_v18 = vpop.permute.xlu1 %2930  ;;  %v4178_v19 = vpop.permute.xlu0 %2925 }
 0x3d4   :  { %v3056_v41 = vmul.f32 %v4154_v11, %v2736_v30  ;;  %v3058_v46 = vmul.f32 %v4154_v11, %v2738_v8  ;;  %v2740_v42 = vmax.f32 %v2391_v31, 0.0  ;;  %v2742_v44 = vmax.f32 %v2584_v32, 0.0 }
 0x3d5   :  { %v3057_v13 = vmul.f32 %v4154_v11, %v2737_v35  ;;  %v3059_v15 = vmul.f32 %v4154_v11, %v2739_v36  ;;  %v2741_v16 = vmax.f32 %v2393_v37, 0.0  ;;  %v2743_v17 = vmax.f32 %v2586_v40, 0.0 }
 0x3d6   :  { %v3177_v21 = vadd.f32 %v3176_v20, %v3056_v41  ;;  %v3251_v22 = vadd.f32 %v3250_v43, %v3058_v46  ;;  %v3060_v45 = vmul.f32 %v4158_v12, %v2740_v42  ;;  %v3062_v23 = vmul.f32 %v4158_v12, %v2742_v44 }
 0x3d7   :  { %v3214_v26 = vadd.f32 %v3213_v27, %v3057_v13  ;;  %v3288_v24 = vadd.f32 %v3287_v28, %v3059_v15  ;;  %v3061_v25 = vmul.f32 %v4158_v12, %v2741_v16  ;;  %v3063_v29 = vmul.f32 %v4158_v12, %v2743_v17  ;;  %v2396_v6 = vpop.f32.mrb[72].mxu0  ;;  %v2589_v11 = vpop.f32.mrb[72].mxu1 }
 0x3d8   :  { %v3178_v30 = vadd.f32 %v3177_v21, %v3060_v45  ;;  %v3252_v8 = vadd.f32 %v3251_v22, %v3062_v23  ;;  %v2397_v31 = vadd.f32 %v2396_v6, %v4110_v48  ;;  %v2590_v32 = vadd.f32 %v2589_v11, %v4110_v48  ;;  %v2398_v20 = vpop.f32.mrb[73].mxu0  ;;  %v2591_v43 = vpop.f32.mrb[73].mxu1 }
 0x3d9   :  { %v3215_v33 = vadd.f32 %v3214_v26, %v3061_v25  ;;  %v3289_v34 = vadd.f32 %v3288_v24, %v3063_v29  ;;  %v2399_v35 = vadd.f32 %v2398_v20, %v4110_v48  ;;  %v2592_v27 = vadd.f32 %v2591_v43, %v4110_v48  ;;  %v2400_v28 = vpop.f32.mrb[74].mxu0  ;;  %v2593_v36 = vpop.f32.mrb[74].mxu1 }
 0x3da   :  { %v2744_v37 = vmax.f32 %v2397_v31, 0.0  ;;  %v2746_v12 = vmax.f32 %v2590_v32, 0.0  ;;  %v2401_v40 = vadd.f32 %v2400_v28, %v4108_v47  ;;  %v2594_v41 = vadd.f32 %v2593_v36, %v4108_v47  ;;  %v2402_v46 = vpop.f32.mrb[75].mxu0  ;;  %v2595_v42 = vpop.f32.mrb[75].mxu1 }
 0x3db   :  { %v2745_v44 = vmax.f32 %v2399_v35, 0.0  ;;  %v2747_v13 = vmax.f32 %v2592_v27, 0.0  ;;  %v2403_v15 = vadd.f32 %v2402_v46, %v4108_v47  ;;  %v2596_v16 = vadd.f32 %v2595_v42, %v4108_v47  ;;  %v4196_v25 = vpop.permute.xlu1 %2940  ;;  %v4198_v29 = vpop.permute.xlu0 %2935 }
 0x3dc   :  { %v3064_v17 = vmul.f32 %v4156_v14, %v2744_v37  ;;  %v3066_v48 = vmul.f32 %v4156_v14, %v2746_v12  ;;  %v2748_v21 = vmax.f32 %v2401_v40, 0.0  ;;  %v2750_v22 = vmax.f32 %v2594_v41, 0.0 }
 0x3dd   :  { %v3065_v45 = vmul.f32 %v4156_v14, %v2745_v44  ;;  %v3067_v23 = vmul.f32 %v4156_v14, %v2747_v13  ;;  %v2749_v26 = vmax.f32 %v2403_v15, 0.0  ;;  %v2751_v24 = vmax.f32 %v2596_v16, 0.0 }
 0x3de   :  { %v3179_v6 = vadd.f32 %v3178_v30, %v3064_v17  ;;  %v3253_v11 = vadd.f32 %v3252_v8, %v3066_v48  ;;  %v3068_v47 = vmul.f32 %v4162_v39, %v2748_v21  ;;  %v3070_v31 = vmul.f32 %v4162_v39, %v2750_v22 }
 0x3df   :  { %v3216_v32 = vadd.f32 %v3215_v33, %v3065_v45  ;;  %v3290_v20 = vadd.f32 %v3289_v34, %v3067_v23  ;;  %v3069_v43 = vmul.f32 %v4162_v39, %v2749_v26  ;;  %v3071_v35 = vmul.f32 %v4162_v39, %v2751_v24  ;;  %v2406_v27 = vpop.f32.mrb[76].mxu0  ;;  %v2599_v14 = vpop.f32.mrb[76].mxu1 }
 0x3e0   :  { %v3180_v28 = vadd.f32 %v3179_v6, %v3068_v47  ;;  %v3254_v36 = vadd.f32 %v3253_v11, %v3070_v31  ;;  %v2407_v37 = vadd.f32 %v2406_v27, %v4114_v50  ;;  %v2600_v12 = vadd.f32 %v2599_v14, %v4114_v50  ;;  %v2408_v30 = vpop.f32.mrb[77].mxu0  ;;  %v2601_v8 = vpop.f32.mrb[77].mxu1 }
 0x3e1   :  { %v3217_v40 = vadd.f32 %v3216_v32, %v3069_v43  ;;  %v3291_v41 = vadd.f32 %v3290_v20, %v3071_v35  ;;  %v2409_v46 = vadd.f32 %v2408_v30, %v4114_v50  ;;  %v2602_v33 = vadd.f32 %v2601_v8, %v4114_v50  ;;  %v2410_v34 = vpop.f32.mrb[78].mxu0  ;;  %v2603_v42 = vpop.f32.mrb[78].mxu1 }
 0x3e2   :  { %v2752_v44 = vmax.f32 %v2407_v37, 0.0  ;;  %v2754_v39 = vmax.f32 %v2600_v12, 0.0  ;;  %v2411_v13 = vadd.f32 %v2410_v34, %v4112_v49  ;;  %v2604_v15 = vadd.f32 %v2603_v42, %v4112_v49  ;;  %v2412_v16 = vpop.f32.mrb[79].mxu0  ;;  %v2605_v17 = vpop.f32.mrb[79].mxu1 }
 0x3e3   :  { %v2753_v48 = vmax.f32 %v2409_v46, 0.0  ;;  %v2755_v21 = vmax.f32 %v2602_v33, 0.0  ;;  %v2413_v22 = vadd.f32 %v2412_v16, %v4112_v49  ;;  %v2606_v45 = vadd.f32 %v2605_v17, %v4112_v49  ;;  %v4216_v32 = vpop.permute.xlu1 %2950  ;;  %v4218_v20 = vpop.permute.xlu0 %2945 }
 0x3e4   :  { %v3072_v23 = vmul.f32 %v4160_v38, %v2752_v44  ;;  %v3074_v50 = vmul.f32 %v4160_v38, %v2754_v39  ;;  %v2756_v26 = vmax.f32 %v2411_v13, 0.0  ;;  %v2758_v24 = vmax.f32 %v2604_v15, 0.0 }
 0x3e5   :  { %v3073_v6 = vmul.f32 %v4160_v38, %v2753_v48  ;;  %v3075_v11 = vmul.f32 %v4160_v38, %v2755_v21  ;;  %v2757_v47 = vmax.f32 %v2413_v22, 0.0  ;;  %v2759_v31 = vmax.f32 %v2606_v45, 0.0 }
 0x3e6   :  { %v3181_v43 = vadd.f32 %v3180_v28, %v3072_v23  ;;  %v3255_v35 = vadd.f32 %v3254_v36, %v3074_v50  ;;  %v3076_v49 = vmul.f32 %v4178_v19, %v2756_v26  ;;  %v3078_v27 = vmul.f32 %v4178_v19, %v2758_v24 }
 0x3e7   :  { %v3218_v14 = vadd.f32 %v3217_v40, %v3073_v6  ;;  %v3292_v37 = vadd.f32 %v3291_v41, %v3075_v11  ;;  %v3077_v12 = vmul.f32 %v4178_v19, %v2757_v47  ;;  %v3079_v30 = vmul.f32 %v4178_v19, %v2759_v31  ;;  %v2416_v8 = vpop.f32.mrb[80].mxu0  ;;  %v2609_v38 = vpop.f32.mrb[80].mxu1 }
 0x3e8   :  { %v3182_v46 = vadd.f32 %v3181_v43, %v3076_v49  ;;  %v3256_v33 = vadd.f32 %v3255_v35, %v3078_v27  ;;  %v2417_v34 = vadd.f32 %v2416_v8, %v4118_v52  ;;  %v2610_v42 = vadd.f32 %v2609_v38, %v4118_v52  ;;  %v2418_v28 = vpop.f32.mrb[81].mxu0  ;;  %v2611_v36 = vpop.f32.mrb[81].mxu1 }
 0x3e9   :  { %v3219_v44 = vadd.f32 %v3218_v14, %v3077_v12  ;;  %v3293_v39 = vadd.f32 %v3292_v37, %v3079_v30  ;;  %v2419_v13 = vadd.f32 %v2418_v28, %v4118_v52  ;;  %v2612_v40 = vadd.f32 %v2611_v36, %v4118_v52  ;;  %v2420_v41 = vpop.f32.mrb[82].mxu0  ;;  %v2613_v15 = vpop.f32.mrb[82].mxu1 }
 0x3ea   :  { %v2760_v16 = vmax.f32 %v2417_v34, 0.0  ;;  %v2762_v19 = vmax.f32 %v2610_v42, 0.0  ;;  %v2421_v17 = vadd.f32 %v2420_v41, %v4116_v51  ;;  %v2614_v48 = vadd.f32 %v2613_v15, %v4116_v51  ;;  %v2422_v21 = vpop.f32.mrb[83].mxu0  ;;  %v2615_v22 = vpop.f32.mrb[83].mxu1 }
 0x3eb   :  { %v2761_v45 = vmax.f32 %v2419_v13, 0.0  ;;  %v2763_v23 = vmax.f32 %v2612_v40, 0.0  ;;  %v2423_v50 = vadd.f32 %v2422_v21, %v4116_v51  ;;  %v2616_v26 = vadd.f32 %v2615_v22, %v4116_v51  ;;  %v4236_v49 = vpop.permute.xlu1 %2960  ;;  %v4238_v27 = vpop.permute.xlu0 %2955 }
 0x3ec   :  { %v3080_v24 = vmul.f32 %v4176_v18, %v2760_v16  ;;  %v3082_v52 = vmul.f32 %v4176_v18, %v2762_v19  ;;  %v2764_v6 = vmax.f32 %v2421_v17, 0.0  ;;  %v2766_v11 = vmax.f32 %v2614_v48, 0.0 }
 0x3ed   :  { %v3081_v47 = vmul.f32 %v4176_v18, %v2761_v45  ;;  %v3083_v31 = vmul.f32 %v4176_v18, %v2763_v23  ;;  %v2765_v43 = vmax.f32 %v2423_v50, 0.0  ;;  %v2767_v35 = vmax.f32 %v2616_v26, 0.0 }
 0x3ee   :  { %v3183_v14 = vadd.f32 %v3182_v46, %v3080_v24  ;;  %v3257_v37 = vadd.f32 %v3256_v33, %v3082_v52  ;;  %v3084_v51 = vmul.f32 %v4198_v29, %v2764_v6  ;;  %v3086_v12 = vmul.f32 %v4198_v29, %v2766_v11 }
 0x3ef   :  { %v3220_v30 = vadd.f32 %v3219_v44, %v3081_v47  ;;  %v3294_v8 = vadd.f32 %v3293_v39, %v3083_v31  ;;  %v3085_v38 = vmul.f32 %v4198_v29, %v2765_v43  ;;  %v3087_v34 = vmul.f32 %v4198_v29, %v2767_v35  ;;  %v2426_v42 = vpop.f32.mrb[84].mxu0  ;;  %v2619_v18 = vpop.f32.mrb[84].mxu1 }
 0x3f0   :  { %v3184_v28 = vadd.f32 %v3183_v14, %v3084_v51  ;;  %v3258_v36 = vadd.f32 %v3257_v37, %v3086_v12  ;;  %v2427_v13 = vadd.f32 %v2426_v42, %v4122_v54  ;;  %v2620_v40 = vadd.f32 %v2619_v18, %v4122_v54  ;;  %v2428_v46 = vpop.f32.mrb[85].mxu0  ;;  %v2621_v33 = vpop.f32.mrb[85].mxu1 }
 0x3f1   :  { %v3221_v41 = vadd.f32 %v3220_v30, %v3085_v38  ;;  %v3295_v15 = vadd.f32 %v3294_v8, %v3087_v34  ;;  %v2429_v16 = vadd.f32 %v2428_v46, %v4122_v54  ;;  %v2622_v44 = vadd.f32 %v2621_v33, %v4122_v54  ;;  %v2430_v39 = vpop.f32.mrb[86].mxu0  ;;  %v2623_v19 = vpop.f32.mrb[86].mxu1 }
 0x3f2   :  { %v2768_v17 = vmax.f32 %v2427_v13, 0.0  ;;  %v2770_v29 = vmax.f32 %v2620_v40, 0.0  ;;  %v2431_v48 = vadd.f32 %v2430_v39, %v4120_v53  ;;  %v2624_v21 = vadd.f32 %v2623_v19, %v4120_v53  ;;  %v2432_v22 = vpop.f32.mrb[87].mxu0  ;;  %v2625_v45 = vpop.f32.mrb[87].mxu1 }
 0x3f3   :  { %v2769_v23 = vmax.f32 %v2429_v16, 0.0  ;;  %v2771_v50 = vmax.f32 %v2622_v44, 0.0  ;;  %v2433_v26 = vadd.f32 %v2432_v22, %v4120_v53  ;;  %v2626_v24 = vadd.f32 %v2625_v45, %v4120_v53  ;;  %v4256_v14 = vpop.permute.xlu1 %2970  ;;  %v4258_v37 = vpop.permute.xlu0 %2965 }
 0x3f4   :  { %v3088_v52 = vmul.f32 %v4196_v25, %v2768_v17  ;;  %v3090_v54 = vmul.f32 %v4196_v25, %v2770_v29  ;;  %v2772_v6 = vmax.f32 %v2431_v48, 0.0  ;;  %v2774_v11 = vmax.f32 %v2624_v21, 0.0 }
 0x3f5   :  { %v3089_v47 = vmul.f32 %v4196_v25, %v2769_v23  ;;  %v3091_v31 = vmul.f32 %v4196_v25, %v2771_v50  ;;  %v2773_v43 = vmax.f32 %v2433_v26, 0.0  ;;  %v2775_v35 = vmax.f32 %v2626_v24, 0.0 }
 0x3f6   :  { %v3185_v51 = vadd.f32 %v3184_v28, %v3088_v52  ;;  %v3259_v12 = vadd.f32 %v3258_v36, %v3090_v54  ;;  %v3092_v53 = vmul.f32 %v4218_v20, %v2772_v6  ;;  %v3094_v30 = vmul.f32 %v4218_v20, %v2774_v11 }
 0x3f7   :  { %v3222_v8 = vadd.f32 %v3221_v41, %v3089_v47  ;;  %v3296_v38 = vadd.f32 %v3295_v15, %v3091_v31  ;;  %v3093_v34 = vmul.f32 %v4218_v20, %v2773_v43  ;;  %v3095_v42 = vmul.f32 %v4218_v20, %v2775_v35  ;;  %v2436_v18 = vpop.f32.mrb[88].mxu0  ;;  %v2629_v25 = vpop.f32.mrb[88].mxu1 }
 0x3f8   :  { %v3186_v13 = vadd.f32 %v3185_v51, %v3092_v53  ;;  %v3260_v40 = vadd.f32 %v3259_v12, %v3094_v30  ;;  %v2437_v46 = vadd.f32 %v2436_v18, %v4126_v56  ;;  %v2630_v33 = vadd.f32 %v2629_v25, %v4126_v56  ;;  %v2438_v28 = vpop.f32.mrb[89].mxu0  ;;  %v2631_v36 = vpop.f32.mrb[89].mxu1 }
 0x3f9   :  { %v3223_v16 = vadd.f32 %v3222_v8, %v3093_v34  ;;  %v3297_v44 = vadd.f32 %v3296_v38, %v3095_v42  ;;  %v2439_v39 = vadd.f32 %v2438_v28, %v4126_v56  ;;  %v2632_v41 = vadd.f32 %v2631_v36, %v4126_v56  ;;  %v2440_v15 = vpop.f32.mrb[90].mxu0  ;;  %v2633_v19 = vpop.f32.mrb[90].mxu1 }
 0x3fa   :  { %v2776_v17 = vmax.f32 %v2437_v46, 0.0  ;;  %v2778_v20 = vmax.f32 %v2630_v33, 0.0  ;;  %v2441_v29 = vadd.f32 %v2440_v15, %v4124_v55  ;;  %v2634_v48 = vadd.f32 %v2633_v19, %v4124_v55  ;;  %v2442_v21 = vpop.f32.mrb[91].mxu0  ;;  %v2635_v22 = vpop.f32.mrb[91].mxu1 }
 0x3fb   :  { %v2777_v45 = vmax.f32 %v2439_v39, 0.0  ;;  %v2779_v23 = vmax.f32 %v2632_v41, 0.0  ;;  %v2443_v50 = vadd.f32 %v2442_v21, %v4124_v55  ;;  %v2636_v26 = vadd.f32 %v2635_v22, %v4124_v55  ;;  %v4276_v43 = vpop.permute.xlu1 %2980  ;;  %v4278_v35 = vpop.permute.xlu0 %2975 }
 0x3fc   :  { %v3096_v24 = vmul.f32 %v4216_v32, %v2776_v17  ;;  %v3098_v56 = vmul.f32 %v4216_v32, %v2778_v20  ;;  %v2780_v52 = vmax.f32 %v2441_v29, 0.0  ;;  %v2782_v54 = vmax.f32 %v2634_v48, 0.0 }
 0x3fd   :  { %v3097_v6 = vmul.f32 %v4216_v32, %v2777_v45  ;;  %v3099_v11 = vmul.f32 %v4216_v32, %v2779_v23  ;;  %v2781_v47 = vmax.f32 %v2443_v50, 0.0  ;;  %v2783_v31 = vmax.f32 %v2636_v26, 0.0 }
 0x3fe   :  { %v3187_v51 = vadd.f32 %v3186_v13, %v3096_v24  ;;  %v3261_v12 = vadd.f32 %v3260_v40, %v3098_v56  ;;  %v3100_v55 = vmul.f32 %v4238_v27, %v2780_v52  ;;  %v3102_v53 = vmul.f32 %v4238_v27, %v2782_v54 }
 0x3ff   :  { %v3224_v30 = vadd.f32 %v3223_v16, %v3097_v6  ;;  %v3298_v8 = vadd.f32 %v3297_v44, %v3099_v11  ;;  %v3101_v38 = vmul.f32 %v4238_v27, %v2781_v47  ;;  %v3103_v34 = vmul.f32 %v4238_v27, %v2783_v31  ;;  %v2446_v42 = vpop.f32.mrb[92].mxu0  ;;  %v2639_v32 = vpop.f32.mrb[92].mxu1 }
 0x400   :  { %v3188_v18 = vadd.f32 %v3187_v51, %v3100_v55  ;;  %v3262_v25 = vadd.f32 %v3261_v12, %v3102_v53  ;;  %v2447_v46 = vadd.f32 %v2446_v42, %v4130_v58  ;;  %v2640_v33 = vadd.f32 %v2639_v32, %v4130_v58  ;;  %v2448_v13 = vpop.f32.mrb[93].mxu0  ;;  %v2641_v40 = vpop.f32.mrb[93].mxu1 }
 0x401   :  { %v3225_v28 = vadd.f32 %v3224_v30, %v3101_v38  ;;  %v3299_v36 = vadd.f32 %v3298_v8, %v3103_v34  ;;  %v2449_v39 = vadd.f32 %v2448_v13, %v4130_v58  ;;  %v2642_v16 = vadd.f32 %v2641_v40, %v4130_v58  ;;  %v2450_v44 = vpop.f32.mrb[94].mxu0  ;;  %v2643_v41 = vpop.f32.mrb[94].mxu1 }
 0x402   :  { %v2784_v15 = vmax.f32 %v2447_v46, 0.0  ;;  %v2786_v27 = vmax.f32 %v2640_v33, 0.0  ;;  %v2451_v19 = vadd.f32 %v2450_v44, %v4128_v57  ;;  %v2644_v17 = vadd.f32 %v2643_v41, %v4128_v57  ;;  %v2452_v20 = vpop.f32.mrb[95].mxu0  ;;  %v2645_v29 = vpop.f32.mrb[95].mxu1 }
 0x403   :  { %v2785_v48 = vmax.f32 %v2449_v39, 0.0  ;;  %v2787_v21 = vmax.f32 %v2642_v16, 0.0  ;;  %v2453_v22 = vadd.f32 %v2452_v20, %v4128_v57  ;;  %v2646_v45 = vadd.f32 %v2645_v29, %v4128_v57  ;;  %v4296_v6 = vpop.permute.xlu1 %2990  ;;  %v4298_v11 = vpop.permute.xlu0 %2985 }
 0x404   :  { %v3104_v23 = vmul.f32 %v4236_v49, %v2784_v15  ;;  %v3106_v58 = vmul.f32 %v4236_v49, %v2786_v27  ;;  %v2788_v50 = vmax.f32 %v2451_v19, 0.0  ;;  %v2790_v26 = vmax.f32 %v2644_v17, 0.0 }
 0x405   :  { %v3105_v24 = vmul.f32 %v4236_v49, %v2785_v48  ;;  %v3107_v56 = vmul.f32 %v4236_v49, %v2787_v21  ;;  %v2789_v52 = vmax.f32 %v2453_v22, 0.0  ;;  %v2791_v54 = vmax.f32 %v2646_v45, 0.0 }
 0x406   :  { %v3189_v47 = vadd.f32 %v3188_v18, %v3104_v23  ;;  %v3263_v31 = vadd.f32 %v3262_v25, %v3106_v58  ;;  %v3108_v57 = vmul.f32 %v4258_v37, %v2788_v50  ;;  %v3110_v51 = vmul.f32 %v4258_v37, %v2790_v26 }
 0x407   :  { %v3226_v12 = vadd.f32 %v3225_v28, %v3105_v24  ;;  %v3300_v55 = vadd.f32 %v3299_v36, %v3107_v56  ;;  %v3109_v53 = vmul.f32 %v4258_v37, %v2789_v52  ;;  %v3111_v30 = vmul.f32 %v4258_v37, %v2791_v54  ;;  %v2456_v8 = vpop.f32.mrb[96].mxu0  ;;  %v2649_v49 = vpop.f32.mrb[96].mxu1 }
 0x408   :  { %v3190_v38 = vadd.f32 %v3189_v47, %v3108_v57  ;;  %v3264_v34 = vadd.f32 %v3263_v31, %v3110_v51  ;;  %v2457_v42 = vadd.f32 %v2456_v8, %v4134_v61  ;;  %v2650_v32 = vadd.f32 %v2649_v49, %v4134_v61  ;;  %v2458_v18 = vpop.f32.mrb[97].mxu0  ;;  %v2651_v25 = vpop.f32.mrb[97].mxu1 }
 0x409   :  { %v3227_v46 = vadd.f32 %v3226_v12, %v3109_v53  ;;  %v3301_v33 = vadd.f32 %v3300_v55, %v3111_v30  ;;  %v2459_v13 = vadd.f32 %v2458_v18, %v4134_v61  ;;  %v2652_v40 = vadd.f32 %v2651_v25, %v4134_v61  ;;  %v2460_v28 = vpop.f32.mrb[98].mxu0  ;;  %v2653_v36 = vpop.f32.mrb[98].mxu1 }
 0x40a   :  { %v2792_v39 = vmax.f32 %v2457_v42, 0.0  ;;  %v2794_v37 = vmax.f32 %v2650_v32, 0.0  ;;  %v2461_v16 = vadd.f32 %v2460_v28, %v4132_v59  ;;  %v2654_v44 = vadd.f32 %v2653_v36, %v4132_v59  ;;  %v2462_v41 = vpop.f32.mrb[99].mxu0  ;;  %v2655_v15 = vpop.f32.mrb[99].mxu1 }
 0x40b   :  { %v2793_v27 = vmax.f32 %v2459_v13, 0.0  ;;  %v2795_v19 = vmax.f32 %v2652_v40, 0.0  ;;  %v2463_v17 = vadd.f32 %v2462_v41, %v4132_v59  ;;  %v2656_v20 = vadd.f32 %v2655_v15, %v4132_v59  ;;  %v4316_v50 = vpop.permute.xlu1 %3000  ;;  %v4318_v26 = vpop.permute.xlu0 %2995 }
 0x40c   :  { %v3112_v29 = vmul.f32 %v4256_v14, %v2792_v39  ;;  %v3114_v61 = vmul.f32 %v4256_v14, %v2794_v37  ;;  %v2796_v48 = vmax.f32 %v2461_v16, 0.0  ;;  %v2798_v21 = vmax.f32 %v2654_v44, 0.0 }
 0x40d   :  { %v3113_v22 = vmul.f32 %v4256_v14, %v2793_v27  ;;  %v3115_v45 = vmul.f32 %v4256_v14, %v2795_v19  ;;  %v2797_v23 = vmax.f32 %v2463_v17, 0.0  ;;  %v2799_v58 = vmax.f32 %v2656_v20, 0.0 }
 0x40e   :  { %v3191_v24 = vadd.f32 %v3190_v38, %v3112_v29  ;;  %v3265_v56 = vadd.f32 %v3264_v34, %v3114_v61  ;;  %v3116_v59 = vmul.f32 %v4278_v35, %v2796_v48  ;;  %v3118_v52 = vmul.f32 %v4278_v35, %v2798_v21 }
 0x40f   :  { %v3228_v54 = vadd.f32 %v3227_v46, %v3113_v22  ;;  %v3302_v47 = vadd.f32 %v3301_v33, %v3115_v45  ;;  %v3117_v31 = vmul.f32 %v4278_v35, %v2797_v23  ;;  %v3119_v57 = vmul.f32 %v4278_v35, %v2799_v58  ;;  %v2466_v51 = vpop.f32.mrb[100].mxu0  ;;  %v2659_v14 = vpop.f32.mrb[100].mxu1 }
 0x410   :  { %v3192_v12 = vadd.f32 %v3191_v24, %v3116_v59  ;;  %v3266_v55 = vadd.f32 %v3265_v56, %v3118_v52  ;;  %v2467_v53 = vadd.f32 %v2466_v51, %v4138_v9  ;;  %v2660_v30 = vadd.f32 %v2659_v14, %v4138_v9  ;;  %v2468_v8 = vpop.f32.mrb[101].mxu0  ;;  %v2661_v49 = vpop.f32.mrb[101].mxu1 }
 0x411   :  { %v3229_v38 = vadd.f32 %v3228_v54, %v3117_v31  ;;  %v3303_v34 = vadd.f32 %v3302_v47, %v3119_v57  ;;  %v2469_v42 = vadd.f32 %v2468_v8, %v4138_v9  ;;  %v2662_v32 = vadd.f32 %v2661_v49, %v4138_v9  ;;  %v2470_v18 = vpop.f32.mrb[102].mxu0  ;;  %v2663_v25 = vpop.f32.mrb[102].mxu1 }
 0x412   :  { %v2800_v46 = vmax.f32 %v2467_v53, 0.0  ;;  %v2802_v35 = vmax.f32 %v2660_v30, 0.0  ;;  %v2471_v33 = vadd.f32 %v2470_v18, %v4136_v62  ;;  %v2664_v13 = vadd.f32 %v2663_v25, %v4136_v62  ;;  %v2472_v40 = vpop.f32.mrb[103].mxu0  ;;  %v2665_v28 = vpop.f32.mrb[103].mxu1 }
 0x413   :  { %v2801_v36 = vmax.f32 %v2469_v42, 0.0  ;;  %v2803_v39 = vmax.f32 %v2662_v32, 0.0  ;;  %v2473_v37 = vadd.f32 %v2472_v40, %v4136_v62  ;;  %v2666_v16 = vadd.f32 %v2665_v28, %v4136_v62  ;;  %v4336_v29 = vpop.permute.xlu1 %3010  ;;  %v4338_v61 = vpop.permute.xlu0 %3005 }
 0x414   :  { %v3120_v44 = vmul.f32 %v4276_v43, %v2800_v46  ;;  %v3122_v9 = vmul.f32 %v4276_v43, %v2802_v35  ;;  %v2804_v41 = vmax.f32 %v2471_v33, 0.0  ;;  %v2806_v15 = vmax.f32 %v2664_v13, 0.0 }
 0x415   :  { %v3121_v27 = vmul.f32 %v4276_v43, %v2801_v36  ;;  %v3123_v19 = vmul.f32 %v4276_v43, %v2803_v39  ;;  %v2805_v17 = vmax.f32 %v2473_v37, 0.0  ;;  %v2807_v20 = vmax.f32 %v2666_v16, 0.0 }
 0x416   :  { %v3193_v48 = vadd.f32 %v3192_v12, %v3120_v44  ;;  %v3267_v21 = vadd.f32 %v3266_v55, %v3122_v9  ;;  %v3124_v62 = vmul.f32 %v4298_v11, %v2804_v41  ;;  %v3126_v22 = vmul.f32 %v4298_v11, %v2806_v15 }
 0x417   :  { %v3230_v45 = vadd.f32 %v3229_v38, %v3121_v27  ;;  %v3304_v23 = vadd.f32 %v3303_v34, %v3123_v19  ;;  %v3125_v58 = vmul.f32 %v4298_v11, %v2805_v17  ;;  %v3127_v24 = vmul.f32 %v4298_v11, %v2807_v20  ;;  %v2476_v56 = vpop.f32.mrb[104].mxu0  ;;  %v2669_v43 = vpop.f32.mrb[104].mxu1 }
 0x418   :  { %v3194_v59 = vadd.f32 %v3193_v48, %v3124_v62  ;;  %v3268_v52 = vadd.f32 %v3267_v21, %v3126_v22  ;;  %v2477_v54 = vadd.f32 %v2476_v56, %v4142_v10  ;;  %v2670_v47 = vadd.f32 %v2669_v43, %v4142_v10  ;;  %v2478_v31 = vpop.f32.mrb[105].mxu0  ;;  %v2671_v57 = vpop.f32.mrb[105].mxu1 }
 0x419   :  { %v3231_v51 = vadd.f32 %v3230_v45, %v3125_v58  ;;  %v3305_v14 = vadd.f32 %v3304_v23, %v3127_v24  ;;  %v2479_v12 = vadd.f32 %v2478_v31, %v4142_v10  ;;  %v2672_v55 = vadd.f32 %v2671_v57, %v4142_v10  ;;  %v2480_v53 = vpop.f32.mrb[106].mxu0  ;;  %v2673_v30 = vpop.f32.mrb[106].mxu1 }
 0x41a   :  { %v2808_v8 = vmax.f32 %v2477_v54, 0.0  ;;  %v2810_v11 = vmax.f32 %v2670_v47, 0.0  ;;  %v2481_v49 = vadd.f32 %v2480_v53, %v4140_v0  ;;  %v2674_v38 = vadd.f32 %v2673_v30, %v4140_v0  ;;  %v2482_v34 = vpop.f32.mrb[107].mxu0  ;;  %v2675_v42 = vpop.f32.mrb[107].mxu1 }
 0x41b   :  { %v2809_v32 = vmax.f32 %v2479_v12, 0.0  ;;  %v2811_v18 = vmax.f32 %v2672_v55, 0.0  ;;  %v2483_v25 = vadd.f32 %v2482_v34, %v4140_v0  ;;  %v2676_v46 = vadd.f32 %v2675_v42, %v4140_v0  ;;  %v4356_v37 = vpop.permute.xlu1 %3015  ;;  %v4358_v16 = vpop.permute.xlu0 %2159 }
 0x41c   :  { %v3128_v35 = vmul.f32 %v4296_v6, %v2808_v8  ;;  %v3130_v10 = vmul.f32 %v4296_v6, %v2810_v11  ;;  %v2812_v33 = vmax.f32 %v2481_v49, 0.0  ;;  %v2814_v13 = vmax.f32 %v2674_v38, 0.0 }
 0x41d   :  { %v3129_v40 = vmul.f32 %v4296_v6, %v2809_v32  ;;  %v3131_v28 = vmul.f32 %v4296_v6, %v2811_v18  ;;  %v2813_v36 = vmax.f32 %v2483_v25, 0.0  ;;  %v2815_v39 = vmax.f32 %v2676_v46, 0.0 }
 0x41e   :  { %v3195_v44 = vadd.f32 %v3194_v59, %v3128_v35  ;;  %v3269_v9 = vadd.f32 %v3268_v52, %v3130_v10  ;;  %v3132_v0 = vmul.f32 %v4318_v26, %v2812_v33  ;;  %v3134_v41 = vmul.f32 %v4318_v26, %v2814_v13 }
 0x41f   :  { %v3232_v15 = vadd.f32 %v3231_v51, %v3129_v40  ;;  %v3306_v27 = vadd.f32 %v3305_v14, %v3131_v28  ;;  %v3133_v19 = vmul.f32 %v4318_v26, %v2813_v36  ;;  %v3135_v17 = vmul.f32 %v4318_v26, %v2815_v39  ;;  %v2486_v20 = vpop.f32.mrb[108].mxu0  ;;  %v2679_v6 = vpop.f32.mrb[108].mxu1 }
 0x420   :  { %v3196_v48 = vadd.f32 %v3195_v44, %v3132_v0  ;;  %v3270_v21 = vadd.f32 %v3269_v9, %v3134_v41  ;;  %v2487_v62 = vadd.f32 %v2486_v20, %v4146_v2  ;;  %v2680_v22 = vadd.f32 %v2679_v6, %v4146_v2  ;;  %v2488_v45 = vpop.f32.mrb[109].mxu0  ;;  %v2681_v23 = vpop.f32.mrb[109].mxu1 }
 0x421   :  { %v3233_v58 = vadd.f32 %v3232_v15, %v3133_v19  ;;  %v3307_v24 = vadd.f32 %v3306_v27, %v3135_v17  ;;  %v2489_v56 = vadd.f32 %v2488_v45, %v4146_v2  ;;  %v2682_v43 = vadd.f32 %v2681_v23, %v4146_v2  ;;  %v2490_v59 = vpop.f32.mrb[110].mxu0  ;;  %v2683_v52 = vpop.f32.mrb[110].mxu1 }
 0x422   :  { %v2816_v54 = vmax.f32 %v2487_v62, 0.0  ;;  %v2818_v26 = vmax.f32 %v2680_v22, 0.0  ;;  %v2491_v47 = vadd.f32 %v2490_v59, %v4144_v1  ;;  %v2684_v31 = vadd.f32 %v2683_v52, %v4144_v1  ;;  %v2492_v57 = vpop.f32.mrb[111].mxu0  ;;  %v2685_v51 = vpop.f32.mrb[111].mxu1 }
 0x423   :  { %v2817_v14 = vmax.f32 %v2489_v56, 0.0  ;;  %v2819_v12 = vmax.f32 %v2682_v43, 0.0  ;;  %v2493_v55 = vadd.f32 %v2492_v57, %v4144_v1  ;;  %v2686_v53 = vadd.f32 %v2685_v51, %v4144_v1  ;;  %v4376_v32 = vpop.permute.xlu1 %3020  ;;  %v4378_v18 = vpop.permute.xlu0 %2164 }
 0x424   :  { %v3136_v30 = vmul.f32 %v4316_v50, %v2816_v54  ;;  %v3138_v2 = vmul.f32 %v4316_v50, %v2818_v26  ;;  %v2820_v8 = vmax.f32 %v2491_v47, 0.0  ;;  %v2822_v11 = vmax.f32 %v2684_v31, 0.0 }
 0x425   :  { %v3137_v49 = vmul.f32 %v4316_v50, %v2817_v14  ;;  %v3139_v38 = vmul.f32 %v4316_v50, %v2819_v12  ;;  %v2821_v34 = vmax.f32 %v2493_v55, 0.0  ;;  %v2823_v42 = vmax.f32 %v2686_v53, 0.0 }
 0x426   :  { %v3197_v25 = vadd.f32 %v3196_v48, %v3136_v30  ;;  %v3271_v46 = vadd.f32 %v3270_v21, %v3138_v2  ;;  %v3140_v1 = vmul.f32 %v4338_v61, %v2820_v8  ;;  %v3142_v35 = vmul.f32 %v4338_v61, %v2822_v11 }
 0x427   :  { %v3234_v10 = vadd.f32 %v3233_v58, %v3137_v49  ;;  %v3308_v33 = vadd.f32 %v3307_v24, %v3139_v38  ;;  %v3141_v13 = vmul.f32 %v4338_v61, %v2821_v34  ;;  %v3143_v40 = vmul.f32 %v4338_v61, %v2823_v42  ;;  %v2496_v28 = vpop.f32.mrb[112].mxu0  ;;  %v2689_v50 = vpop.f32.mrb[112].mxu1 }
 0x428   :  { %v3198_v36 = vadd.f32 %v3197_v25, %v3140_v1  ;;  %v3272_v39 = vadd.f32 %v3271_v46, %v3142_v35  ;;  %v2497_v44 = vadd.f32 %v2496_v28, %v4150_v5  ;;  %v2690_v9 = vadd.f32 %v2689_v50, %v4150_v5  ;;  %v2498_v0 = vpop.f32.mrb[113].mxu0  ;;  %v2691_v41 = vpop.f32.mrb[113].mxu1 }
 0x429   :  { %v3235_v15 = vadd.f32 %v3234_v10, %v3141_v13  ;;  %v3309_v27 = vadd.f32 %v3308_v33, %v3143_v40  ;;  %v2499_v19 = vadd.f32 %v2498_v0, %v4150_v5  ;;  %v2692_v17 = vadd.f32 %v2691_v41, %v4150_v5  ;;  %v2500_v20 = vpop.f32.mrb[114].mxu0  ;;  %v2693_v6 = vpop.f32.mrb[114].mxu1 }
 0x42a   :  { %v2824_v48 = vmax.f32 %v2497_v44, 0.0  ;;  %v2826_v61 = vmax.f32 %v2690_v9, 0.0  ;;  %v2501_v21 = vadd.f32 %v2500_v20, %v4148_v3  ;;  %v2694_v62 = vadd.f32 %v2693_v6, %v4148_v3  ;;  %v2502_v22 = vpop.f32.mrb[115].mxu0  ;;  %v2695_v45 = vpop.f32.mrb[115].mxu1 }
 0x42b   :  { %v2825_v23 = vmax.f32 %v2499_v19, 0.0  ;;  %v2827_v58 = vmax.f32 %v2692_v17, 0.0  ;;  %v2503_v24 = vadd.f32 %v2502_v22, %v4148_v3  ;;  %v2696_v56 = vadd.f32 %v2695_v45, %v4148_v3  ;;  %v3026_v57 = vpop.permute.xlu1 %3025  ;;  %v4396_v51 = vpop.permute.xlu0 %2169 }
 0x42c   :  { %v3144_v43 = vmul.f32 %v4336_v29, %v2824_v48  ;;  %v3146_v5 = vmul.f32 %v4336_v29, %v2826_v61  ;;  %v2828_v59 = vmax.f32 %v2501_v21, 0.0  ;;  %v2830_v52 = vmax.f32 %v2694_v62, 0.0 }
 0x42d   :  { %v3145_v54 = vmul.f32 %v4336_v29, %v2825_v23  ;;  %v3147_v26 = vmul.f32 %v4336_v29, %v2827_v58  ;;  %v2829_v47 = vmax.f32 %v2503_v24, 0.0  ;;  %v2831_v31 = vmax.f32 %v2696_v56, 0.0 }
 0x42e   :  { %v3199_v14 = vadd.f32 %v3198_v36, %v3144_v43  ;;  %v3273_v12 = vadd.f32 %v3272_v39, %v3146_v5  ;;  %v3148_v55 = vmul.f32 %v4356_v37, %v2828_v59  ;;  %v3150_v3 = vmul.f32 %v4356_v37, %v2830_v52 }
 0x42f   :  { %v3236_v53 = vadd.f32 %v3235_v15, %v3145_v54  ;;  %v3310_v30 = vadd.f32 %v3309_v27, %v3147_v26  ;;  %v3149_v2 = vmul.f32 %v4356_v37, %v2829_v47  ;;  %v3151_v8 = vmul.f32 %v4356_v37, %v2831_v31  ;;  %v2506_v11 = vpop.f32.mrb[116].mxu0  ;;  %v2699_v49 = vpop.f32.mrb[116].mxu1 }
 0x430   :  { %v3200_v29 = vadd.f32 %v3199_v14, %v3148_v55  ;;  %v3274_v38 = vadd.f32 %v3273_v12, %v3150_v3  ;;  %v2507_v34 = vadd.f32 %v2506_v11, %v4152_v7  ;;  %v2700_v42 = vadd.f32 %v2699_v49, %v4152_v7  ;;  %v2508_v25 = vpop.f32.mrb[117].mxu0  ;;  %v2701_v46 = vpop.f32.mrb[117].mxu1 }
 0x431   :  { %v3237_v1 = vadd.f32 %v3236_v53, %v3149_v2  ;;  %v3311_v35 = vadd.f32 %v3310_v30, %v3151_v8  ;;  %v2509_v10 = vadd.f32 %v2508_v25, %v4152_v7  ;;  %v2702_v33 = vadd.f32 %v2701_v46, %v4152_v7  ;;  %v2510_v13 = vpop.f32.mrb[118].mxu0  ;;  %v2703_v40 = vpop.f32.mrb[118].mxu1 }
 0x432   :  { %v2832_v28 = vmax.f32 %v2507_v34, 0.0  ;;  %v2834_v37 = vmax.f32 %v2700_v42, 0.0  ;;  %v2511_v50 = vadd.f32 %v2510_v13, %v4358_v16  ;;  %v2704_v36 = vadd.f32 %v2703_v40, %v4358_v16  ;;  %v2512_v39 = vpop.f32.mrb[119].mxu0  ;;  %v2705_v44 = vpop.f32.mrb[119].mxu1 }
 0x433   :  { %v2833_v9 = vmax.f32 %v2509_v10, 0.0  ;;  %v2835_v0 = vmax.f32 %v2702_v33, 0.0  ;;  %v2513_v41 = vadd.f32 %v2512_v39, %v4358_v16  ;;  %v2706_v15 = vadd.f32 %v2705_v44, %v4358_v16  ;;  %v3031_v21 = vpop.permute.xlu1 %3030  ;;  %v2175_v62 = vpop.permute.xlu0 %2174 }
 0x434   :  { %v3152_v27 = vmul.f32 %v4376_v32, %v2832_v28  ;;  %v3154_v7 = vmul.f32 %v4376_v32, %v2834_v37  ;;  %v2836_v19 = vmax.f32 %v2511_v50, 0.0  ;;  %v2838_v17 = vmax.f32 %v2704_v36, 0.0 }
 0x435   :  { %v3153_v20 = vmul.f32 %v4376_v32, %v2833_v9  ;;  %v3155_v6 = vmul.f32 %v4376_v32, %v2835_v0  ;;  %v2837_v48 = vmax.f32 %v2513_v41, 0.0  ;;  %v2839_v61 = vmax.f32 %v2706_v15, 0.0 }
 0x436   :  { %v3201_v22 = vadd.f32 %v3200_v29, %v3152_v27  ;;  %v3275_v45 = vadd.f32 %v3274_v38, %v3154_v7  ;;  %v3156_v23 = vmul.f32 %v3026_v57, %v2836_v19  ;;  %v3158_v58 = vmul.f32 %v3026_v57, %v2838_v17 }
 0x437   :  { %v3238_v24 = vadd.f32 %v3237_v1, %v3153_v20  ;;  %v3312_v16 = vadd.f32 %v3311_v35, %v3155_v6  ;;  %v3157_v56 = vmul.f32 %v3026_v57, %v2837_v48  ;;  %v3159_v43 = vmul.f32 %v3026_v57, %v2839_v61  ;;  %v2516_v5 = vpop.f32.mrb[120].mxu0  ;;  %v2709_v59 = vpop.f32.mrb[120].mxu1 }
 0x438   :  { %v3202_v52 = vadd.f32 %v3201_v22, %v3156_v23  ;;  %v3276_v54 = vadd.f32 %v3275_v45, %v3158_v58  ;;  %v2517_v26 = vadd.f32 %v2516_v5, %v4378_v18  ;;  %v2710_v32 = vadd.f32 %v2709_v59, %v4378_v18  ;;  %v2518_v47 = vpop.f32.mrb[121].mxu0  ;;  %v2711_v31 = vpop.f32.mrb[121].mxu1 }
 0x439   :  { %v3239_v14 = vadd.f32 %v3238_v24, %v3157_v56  ;;  %v3313_v12 = vadd.f32 %v3312_v16, %v3159_v43  ;;  %v2519_v55 = vadd.f32 %v2518_v47, %v4378_v18  ;;  %v2712_v3 = vadd.f32 %v2711_v31, %v4378_v18  ;;  %v2520_v53 = vpop.f32.mrb[122].mxu0  ;;  %v2713_v30 = vpop.f32.mrb[122].mxu1 }
 0x43a   :  { %v2840_v2 = vmax.f32 %v2517_v26, 0.0  ;;  %v2842_v57 = vmax.f32 %v2710_v32, 0.0  ;;  %v2521_v8 = vadd.f32 %v2520_v53, %v4396_v51  ;;  %v2714_v11 = vadd.f32 %v2713_v30, %v4396_v51  ;;  %v2522_v49 = vpop.f32.mrb[123].mxu0  ;;  %v2715_v29 = vpop.f32.mrb[123].mxu1 }
 0x43b   :  { %v2841_v38 = vmax.f32 %v2519_v55, 0.0  ;;  %v2843_v34 = vmax.f32 %v2712_v3, 0.0  ;;  %v2523_v42 = vadd.f32 %v2522_v49, %v4396_v51  ;;  %v2716_v25 = vadd.f32 %v2715_v29, %v4396_v51  ;;  %v3036_v10 = vpop.permute.xlu1 %3035  ;;  %v2180_v33 = vpop.permute.xlu0 %2179 }
 0x43c   :  { %v3160_v46 = vmul.f32 %v3031_v21, %v2840_v2  ;;  %v3162_v1 = vmul.f32 %v3031_v21, %v2842_v57  ;;  %v2844_v35 = vmax.f32 %v2521_v8, 0.0  ;;  %v2846_v18 = vmax.f32 %v2714_v11, 0.0 }
 0x43d   :  { %v3161_v13 = vmul.f32 %v3031_v21, %v2841_v38  ;;  %v3163_v40 = vmul.f32 %v3031_v21, %v2843_v34  ;;  %v2845_v28 = vmax.f32 %v2523_v42, 0.0  ;;  %v2847_v37 = vmax.f32 %v2716_v25, 0.0 }
 0x43e   :  { %v3203_v50 = vadd.f32 %v3202_v52, %v3160_v46  ;;  %v3277_v36 = vadd.f32 %v3276_v54, %v3162_v1  ;;  %v3164_v39 = vmul.f32 %v3036_v10, %v2844_v35  ;;  %v3166_v44 = vmul.f32 %v3036_v10, %v2846_v18 }
 0x43f   :  { %v3240_v9 = vadd.f32 %v3239_v14, %v3161_v13  ;;  %v3314_v0 = vadd.f32 %v3313_v12, %v3163_v40  ;;  %v3165_v41 = vmul.f32 %v3036_v10, %v2845_v28  ;;  %v3167_v15 = vmul.f32 %v3036_v10, %v2847_v37  ;;  %v2526_v27 = vpop.f32.mrb[124].mxu0  ;;  %v2719_v51 = vpop.f32.mrb[124].mxu1 }
 0x440   :  { %v3204_v7 = vadd.f32 %v3203_v50, %v3164_v39  ;;  %v3278_v19 = vadd.f32 %v3277_v36, %v3166_v44  ;;  %v2527_v17 = vadd.f32 %v2526_v27, %v2175_v62  ;;  %v2720_v20 = vadd.f32 %v2719_v51, %v2175_v62  ;;  %v2528_v6 = vpop.f32.mrb[125].mxu0  ;;  %v2721_v48 = vpop.f32.mrb[125].mxu1 }
 0x441   :  { %v3241_v61 = vadd.f32 %v3240_v9, %v3165_v41  ;;  %v3315_v21 = vadd.f32 %v3314_v0, %v3167_v15  ;;  %v2529_v22 = vadd.f32 %v2528_v6, %v2175_v62  ;;  %v2722_v45 = vadd.f32 %v2721_v48, %v2175_v62  ;;  %v2530_v23 = vpop.f32.mrb[126].mxu0  ;;  %v2723_v58 = vpop.f32.mrb[126].mxu1 }
 0x442   :  { %v2848_v24 = vmax.f32 %v2527_v17, 0.0  ;;  %v2850_v16 = vmax.f32 %v2720_v20, 0.0  ;;  %v2531_v56 = vadd.f32 %v2530_v23, %v2180_v33  ;;  %v2724_v43 = vadd.f32 %v2723_v58, %v2180_v33  ;;  %v2532_v5 = vpop.f32.mrb[127].mxu0  ;;  %v2725_v59 = vpop.f32.mrb[127].mxu1 }
 0x443   :  { %v3041_v52 = vpop.permute.xlu0 %3040  ;;  %v2849_v54 = vmax.f32 %v2529_v22, 0.0  ;;  %v2851_v26 = vmax.f32 %v2722_v45, 0.0  ;;  %v2533_v32 = vadd.f32 %v2532_v5, %v2180_v33  ;;  %v2726_v47 = vadd.f32 %v2725_v59, %v2180_v33  ;;  %v3046_v3 = vpop.permute.xlu1 %3045 }
 0x444   :  { %v3168_v31 = vmul.f32 %v3041_v52, %v2848_v24  ;;  %v3170_v14 = vmul.f32 %v3041_v52, %v2850_v16  ;;  %v2852_v12 = vmax.f32 %v2531_v56, 0.0  ;;  %v2854_v55 = vmax.f32 %v2724_v43, 0.0 }
 0x445   :  { %v3169_v53 = vmul.f32 %v3041_v52, %v2849_v54  ;;  %v3171_v62 = vmul.f32 %v3041_v52, %v2851_v26  ;;  %v2853_v30 = vmax.f32 %v2533_v32, 0.0  ;;  %v2855_v2 = vmax.f32 %v2726_v47, 0.0 }
 0x446   :  { %v3205_v57 = vadd.f32 %v3204_v7, %v3168_v31  ;;  %v3279_v8 = vadd.f32 %v3278_v19, %v3170_v14  ;;  %v3172_v11 = vmul.f32 %v3046_v3, %v2852_v12  ;;  %v3174_v49 = vmul.f32 %v3046_v3, %v2854_v55 }
 0x447   :  { %v3242_v29 = vadd.f32 %v3241_v61, %v3169_v53  ;;  %v3316_v38 = vadd.f32 %v3315_v21, %v3171_v62  ;;  %v3173_v34 = vmul.f32 %v3046_v3, %v2853_v30  ;;  %v3175_v42 = vmul.f32 %v3046_v3, %v2855_v2  ;;  %v3328_v51 = vpop.permute.xlu0 %3327 }
 0x448   :  { %v3206_v25 = vadd.f32 %v3205_v57, %v3172_v11  ;;  %v3280_v46 = vadd.f32 %v3279_v8, %v3174_v49  ;;  %v3787_v0 = vmov 1966171168   ;;  %v3333_v21 = vrot.slane %v3328_v51, %v338_v4 }
 0x449   :  { %v3243_v1 = vadd.f32 %v3242_v29, %v3173_v34  ;;  %v3317_v35 = vadd.f32 %v3316_v38, %v3175_v42  ;;  %v3345_v41 = vunpack.c.l.s4 %v3787_v0 }
 0x44a   :  { %v3207_v18 = vrot.slane %v3206_v25, 4  ;;  %v3281_v10 = vrot.slane %v3280_v46, 4 }
 0x44b   :  { %v3244_v33 = vrot.slane %v3243_v1, 4  ;;  %v3318_v13 = vrot.slane %v3317_v35, 4  ;;  %v3346_v61 = vunpack.c.0.s8 %v3345_v41 }
 0x44c   :  { %v3208_v40 = vadd.f32 %v3207_v18, %v3206_v25  ;;  %v3282_v28 = vadd.f32 %v3281_v10, %v3280_v46 }
 0x44d   :  { %v3245_v37 = vadd.f32 %v3244_v33, %v3243_v1  ;;  %v3319_v50 = vadd.f32 %v3318_v13, %v3317_v35  ;;  %v3349_v5 = vsub.s32 %v3346_v61, %v3960_v63 }
 0x44e   :  { %v3209_v36 = vrot.slane %v3208_v40, 2  ;;  %v3283_v39 = vrot.slane %v3282_v28, 2 }
 0x44f   :  { %v3246_v44 = vrot.slane %v3245_v37, 2  ;;  %v3320_v9 = vrot.slane %v3319_v50, 2 }
 0x450   :  { %v3210_v15 = vadd.f32 %v3209_v36, %v3208_v40  ;;  %v3284_v27 = vadd.f32 %v3283_v39, %v3282_v28 }
 0x451   :  { %v3247_v7 = vadd.f32 %v3246_v44, %v3245_v37  ;;  %v3321_v19 = vadd.f32 %v3320_v9, %v3319_v50 }
 0x452   :  { %v3211_v17 = vrot.slane %v3210_v15, 1  ;;  %v3285_v20 = vrot.slane %v3284_v27, 1 }
 0x453   :  { %v3248_v6 = vrot.slane %v3247_v7, 1  ;;  %v3322_v48 = vrot.slane %v3321_v19, 1 }
 0x454   :  { %v3212_v22 = vadd.f32 %v3211_v17, %v3210_v15  ;;  %v3286_v45 = vadd.f32 %v3285_v20, %v3284_v27 }
 0x455   :  { %v3249_v23 = vadd.f32 %v3248_v6, %v3247_v7  ;;  %v3323_v58 = vadd.f32 %v3322_v48, %v3321_v19 }
 0x456   :  { %v3334_v24 = vadd.f32 %v3333_v21, %v3212_v22  ;;  %v3336_v16 = vadd.f32 %v3333_v21, %v3286_v45 }
 0x457   :  { %v3335_v56 = vadd.f32 %v3333_v21, %v3249_v23  ;;  %v3337_v43 = vadd.f32 %v3333_v21, %v3323_v58 }
 0x459   :  { %v3342_v59 = vcombine.low %v3334_v24, %v3335_v56  ;;  %v3343_v52 = vcombine.low %v3336_v16, %v3337_v43 }
 0x45b   :  { %v3350_v54 = vrot.slane %v3342_v59, %v3349_v5  ;;  %v3357_v26 = vrot.slane %v3343_v52, %v3349_v5 }
 0x45d   :  { %v3358_v32 = vcombine.low %v3350_v54, %v3357_v26 }
 0x45f   :  { %v3365_v4 = vrot.slane %v3358_v32, %v3349_v5 }
 0x461   :  { %3371 = vst.msk [vmem:[#allocation17] sm:$0xf] %vm3369_vm0, %v3365_v4 }
 0x462   :  { %3753 = shalt.err (!%p3750_p12)
}
 0x463   :  { %s3754_s2 = scalar_lea.hbm %s4447_s9, 64 }
 0x464   :  { %p3755_p13 = scmp.ne.s32.totalorder %s4447_s9, %s3754_s2  ;;  %p3758_p0 = scmp.lt.u32.totalorder %s3754_s2, %s4447_s9 }
 0x466   :  { %p3760_p1 = pnand %p3758_p0, %p3755_p13 }
 0x468   :  { %3763 = shalt.err (!%p3760_p1)
}
 0x469   :  { %3381 = dma.vmem_to_hbm [thread:$0]  %s3379_s20, 64, %s4447_s9, [#allocation5]  }
 0x46a   :  { %3774 = dma.done.wait [#allocation5], 64  }
 0x46b   :  { %3775 = vsyncadd [#allocation5], 4294967232 }
 0x46c   :  { %3385 = vsyncpa [#allocation4], 1 }
 0x46d   :  { %3386 = vsyncpa [#allocation7], 1 }
 0x46e   :  { %3387 = vsyncpa [#allocation10], 1 }
 0x46f   :  { %3388 = vsyncpa [#allocation13], 1 }
 0x470   :  { %3389 = vsyncpa [#allocation16], 1 }
 0x471   :  { %3390 = vsyncpa [#allocation5], 1 }

// kernel: tpu_custom_call.1
= control target key start
LH: loop header
LB: loop body
LE: loop exit
PB: predicated region body
PF: predicated region fallthrough
CT: control target
= control target key end

     0   :  { %s4438_s0 = inlined_call_operand.hbm [shape: f32[1,512], index: 0, kind: input, shape index: {}]   ;;  %s4439_s1 = inlined_call_operand.hbm [shape: f32[256,1], index: 1, kind: input, shape index: {}]   ;;  %s4440_s2 = inlined_call_operand.hbm [shape: f32[256,1], index: 2, kind: input, shape index: {}]   ;;  %s4441_s3 = inlined_call_operand.hbm [shape: bf16[256,256], index: 3, kind: input, shape index: {}]   ;;  %s4442_s4 = inlined_call_operand.hbm [shape: f32[256,1], index: 4, kind: input, shape index: {}]   ;;  %s4443_s5 = inlined_call_operand.hbm [shape: bf16[256,256], index: 5, kind: input, shape index: {}]   ;;  %s4444_s6 = inlined_call_operand.hbm [shape: f32[256,1], index: 6, kind: input, shape index: {}]   ;;  %s4445_s7 = inlined_call_operand.hbm [shape: f32[256,1], index: 7, kind: input, shape index: {}]   ;;  %s4446_s8 = inlined_call_operand.<no memory space> [shape: f32[1,1], index: 8, kind: input, shape index: {}]   ;;  %s4447_s9 = inlined_call_operand.hbm [shape: f32[1,512], index: 9, kind: output, shape index: {}]  }
   0x1   :  { %v14_v0 = vstv %s4446_s8 }
   0x2   :  { %15 = vst [vmem:[#allocation2] sm:$0x1] %v14_v0 }
   0x3   :  { %16 = vsyncpa [#allocation4], 0 }
   0x4   :  { %17 = vsyncpa [#allocation7], 0 }
   0x5   :  { %18 = vsyncpa [#allocation10], 0 }
   0x6   :  { %19 = vsyncpa [#allocation13], 0 }
   0x7   :  { %20 = vsyncpa [#allocation16], 0 }
   0x8   :  { %21 = vsyncpa [#allocation5], 0  ;;  %s3776_s11 = smov [#allocation6]   ;;  %s3566_s15 = scalar_lea.hbm %s4439_s1, 4096 }
   0x9   :  { %s37_s12 = sshll.u32 %s3776_s11, 4  ;;  %p3567_p0 = scmp.ne.s32.totalorder %s4439_s1, %s3566_s15  ;;  %s38_s12 = int_to_ptr.vmem [resolvable:$true] %s37_s12 }
   0xa   :  { %p3570_p1 = scmp.lt.u32.totalorder %s3566_s15, %s4439_s1 }
   0xc   :  { %p3572_p2 = pnand %p3570_p1, %p3567_p0 }
   0xe   :  { %3575 = shalt.err (!%p3572_p2)
}
   0xf   :  { %s3576_s19 = scalar_lea.vmem %s38_s12, 4096  ;;  %p3581_p4 = scmp.lt.s32.totalorder %s38_s12, %s38_s12 }
  0x10   :  { %p3577_p3 = scmp.ne.s32.totalorder %s38_s12, %s3576_s19  ;;  %p3582_p5 = scmp.lt.s32.totalorder %s3576_s19, %s3576_s19 }
  0x12   :  { %p3583_p6 = por %p3582_p5, %p3581_p4 }
  0x14   :  { %p3584_p7 = pnand %p3583_p6, %p3577_p3 }
  0x16   :  { %3587 = shalt.err (!%p3584_p7)
}
  0x17   :  { %s3777_s20 = smov 128   ;;  %s3778_s21 = smov 8  }
  0x18   :  { %43 = dma.hbm_to_vmem [thread:$0]  %s4439_s1, 4096, %s38_s12, [#allocation7], %s3777_s20, %s3777_s20, %s3778_s21  }
  0x19   :  { %s3779_s24 = smov [#allocation9]   ;;  %s3780_s26 = smov [#allocation12]  }
  0x1a   :  { %s61_s25 = sshll.u32 %s3779_s24, 4  ;;  %s85_s27 = sshll.u32 %s3780_s26, 4  ;;  %s62_s25 = int_to_ptr.vmem [resolvable:$true] %s61_s25  ;;  %s86_s27 = int_to_ptr.vmem [resolvable:$true] %s85_s27 }
  0x1b   :  { %s3588_s30 = scalar_lea.hbm %s4441_s3, 4096 }
  0x1c   :  { %p3589_p8 = scmp.ne.s32.totalorder %s4441_s3, %s3588_s30  ;;  %p3592_p9 = scmp.lt.u32.totalorder %s3588_s30, %s4441_s3 }
  0x1e   :  { %p3594_p10 = pnand %p3592_p9, %p3589_p8 }
  0x20   :  { %3597 = shalt.err (!%p3594_p10)
}
  0x21   :  { %s3598_s1 = scalar_lea.vmem %s62_s25, 4096  ;;  %p3603_p12 = scmp.lt.s32.totalorder %s62_s25, %s62_s25 }
  0x22   :  { %p3599_p11 = scmp.ne.s32.totalorder %s62_s25, %s3598_s1  ;;  %p3604_p13 = scmp.lt.s32.totalorder %s3598_s1, %s3598_s1 }
  0x24   :  { %p3605_p0 = por %p3604_p13, %p3603_p12 }
  0x26   :  { %p3606_p1 = pnand %p3605_p0, %p3599_p11 }
  0x28   :  { %3609 = shalt.err (!%p3606_p1)
}
  0x29   :  { %67 = dma.hbm_to_vmem [thread:$0]  %s4441_s3, 4096, %s62_s25, [#allocation10], %s3777_s20, %s3777_s20, %s3778_s21  }
  0x2a   :  { %s3610_s18 = scalar_lea.hbm %s4443_s5, 4096 }
  0x2b   :  { %p3611_p2 = scmp.ne.s32.totalorder %s4443_s5, %s3610_s18  ;;  %p3614_p3 = scmp.lt.u32.totalorder %s3610_s18, %s4443_s5 }
  0x2d   :  { %p3616_p4 = pnand %p3614_p3, %p3611_p2 }
  0x2f   :  { %3619 = shalt.err (!%p3616_p4)
}
  0x30   :  { %s3620_s24 = scalar_lea.vmem %s86_s27, 4096  ;;  %p3625_p6 = scmp.lt.s32.totalorder %s86_s27, %s86_s27 }
  0x31   :  { %p3621_p5 = scmp.ne.s32.totalorder %s86_s27, %s3620_s24  ;;  %p3626_p7 = scmp.lt.s32.totalorder %s3620_s24, %s3620_s24 }
  0x33   :  { %p3627_p8 = por %p3626_p7, %p3625_p6 }
  0x35   :  { %p3628_p9 = pnand %p3627_p8, %p3621_p5 }
  0x37   :  { %3631 = shalt.err (!%p3628_p9)
}
  0x38   :  { %91 = dma.hbm_to_vmem [thread:$0]  %s4443_s5, 4096, %s86_s27, [#allocation13], %s3777_s20, %s3777_s20, %s3778_s21  }
  0x39   :  { %s3781_s26 = smov [#allocation3]   ;;  %s3782_s29 = smov [#allocation8]  }
  0x3a   :  { %s28_s28 = sshll.u32 %s3781_s26, 4  ;;  %s49_s30 = sshll.u32 %s3782_s29, 4  ;;  %s29_s28 = int_to_ptr.vmem [resolvable:$true] %s28_s28  ;;  %s50_s30 = int_to_ptr.vmem [resolvable:$true] %s49_s30 }
  0x3b   :  { %s3632_s13 = scalar_lea.hbm %s4438_s0, 64 }
  0x3c   :  { %p3633_p10 = scmp.ne.s32.totalorder %s4438_s0, %s3632_s13  ;;  %p3636_p11 = scmp.lt.u32.totalorder %s3632_s13, %s4438_s0 }
  0x3e   :  { %p3638_p12 = pnand %p3636_p11, %p3633_p10 }
  0x40   :  { %3641 = shalt.err (!%p3638_p12)
}
  0x41   :  { %s3642_s5 = scalar_lea.vmem %s29_s28, 64  ;;  %p3647_p0 = scmp.lt.s32.totalorder %s29_s28, %s29_s28 }
  0x42   :  { %p3643_p13 = scmp.ne.s32.totalorder %s29_s28, %s3642_s5  ;;  %p3648_p1 = scmp.lt.s32.totalorder %s3642_s5, %s3642_s5 }
  0x44   :  { %p3649_p2 = por %p3648_p1, %p3647_p0 }
  0x46   :  { %p3650_p3 = pnand %p3649_p2, %p3643_p13 }
  0x48   :  { %3653 = shalt.err (!%p3650_p3)
}
  0x49   :  { %31 = dma.hbm_to_vmem [thread:$0]  %s4438_s0, 64, %s29_s28, [#allocation4]  }
  0x4a   :  { %s3654_s8 = scalar_lea.hbm %s4440_s2, 4096 }
  0x4b   :  { %p3655_p4 = scmp.ne.s32.totalorder %s4440_s2, %s3654_s8  ;;  %p3658_p5 = scmp.lt.u32.totalorder %s3654_s8, %s4440_s2 }
  0x4d   :  { %p3660_p6 = pnand %p3658_p5, %p3655_p4 }
  0x4f   :  { %3663 = shalt.err (!%p3660_p6)
}
  0x50   :  { %s3664_s3 = scalar_lea.vmem %s50_s30, 4096  ;;  %p3669_p8 = scmp.lt.s32.totalorder %s50_s30, %s50_s30 }
  0x51   :  { %p3665_p7 = scmp.ne.s32.totalorder %s50_s30, %s3664_s3  ;;  %p3670_p9 = scmp.lt.s32.totalorder %s3664_s3, %s3664_s3 }
  0x53   :  { %p3671_p10 = por %p3670_p9, %p3669_p8 }
  0x55   :  { %p3672_p11 = pnand %p3671_p10, %p3665_p7 }
  0x57   :  { %3675 = shalt.err (!%p3672_p11)
}
  0x58   :  { %55 = dma.hbm_to_vmem [thread:$0]  %s4440_s2, 4096, %s50_s30, [#allocation7], %s3777_s20, %s3777_s20, %s3778_s21  }
  0x59   :  { %s3783_s26 = smov [#allocation11]   ;;  %s3784_s29 = smov [#allocation14]  }
  0x5a   :  { %s73_s28 = sshll.u32 %s3783_s26, 4  ;;  %s97_s10 = sshll.u32 %s3784_s29, 4  ;;  %s74_s28 = int_to_ptr.vmem [resolvable:$true] %s73_s28  ;;  %s98_s10 = int_to_ptr.vmem [resolvable:$true] %s97_s10 }
  0x5b   :  { %s3676_s14 = scalar_lea.hbm %s4442_s4, 4096 }
  0x5c   :  { %p3677_p12 = scmp.ne.s32.totalorder %s4442_s4, %s3676_s14  ;;  %p3680_p13 = scmp.lt.u32.totalorder %s3676_s14, %s4442_s4 }
  0x5e   :  { %p3682_p0 = pnand %p3680_p13, %p3677_p12 }
  0x60   :  { %3685 = shalt.err (!%p3682_p0)
}
  0x61   :  { %s3686_s2 = scalar_lea.vmem %s74_s28, 4096  ;;  %p3691_p2 = scmp.lt.s32.totalorder %s74_s28, %s74_s28 }
  0x62   :  { %p3687_p1 = scmp.ne.s32.totalorder %s74_s28, %s3686_s2  ;;  %p3692_p3 = scmp.lt.s32.totalorder %s3686_s2, %s3686_s2 }
  0x64   :  { %p3693_p4 = por %p3692_p3, %p3691_p2 }
  0x66   :  { %p3694_p5 = pnand %p3693_p4, %p3687_p1 }
  0x68   :  { %3697 = shalt.err (!%p3694_p5)
}
  0x69   :  { %79 = dma.hbm_to_vmem [thread:$0]  %s4442_s4, 4096, %s74_s28, [#allocation10], %s3777_s20, %s3777_s20, %s3778_s21  }
  0x6a   :  { %s3698_s18 = scalar_lea.hbm %s4444_s6, 4096 }
  0x6b   :  { %p3699_p6 = scmp.ne.s32.totalorder %s4444_s6, %s3698_s18  ;;  %p3702_p7 = scmp.lt.u32.totalorder %s3698_s18, %s4444_s6 }
  0x6d   :  { %p3704_p8 = pnand %p3702_p7, %p3699_p6 }
  0x6f   :  { %3707 = shalt.err (!%p3704_p8)
}
  0x70   :  { %s3708_s24 = scalar_lea.vmem %s98_s10, 4096  ;;  %p3713_p10 = scmp.lt.s32.totalorder %s98_s10, %s98_s10 }
  0x71   :  { %p3709_p9 = scmp.ne.s32.totalorder %s98_s10, %s3708_s24  ;;  %p3714_p11 = scmp.lt.s32.totalorder %s3708_s24, %s3708_s24 }
  0x73   :  { %p3715_p12 = por %p3714_p11, %p3713_p10 }
  0x75   :  { %p3716_p13 = pnand %p3715_p12, %p3709_p9 }
  0x77   :  { %3719 = shalt.err (!%p3716_p13)
}
  0x78   :  { %103 = dma.hbm_to_vmem [thread:$0]  %s4444_s6, 4096, %s98_s10, [#allocation13], %s3777_s20, %s3777_s20, %s3778_s21  }
  0x79   :  { %s3785_s0 = smov [#allocation15]   ;;  %s3720_s29 = scalar_lea.hbm %s4445_s7, 4096 }
  0x7a   :  { %s109_s25 = sshll.u32 %s3785_s0, 4  ;;  %p3721_p0 = scmp.ne.s32.totalorder %s4445_s7, %s3720_s29  ;;  %s110_s25 = int_to_ptr.vmem [resolvable:$true] %s109_s25 }
  0x7b   :  { %p3724_p1 = scmp.lt.u32.totalorder %s3720_s29, %s4445_s7 }
  0x7d   :  { %p3726_p2 = pnand %p3724_p1, %p3721_p0 }
  0x7f   :  { %3729 = shalt.err (!%p3726_p2)
}
  0x80   :  { %s3730_s12 = scalar_lea.vmem %s110_s25, 4096  ;;  %p3735_p4 = scmp.lt.s32.totalorder %s110_s25, %s110_s25 }
  0x81   :  { %p3731_p3 = scmp.ne.s32.totalorder %s110_s25, %s3730_s12  ;;  %p3736_p5 = scmp.lt.s32.totalorder %s3730_s12, %s3730_s12 }
  0x83   :  { %p3737_p6 = por %p3736_p5, %p3735_p4 }
  0x85   :  { %p3738_p7 = pnand %p3737_p6, %p3731_p3 }
  0x87   :  { %3741 = shalt.err (!%p3738_p7)
}
  0x88   :  { %115 = dma.hbm_to_vmem [thread:$0]  %s4445_s7, 4096, %s110_s25, [#allocation16], %s3777_s20, %s3777_s20, %s3778_s21  }
  0x89   :  { %3764 = dma.done.wait [#allocation4], 64  }
  0x8a   :  { %3765 = vsyncadd [#allocation4], 4294967232 }
  0x8b   :  { %3766 = dma.done.wait [#allocation7], 8192  }
  0x8c   :  { %3767 = vsyncadd [#allocation7], 4294959104 }
  0x8d   :  { %3768 = dma.done.wait [#allocation10], 8192  }
  0x8e   :  { %3769 = vsyncadd [#allocation10], 4294959104 }
  0x8f   :  { %3770 = dma.done.wait [#allocation13], 8192  }
  0x90   :  { %3771 = vsyncadd [#allocation13], 4294959104 }
  0x91   :  { %3772 = dma.done.wait [#allocation16], 4096  }
  0x92   :  { %3773 = vsyncadd [#allocation16], 4294963200  ;;  %v3786_v1 = vmov 0   ;;  %v484_v2 = vld [vmem:[#allocation8] sm:$0xff]  ;;  %v485_v4 = vld [vmem:[#allocation8 + $0x8] sm:$0xff]  ;;  %v336_v60 = vlaneseq  ;;  %s3788_s7 = smov [#allocation17]  }
  0x93   :  { %3469 = vset.pattern.permute.xlu1 %v3786_v1  ;;  %3468 = vset.pattern.permute.xlu0 %v3786_v1  ;;  %v143_v3 = vld [vmem:[#allocation6] sm:$0xff]  ;;  %v144_v5 = vld [vmem:[#allocation6 + $0x8] sm:$0xff]  ;;  %v146_v6 = vld [vmem:[#allocation6 + $0x18] sm:$0xff]  ;;  %s3378_s20 = sshll.u32 %s3788_s7, 4  ;;  %s3379_s20 = int_to_ptr.vmem [resolvable:$true] %s3378_s20 }
  0x94   :  { %518 = vperm.xlu1 %3469, %v484_v2   ;;  %177 = vperm.xlu0 %3468, %v143_v3   ;;  %v145_v7 = vld [vmem:[#allocation6 + $0x10] sm:$0xff]  ;;  %v487_v8 = vld [vmem:[#allocation8 + $0x18] sm:$0xff]  ;;  %v148_v10 = vld [vmem:[#allocation6 + $0x28] sm:$0xff]  ;;  %v3960_v63 = vshrl.u32 %v336_v60, 7  ;;  %vm3369_vm0 = vcmp.lt.s32.totalorder %v336_v60, 512  ;;  %s3742_s21 = scalar_lea.vmem %s3379_s20, 64  ;;  %p3747_p9 = scmp.lt.s32.totalorder %s3379_s20, %s3379_s20 }
  0x95   :  { %v486_v9 = vld [vmem:[#allocation8 + $0x10] sm:$0xff]  ;;  %v147_v11 = vld [vmem:[#allocation6 + $0x20] sm:$0xff]  ;;  %v489_v12 = vld [vmem:[#allocation8 + $0x28] sm:$0xff]  ;;  %p3743_p8 = scmp.ne.s32.totalorder %s3379_s20, %s3742_s21  ;;  %p3748_p10 = scmp.lt.s32.totalorder %s3742_s21, %s3742_s21 }
  0x96   :  { %v488_v13 = vld [vmem:[#allocation8 + $0x20] sm:$0xff]  ;;  %v150_v14 = vld [vmem:[#allocation6 + $0x38] sm:$0xff]  ;;  %v149_v15 = vld [vmem:[#allocation6 + $0x30] sm:$0xff]  ;;  %v342_v2 = vsub.s32 1, %v3960_v63  ;;  %v350_v3 = vsub.s32 3, %v3960_v63 }
  0x97   :  { %v491_v16 = vld [vmem:[#allocation8 + $0x38] sm:$0xff]  ;;  %v490_v17 = vld [vmem:[#allocation8 + $0x30] sm:$0xff]  ;;  %v152_v18 = vld [vmem:[#allocation6 + $0x48] sm:$0xff]  ;;  %p3749_p11 = por %p3748_p10, %p3747_p9 }
  0x98   :  { %523 = vperm.xlu1 %3469, %v485_v4   ;;  %182 = vperm.xlu0 %3468, %v144_v5   ;;  %v151_v19 = vld [vmem:[#allocation6 + $0x40] sm:$0xff]  ;;  %v493_v20 = vld [vmem:[#allocation8 + $0x48] sm:$0xff]  ;;  %v154_v22 = vld [vmem:[#allocation6 + $0x58] sm:$0xff]  ;;  %v338_v4 = vsub.s32 0, %v3960_v63 }
  0x99   :  { %v492_v21 = vld [vmem:[#allocation8 + $0x40] sm:$0xff]  ;;  %v153_v23 = vld [vmem:[#allocation6 + $0x50] sm:$0xff]  ;;  %v495_v24 = vld [vmem:[#allocation8 + $0x58] sm:$0xff]  ;;  %p3750_p12 = pnand %p3749_p11, %p3743_p8 }
  0x9a   :  { %v494_v25 = vld [vmem:[#allocation8 + $0x50] sm:$0xff]  ;;  %v156_v26 = vld [vmem:[#allocation6 + $0x68] sm:$0xff]  ;;  %v155_v27 = vld [vmem:[#allocation6 + $0x60] sm:$0xff] }
  0x9b   :  { %v497_v28 = vld [vmem:[#allocation8 + $0x68] sm:$0xff]  ;;  %v496_v29 = vld [vmem:[#allocation8 + $0x60] sm:$0xff]  ;;  %v158_v30 = vld [vmem:[#allocation6 + $0x78] sm:$0xff] }
  0x9c   :  { %192 = vperm.xlu1 %3469, %v146_v6   ;;  %187 = vperm.xlu0 %3468, %v145_v7   ;;  %v157_v31 = vld [vmem:[#allocation6 + $0x70] sm:$0xff]  ;;  %v499_v32 = vld [vmem:[#allocation8 + $0x78] sm:$0xff]  ;;  %v160_v34 = vld [vmem:[#allocation6 + $0x88] sm:$0xff] }
  0x9d   :  { %v498_v33 = vld [vmem:[#allocation8 + $0x70] sm:$0xff]  ;;  %v159_v35 = vld [vmem:[#allocation6 + $0x80] sm:$0xff]  ;;  %v501_v36 = vld [vmem:[#allocation8 + $0x88] sm:$0xff] }
  0x9e   :  { %v500_v37 = vld [vmem:[#allocation8 + $0x80] sm:$0xff]  ;;  %v162_v38 = vld [vmem:[#allocation6 + $0x98] sm:$0xff]  ;;  %v161_v39 = vld [vmem:[#allocation6 + $0x90] sm:$0xff] }
  0x9f   :  { %v503_v40 = vld [vmem:[#allocation8 + $0x98] sm:$0xff]  ;;  %v502_v41 = vld [vmem:[#allocation8 + $0x90] sm:$0xff]  ;;  %v164_v42 = vld [vmem:[#allocation6 + $0xa8] sm:$0xff] }
  0xa0   :  { %533 = vperm.xlu1 %3469, %v487_v8   ;;  %528 = vperm.xlu0 %3468, %v486_v9   ;;  %v163_v43 = vld [vmem:[#allocation6 + $0xa0] sm:$0xff]  ;;  %v505_v44 = vld [vmem:[#allocation8 + $0xa8] sm:$0xff]  ;;  %v166_v46 = vld [vmem:[#allocation6 + $0xb8] sm:$0xff]  ;;  %v346_v8 = vsub.s32 2, %v3960_v63 }
  0xa1   :  { %v504_v45 = vld [vmem:[#allocation8 + $0xa0] sm:$0xff]  ;;  %v165_v47 = vld [vmem:[#allocation6 + $0xb0] sm:$0xff]  ;;  %v507_v48 = vld [vmem:[#allocation8 + $0xb8] sm:$0xff] }
  0xa2   :  { %v506_v49 = vld [vmem:[#allocation8 + $0xb0] sm:$0xff]  ;;  %v168_v50 = vld [vmem:[#allocation6 + $0xc8] sm:$0xff]  ;;  %v167_v51 = vld [vmem:[#allocation6 + $0xc0] sm:$0xff] }
  0xa3   :  { %v509_v52 = vld [vmem:[#allocation8 + $0xc8] sm:$0xff]  ;;  %v508_v53 = vld [vmem:[#allocation8 + $0xc0] sm:$0xff]  ;;  %v170_v54 = vld [vmem:[#allocation6 + $0xd8] sm:$0xff] }
  0xa4   :  { %202 = vperm.xlu1 %3469, %v148_v10   ;;  %197 = vperm.xlu0 %3468, %v147_v11   ;;  %v169_v55 = vld [vmem:[#allocation6 + $0xd0] sm:$0xff]  ;;  %v511_v56 = vld [vmem:[#allocation8 + $0xd8] sm:$0xff]  ;;  %v172_v58 = vld [vmem:[#allocation6 + $0xe8] sm:$0xff] }
  0xa5   :  { %v510_v57 = vld [vmem:[#allocation8 + $0xd0] sm:$0xff]  ;;  %v171_v59 = vld [vmem:[#allocation6 + $0xe0] sm:$0xff]  ;;  %v513_v61 = vld [vmem:[#allocation8 + $0xe8] sm:$0xff] }
  0xa6   :  { %v512_v62 = vld [vmem:[#allocation8 + $0xe0] sm:$0xff]  ;;  %v174_v0 = vld [vmem:[#allocation6 + $0xf8] sm:$0xff]  ;;  %v173_v1 = vld [vmem:[#allocation6 + $0xf0] sm:$0xff] }
  0xa7   :  { %v515_v5 = vld [vmem:[#allocation8 + $0xf8] sm:$0xff]  ;;  %v514_v6 = vld [vmem:[#allocation8 + $0xf0] sm:$0xff] }
  0xa8   :  { %543 = vperm.xlu1 %3469, %v489_v12   ;;  %538 = vperm.xlu0 %3468, %v488_v13   ;;  %v142_v7 = vld [vmem:[#allocation3] sm:$0xf]  ;;  %v1029_v12 = vld [vmem:[#allocation11 + $0x8] sm:$0xff]  ;;  %v1028_v13 = vld [vmem:[#allocation11] sm:$0xff] }
  0xa9   :  { %v3966_v9 = vrot.slane %v142_v7, %v342_v2  ;;  %v3968_v10 = vrot.slane %v142_v7, %v350_v3  ;;  %v3972_v11 = vrot.slane %v142_v7, %v338_v4 }
  0xac   :  { %212 = vperm.xlu1 %3469, %v150_v14   ;;  %207 = vperm.xlu0 %3468, %v149_v15   ;;  %v3974_v14 = vrot.slane %v142_v7, %v346_v8  ;;  %v1037_v8 = vld [vmem:[#allocation11 + $0x48] sm:$0xff] }
  0xb0   :  { %553 = vperm.xlu1 %3469, %v491_v16   ;;  %548 = vperm.xlu0 %3468, %v490_v17  }
  0xb4   :  { %222 = vperm.xlu1 %3469, %v152_v18   ;;  %217 = vperm.xlu0 %3468, %v151_v19  }
  0xb8   :  { %563 = vperm.xlu1 %3469, %v493_v20   ;;  %558 = vperm.xlu0 %3468, %v492_v21   ;;  %v1031_v20 = vld [vmem:[#allocation11 + $0x18] sm:$0xff]  ;;  %v1030_v21 = vld [vmem:[#allocation11 + $0x10] sm:$0xff] }
  0xbc   :  { %232 = vperm.xlu1 %3469, %v154_v22   ;;  %227 = vperm.xlu0 %3468, %v153_v23  }
  0xc0   :  { %573 = vperm.xlu1 %3469, %v495_v24   ;;  %568 = vperm.xlu0 %3468, %v494_v25  }
  0xc4   :  { %242 = vperm.xlu1 %3469, %v156_v26   ;;  %237 = vperm.xlu0 %3468, %v155_v27  }
  0xc8   :  { %583 = vperm.xlu1 %3469, %v497_v28   ;;  %578 = vperm.xlu0 %3468, %v496_v29  }
  0xcc   :  { %252 = vperm.xlu1 %3469, %v158_v30   ;;  %247 = vperm.xlu0 %3468, %v157_v31   ;;  %v1033_v31 = vld [vmem:[#allocation11 + $0x28] sm:$0xff] }
  0xd0   :  { %593 = vperm.xlu1 %3469, %v499_v32   ;;  %588 = vperm.xlu0 %3468, %v498_v33   ;;  %v1032_v32 = vld [vmem:[#allocation11 + $0x20] sm:$0xff] }
  0xd4   :  { %262 = vperm.xlu1 %3469, %v160_v34   ;;  %257 = vperm.xlu0 %3468, %v159_v35  }
  0xd8   :  { %603 = vperm.xlu1 %3469, %v501_v36   ;;  %598 = vperm.xlu0 %3468, %v500_v37  }
  0xdc   :  { %272 = vperm.xlu1 %3469, %v162_v38   ;;  %267 = vperm.xlu0 %3468, %v161_v39   ;;  %v3472_v39 = vld [vmem:[#allocation9 + $0x4] ss:$8 sps:$4 sm:$0xff]  }
  0xdd   :  { %1412 = vmatprep.mubr.bf16.mxu0 %v3472_v39  ;;  %1605 = vmatprep.mubr.bf16.mxu1 %v3472_v39 }
  0xe0   :  { %613 = vperm.xlu1 %3469, %v503_v40   ;;  %608 = vperm.xlu0 %3468, %v502_v41  }
  0xe4   :  { %282 = vperm.xlu1 %3469, %v164_v42   ;;  %277 = vperm.xlu0 %3468, %v163_v43  }
  0xe8   :  { %623 = vperm.xlu1 %3469, %v505_v44   ;;  %618 = vperm.xlu0 %3468, %v504_v45  }
  0xec   :  { %292 = vperm.xlu1 %3469, %v166_v46   ;;  %287 = vperm.xlu0 %3468, %v165_v47  }
  0xf0   :  { %633 = vperm.xlu1 %3469, %v507_v48   ;;  %628 = vperm.xlu0 %3468, %v506_v49  }
  0xf4   :  { %302 = vperm.xlu1 %3469, %v168_v50   ;;  %297 = vperm.xlu0 %3468, %v167_v51   ;;  %v1035_v50 = vld [vmem:[#allocation11 + $0x38] sm:$0xff]  ;;  %v1034_v51 = vld [vmem:[#allocation11 + $0x30] sm:$0xff] }
  0xf8   :  { %643 = vperm.xlu1 %3469, %v509_v52   ;;  %638 = vperm.xlu0 %3468, %v508_v53  }
  0xfc   :  { %312 = vperm.xlu1 %3469, %v170_v54   ;;  %307 = vperm.xlu0 %3468, %v169_v55  }
 0x100   :  { %653 = vperm.xlu1 %3469, %v511_v56   ;;  %648 = vperm.xlu0 %3468, %v510_v57  }
 0x104   :  { %322 = vperm.xlu1 %3469, %v172_v58   ;;  %317 = vperm.xlu0 %3468, %v171_v59  }
 0x108   :  { %663 = vperm.xlu1 %3469, %v513_v61   ;;  %658 = vperm.xlu0 %3468, %v512_v62  }
 0x10c   :  { %332 = vperm.xlu1 %3469, %v174_v0   ;;  %327 = vperm.xlu0 %3468, %v173_v1  }
 0x110   :  { %673 = vperm.xlu1 %3469, %v515_v5   ;;  %668 = vperm.xlu0 %3468, %v514_v6  }
 0x113   :  { %v519_v15 = vpop.permute.xlu1 %518  ;;  %v178_v16 = vpop.permute.xlu0 %177 }
 0x114   :  { %1067 = vperm.xlu1 %3469, %v1029_v12   ;;  %1062 = vperm.xlu0 %3468, %v1028_v13   ;;  %v357_v17 = vmul.f32 %v3966_v9, %v178_v16  ;;  %v359_v18 = vmul.f32 %v3968_v10, %v178_v16  ;;  %v356_v19 = vmul.f32 %v3972_v11, %v178_v16  ;;  %v1036_v12 = vld [vmem:[#allocation11 + $0x40] sm:$0xff] }
 0x115   :  { %v358_v22 = vmul.f32 %v3974_v14, %v178_v16 }
 0x116   :  { %v677_v23 = vadd.f32 %v519_v15, %v357_v17  ;;  %v679_v24 = vadd.f32 %v519_v15, %v359_v18  ;;  %v676_v27 = vadd.f32 %v519_v15, %v356_v19 }
 0x117   :  { %v524_v25 = vpop.permute.xlu1 %523  ;;  %v183_v26 = vpop.permute.xlu0 %182  ;;  %v678_v28 = vadd.f32 %v519_v15, %v358_v22 }
 0x118   :  { %1077 = vperm.xlu1 %3469, %v1031_v20   ;;  %1072 = vperm.xlu0 %3468, %v1030_v21   ;;  %v361_v29 = vmul.f32 %v3966_v9, %v183_v26  ;;  %v363_v30 = vmul.f32 %v3968_v10, %v183_v26  ;;  %v360_v33 = vmul.f32 %v3972_v11, %v183_v26  ;;  %v805_v36 = vmax.f32 %v677_v23, 0.0 }
 0x119   :  { %v362_v34 = vmul.f32 %v3974_v14, %v183_v26  ;;  %v807_v38 = vmax.f32 %v679_v24, 0.0  ;;  %v804_v43 = vmax.f32 %v676_v27, 0.0  ;;  %v806_v45 = vmax.f32 %v678_v28, 0.0 }
 0x11a   :  { %v681_v35 = vadd.f32 %v524_v25, %v361_v29  ;;  %v683_v37 = vadd.f32 %v524_v25, %v363_v30  ;;  %v680_v42 = vadd.f32 %v524_v25, %v360_v33  ;;  %v1039_v33 = vld [vmem:[#allocation11 + $0x58] sm:$0xff] }
 0x11b   :  { %v193_v40 = vpop.permute.xlu1 %192  ;;  %v188_v41 = vpop.permute.xlu0 %187  ;;  %v682_v44 = vadd.f32 %v524_v25, %v362_v34  ;;  %v1038_v34 = vld [vmem:[#allocation11 + $0x50] sm:$0xff] }
 0x11c   :  { %1087 = vperm.xlu1 %3469, %v1033_v31   ;;  %1082 = vperm.xlu0 %3468, %v1032_v32   ;;  %v809_v46 = vmax.f32 %v681_v35, 0.0  ;;  %v811_v47 = vmax.f32 %v683_v37, 0.0  ;;  %v365_v48 = vmul.f32 %v3966_v9, %v188_v41  ;;  %v369_v49 = vmul.f32 %v3966_v9, %v193_v40 }
 0x11d   :  { %v808_v52 = vmax.f32 %v680_v42, 0.0  ;;  %v810_v53 = vmax.f32 %v682_v44, 0.0  ;;  %v367_v54 = vmul.f32 %v3968_v10, %v188_v41  ;;  %v371_v55 = vmul.f32 %v3968_v10, %v193_v40 }
 0x11e   :  { %v933_v56 = vpack.c.bf16 %v809_v46, %v805_v36  ;;  %v935_v57 = vpack.c.bf16 %v811_v47, %v807_v38  ;;  %v364_v58 = vmul.f32 %v3972_v11, %v188_v41  ;;  %v368_v59 = vmul.f32 %v3972_v11, %v193_v40 }
 0x11f   :  { %v534_v61 = vpop.permute.xlu1 %533  ;;  %v529_v62 = vpop.permute.xlu0 %528  ;;  %v932_v0 = vpack.c.bf16 %v808_v52, %v804_v43  ;;  %v934_v1 = vpack.c.bf16 %v810_v53, %v806_v45  ;;  %v366_v2 = vmul.f32 %v3974_v14, %v188_v41  ;;  %v370_v3 = vmul.f32 %v3974_v14, %v193_v40 }
 0x120   :  { %1097 = vperm.xlu1 %3469, %v1035_v50   ;;  %1092 = vperm.xlu0 %3468, %v1034_v51   ;;  %v685_v5 = vadd.f32 %v529_v62, %v365_v48  ;;  %v689_v6 = vadd.f32 %v534_v61, %v369_v49  ;;  %v687_v7 = vadd.f32 %v529_v62, %v367_v54  ;;  %v1041_v48 = vld [vmem:[#allocation11 + $0x68] sm:$0xff]  ;;  %v1040_v49 = vld [vmem:[#allocation11 + $0x60] sm:$0xff] }
 0x121   :  { %1380 = vmatprep.subr.bf16.mxu0 %v933_v56  ;;  %1573 = vmatprep.subr.bf16.mxu1 %v935_v57  ;;  %v691_v13 = vadd.f32 %v534_v61, %v371_v55  ;;  %v684_v15 = vadd.f32 %v529_v62, %v364_v58  ;;  %v688_v16 = vadd.f32 %v534_v61, %v368_v59 }
 0x122   :  { %1381 = vmatpush1.bf16.msra.mxu0 %v932_v0  ;;  %1574 = vmatpush1.bf16.msra.mxu1 %v934_v1  ;;  %v813_v17 = vmax.f32 %v685_v5, 0.0  ;;  %v817_v18 = vmax.f32 %v689_v6, 0.0  ;;  %v815_v19 = vmax.f32 %v687_v7, 0.0  ;;  %v686_v20 = vadd.f32 %v529_v62, %v366_v2  ;;  %v1043_v7 = vld [vmem:[#allocation11 + $0x78] sm:$0xff] }
 0x123   :  { %v203_v21 = vpop.permute.xlu1 %202  ;;  %v198_v22 = vpop.permute.xlu0 %197  ;;  %v819_v23 = vmax.f32 %v691_v13, 0.0  ;;  %v812_v24 = vmax.f32 %v684_v15, 0.0  ;;  %v816_v25 = vmax.f32 %v688_v16, 0.0  ;;  %v690_v26 = vadd.f32 %v534_v61, %v370_v3  ;;  %v1042_v15 = vld [vmem:[#allocation11 + $0x70] sm:$0xff] }
 0x124   :  { %1107 = vperm.xlu1 %3469, %v1037_v8   ;;  %1102 = vperm.xlu0 %3468, %v1036_v12   ;;  %v937_v27 = vpack.c.bf16 %v817_v18, %v813_v17  ;;  %v814_v28 = vmax.f32 %v686_v20, 0.0  ;;  %v373_v29 = vmul.f32 %v3966_v9, %v198_v22  ;;  %v377_v35 = vmul.f32 %v3966_v9, %v203_v21 }
 0x125   :  { %v939_v30 = vpack.c.bf16 %v819_v23, %v815_v19  ;;  %v936_v31 = vpack.c.bf16 %v816_v25, %v812_v24  ;;  %v818_v32 = vmax.f32 %v690_v26, 0.0  ;;  %v375_v36 = vmul.f32 %v3968_v10, %v198_v22 }
 0x126   :  { %1382 = vmatprep.subr.bf16.mxu0 %v937_v27  ;;  %v379_v37 = vmul.f32 %v3968_v10, %v203_v21  ;;  %v372_v38 = vmul.f32 %v3972_v11, %v198_v22  ;;  %v376_v39 = vmul.f32 %v3972_v11, %v203_v21  ;;  %v374_v43 = vmul.f32 %v3974_v14, %v198_v22  ;;  %v1045_v27 = vld [vmem:[#allocation11 + $0x88] sm:$0xff] }
 0x127   :  { %1575 = vmatprep.subr.bf16.mxu1 %v939_v30  ;;  %v544_v40 = vpop.permute.xlu1 %543  ;;  %v539_v41 = vpop.permute.xlu0 %538  ;;  %1383 = vmatpush1.bf16.msra.mxu0 %v936_v31  ;;  %v938_v42 = vpack.c.bf16 %v818_v32, %v814_v28  ;;  %v378_v44 = vmul.f32 %v3974_v14, %v203_v21  ;;  %v1044_v32 = vld [vmem:[#allocation11 + $0x80] sm:$0xff] }
 0x128   :  { %1117 = vperm.xlu1 %3469, %v1039_v33   ;;  %1112 = vperm.xlu0 %3468, %v1038_v34   ;;  %v693_v45 = vadd.f32 %v539_v41, %v373_v29  ;;  %v697_v46 = vadd.f32 %v544_v40, %v377_v35  ;;  %v695_v47 = vadd.f32 %v539_v41, %v375_v36 }
 0x129   :  { %1576 = vmatpush1.bf16.msra.mxu1 %v938_v42  ;;  %v699_v50 = vadd.f32 %v544_v40, %v379_v37  ;;  %v692_v51 = vadd.f32 %v539_v41, %v372_v38  ;;  %v696_v52 = vadd.f32 %v544_v40, %v376_v39  ;;  %v694_v53 = vadd.f32 %v539_v41, %v374_v43 }
 0x12a   :  { %v821_v54 = vmax.f32 %v693_v45, 0.0  ;;  %v825_v55 = vmax.f32 %v697_v46, 0.0  ;;  %v823_v56 = vmax.f32 %v695_v47, 0.0  ;;  %v698_v57 = vadd.f32 %v544_v40, %v378_v44  ;;  %v1047_v47 = vld [vmem:[#allocation11 + $0x98] sm:$0xff] }
 0x12b   :  { %v213_v58 = vpop.permute.xlu1 %212  ;;  %v208_v59 = vpop.permute.xlu0 %207  ;;  %v827_v61 = vmax.f32 %v699_v50, 0.0  ;;  %v820_v62 = vmax.f32 %v692_v51, 0.0  ;;  %v824_v0 = vmax.f32 %v696_v52, 0.0  ;;  %v822_v1 = vmax.f32 %v694_v53, 0.0  ;;  %v1046_v51 = vld [vmem:[#allocation11 + $0x90] sm:$0xff] }
 0x12c   :  { %1127 = vperm.xlu1 %3469, %v1041_v48   ;;  %1122 = vperm.xlu0 %3468, %v1040_v49   ;;  %v941_v2 = vpack.c.bf16 %v825_v55, %v821_v54  ;;  %v826_v3 = vmax.f32 %v698_v57, 0.0  ;;  %v381_v8 = vmul.f32 %v3966_v9, %v208_v59  ;;  %v385_v12 = vmul.f32 %v3966_v9, %v213_v58 }
 0x12d   :  { %v943_v5 = vpack.c.bf16 %v827_v61, %v823_v56  ;;  %v940_v6 = vpack.c.bf16 %v824_v0, %v820_v62  ;;  %v383_v16 = vmul.f32 %v3968_v10, %v208_v59  ;;  %v387_v17 = vmul.f32 %v3968_v10, %v213_v58 }
 0x12e   :  { %1384 = vmatprep.subr.bf16.mxu0 %v941_v2  ;;  %v942_v13 = vpack.c.bf16 %v826_v3, %v822_v1  ;;  %v380_v18 = vmul.f32 %v3972_v11, %v208_v59  ;;  %v384_v21 = vmul.f32 %v3972_v11, %v213_v58  ;;  %v382_v22 = vmul.f32 %v3974_v14, %v208_v59  ;;  %v1049_v1 = vld [vmem:[#allocation11 + $0xa8] sm:$0xff] }
 0x12f   :  { %1577 = vmatprep.subr.bf16.mxu1 %v943_v5  ;;  %v554_v19 = vpop.permute.xlu1 %553  ;;  %v549_v20 = vpop.permute.xlu0 %548  ;;  %1385 = vmatpush1.bf16.msra.mxu0 %v940_v6  ;;  %v386_v23 = vmul.f32 %v3974_v14, %v213_v58 }
 0x130   :  { %1578 = vmatpush1.bf16.msra.mxu1 %v942_v13  ;;  %1137 = vperm.xlu1 %3469, %v1043_v7   ;;  %v701_v24 = vadd.f32 %v549_v20, %v381_v8  ;;  %v705_v25 = vadd.f32 %v554_v19, %v385_v12  ;;  %v703_v26 = vadd.f32 %v549_v20, %v383_v16  ;;  %v1048_v7 = vld [vmem:[#allocation11 + $0xa0] sm:$0xff] }
 0x131   :  { %1132 = vperm.xlu0 %3468, %v1042_v15   ;;  %v707_v28 = vadd.f32 %v554_v19, %v387_v17  ;;  %v700_v29 = vadd.f32 %v549_v20, %v380_v18  ;;  %v704_v30 = vadd.f32 %v554_v19, %v384_v21  ;;  %v702_v31 = vadd.f32 %v549_v20, %v382_v22 }
 0x132   :  { %v829_v33 = vmax.f32 %v701_v24, 0.0  ;;  %v833_v34 = vmax.f32 %v705_v25, 0.0  ;;  %v831_v35 = vmax.f32 %v703_v26, 0.0  ;;  %v706_v36 = vadd.f32 %v554_v19, %v386_v23  ;;  %v1051_v26 = vld [vmem:[#allocation11 + $0xb8] sm:$0xff] }
 0x133   :  { %v223_v37 = vpop.permute.xlu1 %222  ;;  %v218_v38 = vpop.permute.xlu0 %217  ;;  %v835_v39 = vmax.f32 %v707_v28, 0.0  ;;  %v828_v40 = vmax.f32 %v700_v29, 0.0  ;;  %v832_v41 = vmax.f32 %v704_v30, 0.0  ;;  %v830_v42 = vmax.f32 %v702_v31, 0.0  ;;  %v1050_v30 = vld [vmem:[#allocation11 + $0xb0] sm:$0xff] }
 0x134   :  { %1147 = vperm.xlu1 %3469, %v1045_v27   ;;  %v945_v43 = vpack.c.bf16 %v833_v34, %v829_v33  ;;  %v834_v44 = vmax.f32 %v706_v36, 0.0  ;;  %v389_v48 = vmul.f32 %v3966_v9, %v218_v38  ;;  %v393_v49 = vmul.f32 %v3966_v9, %v223_v37 }
 0x135   :  { %1142 = vperm.xlu0 %3468, %v1044_v32   ;;  %v947_v45 = vpack.c.bf16 %v835_v39, %v831_v35  ;;  %v944_v46 = vpack.c.bf16 %v832_v41, %v828_v40  ;;  %v391_v52 = vmul.f32 %v3968_v10, %v218_v38  ;;  %v395_v53 = vmul.f32 %v3968_v10, %v223_v37 }
 0x136   :  { %1386 = vmatprep.subr.bf16.mxu0 %v945_v43  ;;  %v946_v50 = vpack.c.bf16 %v834_v44, %v830_v42  ;;  %v388_v54 = vmul.f32 %v3972_v11, %v218_v38  ;;  %v392_v57 = vmul.f32 %v3972_v11, %v223_v37  ;;  %v390_v58 = vmul.f32 %v3974_v14, %v218_v38  ;;  %v1053_v42 = vld [vmem:[#allocation11 + $0xc8] sm:$0xff] }
 0x137   :  { %1579 = vmatprep.subr.bf16.mxu1 %v947_v45  ;;  %v564_v55 = vpop.permute.xlu1 %563  ;;  %v559_v56 = vpop.permute.xlu0 %558  ;;  %1387 = vmatpush1.bf16.msra.mxu0 %v944_v46  ;;  %v394_v59 = vmul.f32 %v3974_v14, %v223_v37 }
 0x138   :  { %1580 = vmatpush1.bf16.msra.mxu1 %v946_v50  ;;  %1157 = vperm.xlu1 %3469, %v1047_v47   ;;  %v709_v61 = vadd.f32 %v559_v56, %v389_v48  ;;  %v713_v62 = vadd.f32 %v564_v55, %v393_v49  ;;  %v711_v0 = vadd.f32 %v559_v56, %v391_v52  ;;  %v1052_v47 = vld [vmem:[#allocation11 + $0xc0] sm:$0xff] }
 0x139   :  { %1152 = vperm.xlu0 %3468, %v1046_v51   ;;  %v715_v2 = vadd.f32 %v564_v55, %v395_v53  ;;  %v708_v3 = vadd.f32 %v559_v56, %v388_v54  ;;  %v712_v5 = vadd.f32 %v564_v55, %v392_v57  ;;  %v710_v6 = vadd.f32 %v559_v56, %v390_v58 }
 0x13a   :  { %v837_v8 = vmax.f32 %v709_v61, 0.0  ;;  %v841_v12 = vmax.f32 %v713_v62, 0.0  ;;  %v839_v13 = vmax.f32 %v711_v0, 0.0  ;;  %v714_v15 = vadd.f32 %v564_v55, %v394_v59  ;;  %v1055_v0 = vld [vmem:[#allocation11 + $0xd8] sm:$0xff] }
 0x13b   :  { %v233_v16 = vpop.permute.xlu1 %232  ;;  %v228_v17 = vpop.permute.xlu0 %227  ;;  %v843_v18 = vmax.f32 %v715_v2, 0.0  ;;  %v836_v19 = vmax.f32 %v708_v3, 0.0  ;;  %v840_v20 = vmax.f32 %v712_v5, 0.0  ;;  %v838_v21 = vmax.f32 %v710_v6, 0.0  ;;  %v1054_v5 = vld [vmem:[#allocation11 + $0xd0] sm:$0xff] }
 0x13c   :  { %1167 = vperm.xlu1 %3469, %v1049_v1   ;;  %v949_v22 = vpack.c.bf16 %v841_v12, %v837_v8  ;;  %v842_v23 = vmax.f32 %v714_v15, 0.0  ;;  %v397_v27 = vmul.f32 %v3966_v9, %v228_v17  ;;  %v401_v28 = vmul.f32 %v3966_v9, %v233_v16 }
 0x13d   :  { %1162 = vperm.xlu0 %3468, %v1048_v7   ;;  %v951_v24 = vpack.c.bf16 %v843_v18, %v839_v13  ;;  %v948_v25 = vpack.c.bf16 %v840_v20, %v836_v19  ;;  %v399_v31 = vmul.f32 %v3968_v10, %v228_v17  ;;  %v403_v32 = vmul.f32 %v3968_v10, %v233_v16 }
 0x13e   :  { %1388 = vmatprep.subr.bf16.mxu0 %v949_v22  ;;  %v950_v29 = vpack.c.bf16 %v842_v23, %v838_v21  ;;  %v396_v33 = vmul.f32 %v3972_v11, %v228_v17  ;;  %v400_v36 = vmul.f32 %v3972_v11, %v233_v16  ;;  %v398_v37 = vmul.f32 %v3974_v14, %v228_v17  ;;  %v1057_v21 = vld [vmem:[#allocation11 + $0xe8] sm:$0xff] }
 0x13f   :  { %1581 = vmatprep.subr.bf16.mxu1 %v951_v24  ;;  %v574_v34 = vpop.permute.xlu1 %573  ;;  %v569_v35 = vpop.permute.xlu0 %568  ;;  %1389 = vmatpush1.bf16.msra.mxu0 %v948_v25  ;;  %v402_v38 = vmul.f32 %v3974_v14, %v233_v16 }
 0x140   :  { %1582 = vmatpush1.bf16.msra.mxu1 %v950_v29  ;;  %1177 = vperm.xlu1 %3469, %v1051_v26   ;;  %v717_v39 = vadd.f32 %v569_v35, %v397_v27  ;;  %v721_v40 = vadd.f32 %v574_v34, %v401_v28  ;;  %v719_v41 = vadd.f32 %v569_v35, %v399_v31  ;;  %v1056_v26 = vld [vmem:[#allocation11 + $0xe0] sm:$0xff] }
 0x141   :  { %1172 = vperm.xlu0 %3468, %v1050_v30   ;;  %v723_v43 = vadd.f32 %v574_v34, %v403_v32  ;;  %v716_v44 = vadd.f32 %v569_v35, %v396_v33  ;;  %v720_v45 = vadd.f32 %v574_v34, %v400_v36  ;;  %v718_v46 = vadd.f32 %v569_v35, %v398_v37 }
 0x142   :  { %v845_v48 = vmax.f32 %v717_v39, 0.0  ;;  %v849_v49 = vmax.f32 %v721_v40, 0.0  ;;  %v847_v50 = vmax.f32 %v719_v41, 0.0  ;;  %v722_v51 = vadd.f32 %v574_v34, %v402_v38  ;;  %v1059_v41 = vld [vmem:[#allocation11 + $0xf8] sm:$0xff] }
 0x143   :  { %v243_v52 = vpop.permute.xlu1 %242  ;;  %v238_v53 = vpop.permute.xlu0 %237  ;;  %v851_v54 = vmax.f32 %v723_v43, 0.0  ;;  %v844_v55 = vmax.f32 %v716_v44, 0.0  ;;  %v848_v56 = vmax.f32 %v720_v45, 0.0  ;;  %v846_v57 = vmax.f32 %v718_v46, 0.0  ;;  %v1058_v45 = vld [vmem:[#allocation11 + $0xf0] sm:$0xff] }
 0x144   :  { %1187 = vperm.xlu1 %3469, %v1053_v42   ;;  %v953_v58 = vpack.c.bf16 %v849_v49, %v845_v48  ;;  %v850_v59 = vmax.f32 %v722_v51, 0.0  ;;  %v405_v1 = vmul.f32 %v3966_v9, %v238_v53  ;;  %v409_v2 = vmul.f32 %v3966_v9, %v243_v52 }
 0x145   :  { %1182 = vperm.xlu0 %3468, %v1052_v47   ;;  %v955_v61 = vpack.c.bf16 %v851_v54, %v847_v50  ;;  %v952_v62 = vpack.c.bf16 %v848_v56, %v844_v55  ;;  %v407_v6 = vmul.f32 %v3968_v10, %v238_v53  ;;  %v411_v7 = vmul.f32 %v3968_v10, %v243_v52 }
 0x146   :  { %1390 = vmatprep.subr.bf16.mxu0 %v953_v58  ;;  %v954_v3 = vpack.c.bf16 %v850_v59, %v846_v57  ;;  %v404_v8 = vmul.f32 %v3972_v11, %v238_v53  ;;  %v408_v15 = vmul.f32 %v3972_v11, %v243_v52  ;;  %v406_v16 = vmul.f32 %v3974_v14, %v238_v53  ;;  %v1991_v57 = vld [vmem:[#allocation14 + $0x8] sm:$0xff] }
 0x147   :  { %1583 = vmatprep.subr.bf16.mxu1 %v955_v61  ;;  %v584_v12 = vpop.permute.xlu1 %583  ;;  %v579_v13 = vpop.permute.xlu0 %578  ;;  %1391 = vmatpush1.bf16.msra.mxu0 %v952_v62  ;;  %v410_v17 = vmul.f32 %v3974_v14, %v243_v52 }
 0x148   :  { %1584 = vmatpush1.bf16.msra.mxu1 %v954_v3  ;;  %1197 = vperm.xlu1 %3469, %v1055_v0   ;;  %v725_v18 = vadd.f32 %v579_v13, %v405_v1  ;;  %v729_v19 = vadd.f32 %v584_v12, %v409_v2  ;;  %v727_v20 = vadd.f32 %v579_v13, %v407_v6  ;;  %v1990_v0 = vld [vmem:[#allocation14] sm:$0xff] }
 0x149   :  { %1192 = vperm.xlu0 %3468, %v1054_v5   ;;  %v731_v22 = vadd.f32 %v584_v12, %v411_v7  ;;  %v724_v23 = vadd.f32 %v579_v13, %v404_v8  ;;  %v728_v24 = vadd.f32 %v584_v12, %v408_v15  ;;  %v726_v25 = vadd.f32 %v579_v13, %v406_v16 }
 0x14a   :  { %v853_v27 = vmax.f32 %v725_v18, 0.0  ;;  %v857_v28 = vmax.f32 %v729_v19, 0.0  ;;  %v855_v29 = vmax.f32 %v727_v20, 0.0  ;;  %v730_v30 = vadd.f32 %v584_v12, %v410_v17  ;;  %v1993_v20 = vld [vmem:[#allocation14 + $0x18] sm:$0xff] }
 0x14b   :  { %v253_v31 = vpop.permute.xlu1 %252  ;;  %v248_v32 = vpop.permute.xlu0 %247  ;;  %v859_v33 = vmax.f32 %v731_v22, 0.0  ;;  %v852_v34 = vmax.f32 %v724_v23, 0.0  ;;  %v856_v35 = vmax.f32 %v728_v24, 0.0  ;;  %v854_v36 = vmax.f32 %v726_v25, 0.0  ;;  %v1992_v24 = vld [vmem:[#allocation14 + $0x10] sm:$0xff] }
 0x14c   :  { %1207 = vperm.xlu1 %3469, %v1057_v21   ;;  %v957_v37 = vpack.c.bf16 %v857_v28, %v853_v27  ;;  %v858_v38 = vmax.f32 %v730_v30, 0.0  ;;  %v413_v42 = vmul.f32 %v3966_v9, %v248_v32  ;;  %v417_v43 = vmul.f32 %v3966_v9, %v253_v31 }
 0x14d   :  { %1202 = vperm.xlu0 %3468, %v1056_v26   ;;  %v959_v39 = vpack.c.bf16 %v859_v33, %v855_v29  ;;  %v956_v40 = vpack.c.bf16 %v856_v35, %v852_v34  ;;  %v415_v46 = vmul.f32 %v3968_v10, %v248_v32  ;;  %v419_v47 = vmul.f32 %v3968_v10, %v253_v31 }
 0x14e   :  { %1392 = vmatprep.subr.bf16.mxu0 %v957_v37  ;;  %v958_v44 = vpack.c.bf16 %v858_v38, %v854_v36  ;;  %v412_v48 = vmul.f32 %v3972_v11, %v248_v32  ;;  %v416_v51 = vmul.f32 %v3972_v11, %v253_v31  ;;  %v414_v52 = vmul.f32 %v3974_v14, %v248_v32  ;;  %v1995_v36 = vld [vmem:[#allocation14 + $0x28] sm:$0xff] }
 0x14f   :  { %1585 = vmatprep.subr.bf16.mxu1 %v959_v39  ;;  %v594_v49 = vpop.permute.xlu1 %593  ;;  %v589_v50 = vpop.permute.xlu0 %588  ;;  %1393 = vmatpush1.bf16.msra.mxu0 %v956_v40  ;;  %v418_v53 = vmul.f32 %v3974_v14, %v253_v31 }
 0x150   :  { %1586 = vmatpush1.bf16.msra.mxu1 %v958_v44  ;;  %1217 = vperm.xlu1 %3469, %v1059_v41   ;;  %v733_v54 = vadd.f32 %v589_v50, %v413_v42  ;;  %v737_v55 = vadd.f32 %v594_v49, %v417_v43  ;;  %v735_v56 = vadd.f32 %v589_v50, %v415_v46  ;;  %v1994_v41 = vld [vmem:[#allocation14 + $0x20] sm:$0xff] }
 0x151   :  { %1212 = vperm.xlu0 %3468, %v1058_v45   ;;  %v739_v58 = vadd.f32 %v594_v49, %v419_v47  ;;  %v732_v59 = vadd.f32 %v589_v50, %v412_v48  ;;  %v736_v61 = vadd.f32 %v594_v49, %v416_v51  ;;  %v734_v62 = vadd.f32 %v589_v50, %v414_v52 }
 0x152   :  { %v861_v1 = vmax.f32 %v733_v54, 0.0  ;;  %v865_v2 = vmax.f32 %v737_v55, 0.0  ;;  %v863_v3 = vmax.f32 %v735_v56, 0.0  ;;  %v738_v5 = vadd.f32 %v594_v49, %v418_v53  ;;  %v1997_v56 = vld [vmem:[#allocation14 + $0x38] sm:$0xff] }
 0x153   :  { %v263_v6 = vpop.permute.xlu1 %262  ;;  %v258_v7 = vpop.permute.xlu0 %257  ;;  %v867_v8 = vmax.f32 %v739_v58, 0.0  ;;  %v860_v12 = vmax.f32 %v732_v59, 0.0  ;;  %v864_v13 = vmax.f32 %v736_v61, 0.0  ;;  %v862_v15 = vmax.f32 %v734_v62, 0.0  ;;  %v1996_v61 = vld [vmem:[#allocation14 + $0x30] sm:$0xff] }
 0x154   :  { %2029 = vperm.xlu1 %3469, %v1991_v57   ;;  %v961_v16 = vpack.c.bf16 %v865_v2, %v861_v1  ;;  %v866_v17 = vmax.f32 %v738_v5, 0.0  ;;  %v421_v21 = vmul.f32 %v3966_v9, %v258_v7  ;;  %v425_v22 = vmul.f32 %v3966_v9, %v263_v6 }
 0x155   :  { %2024 = vperm.xlu0 %3468, %v1990_v0   ;;  %v963_v18 = vpack.c.bf16 %v867_v8, %v863_v3  ;;  %v960_v19 = vpack.c.bf16 %v864_v13, %v860_v12  ;;  %v423_v25 = vmul.f32 %v3968_v10, %v258_v7  ;;  %v427_v26 = vmul.f32 %v3968_v10, %v263_v6 }
 0x156   :  { %1394 = vmatprep.subr.bf16.mxu0 %v961_v16  ;;  %v962_v23 = vpack.c.bf16 %v866_v17, %v862_v15  ;;  %v420_v27 = vmul.f32 %v3972_v11, %v258_v7  ;;  %v424_v30 = vmul.f32 %v3972_v11, %v263_v6  ;;  %v422_v31 = vmul.f32 %v3974_v14, %v258_v7  ;;  %v1999_v15 = vld [vmem:[#allocation14 + $0x48] sm:$0xff] }
 0x157   :  { %1587 = vmatprep.subr.bf16.mxu1 %v963_v18  ;;  %v604_v28 = vpop.permute.xlu1 %603  ;;  %v599_v29 = vpop.permute.xlu0 %598  ;;  %1395 = vmatpush1.bf16.msra.mxu0 %v960_v19  ;;  %v426_v32 = vmul.f32 %v3974_v14, %v263_v6 }
 0x158   :  { %1588 = vmatpush1.bf16.msra.mxu1 %v962_v23  ;;  %2039 = vperm.xlu1 %3469, %v1993_v20   ;;  %v741_v33 = vadd.f32 %v599_v29, %v421_v21  ;;  %v745_v34 = vadd.f32 %v604_v28, %v425_v22  ;;  %v743_v35 = vadd.f32 %v599_v29, %v423_v25  ;;  %v1998_v20 = vld [vmem:[#allocation14 + $0x40] sm:$0xff] }
 0x159   :  { %2034 = vperm.xlu0 %3468, %v1992_v24   ;;  %v747_v37 = vadd.f32 %v604_v28, %v427_v26  ;;  %v740_v38 = vadd.f32 %v599_v29, %v420_v27  ;;  %v744_v39 = vadd.f32 %v604_v28, %v424_v30  ;;  %v742_v40 = vadd.f32 %v599_v29, %v422_v31 }
 0x15a   :  { %v869_v42 = vmax.f32 %v741_v33, 0.0  ;;  %v873_v43 = vmax.f32 %v745_v34, 0.0  ;;  %v871_v44 = vmax.f32 %v743_v35, 0.0  ;;  %v746_v45 = vadd.f32 %v604_v28, %v426_v32  ;;  %v2001_v35 = vld [vmem:[#allocation14 + $0x58] sm:$0xff] }
 0x15b   :  { %v273_v46 = vpop.permute.xlu1 %272  ;;  %v268_v47 = vpop.permute.xlu0 %267  ;;  %v875_v48 = vmax.f32 %v747_v37, 0.0  ;;  %v868_v49 = vmax.f32 %v740_v38, 0.0  ;;  %v872_v50 = vmax.f32 %v744_v39, 0.0  ;;  %v870_v51 = vmax.f32 %v742_v40, 0.0  ;;  %v2000_v39 = vld [vmem:[#allocation14 + $0x50] sm:$0xff] }
 0x15c   :  { %2049 = vperm.xlu1 %3469, %v1995_v36   ;;  %v965_v52 = vpack.c.bf16 %v873_v43, %v869_v42  ;;  %v874_v53 = vmax.f32 %v746_v45, 0.0  ;;  %v429_v57 = vmul.f32 %v3966_v9, %v268_v47  ;;  %v433_v58 = vmul.f32 %v3966_v9, %v273_v46 }
 0x15d   :  { %2044 = vperm.xlu0 %3468, %v1994_v41   ;;  %v967_v54 = vpack.c.bf16 %v875_v48, %v871_v44  ;;  %v964_v55 = vpack.c.bf16 %v872_v50, %v868_v49  ;;  %v431_v62 = vmul.f32 %v3968_v10, %v268_v47  ;;  %v435_v0 = vmul.f32 %v3968_v10, %v273_v46 }
 0x15e   :  { %1396 = vmatprep.subr.bf16.mxu0 %v965_v52  ;;  %v966_v59 = vpack.c.bf16 %v874_v53, %v870_v51  ;;  %v428_v1 = vmul.f32 %v3972_v11, %v268_v47  ;;  %v432_v5 = vmul.f32 %v3972_v11, %v273_v46  ;;  %v430_v6 = vmul.f32 %v3974_v14, %v268_v47  ;;  %v2003_v51 = vld [vmem:[#allocation14 + $0x68] sm:$0xff] }
 0x15f   :  { %1589 = vmatprep.subr.bf16.mxu1 %v967_v54  ;;  %v614_v2 = vpop.permute.xlu1 %613  ;;  %v609_v3 = vpop.permute.xlu0 %608  ;;  %1397 = vmatpush1.bf16.msra.mxu0 %v964_v55  ;;  %v434_v7 = vmul.f32 %v3974_v14, %v273_v46 }
 0x160   :  { %1590 = vmatpush1.bf16.msra.mxu1 %v966_v59  ;;  %2059 = vperm.xlu1 %3469, %v1997_v56   ;;  %v749_v8 = vadd.f32 %v609_v3, %v429_v57  ;;  %v753_v12 = vadd.f32 %v614_v2, %v433_v58  ;;  %v751_v13 = vadd.f32 %v609_v3, %v431_v62  ;;  %v2002_v56 = vld [vmem:[#allocation14 + $0x60] sm:$0xff] }
 0x161   :  { %2054 = vperm.xlu0 %3468, %v1996_v61   ;;  %v755_v16 = vadd.f32 %v614_v2, %v435_v0  ;;  %v748_v17 = vadd.f32 %v609_v3, %v428_v1  ;;  %v752_v18 = vadd.f32 %v614_v2, %v432_v5  ;;  %v750_v19 = vadd.f32 %v609_v3, %v430_v6 }
 0x162   :  { %v877_v21 = vmax.f32 %v749_v8, 0.0  ;;  %v881_v22 = vmax.f32 %v753_v12, 0.0  ;;  %v879_v23 = vmax.f32 %v751_v13, 0.0  ;;  %v754_v24 = vadd.f32 %v614_v2, %v434_v7  ;;  %v2005_v13 = vld [vmem:[#allocation14 + $0x78] sm:$0xff] }
 0x163   :  { %v283_v25 = vpop.permute.xlu1 %282  ;;  %v278_v26 = vpop.permute.xlu0 %277  ;;  %v883_v27 = vmax.f32 %v755_v16, 0.0  ;;  %v876_v28 = vmax.f32 %v748_v17, 0.0  ;;  %v880_v29 = vmax.f32 %v752_v18, 0.0  ;;  %v878_v30 = vmax.f32 %v750_v19, 0.0  ;;  %v2004_v18 = vld [vmem:[#allocation14 + $0x70] sm:$0xff] }
 0x164   :  { %2069 = vperm.xlu1 %3469, %v1999_v15   ;;  %v969_v31 = vpack.c.bf16 %v881_v22, %v877_v21  ;;  %v882_v32 = vmax.f32 %v754_v24, 0.0  ;;  %v437_v36 = vmul.f32 %v3966_v9, %v278_v26  ;;  %v441_v37 = vmul.f32 %v3966_v9, %v283_v25 }
 0x165   :  { %2064 = vperm.xlu0 %3468, %v1998_v20   ;;  %v971_v33 = vpack.c.bf16 %v883_v27, %v879_v23  ;;  %v968_v34 = vpack.c.bf16 %v880_v29, %v876_v28  ;;  %v439_v40 = vmul.f32 %v3968_v10, %v278_v26  ;;  %v443_v41 = vmul.f32 %v3968_v10, %v283_v25 }
 0x166   :  { %1398 = vmatprep.subr.bf16.mxu0 %v969_v31  ;;  %v970_v38 = vpack.c.bf16 %v882_v32, %v878_v30  ;;  %v436_v42 = vmul.f32 %v3972_v11, %v278_v26  ;;  %v440_v45 = vmul.f32 %v3972_v11, %v283_v25  ;;  %v438_v46 = vmul.f32 %v3974_v14, %v278_v26  ;;  %v2007_v30 = vld [vmem:[#allocation14 + $0x88] sm:$0xff] }
 0x167   :  { %1591 = vmatprep.subr.bf16.mxu1 %v971_v33  ;;  %v624_v43 = vpop.permute.xlu1 %623  ;;  %v619_v44 = vpop.permute.xlu0 %618  ;;  %1399 = vmatpush1.bf16.msra.mxu0 %v968_v34  ;;  %v442_v47 = vmul.f32 %v3974_v14, %v283_v25 }
 0x168   :  { %1592 = vmatpush1.bf16.msra.mxu1 %v970_v38  ;;  %2079 = vperm.xlu1 %3469, %v2001_v35   ;;  %v757_v48 = vadd.f32 %v619_v44, %v437_v36  ;;  %v761_v49 = vadd.f32 %v624_v43, %v441_v37  ;;  %v759_v50 = vadd.f32 %v619_v44, %v439_v40  ;;  %v2006_v35 = vld [vmem:[#allocation14 + $0x80] sm:$0xff] }
 0x169   :  { %2074 = vperm.xlu0 %3468, %v2000_v39   ;;  %v763_v52 = vadd.f32 %v624_v43, %v443_v41  ;;  %v756_v53 = vadd.f32 %v619_v44, %v436_v42  ;;  %v760_v54 = vadd.f32 %v624_v43, %v440_v45  ;;  %v758_v55 = vadd.f32 %v619_v44, %v438_v46 }
 0x16a   :  { %v885_v57 = vmax.f32 %v757_v48, 0.0  ;;  %v889_v58 = vmax.f32 %v761_v49, 0.0  ;;  %v887_v59 = vmax.f32 %v759_v50, 0.0  ;;  %v762_v61 = vadd.f32 %v624_v43, %v442_v47  ;;  %v2009_v50 = vld [vmem:[#allocation14 + $0x98] sm:$0xff] }
 0x16b   :  { %v293_v62 = vpop.permute.xlu1 %292  ;;  %v288_v0 = vpop.permute.xlu0 %287  ;;  %v891_v1 = vmax.f32 %v763_v52, 0.0  ;;  %v884_v2 = vmax.f32 %v756_v53, 0.0  ;;  %v888_v3 = vmax.f32 %v760_v54, 0.0  ;;  %v886_v5 = vmax.f32 %v758_v55, 0.0  ;;  %v2008_v54 = vld [vmem:[#allocation14 + $0x90] sm:$0xff] }
 0x16c   :  { %2089 = vperm.xlu1 %3469, %v2003_v51   ;;  %v973_v6 = vpack.c.bf16 %v889_v58, %v885_v57  ;;  %v890_v7 = vmax.f32 %v762_v61, 0.0  ;;  %v445_v15 = vmul.f32 %v3966_v9, %v288_v0  ;;  %v449_v16 = vmul.f32 %v3966_v9, %v293_v62 }
 0x16d   :  { %2084 = vperm.xlu0 %3468, %v2002_v56   ;;  %v975_v8 = vpack.c.bf16 %v891_v1, %v887_v59  ;;  %v972_v12 = vpack.c.bf16 %v888_v3, %v884_v2  ;;  %v447_v19 = vmul.f32 %v3968_v10, %v288_v0  ;;  %v451_v20 = vmul.f32 %v3968_v10, %v293_v62 }
 0x16e   :  { %1400 = vmatprep.subr.bf16.mxu0 %v973_v6  ;;  %v974_v17 = vpack.c.bf16 %v890_v7, %v886_v5  ;;  %v444_v21 = vmul.f32 %v3972_v11, %v288_v0  ;;  %v448_v24 = vmul.f32 %v3972_v11, %v293_v62  ;;  %v446_v25 = vmul.f32 %v3974_v14, %v288_v0  ;;  %v2011_v5 = vld [vmem:[#allocation14 + $0xa8] sm:$0xff] }
 0x16f   :  { %1593 = vmatprep.subr.bf16.mxu1 %v975_v8  ;;  %v634_v22 = vpop.permute.xlu1 %633  ;;  %v629_v23 = vpop.permute.xlu0 %628  ;;  %1401 = vmatpush1.bf16.msra.mxu0 %v972_v12  ;;  %v450_v26 = vmul.f32 %v3974_v14, %v293_v62 }
 0x170   :  { %1594 = vmatpush1.bf16.msra.mxu1 %v974_v17  ;;  %2099 = vperm.xlu1 %3469, %v2005_v13   ;;  %v765_v27 = vadd.f32 %v629_v23, %v445_v15  ;;  %v769_v28 = vadd.f32 %v634_v22, %v449_v16  ;;  %v767_v29 = vadd.f32 %v629_v23, %v447_v19  ;;  %v2010_v13 = vld [vmem:[#allocation14 + $0xa0] sm:$0xff] }
 0x171   :  { %2094 = vperm.xlu0 %3468, %v2004_v18   ;;  %v771_v31 = vadd.f32 %v634_v22, %v451_v20  ;;  %v764_v32 = vadd.f32 %v629_v23, %v444_v21  ;;  %v768_v33 = vadd.f32 %v634_v22, %v448_v24  ;;  %v766_v34 = vadd.f32 %v629_v23, %v446_v25 }
 0x172   :  { %v893_v36 = vmax.f32 %v765_v27, 0.0  ;;  %v897_v37 = vmax.f32 %v769_v28, 0.0  ;;  %v895_v38 = vmax.f32 %v767_v29, 0.0  ;;  %v770_v39 = vadd.f32 %v634_v22, %v450_v26  ;;  %v2013_v29 = vld [vmem:[#allocation14 + $0xb8] sm:$0xff] }
 0x173   :  { %v303_v40 = vpop.permute.xlu1 %302  ;;  %v298_v41 = vpop.permute.xlu0 %297  ;;  %v899_v42 = vmax.f32 %v771_v31, 0.0  ;;  %v892_v43 = vmax.f32 %v764_v32, 0.0  ;;  %v896_v44 = vmax.f32 %v768_v33, 0.0  ;;  %v894_v45 = vmax.f32 %v766_v34, 0.0  ;;  %v2012_v33 = vld [vmem:[#allocation14 + $0xb0] sm:$0xff] }
 0x174   :  { %2109 = vperm.xlu1 %3469, %v2007_v30   ;;  %v977_v46 = vpack.c.bf16 %v897_v37, %v893_v36  ;;  %v898_v47 = vmax.f32 %v770_v39, 0.0  ;;  %v453_v51 = vmul.f32 %v3966_v9, %v298_v41  ;;  %v457_v52 = vmul.f32 %v3966_v9, %v303_v40 }
 0x175   :  { %2104 = vperm.xlu0 %3468, %v2006_v35   ;;  %v979_v48 = vpack.c.bf16 %v899_v42, %v895_v38  ;;  %v976_v49 = vpack.c.bf16 %v896_v44, %v892_v43  ;;  %v455_v55 = vmul.f32 %v3968_v10, %v298_v41  ;;  %v459_v56 = vmul.f32 %v3968_v10, %v303_v40 }
 0x176   :  { %1402 = vmatprep.subr.bf16.mxu0 %v977_v46  ;;  %v978_v53 = vpack.c.bf16 %v898_v47, %v894_v45  ;;  %v452_v57 = vmul.f32 %v3972_v11, %v298_v41  ;;  %v456_v61 = vmul.f32 %v3972_v11, %v303_v40  ;;  %v454_v62 = vmul.f32 %v3974_v14, %v298_v41  ;;  %v2015_v45 = vld [vmem:[#allocation14 + $0xc8] sm:$0xff] }
 0x177   :  { %1595 = vmatprep.subr.bf16.mxu1 %v979_v48  ;;  %v644_v58 = vpop.permute.xlu1 %643  ;;  %v639_v59 = vpop.permute.xlu0 %638  ;;  %1403 = vmatpush1.bf16.msra.mxu0 %v976_v49  ;;  %v458_v0 = vmul.f32 %v3974_v14, %v303_v40 }
 0x178   :  { %1596 = vmatpush1.bf16.msra.mxu1 %v978_v53  ;;  %2119 = vperm.xlu1 %3469, %v2009_v50   ;;  %v773_v1 = vadd.f32 %v639_v59, %v453_v51  ;;  %v777_v2 = vadd.f32 %v644_v58, %v457_v52  ;;  %v775_v3 = vadd.f32 %v639_v59, %v455_v55  ;;  %v2014_v50 = vld [vmem:[#allocation14 + $0xc0] sm:$0xff] }
 0x179   :  { %2114 = vperm.xlu0 %3468, %v2008_v54   ;;  %v779_v6 = vadd.f32 %v644_v58, %v459_v56  ;;  %v772_v7 = vadd.f32 %v639_v59, %v452_v57  ;;  %v776_v8 = vadd.f32 %v644_v58, %v456_v61  ;;  %v774_v12 = vadd.f32 %v639_v59, %v454_v62 }
 0x17a   :  { %v901_v15 = vmax.f32 %v773_v1, 0.0  ;;  %v905_v16 = vmax.f32 %v777_v2, 0.0  ;;  %v903_v17 = vmax.f32 %v775_v3, 0.0  ;;  %v778_v18 = vadd.f32 %v644_v58, %v458_v0  ;;  %v2856_v3 = vld [vmem:[#allocation15] sm:$0xff] }
 0x17b   :  { %v313_v19 = vpop.permute.xlu1 %312  ;;  %v308_v20 = vpop.permute.xlu0 %307  ;;  %v907_v21 = vmax.f32 %v779_v6, 0.0  ;;  %v900_v22 = vmax.f32 %v772_v7, 0.0  ;;  %v904_v23 = vmax.f32 %v776_v8, 0.0  ;;  %v902_v24 = vmax.f32 %v774_v12, 0.0  ;;  %v2016_v8 = vld [vmem:[#allocation14 + $0xd0] sm:$0xff] }
 0x17c   :  { %2129 = vperm.xlu1 %3469, %v2011_v5   ;;  %v981_v25 = vpack.c.bf16 %v905_v16, %v901_v15  ;;  %v906_v26 = vmax.f32 %v778_v18, 0.0  ;;  %v461_v30 = vmul.f32 %v3966_v9, %v308_v20  ;;  %v465_v31 = vmul.f32 %v3966_v9, %v313_v19 }
 0x17d   :  { %2124 = vperm.xlu0 %3468, %v2010_v13   ;;  %v983_v27 = vpack.c.bf16 %v907_v21, %v903_v17  ;;  %v980_v28 = vpack.c.bf16 %v904_v23, %v900_v22  ;;  %v463_v34 = vmul.f32 %v3968_v10, %v308_v20  ;;  %v467_v35 = vmul.f32 %v3968_v10, %v313_v19 }
 0x17e   :  { %1404 = vmatprep.subr.bf16.mxu0 %v981_v25  ;;  %v982_v32 = vpack.c.bf16 %v906_v26, %v902_v24  ;;  %v460_v36 = vmul.f32 %v3972_v11, %v308_v20  ;;  %v464_v39 = vmul.f32 %v3972_v11, %v313_v19  ;;  %v462_v40 = vmul.f32 %v3974_v14, %v308_v20  ;;  %v2858_v24 = vld [vmem:[#allocation15 + $0x10] sm:$0xff] }
 0x17f   :  { %1597 = vmatprep.subr.bf16.mxu1 %v983_v27  ;;  %v654_v37 = vpop.permute.xlu1 %653  ;;  %v649_v38 = vpop.permute.xlu0 %648  ;;  %1405 = vmatpush1.bf16.msra.mxu0 %v980_v28  ;;  %v466_v41 = vmul.f32 %v3974_v14, %v313_v19 }
 0x180   :  { %1598 = vmatpush1.bf16.msra.mxu1 %v982_v32  ;;  %2139 = vperm.xlu1 %3469, %v2013_v29   ;;  %v781_v42 = vadd.f32 %v649_v38, %v461_v30  ;;  %v785_v43 = vadd.f32 %v654_v37, %v465_v31  ;;  %v783_v44 = vadd.f32 %v649_v38, %v463_v34  ;;  %v2857_v29 = vld [vmem:[#allocation15 + $0x8] sm:$0xff] }
 0x181   :  { %2134 = vperm.xlu0 %3468, %v2012_v33   ;;  %v787_v46 = vadd.f32 %v654_v37, %v467_v35  ;;  %v780_v47 = vadd.f32 %v649_v38, %v460_v36  ;;  %v784_v48 = vadd.f32 %v654_v37, %v464_v39  ;;  %v782_v49 = vadd.f32 %v649_v38, %v462_v40 }
 0x182   :  { %v909_v51 = vmax.f32 %v781_v42, 0.0  ;;  %v913_v52 = vmax.f32 %v785_v43, 0.0  ;;  %v911_v53 = vmax.f32 %v783_v44, 0.0  ;;  %v786_v54 = vadd.f32 %v654_v37, %v466_v41 }
 0x183   :  { %v323_v55 = vpop.permute.xlu1 %322  ;;  %v318_v56 = vpop.permute.xlu0 %317  ;;  %v915_v57 = vmax.f32 %v787_v46, 0.0  ;;  %v908_v58 = vmax.f32 %v780_v47, 0.0  ;;  %v912_v59 = vmax.f32 %v784_v48, 0.0  ;;  %v910_v61 = vmax.f32 %v782_v49, 0.0  ;;  %v2860_v46 = vld [vmem:[#allocation15 + $0x20] sm:$0xff]  ;;  %v2859_v49 = vld [vmem:[#allocation15 + $0x18] sm:$0xff] }
 0x184   :  { %2149 = vperm.xlu1 %3469, %v2015_v45   ;;  %v985_v62 = vpack.c.bf16 %v913_v52, %v909_v51  ;;  %v914_v0 = vmax.f32 %v786_v54, 0.0  ;;  %v469_v5 = vmul.f32 %v3966_v9, %v318_v56  ;;  %v473_v6 = vmul.f32 %v3966_v9, %v323_v55 }
 0x185   :  { %2144 = vperm.xlu0 %3468, %v2014_v50   ;;  %v987_v1 = vpack.c.bf16 %v915_v57, %v911_v53  ;;  %v984_v2 = vpack.c.bf16 %v912_v59, %v908_v58  ;;  %v471_v12 = vmul.f32 %v3968_v10, %v318_v56  ;;  %v475_v13 = vmul.f32 %v3968_v10, %v323_v55 }
 0x186   :  { %1406 = vmatprep.subr.bf16.mxu0 %v985_v62  ;;  %v986_v7 = vpack.c.bf16 %v914_v0, %v910_v61  ;;  %v468_v15 = vmul.f32 %v3972_v11, %v318_v56  ;;  %v472_v18 = vmul.f32 %v3972_v11, %v323_v55  ;;  %v470_v19 = vmul.f32 %v3974_v14, %v318_v56  ;;  %v2862_v62 = vld [vmem:[#allocation15 + $0x30] sm:$0xff] }
 0x187   :  { %1599 = vmatprep.subr.bf16.mxu1 %v987_v1  ;;  %v664_v16 = vpop.permute.xlu1 %663  ;;  %v659_v17 = vpop.permute.xlu0 %658  ;;  %1407 = vmatpush1.bf16.msra.mxu0 %v984_v2  ;;  %v474_v20 = vmul.f32 %v3974_v14, %v323_v55  ;;  %v2861_v1 = vld [vmem:[#allocation15 + $0x28] sm:$0xff] }
 0x188   :  { %1600 = vmatpush1.bf16.msra.mxu1 %v986_v7  ;;  %2890 = vperm.xlu1 %3469, %v2856_v3   ;;  %v789_v21 = vadd.f32 %v659_v17, %v469_v5  ;;  %v793_v22 = vadd.f32 %v664_v16, %v473_v6  ;;  %v791_v23 = vadd.f32 %v659_v17, %v471_v12 }
 0x189   :  { %2154 = vperm.xlu0 %3468, %v2016_v8   ;;  %v795_v25 = vadd.f32 %v664_v16, %v475_v13  ;;  %v788_v26 = vadd.f32 %v659_v17, %v468_v15  ;;  %v792_v27 = vadd.f32 %v664_v16, %v472_v18  ;;  %v790_v28 = vadd.f32 %v659_v17, %v470_v19  ;;  %v2864_v18 = vld [vmem:[#allocation15 + $0x40] sm:$0xff]  ;;  %v2863_v19 = vld [vmem:[#allocation15 + $0x38] sm:$0xff] }
 0x18a   :  { %v917_v30 = vmax.f32 %v789_v21, 0.0  ;;  %v921_v31 = vmax.f32 %v793_v22, 0.0  ;;  %v919_v32 = vmax.f32 %v791_v23, 0.0  ;;  %v794_v33 = vadd.f32 %v664_v16, %v474_v20  ;;  %v3470_v20 = vld [vmem:[#allocation9] ss:$8 sps:$4 sm:$0xff]   ;;  %v2866_v22 = vld [vmem:[#allocation15 + $0x50] sm:$0xff] }
 0x18b   :  { %v333_v34 = vpop.permute.xlu1 %332  ;;  %v328_v35 = vpop.permute.xlu0 %327  ;;  %v923_v36 = vmax.f32 %v795_v25, 0.0  ;;  %v916_v37 = vmax.f32 %v788_v26, 0.0  ;;  %v920_v38 = vmax.f32 %v792_v27, 0.0  ;;  %v918_v39 = vmax.f32 %v790_v28, 0.0  ;;  %v3473_v21 = vld [vmem:[#allocation9 + $0x14] ss:$8 sps:$4 sm:$0xff]  }
 0x18c   :  { %2900 = vperm.xlu1 %3469, %v2858_v24   ;;  %v989_v40 = vpack.c.bf16 %v921_v31, %v917_v30  ;;  %v480_v41 = vmul.f32 %v3972_v11, %v333_v34  ;;  %v481_v43 = vmul.f32 %v3966_v9, %v333_v34  ;;  %v922_v45 = vmax.f32 %v794_v33, 0.0  ;;  %v2865_v23 = vld [vmem:[#allocation15 + $0x48] sm:$0xff]  ;;  %v2868_v24 = vld [vmem:[#allocation15 + $0x60] sm:$0xff]  ;;  %v2867_v25 = vld [vmem:[#allocation15 + $0x58] sm:$0xff] }
 0x18d   :  { %2895 = vperm.xlu0 %3468, %v2857_v29   ;;  %v991_v42 = vpack.c.bf16 %v923_v36, %v919_v32  ;;  %v988_v44 = vpack.c.bf16 %v920_v38, %v916_v37  ;;  %v482_v47 = vmul.f32 %v3974_v14, %v333_v34  ;;  %v483_v48 = vmul.f32 %v3968_v10, %v333_v34  ;;  %v3475_v26 = vld [vmem:[#allocation9 + $0x10] ss:$8 sps:$4 sm:$0xff]   ;;  %v3476_v27 = vld [vmem:[#allocation9 + $0x24] ss:$8 sps:$4 sm:$0xff]   ;;  %v3478_v32 = vld [vmem:[#allocation9 + $0x20] ss:$8 sps:$4 sm:$0xff]  }
 0x18e   :  { %1408 = vmatprep.subr.bf16.mxu0 %v989_v40  ;;  %v477_v50 = vmul.f32 %v3966_v9, %v328_v35  ;;  %v479_v51 = vmul.f32 %v3968_v10, %v328_v35  ;;  %v990_v54 = vpack.c.bf16 %v922_v45, %v918_v39  ;;  %v476_v55 = vmul.f32 %v3972_v11, %v328_v35  ;;  %v2870_v28 = vld [vmem:[#allocation15 + $0x70] sm:$0xff]  ;;  %v2869_v29 = vld [vmem:[#allocation15 + $0x68] sm:$0xff]  ;;  %v2872_v30 = vld [vmem:[#allocation15 + $0x80] sm:$0xff] }
 0x18f   :  { %1601 = vmatprep.subr.bf16.mxu1 %v991_v42  ;;  %v674_v52 = vpop.permute.xlu1 %673  ;;  %v669_v53 = vpop.permute.xlu0 %668  ;;  %1409 = vmatpush1.bf16.msra.mxu0 %v988_v44  ;;  %v478_v56 = vmul.f32 %v3974_v14, %v328_v35  ;;  %v2871_v31 = vld [vmem:[#allocation15 + $0x78] sm:$0xff]  ;;  %v2874_v34 = vld [vmem:[#allocation15 + $0x90] sm:$0xff]  ;;  %v2873_v35 = vld [vmem:[#allocation15 + $0x88] sm:$0xff] }
 0x190   :  { %v800_v57 = vadd.f32 %v674_v52, %v480_v41  ;;  %v801_v58 = vadd.f32 %v674_v52, %v481_v43  ;;  %v802_v59 = vadd.f32 %v674_v52, %v482_v47  ;;  %v803_v61 = vadd.f32 %v674_v52, %v483_v48  ;;  %2910 = vperm.xlu1 %3469, %v2860_v46   ;;  %v3479_v33 = vld [vmem:[#allocation9 + $0x34] ss:$8 sps:$4 sm:$0xff]   ;;  %v2876_v36 = vld [vmem:[#allocation15 + $0xa0] sm:$0xff]  ;;  %v3481_v38 = vld [vmem:[#allocation9 + $0x30] ss:$8 sps:$4 sm:$0xff]  }
 0x191   :  { %1602 = vmatpush1.bf16.msra.mxu1 %v990_v54  ;;  %2905 = vperm.xlu0 %3468, %v2859_v49   ;;  %v797_v9 = vadd.f32 %v669_v53, %v477_v50  ;;  %v799_v0 = vadd.f32 %v669_v53, %v479_v51  ;;  %v796_v10 = vadd.f32 %v669_v53, %v476_v55  ;;  %v2875_v37 = vld [vmem:[#allocation15 + $0x98] sm:$0xff]  ;;  %v3482_v39 = vld [vmem:[#allocation9 + $0x44] ss:$8 sps:$4 sm:$0xff]   ;;  %v2878_v40 = vld [vmem:[#allocation15 + $0xb0] sm:$0xff] }
 0x192   :  { %v929_v2 = vmax.f32 %v801_v58, 0.0  ;;  %v931_v3 = vmax.f32 %v803_v61, 0.0  ;;  %v928_v5 = vmax.f32 %v800_v57, 0.0  ;;  %v798_v6 = vadd.f32 %v669_v53, %v478_v56  ;;  %v2877_v41 = vld [vmem:[#allocation15 + $0xa8] sm:$0xff]  ;;  %v2880_v42 = vld [vmem:[#allocation15 + $0xc0] sm:$0xff]  ;;  %v2879_v43 = vld [vmem:[#allocation15 + $0xb8] sm:$0xff] }
 0x193   :  { %v925_v7 = vmax.f32 %v797_v9, 0.0  ;;  %v927_v11 = vmax.f32 %v799_v0, 0.0  ;;  %v924_v8 = vmax.f32 %v796_v10, 0.0  ;;  %v930_v14 = vmax.f32 %v802_v59, 0.0  ;;  %v3484_v44 = vld [vmem:[#allocation9 + $0x40] ss:$8 sps:$4 sm:$0xff]  }
 0x194   :  { %2920 = vperm.xlu1 %3469, %v2862_v62   ;;  %v926_v12 = vmax.f32 %v798_v6, 0.0  ;;  %v3485_v45 = vld [vmem:[#allocation9 + $0x54] ss:$8 sps:$4 sm:$0xff]   ;;  %v2881_v46 = vld [vmem:[#allocation15 + $0xc8] sm:$0xff]  ;;  %v2018_v49 = vld [vmem:[#allocation14 + $0xe0] sm:$0xff] }
 0x195   :  { %2915 = vperm.xlu0 %3468, %v2861_v1   ;;  %v993_v13 = vpack.c.bf16 %v929_v2, %v925_v7  ;;  %v995_v15 = vpack.c.bf16 %v931_v3, %v927_v11  ;;  %v992_v16 = vpack.c.bf16 %v928_v5, %v924_v8  ;;  %v2017_v47 = vld [vmem:[#allocation14 + $0xd8] sm:$0xff]  ;;  %v2882_v48 = vld [vmem:[#allocation15 + $0xd0] sm:$0xff]  ;;  %v3488_v51 = vld [vmem:[#allocation9 + $0x64] ss:$8 sps:$4 sm:$0xff]  }
 0x196   :  { %v994_v17 = vpack.c.bf16 %v930_v14, %v926_v12  ;;  %v3487_v50 = vld [vmem:[#allocation9 + $0x50] ss:$8 sps:$4 sm:$0xff]   ;;  %v2019_v53 = vld [vmem:[#allocation14 + $0xe8] sm:$0xff]  ;;  %v2884_v54 = vld [vmem:[#allocation15 + $0xe0] sm:$0xff] }
 0x197   :  { %1410 = vmatprep.subr.bf16.mxu0 %v993_v13  ;;  %1603 = vmatprep.subr.bf16.mxu1 %v995_v15  ;;  %v2883_v52 = vld [vmem:[#allocation15 + $0xd8] sm:$0xff]  ;;  %v2020_v55 = vld [vmem:[#allocation14 + $0xf0] sm:$0xff]  ;;  %v3490_v56 = vld [vmem:[#allocation9 + $0x60] ss:$8 sps:$4 sm:$0xff]  }
 0x198   :  { %1411 = vmatpush1.bf16.msra.mxu0 %v992_v16  ;;  %1604 = vmatpush1.bf16.msra.mxu1 %v994_v17  ;;  %v3491_v57 = vld [vmem:[#allocation9 + $0x74] ss:$8 sps:$4 sm:$0xff]   ;;  %v2885_v58 = vld [vmem:[#allocation15 + $0xe8] sm:$0xff]  ;;  %v3493_v9 = vld [vmem:[#allocation9 + $0x70] ss:$8 sps:$4 sm:$0xff]  }
 0x199   :  { %2930 = vperm.xlu1 %3469, %v2864_v18   ;;  %2925 = vperm.xlu0 %3468, %v2863_v19   ;;  %v2021_v59 = vld [vmem:[#allocation14 + $0xf8] sm:$0xff]  ;;  %v2886_v62 = vld [vmem:[#allocation15 + $0xf0] sm:$0xff]  ;;  %v3494_v0 = vld [vmem:[#allocation9 + $0x84] ss:$8 sps:$4 sm:$0xff]   ;;  %v1068_v19 = vpop.permute.xlu1 %1067 }
 0x19a   :  { %v2887_v61 = vld [vmem:[#allocation15 + $0xf8] sm:$0xff]  ;;  %v3496_v1 = vld [vmem:[#allocation9 + $0x80] ss:$8 sps:$4 sm:$0xff]   ;;  %v3500_v5 = vld [vmem:[#allocation9 + $0xa4] ss:$8 sps:$4 sm:$0xff]  }
 0x19b   :  { %1413 = vmatmul.mubr.bf16.vlgmr.msra.gmra.mrb[0].mxu0 %v3470_v20  ;;  %1606 = vmatmul.mubr.bf16.vlgmr.msra.gmra.mrb[0].mxu1 %v3470_v20  ;;  %v3324_v10 = vld [vmem:[#allocation2] sm:$0x1]  ;;  %v3497_v2 = vld [vmem:[#allocation9 + $0x94] ss:$8 sps:$4 sm:$0xff]   ;;  %v3502_v6 = vld [vmem:[#allocation9 + $0xa0] ss:$8 sps:$4 sm:$0xff]   ;;  %v1063_v20 = vpop.permute.xlu0 %1062 }
 0x19c   :  { %1422 = vmatprep.mubr.bf16.mxu0 %v3473_v21  ;;  %1615 = vmatprep.mubr.bf16.mxu1 %v3473_v21  ;;  %v3499_v3 = vld [vmem:[#allocation9 + $0x90] ss:$8 sps:$4 sm:$0xff]   ;;  %v3503_v7 = vld [vmem:[#allocation9 + $0xb4] ss:$8 sps:$4 sm:$0xff]   ;;  %v3506_v8 = vld [vmem:[#allocation9 + $0xc4] ss:$8 sps:$4 sm:$0xff]  }
 0x19d   :  { %2940 = vperm.xlu1 %3469, %v2866_v22   ;;  %2935 = vperm.xlu0 %3468, %v2865_v23   ;;  %v3505_v11 = vld [vmem:[#allocation9 + $0xb0] ss:$8 sps:$4 sm:$0xff]   ;;  %v3508_v14 = vld [vmem:[#allocation9 + $0xc0] ss:$8 sps:$4 sm:$0xff]   ;;  %v3509_v12 = vld [vmem:[#allocation9 + $0xd4] ss:$8 sps:$4 sm:$0xff]  }
 0x19e   :  { %v3511_v13 = vld [vmem:[#allocation9 + $0xd0] ss:$8 sps:$4 sm:$0xff]   ;;  %v3512_v15 = vld [vmem:[#allocation9 + $0xe4] ss:$8 sps:$4 sm:$0xff]   ;;  %v3514_v16 = vld [vmem:[#allocation9 + $0xe0] ss:$8 sps:$4 sm:$0xff]  }
 0x19f   :  { %v3515_v17 = vld [vmem:[#allocation9 + $0xf4] ss:$8 sps:$4 sm:$0xff]   ;;  %v3517_v18 = vld [vmem:[#allocation9 + $0xf0] ss:$8 sps:$4 sm:$0xff]  }
 0x1a1   :  { %2950 = vperm.xlu1 %3469, %v2868_v24   ;;  %2945 = vperm.xlu0 %3468, %v2867_v25  }
 0x1a3   :  { %1423 = vmatmul.mubr.bf16.gmra.mrb[4].mxu0 %v3475_v26  ;;  %1616 = vmatmul.mubr.bf16.gmra.mrb[4].mxu1 %v3475_v26 }
 0x1a4   :  { %1432 = vmatprep.mubr.bf16.mxu0 %v3476_v27  ;;  %1625 = vmatprep.mubr.bf16.mxu1 %v3476_v27 }
 0x1a5   :  { %2960 = vperm.xlu1 %3469, %v2870_v28   ;;  %2955 = vperm.xlu0 %3468, %v2869_v29  }
 0x1a9   :  { %2970 = vperm.xlu1 %3469, %v2872_v30   ;;  %2965 = vperm.xlu0 %3468, %v2871_v31  }
 0x1ab   :  { %1433 = vmatmul.mubr.bf16.gmra.mrb[8].mxu0 %v3478_v32  ;;  %1626 = vmatmul.mubr.bf16.gmra.mrb[8].mxu1 %v3478_v32 }
 0x1ac   :  { %1442 = vmatprep.mubr.bf16.mxu0 %v3479_v33  ;;  %1635 = vmatprep.mubr.bf16.mxu1 %v3479_v33 }
 0x1ad   :  { %2980 = vperm.xlu1 %3469, %v2874_v34   ;;  %2975 = vperm.xlu0 %3468, %v2873_v35  }
 0x1b1   :  { %2990 = vperm.xlu1 %3469, %v2876_v36   ;;  %2985 = vperm.xlu0 %3468, %v2875_v37   ;;  %v3520_v37 = vld [vmem:[#allocation12 + $0x4] ss:$8 sps:$4 sm:$0xff]  }
 0x1b3   :  { %1443 = vmatmul.mubr.bf16.gmra.mrb[12].mxu0 %v3481_v38  ;;  %1636 = vmatmul.mubr.bf16.gmra.mrb[12].mxu1 %v3481_v38 }
 0x1b4   :  { %1452 = vmatprep.mubr.bf16.mxu0 %v3482_v39  ;;  %1645 = vmatprep.mubr.bf16.mxu1 %v3482_v39 }
 0x1b5   :  { %3000 = vperm.xlu1 %3469, %v2878_v40   ;;  %2995 = vperm.xlu0 %3468, %v2877_v41  }
 0x1b9   :  { %3010 = vperm.xlu1 %3469, %v2880_v42   ;;  %3005 = vperm.xlu0 %3468, %v2879_v43  }
 0x1bb   :  { %1453 = vmatmul.mubr.bf16.gmra.mrb[16].mxu0 %v3484_v44  ;;  %1646 = vmatmul.mubr.bf16.gmra.mrb[16].mxu1 %v3484_v44 }
 0x1bc   :  { %1462 = vmatprep.mubr.bf16.mxu0 %v3485_v45  ;;  %1655 = vmatprep.mubr.bf16.mxu1 %v3485_v45 }
 0x1bd   :  { %3015 = vperm.xlu1 %3469, %v2881_v46   ;;  %2159 = vperm.xlu0 %3468, %v2017_v47   ;;  %v1078_v46 = vpop.permute.xlu1 %1077  ;;  %v1073_v47 = vpop.permute.xlu0 %1072 }
 0x1c1   :  { %3020 = vperm.xlu1 %3469, %v2882_v48   ;;  %2164 = vperm.xlu0 %3468, %v2018_v49  }
 0x1c3   :  { %1463 = vmatmul.mubr.bf16.gmra.mrb[20].mxu0 %v3487_v50  ;;  %1656 = vmatmul.mubr.bf16.gmra.mrb[20].mxu1 %v3487_v50 }
 0x1c4   :  { %1472 = vmatprep.mubr.bf16.mxu0 %v3488_v51  ;;  %1665 = vmatprep.mubr.bf16.mxu1 %v3488_v51 }
 0x1c5   :  { %3025 = vperm.xlu1 %3469, %v2883_v52   ;;  %2169 = vperm.xlu0 %3468, %v2019_v53  }
 0x1c9   :  { %3030 = vperm.xlu1 %3469, %v2884_v54   ;;  %2174 = vperm.xlu0 %3468, %v2020_v55  }
 0x1cb   :  { %1473 = vmatmul.mubr.bf16.gmra.mrb[24].mxu0 %v3490_v56  ;;  %1666 = vmatmul.mubr.bf16.gmra.mrb[24].mxu1 %v3490_v56 }
 0x1cc   :  { %1482 = vmatprep.mubr.bf16.mxu0 %v3491_v57  ;;  %1675 = vmatprep.mubr.bf16.mxu1 %v3491_v57 }
 0x1cd   :  { %3035 = vperm.xlu1 %3469, %v2885_v58   ;;  %2179 = vperm.xlu0 %3468, %v2021_v59  }
 0x1d1   :  { %3045 = vperm.xlu1 %3469, %v2887_v61   ;;  %3040 = vperm.xlu0 %3468, %v2886_v62  }
 0x1d3   :  { %1483 = vmatmul.mubr.bf16.gmra.mrb[28].mxu0 %v3493_v9  ;;  %1676 = vmatmul.mubr.bf16.gmra.mrb[28].mxu1 %v3493_v9 }
 0x1d4   :  { %1492 = vmatprep.mubr.bf16.mxu0 %v3494_v0  ;;  %1685 = vmatprep.mubr.bf16.mxu1 %v3494_v0 }
 0x1d5   :  { %3327 = vperm.xlu0 %3468, %v3324_v10  }
 0x1db   :  { %1493 = vmatmul.mubr.bf16.gmra.mrb[32].mxu0 %v3496_v1  ;;  %1686 = vmatmul.mubr.bf16.gmra.mrb[32].mxu1 %v3496_v1 }
 0x1dc   :  { %1502 = vmatprep.mubr.bf16.mxu0 %v3497_v2  ;;  %1695 = vmatprep.mubr.bf16.mxu1 %v3497_v2 }
 0x1e3   :  { %1503 = vmatmul.mubr.bf16.gmra.mrb[36].mxu0 %v3499_v3  ;;  %1696 = vmatmul.mubr.bf16.gmra.mrb[36].mxu1 %v3499_v3 }
 0x1e4   :  { %1512 = vmatprep.mubr.bf16.mxu0 %v3500_v5  ;;  %1705 = vmatprep.mubr.bf16.mxu1 %v3500_v5 }
 0x1eb   :  { %1513 = vmatmul.mubr.bf16.gmra.mrb[40].mxu0 %v3502_v6  ;;  %1706 = vmatmul.mubr.bf16.gmra.mrb[40].mxu1 %v3502_v6 }
 0x1ec   :  { %1522 = vmatprep.mubr.bf16.mxu0 %v3503_v7  ;;  %1715 = vmatprep.mubr.bf16.mxu1 %v3503_v7 }
 0x1f3   :  { %1523 = vmatmul.mubr.bf16.gmra.mrb[44].mxu0 %v3505_v11  ;;  %1716 = vmatmul.mubr.bf16.gmra.mrb[44].mxu1 %v3505_v11 }
 0x1f4   :  { %1532 = vmatprep.mubr.bf16.mxu0 %v3506_v8  ;;  %1725 = vmatprep.mubr.bf16.mxu1 %v3506_v8 }
 0x1fb   :  { %1533 = vmatmul.mubr.bf16.gmra.mrb[48].mxu0 %v3508_v14  ;;  %1726 = vmatmul.mubr.bf16.gmra.mrb[48].mxu1 %v3508_v14 }
 0x1fc   :  { %1542 = vmatprep.mubr.bf16.mxu0 %v3509_v12  ;;  %1735 = vmatprep.mubr.bf16.mxu1 %v3509_v12 }
 0x203   :  { %1543 = vmatmul.mubr.bf16.gmra.mrb[52].mxu0 %v3511_v13  ;;  %1736 = vmatmul.mubr.bf16.gmra.mrb[52].mxu1 %v3511_v13 }
 0x204   :  { %1552 = vmatprep.mubr.bf16.mxu0 %v3512_v15  ;;  %1745 = vmatprep.mubr.bf16.mxu1 %v3512_v15  ;;  %v1088_v15 = vpop.permute.xlu1 %1087 }
 0x20b   :  { %1553 = vmatmul.mubr.bf16.gmra.mrb[56].mxu0 %v3514_v16  ;;  %1746 = vmatmul.mubr.bf16.gmra.mrb[56].mxu1 %v3514_v16  ;;  %v1083_v16 = vpop.permute.xlu0 %1082 }
 0x20c   :  { %1562 = vmatprep.mubr.bf16.mxu0 %v3515_v17  ;;  %1755 = vmatprep.mubr.bf16.mxu1 %v3515_v17 }
 0x213   :  { %1563 = vmatmul.mubr.bf16.gmra.mrb[60].mxu0 %v3517_v18  ;;  %1756 = vmatmul.mubr.bf16.gmra.mrb[60].mxu1 %v3517_v18 }
 0x214   :  { %2374 = vmatprep.mubr.bf16.mxu0 %v3520_v37  ;;  %2567 = vmatprep.mubr.bf16.mxu1 %v3520_v37 }
 0x26e   :  { %v1414_v21 = vpop.f32.mrb[0].mxu0  ;;  %v1607_v22 = vpop.f32.mrb[0].mxu1 }
 0x26f   :  { %v1415_v23 = vadd.f32 %v1414_v21, %v1063_v20  ;;  %v1608_v24 = vadd.f32 %v1607_v22, %v1063_v20  ;;  %v1416_v25 = vpop.f32.mrb[1].mxu0  ;;  %v1609_v26 = vpop.f32.mrb[1].mxu1 }
 0x270   :  { %v1417_v27 = vadd.f32 %v1416_v25, %v1063_v20  ;;  %v1610_v28 = vadd.f32 %v1609_v26, %v1063_v20  ;;  %v1418_v29 = vpop.f32.mrb[2].mxu0  ;;  %v1611_v30 = vpop.f32.mrb[2].mxu1 }
 0x271   :  { %v1419_v31 = vadd.f32 %v1418_v29, %v1068_v19  ;;  %v1612_v32 = vadd.f32 %v1611_v30, %v1068_v19  ;;  %v1420_v33 = vpop.f32.mrb[3].mxu0  ;;  %v1613_v34 = vpop.f32.mrb[3].mxu1  ;;  %v1766_v38 = vmax.f32 %v1415_v23, 0.0  ;;  %v1768_v39 = vmax.f32 %v1608_v24, 0.0 }
 0x272   :  { %v1421_v35 = vadd.f32 %v1420_v33, %v1068_v19  ;;  %v1614_v36 = vadd.f32 %v1613_v34, %v1068_v19  ;;  %v1767_v42 = vmax.f32 %v1417_v27, 0.0  ;;  %v1769_v43 = vmax.f32 %v1610_v28, 0.0 }
 0x273   :  { %v1770_v40 = vmax.f32 %v1419_v31, 0.0  ;;  %v1772_v41 = vmax.f32 %v1612_v32, 0.0 }
 0x274   :  { %v1771_v44 = vmax.f32 %v1421_v35, 0.0  ;;  %v1773_v45 = vmax.f32 %v1614_v36, 0.0 }
 0x275   :  { %v1894_v48 = vpack.c.bf16 %v1770_v40, %v1766_v38  ;;  %v1896_v49 = vpack.c.bf16 %v1772_v41, %v1768_v39 }
 0x276   :  { %v1895_v50 = vpack.c.bf16 %v1771_v44, %v1767_v42  ;;  %v1897_v51 = vpack.c.bf16 %v1773_v45, %v1769_v43  ;;  %v1424_v52 = vpop.f32.mrb[4].mxu0  ;;  %v1617_v53 = vpop.f32.mrb[4].mxu1 }
 0x277   :  { %v1425_v54 = vadd.f32 %v1424_v52, %v1073_v47  ;;  %v1618_v55 = vadd.f32 %v1617_v53, %v1073_v47  ;;  %v1426_v56 = vpop.f32.mrb[5].mxu0  ;;  %v1619_v57 = vpop.f32.mrb[5].mxu1 }
 0x278   :  { %v1427_v58 = vadd.f32 %v1426_v56, %v1073_v47  ;;  %v1620_v59 = vadd.f32 %v1619_v57, %v1073_v47  ;;  %v1428_v61 = vpop.f32.mrb[6].mxu0  ;;  %v1621_v62 = vpop.f32.mrb[6].mxu1  ;;  %2342 = vmatprep.subr.bf16.mxu0 %v1895_v50  ;;  %2535 = vmatprep.subr.bf16.mxu1 %v1897_v51 }
 0x279   :  { %v1429_v9 = vadd.f32 %v1428_v61, %v1078_v46  ;;  %v1622_v0 = vadd.f32 %v1621_v62, %v1078_v46  ;;  %v1430_v10 = vpop.f32.mrb[7].mxu0  ;;  %v1623_v1 = vpop.f32.mrb[7].mxu1  ;;  %2343 = vmatpush1.bf16.msra.mxu0 %v1894_v48  ;;  %2536 = vmatpush1.bf16.msra.mxu1 %v1896_v49  ;;  %v1774_v5 = vmax.f32 %v1425_v54, 0.0  ;;  %v1776_v6 = vmax.f32 %v1618_v55, 0.0 }
 0x27a   :  { %v1431_v2 = vadd.f32 %v1430_v10, %v1078_v46  ;;  %v1624_v3 = vadd.f32 %v1623_v1, %v1078_v46  ;;  %v1775_v8 = vmax.f32 %v1427_v58, 0.0  ;;  %v1777_v14 = vmax.f32 %v1620_v59, 0.0  ;;  %v1098_v45 = vpop.permute.xlu1 %1097  ;;  %v1093_v46 = vpop.permute.xlu0 %1092 }
 0x27b   :  { %v1778_v7 = vmax.f32 %v1429_v9, 0.0  ;;  %v1780_v11 = vmax.f32 %v1622_v0, 0.0 }
 0x27c   :  { %v1779_v12 = vmax.f32 %v1431_v2, 0.0  ;;  %v1781_v13 = vmax.f32 %v1624_v3, 0.0 }
 0x27d   :  { %v1898_v17 = vpack.c.bf16 %v1778_v7, %v1774_v5  ;;  %v1900_v18 = vpack.c.bf16 %v1780_v11, %v1776_v6 }
 0x27e   :  { %v1899_v19 = vpack.c.bf16 %v1779_v12, %v1775_v8  ;;  %v1901_v20 = vpack.c.bf16 %v1781_v13, %v1777_v14  ;;  %v1434_v21 = vpop.f32.mrb[8].mxu0  ;;  %v1627_v22 = vpop.f32.mrb[8].mxu1 }
 0x27f   :  { %v1435_v23 = vadd.f32 %v1434_v21, %v1083_v16  ;;  %v1628_v24 = vadd.f32 %v1627_v22, %v1083_v16  ;;  %v1436_v25 = vpop.f32.mrb[9].mxu0  ;;  %v1629_v26 = vpop.f32.mrb[9].mxu1 }
 0x280   :  { %v1437_v27 = vadd.f32 %v1436_v25, %v1083_v16  ;;  %v1630_v28 = vadd.f32 %v1629_v26, %v1083_v16  ;;  %v1438_v29 = vpop.f32.mrb[10].mxu0  ;;  %v1631_v30 = vpop.f32.mrb[10].mxu1  ;;  %2344 = vmatprep.subr.bf16.mxu0 %v1899_v19  ;;  %2537 = vmatprep.subr.bf16.mxu1 %v1901_v20 }
 0x281   :  { %v1439_v31 = vadd.f32 %v1438_v29, %v1088_v15  ;;  %v1632_v32 = vadd.f32 %v1631_v30, %v1088_v15  ;;  %v1440_v33 = vpop.f32.mrb[11].mxu0  ;;  %v1633_v34 = vpop.f32.mrb[11].mxu1  ;;  %2345 = vmatpush1.bf16.msra.mxu0 %v1898_v17  ;;  %2538 = vmatpush1.bf16.msra.mxu1 %v1900_v18  ;;  %v1782_v37 = vmax.f32 %v1435_v23, 0.0  ;;  %v1784_v38 = vmax.f32 %v1628_v24, 0.0 }
 0x282   :  { %v1441_v35 = vadd.f32 %v1440_v33, %v1088_v15  ;;  %v1634_v36 = vadd.f32 %v1633_v34, %v1088_v15  ;;  %v1783_v41 = vmax.f32 %v1437_v27, 0.0  ;;  %v1785_v42 = vmax.f32 %v1630_v28, 0.0  ;;  %v1108_v13 = vpop.permute.xlu1 %1107  ;;  %v1103_v15 = vpop.permute.xlu0 %1102 }
 0x283   :  { %v1786_v39 = vmax.f32 %v1439_v31, 0.0  ;;  %v1788_v40 = vmax.f32 %v1632_v32, 0.0 }
 0x284   :  { %v1787_v43 = vmax.f32 %v1441_v35, 0.0  ;;  %v1789_v44 = vmax.f32 %v1634_v36, 0.0 }
 0x285   :  { %v1902_v47 = vpack.c.bf16 %v1786_v39, %v1782_v37  ;;  %v1904_v48 = vpack.c.bf16 %v1788_v40, %v1784_v38 }
 0x286   :  { %v1903_v49 = vpack.c.bf16 %v1787_v43, %v1783_v41  ;;  %v1905_v50 = vpack.c.bf16 %v1789_v44, %v1785_v42  ;;  %v1444_v51 = vpop.f32.mrb[12].mxu0  ;;  %v1637_v52 = vpop.f32.mrb[12].mxu1 }
 0x287   :  { %v1445_v53 = vadd.f32 %v1444_v51, %v1093_v46  ;;  %v1638_v54 = vadd.f32 %v1637_v52, %v1093_v46  ;;  %v1446_v55 = vpop.f32.mrb[13].mxu0  ;;  %v1639_v56 = vpop.f32.mrb[13].mxu1 }
 0x288   :  { %v1447_v57 = vadd.f32 %v1446_v55, %v1093_v46  ;;  %v1640_v58 = vadd.f32 %v1639_v56, %v1093_v46  ;;  %v1448_v59 = vpop.f32.mrb[14].mxu0  ;;  %v1641_v61 = vpop.f32.mrb[14].mxu1  ;;  %2346 = vmatprep.subr.bf16.mxu0 %v1903_v49  ;;  %2539 = vmatprep.subr.bf16.mxu1 %v1905_v50 }
 0x289   :  { %v1449_v62 = vadd.f32 %v1448_v59, %v1098_v45  ;;  %v1642_v9 = vadd.f32 %v1641_v61, %v1098_v45  ;;  %v1450_v0 = vpop.f32.mrb[15].mxu0  ;;  %v1643_v10 = vpop.f32.mrb[15].mxu1  ;;  %2347 = vmatpush1.bf16.msra.mxu0 %v1902_v47  ;;  %2540 = vmatpush1.bf16.msra.mxu1 %v1904_v48  ;;  %v1790_v3 = vmax.f32 %v1445_v53, 0.0  ;;  %v1792_v5 = vmax.f32 %v1638_v54, 0.0 }
 0x28a   :  { %v1451_v1 = vadd.f32 %v1450_v0, %v1098_v45  ;;  %v1644_v2 = vadd.f32 %v1643_v10, %v1098_v45  ;;  %v1791_v11 = vmax.f32 %v1447_v57, 0.0  ;;  %v1793_v8 = vmax.f32 %v1640_v58, 0.0  ;;  %v1118_v44 = vpop.permute.xlu1 %1117  ;;  %v1113_v45 = vpop.permute.xlu0 %1112 }
 0x28b   :  { %v1794_v6 = vmax.f32 %v1449_v62, 0.0  ;;  %v1796_v7 = vmax.f32 %v1642_v9, 0.0 }
 0x28c   :  { %v1795_v14 = vmax.f32 %v1451_v1, 0.0  ;;  %v1797_v12 = vmax.f32 %v1644_v2, 0.0 }
 0x28d   :  { %v1906_v16 = vpack.c.bf16 %v1794_v6, %v1790_v3  ;;  %v1908_v17 = vpack.c.bf16 %v1796_v7, %v1792_v5 }
 0x28e   :  { %v1907_v18 = vpack.c.bf16 %v1795_v14, %v1791_v11  ;;  %v1909_v19 = vpack.c.bf16 %v1797_v12, %v1793_v8  ;;  %v1454_v20 = vpop.f32.mrb[16].mxu0  ;;  %v1647_v21 = vpop.f32.mrb[16].mxu1 }
 0x28f   :  { %v1455_v22 = vadd.f32 %v1454_v20, %v1103_v15  ;;  %v1648_v23 = vadd.f32 %v1647_v21, %v1103_v15  ;;  %v1456_v24 = vpop.f32.mrb[17].mxu0  ;;  %v1649_v25 = vpop.f32.mrb[17].mxu1 }
 0x290   :  { %v1457_v26 = vadd.f32 %v1456_v24, %v1103_v15  ;;  %v1650_v27 = vadd.f32 %v1649_v25, %v1103_v15  ;;  %v1458_v28 = vpop.f32.mrb[18].mxu0  ;;  %v1651_v29 = vpop.f32.mrb[18].mxu1  ;;  %2348 = vmatprep.subr.bf16.mxu0 %v1907_v18  ;;  %2541 = vmatprep.subr.bf16.mxu1 %v1909_v19 }
 0x291   :  { %v1459_v30 = vadd.f32 %v1458_v28, %v1108_v13  ;;  %v1652_v31 = vadd.f32 %v1651_v29, %v1108_v13  ;;  %v1460_v32 = vpop.f32.mrb[19].mxu0  ;;  %v1653_v33 = vpop.f32.mrb[19].mxu1  ;;  %2349 = vmatpush1.bf16.msra.mxu0 %v1906_v16  ;;  %2542 = vmatpush1.bf16.msra.mxu1 %v1908_v17  ;;  %v1798_v36 = vmax.f32 %v1455_v22, 0.0  ;;  %v1800_v37 = vmax.f32 %v1648_v23, 0.0 }
 0x292   :  { %v1461_v34 = vadd.f32 %v1460_v32, %v1108_v13  ;;  %v1654_v35 = vadd.f32 %v1653_v33, %v1108_v13  ;;  %v1799_v40 = vmax.f32 %v1457_v26, 0.0  ;;  %v1801_v41 = vmax.f32 %v1650_v27, 0.0  ;;  %v1128_v12 = vpop.permute.xlu1 %1127  ;;  %v1123_v13 = vpop.permute.xlu0 %1122 }
 0x293   :  { %v1802_v38 = vmax.f32 %v1459_v30, 0.0  ;;  %v1804_v39 = vmax.f32 %v1652_v31, 0.0 }
 0x294   :  { %v1803_v42 = vmax.f32 %v1461_v34, 0.0  ;;  %v1805_v43 = vmax.f32 %v1654_v35, 0.0 }
 0x295   :  { %v1910_v46 = vpack.c.bf16 %v1802_v38, %v1798_v36  ;;  %v1912_v47 = vpack.c.bf16 %v1804_v39, %v1800_v37 }
 0x296   :  { %v1911_v48 = vpack.c.bf16 %v1803_v42, %v1799_v40  ;;  %v1913_v49 = vpack.c.bf16 %v1805_v43, %v1801_v41  ;;  %v1464_v50 = vpop.f32.mrb[20].mxu0  ;;  %v1657_v51 = vpop.f32.mrb[20].mxu1 }
 0x297   :  { %v1465_v52 = vadd.f32 %v1464_v50, %v1113_v45  ;;  %v1658_v53 = vadd.f32 %v1657_v51, %v1113_v45  ;;  %v1466_v54 = vpop.f32.mrb[21].mxu0  ;;  %v1659_v55 = vpop.f32.mrb[21].mxu1 }
 0x298   :  { %v1467_v56 = vadd.f32 %v1466_v54, %v1113_v45  ;;  %v1660_v57 = vadd.f32 %v1659_v55, %v1113_v45  ;;  %v1468_v58 = vpop.f32.mrb[22].mxu0  ;;  %v1661_v59 = vpop.f32.mrb[22].mxu1  ;;  %2350 = vmatprep.subr.bf16.mxu0 %v1911_v48  ;;  %2543 = vmatprep.subr.bf16.mxu1 %v1913_v49 }
 0x299   :  { %v1469_v61 = vadd.f32 %v1468_v58, %v1118_v44  ;;  %v1662_v62 = vadd.f32 %v1661_v59, %v1118_v44  ;;  %v1470_v9 = vpop.f32.mrb[23].mxu0  ;;  %v1663_v0 = vpop.f32.mrb[23].mxu1  ;;  %2351 = vmatpush1.bf16.msra.mxu0 %v1910_v46  ;;  %2544 = vmatpush1.bf16.msra.mxu1 %v1912_v47  ;;  %v1806_v2 = vmax.f32 %v1465_v52, 0.0  ;;  %v1808_v3 = vmax.f32 %v1658_v53, 0.0 }
 0x29a   :  { %v1471_v10 = vadd.f32 %v1470_v9, %v1118_v44  ;;  %v1664_v1 = vadd.f32 %v1663_v0, %v1118_v44  ;;  %v1807_v7 = vmax.f32 %v1467_v56, 0.0  ;;  %v1809_v11 = vmax.f32 %v1660_v57, 0.0  ;;  %v1138_v43 = vpop.permute.xlu1 %1137  ;;  %v1133_v44 = vpop.permute.xlu0 %1132 }
 0x29b   :  { %v1810_v5 = vmax.f32 %v1469_v61, 0.0  ;;  %v1812_v6 = vmax.f32 %v1662_v62, 0.0 }
 0x29c   :  { %v1811_v8 = vmax.f32 %v1471_v10, 0.0  ;;  %v1813_v14 = vmax.f32 %v1664_v1, 0.0 }
 0x29d   :  { %v1914_v15 = vpack.c.bf16 %v1810_v5, %v1806_v2  ;;  %v1916_v16 = vpack.c.bf16 %v1812_v6, %v1808_v3 }
 0x29e   :  { %v1915_v17 = vpack.c.bf16 %v1811_v8, %v1807_v7  ;;  %v1917_v18 = vpack.c.bf16 %v1813_v14, %v1809_v11  ;;  %v1474_v19 = vpop.f32.mrb[24].mxu0  ;;  %v1667_v20 = vpop.f32.mrb[24].mxu1 }
 0x29f   :  { %v1475_v21 = vadd.f32 %v1474_v19, %v1123_v13  ;;  %v1668_v22 = vadd.f32 %v1667_v20, %v1123_v13  ;;  %v1476_v23 = vpop.f32.mrb[25].mxu0  ;;  %v1669_v24 = vpop.f32.mrb[25].mxu1 }
 0x2a0   :  { %v1477_v25 = vadd.f32 %v1476_v23, %v1123_v13  ;;  %v1670_v26 = vadd.f32 %v1669_v24, %v1123_v13  ;;  %v1478_v27 = vpop.f32.mrb[26].mxu0  ;;  %v1671_v28 = vpop.f32.mrb[26].mxu1  ;;  %2352 = vmatprep.subr.bf16.mxu0 %v1915_v17  ;;  %2545 = vmatprep.subr.bf16.mxu1 %v1917_v18 }
 0x2a1   :  { %v1479_v29 = vadd.f32 %v1478_v27, %v1128_v12  ;;  %v1672_v30 = vadd.f32 %v1671_v28, %v1128_v12  ;;  %v1480_v31 = vpop.f32.mrb[27].mxu0  ;;  %v1673_v32 = vpop.f32.mrb[27].mxu1  ;;  %2353 = vmatpush1.bf16.msra.mxu0 %v1914_v15  ;;  %2546 = vmatpush1.bf16.msra.mxu1 %v1916_v16  ;;  %v1814_v35 = vmax.f32 %v1475_v21, 0.0  ;;  %v1816_v36 = vmax.f32 %v1668_v22, 0.0 }
 0x2a2   :  { %v1481_v33 = vadd.f32 %v1480_v31, %v1128_v12  ;;  %v1674_v34 = vadd.f32 %v1673_v32, %v1128_v12  ;;  %v1815_v39 = vmax.f32 %v1477_v25, 0.0  ;;  %v1817_v40 = vmax.f32 %v1670_v26, 0.0  ;;  %v1148_v14 = vpop.permute.xlu1 %1147  ;;  %v1143_v12 = vpop.permute.xlu0 %1142 }
 0x2a3   :  { %v1818_v37 = vmax.f32 %v1479_v29, 0.0  ;;  %v1820_v38 = vmax.f32 %v1672_v30, 0.0 }
 0x2a4   :  { %v1819_v41 = vmax.f32 %v1481_v33, 0.0  ;;  %v1821_v42 = vmax.f32 %v1674_v34, 0.0 }
 0x2a5   :  { %v1918_v45 = vpack.c.bf16 %v1818_v37, %v1814_v35  ;;  %v1920_v46 = vpack.c.bf16 %v1820_v38, %v1816_v36 }
 0x2a6   :  { %v1919_v47 = vpack.c.bf16 %v1819_v41, %v1815_v39  ;;  %v1921_v48 = vpack.c.bf16 %v1821_v42, %v1817_v40  ;;  %v1484_v49 = vpop.f32.mrb[28].mxu0  ;;  %v1677_v50 = vpop.f32.mrb[28].mxu1 }
 0x2a7   :  { %v1485_v51 = vadd.f32 %v1484_v49, %v1133_v44  ;;  %v1678_v52 = vadd.f32 %v1677_v50, %v1133_v44  ;;  %v1486_v53 = vpop.f32.mrb[29].mxu0  ;;  %v1679_v54 = vpop.f32.mrb[29].mxu1 }
 0x2a8   :  { %v1487_v55 = vadd.f32 %v1486_v53, %v1133_v44  ;;  %v1680_v56 = vadd.f32 %v1679_v54, %v1133_v44  ;;  %v1488_v57 = vpop.f32.mrb[30].mxu0  ;;  %v1681_v58 = vpop.f32.mrb[30].mxu1  ;;  %2354 = vmatprep.subr.bf16.mxu0 %v1919_v47  ;;  %2547 = vmatprep.subr.bf16.mxu1 %v1921_v48 }
 0x2a9   :  { %v1489_v59 = vadd.f32 %v1488_v57, %v1138_v43  ;;  %v1682_v61 = vadd.f32 %v1681_v58, %v1138_v43  ;;  %v1490_v62 = vpop.f32.mrb[31].mxu0  ;;  %v1683_v9 = vpop.f32.mrb[31].mxu1  ;;  %2355 = vmatpush1.bf16.msra.mxu0 %v1918_v45  ;;  %2548 = vmatpush1.bf16.msra.mxu1 %v1920_v46  ;;  %v1822_v1 = vmax.f32 %v1485_v51, 0.0  ;;  %v1824_v2 = vmax.f32 %v1678_v52, 0.0 }
 0x2aa   :  { %v1491_v0 = vadd.f32 %v1490_v62, %v1138_v43  ;;  %v1684_v10 = vadd.f32 %v1683_v9, %v1138_v43  ;;  %v1823_v6 = vmax.f32 %v1487_v55, 0.0  ;;  %v1825_v7 = vmax.f32 %v1680_v56, 0.0  ;;  %v1158_v42 = vpop.permute.xlu1 %1157  ;;  %v1153_v43 = vpop.permute.xlu0 %1152 }
 0x2ab   :  { %v1826_v3 = vmax.f32 %v1489_v59, 0.0  ;;  %v1828_v5 = vmax.f32 %v1682_v61, 0.0 }
 0x2ac   :  { %v1827_v11 = vmax.f32 %v1491_v0, 0.0  ;;  %v1829_v8 = vmax.f32 %v1684_v10, 0.0 }
 0x2ad   :  { %v1922_v13 = vpack.c.bf16 %v1826_v3, %v1822_v1  ;;  %v1924_v15 = vpack.c.bf16 %v1828_v5, %v1824_v2 }
 0x2ae   :  { %v1923_v16 = vpack.c.bf16 %v1827_v11, %v1823_v6  ;;  %v1925_v17 = vpack.c.bf16 %v1829_v8, %v1825_v7  ;;  %v1494_v18 = vpop.f32.mrb[32].mxu0  ;;  %v1687_v19 = vpop.f32.mrb[32].mxu1 }
 0x2af   :  { %v1495_v20 = vadd.f32 %v1494_v18, %v1143_v12  ;;  %v1688_v21 = vadd.f32 %v1687_v19, %v1143_v12  ;;  %v1496_v22 = vpop.f32.mrb[33].mxu0  ;;  %v1689_v23 = vpop.f32.mrb[33].mxu1 }
 0x2b0   :  { %v1497_v24 = vadd.f32 %v1496_v22, %v1143_v12  ;;  %v1690_v25 = vadd.f32 %v1689_v23, %v1143_v12  ;;  %v1498_v26 = vpop.f32.mrb[34].mxu0  ;;  %v1691_v27 = vpop.f32.mrb[34].mxu1  ;;  %2356 = vmatprep.subr.bf16.mxu0 %v1923_v16  ;;  %2549 = vmatprep.subr.bf16.mxu1 %v1925_v17 }
 0x2b1   :  { %v1499_v28 = vadd.f32 %v1498_v26, %v1148_v14  ;;  %v1692_v29 = vadd.f32 %v1691_v27, %v1148_v14  ;;  %v1500_v30 = vpop.f32.mrb[35].mxu0  ;;  %v1693_v31 = vpop.f32.mrb[35].mxu1  ;;  %2357 = vmatpush1.bf16.msra.mxu0 %v1922_v13  ;;  %2550 = vmatpush1.bf16.msra.mxu1 %v1924_v15  ;;  %v1830_v34 = vmax.f32 %v1495_v20, 0.0  ;;  %v1832_v35 = vmax.f32 %v1688_v21, 0.0 }
 0x2b2   :  { %v1501_v32 = vadd.f32 %v1500_v30, %v1148_v14  ;;  %v1694_v33 = vadd.f32 %v1693_v31, %v1148_v14  ;;  %v1831_v38 = vmax.f32 %v1497_v24, 0.0  ;;  %v1833_v39 = vmax.f32 %v1690_v25, 0.0  ;;  %v1168_v8 = vpop.permute.xlu1 %1167  ;;  %v1163_v14 = vpop.permute.xlu0 %1162 }
 0x2b3   :  { %v1834_v36 = vmax.f32 %v1499_v28, 0.0  ;;  %v1836_v37 = vmax.f32 %v1692_v29, 0.0 }
 0x2b4   :  { %v1835_v40 = vmax.f32 %v1501_v32, 0.0  ;;  %v1837_v41 = vmax.f32 %v1694_v33, 0.0 }
 0x2b5   :  { %v1926_v44 = vpack.c.bf16 %v1834_v36, %v1830_v34  ;;  %v1928_v45 = vpack.c.bf16 %v1836_v37, %v1832_v35 }
 0x2b6   :  { %v1927_v46 = vpack.c.bf16 %v1835_v40, %v1831_v38  ;;  %v1929_v47 = vpack.c.bf16 %v1837_v41, %v1833_v39  ;;  %v1504_v48 = vpop.f32.mrb[36].mxu0  ;;  %v1697_v49 = vpop.f32.mrb[36].mxu1 }
 0x2b7   :  { %v1505_v50 = vadd.f32 %v1504_v48, %v1153_v43  ;;  %v1698_v51 = vadd.f32 %v1697_v49, %v1153_v43  ;;  %v1506_v52 = vpop.f32.mrb[37].mxu0  ;;  %v1699_v53 = vpop.f32.mrb[37].mxu1 }
 0x2b8   :  { %v1507_v54 = vadd.f32 %v1506_v52, %v1153_v43  ;;  %v1700_v55 = vadd.f32 %v1699_v53, %v1153_v43  ;;  %v1508_v56 = vpop.f32.mrb[38].mxu0  ;;  %v1701_v57 = vpop.f32.mrb[38].mxu1  ;;  %2358 = vmatprep.subr.bf16.mxu0 %v1927_v46  ;;  %2551 = vmatprep.subr.bf16.mxu1 %v1929_v47 }
 0x2b9   :  { %v1509_v58 = vadd.f32 %v1508_v56, %v1158_v42  ;;  %v1702_v59 = vadd.f32 %v1701_v57, %v1158_v42  ;;  %v1510_v61 = vpop.f32.mrb[39].mxu0  ;;  %v1703_v62 = vpop.f32.mrb[39].mxu1  ;;  %2359 = vmatpush1.bf16.msra.mxu0 %v1926_v44  ;;  %2552 = vmatpush1.bf16.msra.mxu1 %v1928_v45  ;;  %v1838_v10 = vmax.f32 %v1505_v50, 0.0  ;;  %v1840_v1 = vmax.f32 %v1698_v51, 0.0 }
 0x2ba   :  { %v1511_v9 = vadd.f32 %v1510_v61, %v1158_v42  ;;  %v1704_v0 = vadd.f32 %v1703_v62, %v1158_v42  ;;  %v1839_v5 = vmax.f32 %v1507_v54, 0.0  ;;  %v1841_v6 = vmax.f32 %v1700_v55, 0.0  ;;  %v1178_v41 = vpop.permute.xlu1 %1177  ;;  %v1173_v42 = vpop.permute.xlu0 %1172 }
 0x2bb   :  { %v1842_v2 = vmax.f32 %v1509_v58, 0.0  ;;  %v1844_v3 = vmax.f32 %v1702_v59, 0.0 }
 0x2bc   :  { %v1843_v7 = vmax.f32 %v1511_v9, 0.0  ;;  %v1845_v11 = vmax.f32 %v1704_v0, 0.0 }
 0x2bd   :  { %v1930_v12 = vpack.c.bf16 %v1842_v2, %v1838_v10  ;;  %v1932_v13 = vpack.c.bf16 %v1844_v3, %v1840_v1 }
 0x2be   :  { %v1931_v15 = vpack.c.bf16 %v1843_v7, %v1839_v5  ;;  %v1933_v16 = vpack.c.bf16 %v1845_v11, %v1841_v6  ;;  %v1514_v17 = vpop.f32.mrb[40].mxu0  ;;  %v1707_v18 = vpop.f32.mrb[40].mxu1 }
 0x2bf   :  { %v1515_v19 = vadd.f32 %v1514_v17, %v1163_v14  ;;  %v1708_v20 = vadd.f32 %v1707_v18, %v1163_v14  ;;  %v1516_v21 = vpop.f32.mrb[41].mxu0  ;;  %v1709_v22 = vpop.f32.mrb[41].mxu1 }
 0x2c0   :  { %v1517_v23 = vadd.f32 %v1516_v21, %v1163_v14  ;;  %v1710_v24 = vadd.f32 %v1709_v22, %v1163_v14  ;;  %v1518_v25 = vpop.f32.mrb[42].mxu0  ;;  %v1711_v26 = vpop.f32.mrb[42].mxu1  ;;  %2360 = vmatprep.subr.bf16.mxu0 %v1931_v15  ;;  %2553 = vmatprep.subr.bf16.mxu1 %v1933_v16 }
 0x2c1   :  { %v1519_v27 = vadd.f32 %v1518_v25, %v1168_v8  ;;  %v1712_v28 = vadd.f32 %v1711_v26, %v1168_v8  ;;  %v1520_v29 = vpop.f32.mrb[43].mxu0  ;;  %v1713_v30 = vpop.f32.mrb[43].mxu1  ;;  %2361 = vmatpush1.bf16.msra.mxu0 %v1930_v12  ;;  %2554 = vmatpush1.bf16.msra.mxu1 %v1932_v13  ;;  %v1846_v33 = vmax.f32 %v1515_v19, 0.0  ;;  %v1848_v34 = vmax.f32 %v1708_v20, 0.0 }
 0x2c2   :  { %v1521_v31 = vadd.f32 %v1520_v29, %v1168_v8  ;;  %v1714_v32 = vadd.f32 %v1713_v30, %v1168_v8  ;;  %v1847_v37 = vmax.f32 %v1517_v23, 0.0  ;;  %v1849_v38 = vmax.f32 %v1710_v24, 0.0  ;;  %v1188_v11 = vpop.permute.xlu1 %1187  ;;  %v1183_v8 = vpop.permute.xlu0 %1182 }
 0x2c3   :  { %v1850_v35 = vmax.f32 %v1519_v27, 0.0  ;;  %v1852_v36 = vmax.f32 %v1712_v28, 0.0 }
 0x2c4   :  { %v1851_v39 = vmax.f32 %v1521_v31, 0.0  ;;  %v1853_v40 = vmax.f32 %v1714_v32, 0.0 }
 0x2c5   :  { %v1934_v43 = vpack.c.bf16 %v1850_v35, %v1846_v33  ;;  %v1936_v44 = vpack.c.bf16 %v1852_v36, %v1848_v34 }
 0x2c6   :  { %v1935_v45 = vpack.c.bf16 %v1851_v39, %v1847_v37  ;;  %v1937_v46 = vpack.c.bf16 %v1853_v40, %v1849_v38  ;;  %v1524_v47 = vpop.f32.mrb[44].mxu0  ;;  %v1717_v48 = vpop.f32.mrb[44].mxu1 }
 0x2c7   :  { %v1525_v49 = vadd.f32 %v1524_v47, %v1173_v42  ;;  %v1718_v50 = vadd.f32 %v1717_v48, %v1173_v42  ;;  %v1526_v51 = vpop.f32.mrb[45].mxu0  ;;  %v1719_v52 = vpop.f32.mrb[45].mxu1 }
 0x2c8   :  { %v1527_v53 = vadd.f32 %v1526_v51, %v1173_v42  ;;  %v1720_v54 = vadd.f32 %v1719_v52, %v1173_v42  ;;  %v1528_v55 = vpop.f32.mrb[46].mxu0  ;;  %v1721_v56 = vpop.f32.mrb[46].mxu1  ;;  %2362 = vmatprep.subr.bf16.mxu0 %v1935_v45  ;;  %2555 = vmatprep.subr.bf16.mxu1 %v1937_v46 }
 0x2c9   :  { %v1529_v57 = vadd.f32 %v1528_v55, %v1178_v41  ;;  %v1722_v58 = vadd.f32 %v1721_v56, %v1178_v41  ;;  %v1530_v59 = vpop.f32.mrb[47].mxu0  ;;  %v1723_v61 = vpop.f32.mrb[47].mxu1  ;;  %2363 = vmatpush1.bf16.msra.mxu0 %v1934_v43  ;;  %2556 = vmatpush1.bf16.msra.mxu1 %v1936_v44  ;;  %v1854_v0 = vmax.f32 %v1525_v49, 0.0  ;;  %v1856_v10 = vmax.f32 %v1718_v50, 0.0 }
 0x2ca   :  { %v1531_v62 = vadd.f32 %v1530_v59, %v1178_v41  ;;  %v1724_v9 = vadd.f32 %v1723_v61, %v1178_v41  ;;  %v1855_v3 = vmax.f32 %v1527_v53, 0.0  ;;  %v1857_v5 = vmax.f32 %v1720_v54, 0.0  ;;  %v1198_v40 = vpop.permute.xlu1 %1197  ;;  %v1193_v41 = vpop.permute.xlu0 %1192 }
 0x2cb   :  { %v1858_v1 = vmax.f32 %v1529_v57, 0.0  ;;  %v1860_v2 = vmax.f32 %v1722_v58, 0.0 }
 0x2cc   :  { %v1859_v6 = vmax.f32 %v1531_v62, 0.0  ;;  %v1861_v7 = vmax.f32 %v1724_v9, 0.0 }
 0x2cd   :  { %v1938_v14 = vpack.c.bf16 %v1858_v1, %v1854_v0  ;;  %v1940_v12 = vpack.c.bf16 %v1860_v2, %v1856_v10 }
 0x2ce   :  { %v1939_v13 = vpack.c.bf16 %v1859_v6, %v1855_v3  ;;  %v1941_v15 = vpack.c.bf16 %v1861_v7, %v1857_v5  ;;  %v1534_v16 = vpop.f32.mrb[48].mxu0  ;;  %v1727_v17 = vpop.f32.mrb[48].mxu1 }
 0x2cf   :  { %v1535_v18 = vadd.f32 %v1534_v16, %v1183_v8  ;;  %v1728_v19 = vadd.f32 %v1727_v17, %v1183_v8  ;;  %v1536_v20 = vpop.f32.mrb[49].mxu0  ;;  %v1729_v21 = vpop.f32.mrb[49].mxu1 }
 0x2d0   :  { %v1537_v22 = vadd.f32 %v1536_v20, %v1183_v8  ;;  %v1730_v23 = vadd.f32 %v1729_v21, %v1183_v8  ;;  %v1538_v24 = vpop.f32.mrb[50].mxu0  ;;  %v1731_v25 = vpop.f32.mrb[50].mxu1  ;;  %2364 = vmatprep.subr.bf16.mxu0 %v1939_v13  ;;  %2557 = vmatprep.subr.bf16.mxu1 %v1941_v15 }
 0x2d1   :  { %v1539_v26 = vadd.f32 %v1538_v24, %v1188_v11  ;;  %v1732_v27 = vadd.f32 %v1731_v25, %v1188_v11  ;;  %v1540_v28 = vpop.f32.mrb[51].mxu0  ;;  %v1733_v29 = vpop.f32.mrb[51].mxu1  ;;  %2365 = vmatpush1.bf16.msra.mxu0 %v1938_v14  ;;  %2558 = vmatpush1.bf16.msra.mxu1 %v1940_v12  ;;  %v1862_v32 = vmax.f32 %v1535_v18, 0.0  ;;  %v1864_v33 = vmax.f32 %v1728_v19, 0.0 }
 0x2d2   :  { %v1541_v30 = vadd.f32 %v1540_v28, %v1188_v11  ;;  %v1734_v31 = vadd.f32 %v1733_v29, %v1188_v11  ;;  %v1863_v36 = vmax.f32 %v1537_v22, 0.0  ;;  %v1865_v37 = vmax.f32 %v1730_v23, 0.0  ;;  %v1208_v7 = vpop.permute.xlu1 %1207  ;;  %v1203_v11 = vpop.permute.xlu0 %1202 }
 0x2d3   :  { %v1866_v34 = vmax.f32 %v1539_v26, 0.0  ;;  %v1868_v35 = vmax.f32 %v1732_v27, 0.0 }
 0x2d4   :  { %v1867_v38 = vmax.f32 %v1541_v30, 0.0  ;;  %v1869_v39 = vmax.f32 %v1734_v31, 0.0 }
 0x2d5   :  { %v1942_v42 = vpack.c.bf16 %v1866_v34, %v1862_v32  ;;  %v1944_v43 = vpack.c.bf16 %v1868_v35, %v1864_v33 }
 0x2d6   :  { %v1943_v44 = vpack.c.bf16 %v1867_v38, %v1863_v36  ;;  %v1945_v45 = vpack.c.bf16 %v1869_v39, %v1865_v37  ;;  %v1544_v46 = vpop.f32.mrb[52].mxu0  ;;  %v1737_v47 = vpop.f32.mrb[52].mxu1 }
 0x2d7   :  { %v1545_v48 = vadd.f32 %v1544_v46, %v1193_v41  ;;  %v1738_v49 = vadd.f32 %v1737_v47, %v1193_v41  ;;  %v1546_v50 = vpop.f32.mrb[53].mxu0  ;;  %v1739_v51 = vpop.f32.mrb[53].mxu1 }
 0x2d8   :  { %v1547_v52 = vadd.f32 %v1546_v50, %v1193_v41  ;;  %v1740_v53 = vadd.f32 %v1739_v51, %v1193_v41  ;;  %v1548_v54 = vpop.f32.mrb[54].mxu0  ;;  %v1741_v55 = vpop.f32.mrb[54].mxu1  ;;  %2366 = vmatprep.subr.bf16.mxu0 %v1943_v44  ;;  %2559 = vmatprep.subr.bf16.mxu1 %v1945_v45 }
 0x2d9   :  { %v1549_v56 = vadd.f32 %v1548_v54, %v1198_v40  ;;  %v1742_v57 = vadd.f32 %v1741_v55, %v1198_v40  ;;  %v1550_v58 = vpop.f32.mrb[55].mxu0  ;;  %v1743_v59 = vpop.f32.mrb[55].mxu1  ;;  %2367 = vmatpush1.bf16.msra.mxu0 %v1942_v42  ;;  %2560 = vmatpush1.bf16.msra.mxu1 %v1944_v43  ;;  %v1870_v9 = vmax.f32 %v1545_v48, 0.0  ;;  %v1872_v0 = vmax.f32 %v1738_v49, 0.0 }
 0x2da   :  { %v1551_v61 = vadd.f32 %v1550_v58, %v1198_v40  ;;  %v1744_v62 = vadd.f32 %v1743_v59, %v1198_v40  ;;  %v1871_v2 = vmax.f32 %v1547_v52, 0.0  ;;  %v1873_v3 = vmax.f32 %v1740_v53, 0.0  ;;  %v1218_v39 = vpop.permute.xlu1 %1217  ;;  %v1213_v40 = vpop.permute.xlu0 %1212 }
 0x2db   :  { %v1874_v10 = vmax.f32 %v1549_v56, 0.0  ;;  %v1876_v1 = vmax.f32 %v1742_v57, 0.0 }
 0x2dc   :  { %v1875_v5 = vmax.f32 %v1551_v61, 0.0  ;;  %v1877_v6 = vmax.f32 %v1744_v62, 0.0 }
 0x2dd   :  { %v1946_v8 = vpack.c.bf16 %v1874_v10, %v1870_v9  ;;  %v1948_v14 = vpack.c.bf16 %v1876_v1, %v1872_v0 }
 0x2de   :  { %v1947_v12 = vpack.c.bf16 %v1875_v5, %v1871_v2  ;;  %v1949_v13 = vpack.c.bf16 %v1877_v6, %v1873_v3  ;;  %v1554_v15 = vpop.f32.mrb[56].mxu0  ;;  %v1747_v16 = vpop.f32.mrb[56].mxu1 }
 0x2df   :  { %v1555_v17 = vadd.f32 %v1554_v15, %v1203_v11  ;;  %v1748_v18 = vadd.f32 %v1747_v16, %v1203_v11  ;;  %v1556_v19 = vpop.f32.mrb[57].mxu0  ;;  %v1749_v20 = vpop.f32.mrb[57].mxu1  ;;  %v3524_v15 = vld [vmem:[#allocation12 + $0x24] ss:$8 sps:$4 sm:$0xff]   ;;  %v3526_v16 = vld [vmem:[#allocation12 + $0x20] ss:$8 sps:$4 sm:$0xff]  }
 0x2e0   :  { %v1557_v21 = vadd.f32 %v1556_v19, %v1203_v11  ;;  %v1750_v22 = vadd.f32 %v1749_v20, %v1203_v11  ;;  %v1558_v23 = vpop.f32.mrb[58].mxu0  ;;  %v1751_v24 = vpop.f32.mrb[58].mxu1  ;;  %2368 = vmatprep.subr.bf16.mxu0 %v1947_v12  ;;  %2561 = vmatprep.subr.bf16.mxu1 %v1949_v13  ;;  %v3521_v12 = vld [vmem:[#allocation12 + $0x14] ss:$8 sps:$4 sm:$0xff]   ;;  %v3523_v13 = vld [vmem:[#allocation12 + $0x10] ss:$8 sps:$4 sm:$0xff]  }
 0x2e1   :  { %v1559_v25 = vadd.f32 %v1558_v23, %v1208_v7  ;;  %v1752_v26 = vadd.f32 %v1751_v24, %v1208_v7  ;;  %v1560_v27 = vpop.f32.mrb[59].mxu0  ;;  %v1753_v28 = vpop.f32.mrb[59].mxu1  ;;  %2369 = vmatpush1.bf16.msra.mxu0 %v1946_v8  ;;  %2562 = vmatpush1.bf16.msra.mxu1 %v1948_v14  ;;  %v1878_v31 = vmax.f32 %v1555_v17, 0.0  ;;  %v1880_v32 = vmax.f32 %v1748_v18, 0.0  ;;  %v3518_v14 = vld [vmem:[#allocation12] ss:$8 sps:$4 sm:$0xff]  }
 0x2e2   :  { %v1561_v29 = vadd.f32 %v1560_v27, %v1208_v7  ;;  %v1754_v30 = vadd.f32 %v1753_v28, %v1208_v7  ;;  %v1879_v35 = vmax.f32 %v1557_v21, 0.0  ;;  %v1881_v36 = vmax.f32 %v1750_v22, 0.0  ;;  %v3527_v17 = vld [vmem:[#allocation12 + $0x34] ss:$8 sps:$4 sm:$0xff]   ;;  %v3529_v18 = vld [vmem:[#allocation12 + $0x30] ss:$8 sps:$4 sm:$0xff]  }
 0x2e3   :  { %v1882_v33 = vmax.f32 %v1559_v25, 0.0  ;;  %v1884_v34 = vmax.f32 %v1752_v26, 0.0  ;;  %v3530_v19 = vld [vmem:[#allocation12 + $0x44] ss:$8 sps:$4 sm:$0xff]   ;;  %v3532_v20 = vld [vmem:[#allocation12 + $0x40] ss:$8 sps:$4 sm:$0xff]  }
 0x2e4   :  { %v1883_v37 = vmax.f32 %v1561_v29, 0.0  ;;  %v1885_v38 = vmax.f32 %v1754_v30, 0.0  ;;  %v3533_v21 = vld [vmem:[#allocation12 + $0x54] ss:$8 sps:$4 sm:$0xff]   ;;  %v3535_v22 = vld [vmem:[#allocation12 + $0x50] ss:$8 sps:$4 sm:$0xff]  }
 0x2e5   :  { %v1950_v41 = vpack.c.bf16 %v1882_v33, %v1878_v31  ;;  %v1952_v42 = vpack.c.bf16 %v1884_v34, %v1880_v32  ;;  %v3536_v23 = vld [vmem:[#allocation12 + $0x64] ss:$8 sps:$4 sm:$0xff]   ;;  %v3538_v24 = vld [vmem:[#allocation12 + $0x60] ss:$8 sps:$4 sm:$0xff]   ;;  %v3539_v25 = vld [vmem:[#allocation12 + $0x74] ss:$8 sps:$4 sm:$0xff]  }
 0x2e6   :  { %v1951_v43 = vpack.c.bf16 %v1883_v37, %v1879_v35  ;;  %v1953_v44 = vpack.c.bf16 %v1885_v38, %v1881_v36  ;;  %v1564_v45 = vpop.f32.mrb[60].mxu0  ;;  %v1757_v46 = vpop.f32.mrb[60].mxu1  ;;  %v3541_v26 = vld [vmem:[#allocation12 + $0x70] ss:$8 sps:$4 sm:$0xff]   ;;  %v3542_v27 = vld [vmem:[#allocation12 + $0x84] ss:$8 sps:$4 sm:$0xff]  }
 0x2e7   :  { %v1565_v47 = vadd.f32 %v1564_v45, %v1213_v40  ;;  %v1758_v48 = vadd.f32 %v1757_v46, %v1213_v40  ;;  %v1566_v49 = vpop.f32.mrb[61].mxu0  ;;  %v1759_v50 = vpop.f32.mrb[61].mxu1  ;;  %v3544_v28 = vld [vmem:[#allocation12 + $0x80] ss:$8 sps:$4 sm:$0xff]   ;;  %v3545_v29 = vld [vmem:[#allocation12 + $0x94] ss:$8 sps:$4 sm:$0xff]  }
 0x2e8   :  { %v1567_v51 = vadd.f32 %v1566_v49, %v1213_v40  ;;  %v1760_v52 = vadd.f32 %v1759_v50, %v1213_v40  ;;  %v1568_v53 = vpop.f32.mrb[62].mxu0  ;;  %v1761_v54 = vpop.f32.mrb[62].mxu1  ;;  %2370 = vmatprep.subr.bf16.mxu0 %v1951_v43  ;;  %2563 = vmatprep.subr.bf16.mxu1 %v1953_v44  ;;  %v3547_v30 = vld [vmem:[#allocation12 + $0x90] ss:$8 sps:$4 sm:$0xff]   ;;  %v3548_v31 = vld [vmem:[#allocation12 + $0xa4] ss:$8 sps:$4 sm:$0xff]  }
 0x2e9   :  { %v1569_v55 = vadd.f32 %v1568_v53, %v1218_v39  ;;  %v1762_v56 = vadd.f32 %v1761_v54, %v1218_v39  ;;  %v1570_v57 = vpop.f32.mrb[63].mxu0  ;;  %v1763_v58 = vpop.f32.mrb[63].mxu1  ;;  %2371 = vmatpush1.bf16.msra.mxu0 %v1950_v41  ;;  %2564 = vmatpush1.bf16.msra.mxu1 %v1952_v42  ;;  %v1886_v62 = vmax.f32 %v1565_v47, 0.0  ;;  %v1888_v9 = vmax.f32 %v1758_v48, 0.0  ;;  %v3550_v32 = vld [vmem:[#allocation12 + $0xa0] ss:$8 sps:$4 sm:$0xff]  }
 0x2ea   :  { %v1571_v59 = vadd.f32 %v1570_v57, %v1218_v39  ;;  %v1764_v61 = vadd.f32 %v1763_v58, %v1218_v39  ;;  %v1887_v1 = vmax.f32 %v1567_v51, 0.0  ;;  %v1889_v2 = vmax.f32 %v1760_v52, 0.0  ;;  %v3551_v33 = vld [vmem:[#allocation12 + $0xb4] ss:$8 sps:$4 sm:$0xff]   ;;  %v3553_v34 = vld [vmem:[#allocation12 + $0xb0] ss:$8 sps:$4 sm:$0xff]   ;;  %v2030_v43 = vpop.permute.xlu1 %2029  ;;  %v2025_v44 = vpop.permute.xlu0 %2024 }
 0x2eb   :  { %v1890_v0 = vmax.f32 %v1569_v55, 0.0  ;;  %v1892_v10 = vmax.f32 %v1762_v56, 0.0  ;;  %v3554_v35 = vld [vmem:[#allocation12 + $0xc4] ss:$8 sps:$4 sm:$0xff]   ;;  %v3556_v36 = vld [vmem:[#allocation12 + $0xc0] ss:$8 sps:$4 sm:$0xff]  }
 0x2ec   :  { %v1891_v3 = vmax.f32 %v1571_v59, 0.0  ;;  %v1893_v5 = vmax.f32 %v1764_v61, 0.0  ;;  %v3557_v37 = vld [vmem:[#allocation12 + $0xd4] ss:$8 sps:$4 sm:$0xff]   ;;  %v3559_v38 = vld [vmem:[#allocation12 + $0xd0] ss:$8 sps:$4 sm:$0xff]  }
 0x2ed   :  { %v1954_v6 = vpack.c.bf16 %v1890_v0, %v1886_v62  ;;  %v1956_v7 = vpack.c.bf16 %v1892_v10, %v1888_v9  ;;  %v3560_v39 = vld [vmem:[#allocation12 + $0xe4] ss:$8 sps:$4 sm:$0xff]   ;;  %v3562_v40 = vld [vmem:[#allocation12 + $0xe0] ss:$8 sps:$4 sm:$0xff]   ;;  %v3563_v41 = vld [vmem:[#allocation12 + $0xf4] ss:$8 sps:$4 sm:$0xff]  }
 0x2ee   :  { %v1955_v11 = vpack.c.bf16 %v1891_v3, %v1887_v1  ;;  %v1957_v8 = vpack.c.bf16 %v1893_v5, %v1889_v2  ;;  %v3565_v42 = vld [vmem:[#allocation12 + $0xf0] ss:$8 sps:$4 sm:$0xff]   ;;  %v4104_v45 = vpop.permute.xlu1 %2039  ;;  %v4106_v46 = vpop.permute.xlu0 %2034 }
 0x2f0   :  { %2372 = vmatprep.subr.bf16.mxu0 %v1955_v11  ;;  %2565 = vmatprep.subr.bf16.mxu1 %v1957_v8 }
 0x2f1   :  { %2373 = vmatpush1.bf16.msra.mxu0 %v1954_v6  ;;  %2566 = vmatpush1.bf16.msra.mxu1 %v1956_v7 }
 0x2f2   :  { %v4108_v47 = vpop.permute.xlu1 %2049  ;;  %v4110_v48 = vpop.permute.xlu0 %2044 }
 0x2f4   :  { %2375 = vmatmul.mubr.bf16.vlgmr.msra.gmra.mrb[64].mxu0 %v3518_v14  ;;  %2568 = vmatmul.mubr.bf16.vlgmr.msra.gmra.mrb[64].mxu1 %v3518_v14 }
 0x2f5   :  { %2384 = vmatprep.mubr.bf16.mxu0 %v3521_v12  ;;  %2577 = vmatprep.mubr.bf16.mxu1 %v3521_v12 }
 0x2f6   :  { %v4112_v49 = vpop.permute.xlu1 %2059  ;;  %v4114_v50 = vpop.permute.xlu0 %2054 }
 0x2fa   :  { %v4116_v51 = vpop.permute.xlu1 %2069  ;;  %v4118_v52 = vpop.permute.xlu0 %2064 }
 0x2fc   :  { %2385 = vmatmul.mubr.bf16.gmra.mrb[68].mxu0 %v3523_v13  ;;  %2578 = vmatmul.mubr.bf16.gmra.mrb[68].mxu1 %v3523_v13 }
 0x2fd   :  { %2394 = vmatprep.mubr.bf16.mxu0 %v3524_v15  ;;  %2587 = vmatprep.mubr.bf16.mxu1 %v3524_v15 }
 0x2fe   :  { %v4120_v53 = vpop.permute.xlu1 %2079  ;;  %v4122_v54 = vpop.permute.xlu0 %2074 }
 0x302   :  { %v4124_v55 = vpop.permute.xlu1 %2089  ;;  %v4126_v56 = vpop.permute.xlu0 %2084 }
 0x304   :  { %2395 = vmatmul.mubr.bf16.gmra.mrb[72].mxu0 %v3526_v16  ;;  %2588 = vmatmul.mubr.bf16.gmra.mrb[72].mxu1 %v3526_v16 }
 0x305   :  { %2404 = vmatprep.mubr.bf16.mxu0 %v3527_v17  ;;  %2597 = vmatprep.mubr.bf16.mxu1 %v3527_v17 }
 0x306   :  { %v4128_v57 = vpop.permute.xlu1 %2099  ;;  %v4130_v58 = vpop.permute.xlu0 %2094 }
 0x30a   :  { %v4132_v59 = vpop.permute.xlu1 %2109  ;;  %v4134_v61 = vpop.permute.xlu0 %2104 }
 0x30c   :  { %2405 = vmatmul.mubr.bf16.gmra.mrb[76].mxu0 %v3529_v18  ;;  %2598 = vmatmul.mubr.bf16.gmra.mrb[76].mxu1 %v3529_v18 }
 0x30d   :  { %2414 = vmatprep.mubr.bf16.mxu0 %v3530_v19  ;;  %2607 = vmatprep.mubr.bf16.mxu1 %v3530_v19 }
 0x30e   :  { %v4136_v62 = vpop.permute.xlu1 %2119  ;;  %v4138_v9 = vpop.permute.xlu0 %2114 }
 0x312   :  { %v4140_v0 = vpop.permute.xlu1 %2129  ;;  %v4142_v10 = vpop.permute.xlu0 %2124 }
 0x314   :  { %2415 = vmatmul.mubr.bf16.gmra.mrb[80].mxu0 %v3532_v20  ;;  %2608 = vmatmul.mubr.bf16.gmra.mrb[80].mxu1 %v3532_v20 }
 0x315   :  { %2424 = vmatprep.mubr.bf16.mxu0 %v3533_v21  ;;  %2617 = vmatprep.mubr.bf16.mxu1 %v3533_v21 }
 0x316   :  { %v4144_v1 = vpop.permute.xlu1 %2139  ;;  %v4146_v2 = vpop.permute.xlu0 %2134 }
 0x31a   :  { %v4148_v3 = vpop.permute.xlu1 %2149  ;;  %v4150_v5 = vpop.permute.xlu0 %2144 }
 0x31c   :  { %2425 = vmatmul.mubr.bf16.gmra.mrb[84].mxu0 %v3535_v22  ;;  %2618 = vmatmul.mubr.bf16.gmra.mrb[84].mxu1 %v3535_v22 }
 0x31d   :  { %2434 = vmatprep.mubr.bf16.mxu0 %v3536_v23  ;;  %2627 = vmatprep.mubr.bf16.mxu1 %v3536_v23 }
 0x31e   :  { %v2891_v6 = vpop.permute.xlu1 %2890  ;;  %v4152_v7 = vpop.permute.xlu0 %2154 }
 0x322   :  { %v4154_v11 = vpop.permute.xlu1 %2900  ;;  %v2896_v8 = vpop.permute.xlu0 %2895 }
 0x324   :  { %2435 = vmatmul.mubr.bf16.gmra.mrb[88].mxu0 %v3538_v24  ;;  %2628 = vmatmul.mubr.bf16.gmra.mrb[88].mxu1 %v3538_v24 }
 0x325   :  { %2444 = vmatprep.mubr.bf16.mxu0 %v3539_v25  ;;  %2637 = vmatprep.mubr.bf16.mxu1 %v3539_v25 }
 0x326   :  { %v4156_v14 = vpop.permute.xlu1 %2910  ;;  %v4158_v12 = vpop.permute.xlu0 %2905 }
 0x32c   :  { %2445 = vmatmul.mubr.bf16.gmra.mrb[92].mxu0 %v3541_v26  ;;  %2638 = vmatmul.mubr.bf16.gmra.mrb[92].mxu1 %v3541_v26 }
 0x32d   :  { %2454 = vmatprep.mubr.bf16.mxu0 %v3542_v27  ;;  %2647 = vmatprep.mubr.bf16.mxu1 %v3542_v27 }
 0x334   :  { %2455 = vmatmul.mubr.bf16.gmra.mrb[96].mxu0 %v3544_v28  ;;  %2648 = vmatmul.mubr.bf16.gmra.mrb[96].mxu1 %v3544_v28 }
 0x335   :  { %2464 = vmatprep.mubr.bf16.mxu0 %v3545_v29  ;;  %2657 = vmatprep.mubr.bf16.mxu1 %v3545_v29 }
 0x33c   :  { %2465 = vmatmul.mubr.bf16.gmra.mrb[100].mxu0 %v3547_v30  ;;  %2658 = vmatmul.mubr.bf16.gmra.mrb[100].mxu1 %v3547_v30 }
 0x33d   :  { %2474 = vmatprep.mubr.bf16.mxu0 %v3548_v31  ;;  %2667 = vmatprep.mubr.bf16.mxu1 %v3548_v31 }
 0x344   :  { %2475 = vmatmul.mubr.bf16.gmra.mrb[104].mxu0 %v3550_v32  ;;  %2668 = vmatmul.mubr.bf16.gmra.mrb[104].mxu1 %v3550_v32 }
 0x345   :  { %2484 = vmatprep.mubr.bf16.mxu0 %v3551_v33  ;;  %2677 = vmatprep.mubr.bf16.mxu1 %v3551_v33 }
 0x34c   :  { %2485 = vmatmul.mubr.bf16.gmra.mrb[108].mxu0 %v3553_v34  ;;  %2678 = vmatmul.mubr.bf16.gmra.mrb[108].mxu1 %v3553_v34 }
 0x34d   :  { %2494 = vmatprep.mubr.bf16.mxu0 %v3554_v35  ;;  %2687 = vmatprep.mubr.bf16.mxu1 %v3554_v35 }
 0x354   :  { %2495 = vmatmul.mubr.bf16.gmra.mrb[112].mxu0 %v3556_v36  ;;  %2688 = vmatmul.mubr.bf16.gmra.mrb[112].mxu1 %v3556_v36 }
 0x355   :  { %2504 = vmatprep.mubr.bf16.mxu0 %v3557_v37  ;;  %2697 = vmatprep.mubr.bf16.mxu1 %v3557_v37 }
 0x35c   :  { %2505 = vmatmul.mubr.bf16.gmra.mrb[116].mxu0 %v3559_v38  ;;  %2698 = vmatmul.mubr.bf16.gmra.mrb[116].mxu1 %v3559_v38  ;;  %v4160_v38 = vpop.permute.xlu1 %2920 }
 0x35d   :  { %2514 = vmatprep.mubr.bf16.mxu0 %v3560_v39  ;;  %2707 = vmatprep.mubr.bf16.mxu1 %v3560_v39  ;;  %v4162_v39 = vpop.permute.xlu0 %2915 }
 0x364   :  { %2515 = vmatmul.mubr.bf16.gmra.mrb[120].mxu0 %v3562_v40  ;;  %2708 = vmatmul.mubr.bf16.gmra.mrb[120].mxu1 %v3562_v40 }
 0x365   :  { %2524 = vmatprep.mubr.bf16.mxu0 %v3563_v41  ;;  %2717 = vmatprep.mubr.bf16.mxu1 %v3563_v41 }
 0x36c   :  { %2525 = vmatmul.mubr.bf16.gmra.mrb[124].mxu0 %v3565_v42  ;;  %2718 = vmatmul.mubr.bf16.gmra.mrb[124].mxu1 %v3565_v42 }
 0x3c7   :  { %v2376_v13 = vpop.f32.mrb[64].mxu0  ;;  %v2569_v15 = vpop.f32.mrb[64].mxu1 }
 0x3c8   :  { %v2377_v16 = vadd.f32 %v2376_v13, %v2025_v44  ;;  %v2570_v17 = vadd.f32 %v2569_v15, %v2025_v44  ;;  %v2378_v18 = vpop.f32.mrb[65].mxu0  ;;  %v2571_v19 = vpop.f32.mrb[65].mxu1 }
 0x3c9   :  { %v2379_v20 = vadd.f32 %v2378_v18, %v2025_v44  ;;  %v2572_v21 = vadd.f32 %v2571_v19, %v2025_v44  ;;  %v2380_v22 = vpop.f32.mrb[66].mxu0  ;;  %v2573_v23 = vpop.f32.mrb[66].mxu1 }
 0x3ca   :  { %v2728_v24 = vmax.f32 %v2377_v16, 0.0  ;;  %v2730_v25 = vmax.f32 %v2570_v17, 0.0  ;;  %v2381_v26 = vadd.f32 %v2380_v22, %v2030_v43  ;;  %v2574_v27 = vadd.f32 %v2573_v23, %v2030_v43  ;;  %v2382_v28 = vpop.f32.mrb[67].mxu0  ;;  %v2575_v29 = vpop.f32.mrb[67].mxu1 }
 0x3cb   :  { %v2729_v30 = vmax.f32 %v2379_v20, 0.0  ;;  %v2731_v31 = vmax.f32 %v2572_v21, 0.0  ;;  %v2383_v32 = vadd.f32 %v2382_v28, %v2030_v43  ;;  %v2576_v33 = vadd.f32 %v2575_v29, %v2030_v43 }
 0x3cc   :  { %v2732_v34 = vmax.f32 %v2381_v26, 0.0  ;;  %v2734_v35 = vmax.f32 %v2574_v27, 0.0  ;;  %v3048_v40 = vmul.f32 %v2891_v6, %v2728_v24  ;;  %v3050_v41 = vmul.f32 %v2891_v6, %v2730_v25 }
 0x3cd   :  { %v2733_v36 = vmax.f32 %v2383_v32, 0.0  ;;  %v2735_v37 = vmax.f32 %v2576_v33, 0.0  ;;  %v3049_v13 = vmul.f32 %v2891_v6, %v2729_v30  ;;  %v3051_v15 = vmul.f32 %v2891_v6, %v2731_v31 }
 0x3ce   :  { %v3052_v42 = vmul.f32 %v2896_v8, %v2732_v34  ;;  %v3054_v44 = vmul.f32 %v2896_v8, %v2734_v35 }
 0x3cf   :  { %v3053_v16 = vmul.f32 %v2896_v8, %v2733_v36  ;;  %v3055_v17 = vmul.f32 %v2896_v8, %v2735_v37  ;;  %v2386_v18 = vpop.f32.mrb[68].mxu0  ;;  %v2579_v19 = vpop.f32.mrb[68].mxu1 }
 0x3d0   :  { %v3176_v20 = vadd.f32 %v3052_v42, %v3048_v40  ;;  %v3250_v43 = vadd.f32 %v3054_v44, %v3050_v41  ;;  %v2387_v21 = vadd.f32 %v2386_v18, %v4106_v46  ;;  %v2580_v22 = vadd.f32 %v2579_v19, %v4106_v46  ;;  %v2388_v23 = vpop.f32.mrb[69].mxu0  ;;  %v2581_v26 = vpop.f32.mrb[69].mxu1 }
 0x3d1   :  { %v3213_v27 = vadd.f32 %v3053_v16, %v3049_v13  ;;  %v3287_v28 = vadd.f32 %v3055_v17, %v3051_v15  ;;  %v2389_v24 = vadd.f32 %v2388_v23, %v4106_v46  ;;  %v2582_v25 = vadd.f32 %v2581_v26, %v4106_v46  ;;  %v2390_v29 = vpop.f32.mrb[70].mxu0  ;;  %v2583_v6 = vpop.f32.mrb[70].mxu1 }
 0x3d2   :  { %v2736_v30 = vmax.f32 %v2387_v21, 0.0  ;;  %v2738_v8 = vmax.f32 %v2580_v22, 0.0  ;;  %v2391_v31 = vadd.f32 %v2390_v29, %v4104_v45  ;;  %v2584_v32 = vadd.f32 %v2583_v6, %v4104_v45  ;;  %v2392_v33 = vpop.f32.mrb[71].mxu0  ;;  %v2585_v34 = vpop.f32.mrb[71].mxu1 }
 0x3d3   :  { %v2737_v35 = vmax.f32 %v2389_v24, 0.0  ;;  %v2739_v36 = vmax.f32 %v2582_v25, 0.0  ;;  %v2393_v37 = vadd.f32 %v2392_v33, %v4104_v45  ;;  %v2586_v40 = vadd.f32 %v2585_v34, %v4104_v45  ;;  %v4176_v18 = vpop.permute.xlu1 %2930  ;;  %v4178_v19 = vpop.permute.xlu0 %2925 }
 0x3d4   :  { %v3056_v41 = vmul.f32 %v4154_v11, %v2736_v30  ;;  %v3058_v46 = vmul.f32 %v4154_v11, %v2738_v8  ;;  %v2740_v42 = vmax.f32 %v2391_v31, 0.0  ;;  %v2742_v44 = vmax.f32 %v2584_v32, 0.0 }
 0x3d5   :  { %v3057_v13 = vmul.f32 %v4154_v11, %v2737_v35  ;;  %v3059_v15 = vmul.f32 %v4154_v11, %v2739_v36  ;;  %v2741_v16 = vmax.f32 %v2393_v37, 0.0  ;;  %v2743_v17 = vmax.f32 %v2586_v40, 0.0 }
 0x3d6   :  { %v3177_v21 = vadd.f32 %v3176_v20, %v3056_v41  ;;  %v3251_v22 = vadd.f32 %v3250_v43, %v3058_v46  ;;  %v3060_v45 = vmul.f32 %v4158_v12, %v2740_v42  ;;  %v3062_v23 = vmul.f32 %v4158_v12, %v2742_v44 }
 0x3d7   :  { %v3214_v26 = vadd.f32 %v3213_v27, %v3057_v13  ;;  %v3288_v24 = vadd.f32 %v3287_v28, %v3059_v15  ;;  %v3061_v25 = vmul.f32 %v4158_v12, %v2741_v16  ;;  %v3063_v29 = vmul.f32 %v4158_v12, %v2743_v17  ;;  %v2396_v6 = vpop.f32.mrb[72].mxu0  ;;  %v2589_v11 = vpop.f32.mrb[72].mxu1 }
 0x3d8   :  { %v3178_v30 = vadd.f32 %v3177_v21, %v3060_v45  ;;  %v3252_v8 = vadd.f32 %v3251_v22, %v3062_v23  ;;  %v2397_v31 = vadd.f32 %v2396_v6, %v4110_v48  ;;  %v2590_v32 = vadd.f32 %v2589_v11, %v4110_v48  ;;  %v2398_v20 = vpop.f32.mrb[73].mxu0  ;;  %v2591_v43 = vpop.f32.mrb[73].mxu1 }
 0x3d9   :  { %v3215_v33 = vadd.f32 %v3214_v26, %v3061_v25  ;;  %v3289_v34 = vadd.f32 %v3288_v24, %v3063_v29  ;;  %v2399_v35 = vadd.f32 %v2398_v20, %v4110_v48  ;;  %v2592_v27 = vadd.f32 %v2591_v43, %v4110_v48  ;;  %v2400_v28 = vpop.f32.mrb[74].mxu0  ;;  %v2593_v36 = vpop.f32.mrb[74].mxu1 }
 0x3da   :  { %v2744_v37 = vmax.f32 %v2397_v31, 0.0  ;;  %v2746_v12 = vmax.f32 %v2590_v32, 0.0  ;;  %v2401_v40 = vadd.f32 %v2400_v28, %v4108_v47  ;;  %v2594_v41 = vadd.f32 %v2593_v36, %v4108_v47  ;;  %v2402_v46 = vpop.f32.mrb[75].mxu0  ;;  %v2595_v42 = vpop.f32.mrb[75].mxu1 }
 0x3db   :  { %v2745_v44 = vmax.f32 %v2399_v35, 0.0  ;;  %v2747_v13 = vmax.f32 %v2592_v27, 0.0  ;;  %v2403_v15 = vadd.f32 %v2402_v46, %v4108_v47  ;;  %v2596_v16 = vadd.f32 %v2595_v42, %v4108_v47  ;;  %v4196_v25 = vpop.permute.xlu1 %2940  ;;  %v4198_v29 = vpop.permute.xlu0 %2935 }
 0x3dc   :  { %v3064_v17 = vmul.f32 %v4156_v14, %v2744_v37  ;;  %v3066_v48 = vmul.f32 %v4156_v14, %v2746_v12  ;;  %v2748_v21 = vmax.f32 %v2401_v40, 0.0  ;;  %v2750_v22 = vmax.f32 %v2594_v41, 0.0 }
 0x3dd   :  { %v3065_v45 = vmul.f32 %v4156_v14, %v2745_v44  ;;  %v3067_v23 = vmul.f32 %v4156_v14, %v2747_v13  ;;  %v2749_v26 = vmax.f32 %v2403_v15, 0.0  ;;  %v2751_v24 = vmax.f32 %v2596_v16, 0.0 }
 0x3de   :  { %v3179_v6 = vadd.f32 %v3178_v30, %v3064_v17  ;;  %v3253_v11 = vadd.f32 %v3252_v8, %v3066_v48  ;;  %v3068_v47 = vmul.f32 %v4162_v39, %v2748_v21  ;;  %v3070_v31 = vmul.f32 %v4162_v39, %v2750_v22 }
 0x3df   :  { %v3216_v32 = vadd.f32 %v3215_v33, %v3065_v45  ;;  %v3290_v20 = vadd.f32 %v3289_v34, %v3067_v23  ;;  %v3069_v43 = vmul.f32 %v4162_v39, %v2749_v26  ;;  %v3071_v35 = vmul.f32 %v4162_v39, %v2751_v24  ;;  %v2406_v27 = vpop.f32.mrb[76].mxu0  ;;  %v2599_v14 = vpop.f32.mrb[76].mxu1 }
 0x3e0   :  { %v3180_v28 = vadd.f32 %v3179_v6, %v3068_v47  ;;  %v3254_v36 = vadd.f32 %v3253_v11, %v3070_v31  ;;  %v2407_v37 = vadd.f32 %v2406_v27, %v4114_v50  ;;  %v2600_v12 = vadd.f32 %v2599_v14, %v4114_v50  ;;  %v2408_v30 = vpop.f32.mrb[77].mxu0  ;;  %v2601_v8 = vpop.f32.mrb[77].mxu1 }
 0x3e1   :  { %v3217_v40 = vadd.f32 %v3216_v32, %v3069_v43  ;;  %v3291_v41 = vadd.f32 %v3290_v20, %v3071_v35  ;;  %v2409_v46 = vadd.f32 %v2408_v30, %v4114_v50  ;;  %v2602_v33 = vadd.f32 %v2601_v8, %v4114_v50  ;;  %v2410_v34 = vpop.f32.mrb[78].mxu0  ;;  %v2603_v42 = vpop.f32.mrb[78].mxu1 }
 0x3e2   :  { %v2752_v44 = vmax.f32 %v2407_v37, 0.0  ;;  %v2754_v39 = vmax.f32 %v2600_v12, 0.0  ;;  %v2411_v13 = vadd.f32 %v2410_v34, %v4112_v49  ;;  %v2604_v15 = vadd.f32 %v2603_v42, %v4112_v49  ;;  %v2412_v16 = vpop.f32.mrb[79].mxu0  ;;  %v2605_v17 = vpop.f32.mrb[79].mxu1 }
 0x3e3   :  { %v2753_v48 = vmax.f32 %v2409_v46, 0.0  ;;  %v2755_v21 = vmax.f32 %v2602_v33, 0.0  ;;  %v2413_v22 = vadd.f32 %v2412_v16, %v4112_v49  ;;  %v2606_v45 = vadd.f32 %v2605_v17, %v4112_v49  ;;  %v4216_v32 = vpop.permute.xlu1 %2950  ;;  %v4218_v20 = vpop.permute.xlu0 %2945 }
 0x3e4   :  { %v3072_v23 = vmul.f32 %v4160_v38, %v2752_v44  ;;  %v3074_v50 = vmul.f32 %v4160_v38, %v2754_v39  ;;  %v2756_v26 = vmax.f32 %v2411_v13, 0.0  ;;  %v2758_v24 = vmax.f32 %v2604_v15, 0.0 }
 0x3e5   :  { %v3073_v6 = vmul.f32 %v4160_v38, %v2753_v48  ;;  %v3075_v11 = vmul.f32 %v4160_v38, %v2755_v21  ;;  %v2757_v47 = vmax.f32 %v2413_v22, 0.0  ;;  %v2759_v31 = vmax.f32 %v2606_v45, 0.0 }
 0x3e6   :  { %v3181_v43 = vadd.f32 %v3180_v28, %v3072_v23  ;;  %v3255_v35 = vadd.f32 %v3254_v36, %v3074_v50  ;;  %v3076_v49 = vmul.f32 %v4178_v19, %v2756_v26  ;;  %v3078_v27 = vmul.f32 %v4178_v19, %v2758_v24 }
 0x3e7   :  { %v3218_v14 = vadd.f32 %v3217_v40, %v3073_v6  ;;  %v3292_v37 = vadd.f32 %v3291_v41, %v3075_v11  ;;  %v3077_v12 = vmul.f32 %v4178_v19, %v2757_v47  ;;  %v3079_v30 = vmul.f32 %v4178_v19, %v2759_v31  ;;  %v2416_v8 = vpop.f32.mrb[80].mxu0  ;;  %v2609_v38 = vpop.f32.mrb[80].mxu1 }
 0x3e8   :  { %v3182_v46 = vadd.f32 %v3181_v43, %v3076_v49  ;;  %v3256_v33 = vadd.f32 %v3255_v35, %v3078_v27  ;;  %v2417_v34 = vadd.f32 %v2416_v8, %v4118_v52  ;;  %v2610_v42 = vadd.f32 %v2609_v38, %v4118_v52  ;;  %v2418_v28 = vpop.f32.mrb[81].mxu0  ;;  %v2611_v36 = vpop.f32.mrb[81].mxu1 }
 0x3e9   :  { %v3219_v44 = vadd.f32 %v3218_v14, %v3077_v12  ;;  %v3293_v39 = vadd.f32 %v3292_v37, %v3079_v30  ;;  %v2419_v13 = vadd.f32 %v2418_v28, %v4118_v52  ;;  %v2612_v40 = vadd.f32 %v2611_v36, %v4118_v52  ;;  %v2420_v41 = vpop.f32.mrb[82].mxu0  ;;  %v2613_v15 = vpop.f32.mrb[82].mxu1 }
 0x3ea   :  { %v2760_v16 = vmax.f32 %v2417_v34, 0.0  ;;  %v2762_v19 = vmax.f32 %v2610_v42, 0.0  ;;  %v2421_v17 = vadd.f32 %v2420_v41, %v4116_v51  ;;  %v2614_v48 = vadd.f32 %v2613_v15, %v4116_v51  ;;  %v2422_v21 = vpop.f32.mrb[83].mxu0  ;;  %v2615_v22 = vpop.f32.mrb[83].mxu1 }
 0x3eb   :  { %v2761_v45 = vmax.f32 %v2419_v13, 0.0  ;;  %v2763_v23 = vmax.f32 %v2612_v40, 0.0  ;;  %v2423_v50 = vadd.f32 %v2422_v21, %v4116_v51  ;;  %v2616_v26 = vadd.f32 %v2615_v22, %v4116_v51  ;;  %v4236_v49 = vpop.permute.xlu1 %2960  ;;  %v4238_v27 = vpop.permute.xlu0 %2955 }
 0x3ec   :  { %v3080_v24 = vmul.f32 %v4176_v18, %v2760_v16  ;;  %v3082_v52 = vmul.f32 %v4176_v18, %v2762_v19  ;;  %v2764_v6 = vmax.f32 %v2421_v17, 0.0  ;;  %v2766_v11 = vmax.f32 %v2614_v48, 0.0 }
 0x3ed   :  { %v3081_v47 = vmul.f32 %v4176_v18, %v2761_v45  ;;  %v3083_v31 = vmul.f32 %v4176_v18, %v2763_v23  ;;  %v2765_v43 = vmax.f32 %v2423_v50, 0.0  ;;  %v2767_v35 = vmax.f32 %v2616_v26, 0.0 }
 0x3ee   :  { %v3183_v14 = vadd.f32 %v3182_v46, %v3080_v24  ;;  %v3257_v37 = vadd.f32 %v3256_v33, %v3082_v52  ;;  %v3084_v51 = vmul.f32 %v4198_v29, %v2764_v6  ;;  %v3086_v12 = vmul.f32 %v4198_v29, %v2766_v11 }
 0x3ef   :  { %v3220_v30 = vadd.f32 %v3219_v44, %v3081_v47  ;;  %v3294_v8 = vadd.f32 %v3293_v39, %v3083_v31  ;;  %v3085_v38 = vmul.f32 %v4198_v29, %v2765_v43  ;;  %v3087_v34 = vmul.f32 %v4198_v29, %v2767_v35  ;;  %v2426_v42 = vpop.f32.mrb[84].mxu0  ;;  %v2619_v18 = vpop.f32.mrb[84].mxu1 }
 0x3f0   :  { %v3184_v28 = vadd.f32 %v3183_v14, %v3084_v51  ;;  %v3258_v36 = vadd.f32 %v3257_v37, %v3086_v12  ;;  %v2427_v13 = vadd.f32 %v2426_v42, %v4122_v54  ;;  %v2620_v40 = vadd.f32 %v2619_v18, %v4122_v54  ;;  %v2428_v46 = vpop.f32.mrb[85].mxu0  ;;  %v2621_v33 = vpop.f32.mrb[85].mxu1 }
 0x3f1   :  { %v3221_v41 = vadd.f32 %v3220_v30, %v3085_v38  ;;  %v3295_v15 = vadd.f32 %v3294_v8, %v3087_v34  ;;  %v2429_v16 = vadd.f32 %v2428_v46, %v4122_v54  ;;  %v2622_v44 = vadd.f32 %v2621_v33, %v4122_v54  ;;  %v2430_v39 = vpop.f32.mrb[86].mxu0  ;;  %v2623_v19 = vpop.f32.mrb[86].mxu1 }
 0x3f2   :  { %v2768_v17 = vmax.f32 %v2427_v13, 0.0  ;;  %v2770_v29 = vmax.f32 %v2620_v40, 0.0  ;;  %v2431_v48 = vadd.f32 %v2430_v39, %v4120_v53  ;;  %v2624_v21 = vadd.f32 %v2623_v19, %v4120_v53  ;;  %v2432_v22 = vpop.f32.mrb[87].mxu0  ;;  %v2625_v45 = vpop.f32.mrb[87].mxu1 }
 0x3f3   :  { %v2769_v23 = vmax.f32 %v2429_v16, 0.0  ;;  %v2771_v50 = vmax.f32 %v2622_v44, 0.0  ;;  %v2433_v26 = vadd.f32 %v2432_v22, %v4120_v53  ;;  %v2626_v24 = vadd.f32 %v2625_v45, %v4120_v53  ;;  %v4256_v14 = vpop.permute.xlu1 %2970  ;;  %v4258_v37 = vpop.permute.xlu0 %2965 }
 0x3f4   :  { %v3088_v52 = vmul.f32 %v4196_v25, %v2768_v17  ;;  %v3090_v54 = vmul.f32 %v4196_v25, %v2770_v29  ;;  %v2772_v6 = vmax.f32 %v2431_v48, 0.0  ;;  %v2774_v11 = vmax.f32 %v2624_v21, 0.0 }
 0x3f5   :  { %v3089_v47 = vmul.f32 %v4196_v25, %v2769_v23  ;;  %v3091_v31 = vmul.f32 %v4196_v25, %v2771_v50  ;;  %v2773_v43 = vmax.f32 %v2433_v26, 0.0  ;;  %v2775_v35 = vmax.f32 %v2626_v24, 0.0 }
 0x3f6   :  { %v3185_v51 = vadd.f32 %v3184_v28, %v3088_v52  ;;  %v3259_v12 = vadd.f32 %v3258_v36, %v3090_v54  ;;  %v3092_v53 = vmul.f32 %v4218_v20, %v2772_v6  ;;  %v3094_v30 = vmul.f32 %v4218_v20, %v2774_v11 }
 0x3f7   :  { %v3222_v8 = vadd.f32 %v3221_v41, %v3089_v47  ;;  %v3296_v38 = vadd.f32 %v3295_v15, %v3091_v31  ;;  %v3093_v34 = vmul.f32 %v4218_v20, %v2773_v43  ;;  %v3095_v42 = vmul.f32 %v4218_v20, %v2775_v35  ;;  %v2436_v18 = vpop.f32.mrb[88].mxu0  ;;  %v2629_v25 = vpop.f32.mrb[88].mxu1 }
 0x3f8   :  { %v3186_v13 = vadd.f32 %v3185_v51, %v3092_v53  ;;  %v3260_v40 = vadd.f32 %v3259_v12, %v3094_v30  ;;  %v2437_v46 = vadd.f32 %v2436_v18, %v4126_v56  ;;  %v2630_v33 = vadd.f32 %v2629_v25, %v4126_v56  ;;  %v2438_v28 = vpop.f32.mrb[89].mxu0  ;;  %v2631_v36 = vpop.f32.mrb[89].mxu1 }
 0x3f9   :  { %v3223_v16 = vadd.f32 %v3222_v8, %v3093_v34  ;;  %v3297_v44 = vadd.f32 %v3296_v38, %v3095_v42  ;;  %v2439_v39 = vadd.f32 %v2438_v28, %v4126_v56  ;;  %v2632_v41 = vadd.f32 %v2631_v36, %v4126_v56  ;;  %v2440_v15 = vpop.f32.mrb[90].mxu0  ;;  %v2633_v19 = vpop.f32.mrb[90].mxu1 }
 0x3fa   :  { %v2776_v17 = vmax.f32 %v2437_v46, 0.0  ;;  %v2778_v20 = vmax.f32 %v2630_v33, 0.0  ;;  %v2441_v29 = vadd.f32 %v2440_v15, %v4124_v55  ;;  %v2634_v48 = vadd.f32 %v2633_v19, %v4124_v55  ;;  %v2442_v21 = vpop.f32.mrb[91].mxu0  ;;  %v2635_v22 = vpop.f32.mrb[91].mxu1 }
 0x3fb   :  { %v2777_v45 = vmax.f32 %v2439_v39, 0.0  ;;  %v2779_v23 = vmax.f32 %v2632_v41, 0.0  ;;  %v2443_v50 = vadd.f32 %v2442_v21, %v4124_v55  ;;  %v2636_v26 = vadd.f32 %v2635_v22, %v4124_v55  ;;  %v4276_v43 = vpop.permute.xlu1 %2980  ;;  %v4278_v35 = vpop.permute.xlu0 %2975 }
 0x3fc   :  { %v3096_v24 = vmul.f32 %v4216_v32, %v2776_v17  ;;  %v3098_v56 = vmul.f32 %v4216_v32, %v2778_v20  ;;  %v2780_v52 = vmax.f32 %v2441_v29, 0.0  ;;  %v2782_v54 = vmax.f32 %v2634_v48, 0.0 }
 0x3fd   :  { %v3097_v6 = vmul.f32 %v4216_v32, %v2777_v45  ;;  %v3099_v11 = vmul.f32 %v4216_v32, %v2779_v23  ;;  %v2781_v47 = vmax.f32 %v2443_v50, 0.0  ;;  %v2783_v31 = vmax.f32 %v2636_v26, 0.0 }
 0x3fe   :  { %v3187_v51 = vadd.f32 %v3186_v13, %v3096_v24  ;;  %v3261_v12 = vadd.f32 %v3260_v40, %v3098_v56  ;;  %v3100_v55 = vmul.f32 %v4238_v27, %v2780_v52  ;;  %v3102_v53 = vmul.f32 %v4238_v27, %v2782_v54 }
 0x3ff   :  { %v3224_v30 = vadd.f32 %v3223_v16, %v3097_v6  ;;  %v3298_v8 = vadd.f32 %v3297_v44, %v3099_v11  ;;  %v3101_v38 = vmul.f32 %v4238_v27, %v2781_v47  ;;  %v3103_v34 = vmul.f32 %v4238_v27, %v2783_v31  ;;  %v2446_v42 = vpop.f32.mrb[92].mxu0  ;;  %v2639_v32 = vpop.f32.mrb[92].mxu1 }
 0x400   :  { %v3188_v18 = vadd.f32 %v3187_v51, %v3100_v55  ;;  %v3262_v25 = vadd.f32 %v3261_v12, %v3102_v53  ;;  %v2447_v46 = vadd.f32 %v2446_v42, %v4130_v58  ;;  %v2640_v33 = vadd.f32 %v2639_v32, %v4130_v58  ;;  %v2448_v13 = vpop.f32.mrb[93].mxu0  ;;  %v2641_v40 = vpop.f32.mrb[93].mxu1 }
 0x401   :  { %v3225_v28 = vadd.f32 %v3224_v30, %v3101_v38  ;;  %v3299_v36 = vadd.f32 %v3298_v8, %v3103_v34  ;;  %v2449_v39 = vadd.f32 %v2448_v13, %v4130_v58  ;;  %v2642_v16 = vadd.f32 %v2641_v40, %v4130_v58  ;;  %v2450_v44 = vpop.f32.mrb[94].mxu0  ;;  %v2643_v41 = vpop.f32.mrb[94].mxu1 }
 0x402   :  { %v2784_v15 = vmax.f32 %v2447_v46, 0.0  ;;  %v2786_v27 = vmax.f32 %v2640_v33, 0.0  ;;  %v2451_v19 = vadd.f32 %v2450_v44, %v4128_v57  ;;  %v2644_v17 = vadd.f32 %v2643_v41, %v4128_v57  ;;  %v2452_v20 = vpop.f32.mrb[95].mxu0  ;;  %v2645_v29 = vpop.f32.mrb[95].mxu1 }
 0x403   :  { %v2785_v48 = vmax.f32 %v2449_v39, 0.0  ;;  %v2787_v21 = vmax.f32 %v2642_v16, 0.0  ;;  %v2453_v22 = vadd.f32 %v2452_v20, %v4128_v57  ;;  %v2646_v45 = vadd.f32 %v2645_v29, %v4128_v57  ;;  %v4296_v6 = vpop.permute.xlu1 %2990  ;;  %v4298_v11 = vpop.permute.xlu0 %2985 }
 0x404   :  { %v3104_v23 = vmul.f32 %v4236_v49, %v2784_v15  ;;  %v3106_v58 = vmul.f32 %v4236_v49, %v2786_v27  ;;  %v2788_v50 = vmax.f32 %v2451_v19, 0.0  ;;  %v2790_v26 = vmax.f32 %v2644_v17, 0.0 }
 0x405   :  { %v3105_v24 = vmul.f32 %v4236_v49, %v2785_v48  ;;  %v3107_v56 = vmul.f32 %v4236_v49, %v2787_v21  ;;  %v2789_v52 = vmax.f32 %v2453_v22, 0.0  ;;  %v2791_v54 = vmax.f32 %v2646_v45, 0.0 }
 0x406   :  { %v3189_v47 = vadd.f32 %v3188_v18, %v3104_v23  ;;  %v3263_v31 = vadd.f32 %v3262_v25, %v3106_v58  ;;  %v3108_v57 = vmul.f32 %v4258_v37, %v2788_v50  ;;  %v3110_v51 = vmul.f32 %v4258_v37, %v2790_v26 }
 0x407   :  { %v3226_v12 = vadd.f32 %v3225_v28, %v3105_v24  ;;  %v3300_v55 = vadd.f32 %v3299_v36, %v3107_v56  ;;  %v3109_v53 = vmul.f32 %v4258_v37, %v2789_v52  ;;  %v3111_v30 = vmul.f32 %v4258_v37, %v2791_v54  ;;  %v2456_v8 = vpop.f32.mrb[96].mxu0  ;;  %v2649_v49 = vpop.f32.mrb[96].mxu1 }
 0x408   :  { %v3190_v38 = vadd.f32 %v3189_v47, %v3108_v57  ;;  %v3264_v34 = vadd.f32 %v3263_v31, %v3110_v51  ;;  %v2457_v42 = vadd.f32 %v2456_v8, %v4134_v61  ;;  %v2650_v32 = vadd.f32 %v2649_v49, %v4134_v61  ;;  %v2458_v18 = vpop.f32.mrb[97].mxu0  ;;  %v2651_v25 = vpop.f32.mrb[97].mxu1 }
 0x409   :  { %v3227_v46 = vadd.f32 %v3226_v12, %v3109_v53  ;;  %v3301_v33 = vadd.f32 %v3300_v55, %v3111_v30  ;;  %v2459_v13 = vadd.f32 %v2458_v18, %v4134_v61  ;;  %v2652_v40 = vadd.f32 %v2651_v25, %v4134_v61  ;;  %v2460_v28 = vpop.f32.mrb[98].mxu0  ;;  %v2653_v36 = vpop.f32.mrb[98].mxu1 }
 0x40a   :  { %v2792_v39 = vmax.f32 %v2457_v42, 0.0  ;;  %v2794_v37 = vmax.f32 %v2650_v32, 0.0  ;;  %v2461_v16 = vadd.f32 %v2460_v28, %v4132_v59  ;;  %v2654_v44 = vadd.f32 %v2653_v36, %v4132_v59  ;;  %v2462_v41 = vpop.f32.mrb[99].mxu0  ;;  %v2655_v15 = vpop.f32.mrb[99].mxu1 }
 0x40b   :  { %v2793_v27 = vmax.f32 %v2459_v13, 0.0  ;;  %v2795_v19 = vmax.f32 %v2652_v40, 0.0  ;;  %v2463_v17 = vadd.f32 %v2462_v41, %v4132_v59  ;;  %v2656_v20 = vadd.f32 %v2655_v15, %v4132_v59  ;;  %v4316_v50 = vpop.permute.xlu1 %3000  ;;  %v4318_v26 = vpop.permute.xlu0 %2995 }
 0x40c   :  { %v3112_v29 = vmul.f32 %v4256_v14, %v2792_v39  ;;  %v3114_v61 = vmul.f32 %v4256_v14, %v2794_v37  ;;  %v2796_v48 = vmax.f32 %v2461_v16, 0.0  ;;  %v2798_v21 = vmax.f32 %v2654_v44, 0.0 }
 0x40d   :  { %v3113_v22 = vmul.f32 %v4256_v14, %v2793_v27  ;;  %v3115_v45 = vmul.f32 %v4256_v14, %v2795_v19  ;;  %v2797_v23 = vmax.f32 %v2463_v17, 0.0  ;;  %v2799_v58 = vmax.f32 %v2656_v20, 0.0 }
 0x40e   :  { %v3191_v24 = vadd.f32 %v3190_v38, %v3112_v29  ;;  %v3265_v56 = vadd.f32 %v3264_v34, %v3114_v61  ;;  %v3116_v59 = vmul.f32 %v4278_v35, %v2796_v48  ;;  %v3118_v52 = vmul.f32 %v4278_v35, %v2798_v21 }
 0x40f   :  { %v3228_v54 = vadd.f32 %v3227_v46, %v3113_v22  ;;  %v3302_v47 = vadd.f32 %v3301_v33, %v3115_v45  ;;  %v3117_v31 = vmul.f32 %v4278_v35, %v2797_v23  ;;  %v3119_v57 = vmul.f32 %v4278_v35, %v2799_v58  ;;  %v2466_v51 = vpop.f32.mrb[100].mxu0  ;;  %v2659_v14 = vpop.f32.mrb[100].mxu1 }
 0x410   :  { %v3192_v12 = vadd.f32 %v3191_v24, %v3116_v59  ;;  %v3266_v55 = vadd.f32 %v3265_v56, %v3118_v52  ;;  %v2467_v53 = vadd.f32 %v2466_v51, %v4138_v9  ;;  %v2660_v30 = vadd.f32 %v2659_v14, %v4138_v9  ;;  %v2468_v8 = vpop.f32.mrb[101].mxu0  ;;  %v2661_v49 = vpop.f32.mrb[101].mxu1 }
 0x411   :  { %v3229_v38 = vadd.f32 %v3228_v54, %v3117_v31  ;;  %v3303_v34 = vadd.f32 %v3302_v47, %v3119_v57  ;;  %v2469_v42 = vadd.f32 %v2468_v8, %v4138_v9  ;;  %v2662_v32 = vadd.f32 %v2661_v49, %v4138_v9  ;;  %v2470_v18 = vpop.f32.mrb[102].mxu0  ;;  %v2663_v25 = vpop.f32.mrb[102].mxu1 }
 0x412   :  { %v2800_v46 = vmax.f32 %v2467_v53, 0.0  ;;  %v2802_v35 = vmax.f32 %v2660_v30, 0.0  ;;  %v2471_v33 = vadd.f32 %v2470_v18, %v4136_v62  ;;  %v2664_v13 = vadd.f32 %v2663_v25, %v4136_v62  ;;  %v2472_v40 = vpop.f32.mrb[103].mxu0  ;;  %v2665_v28 = vpop.f32.mrb[103].mxu1 }
 0x413   :  { %v2801_v36 = vmax.f32 %v2469_v42, 0.0  ;;  %v2803_v39 = vmax.f32 %v2662_v32, 0.0  ;;  %v2473_v37 = vadd.f32 %v2472_v40, %v4136_v62  ;;  %v2666_v16 = vadd.f32 %v2665_v28, %v4136_v62  ;;  %v4336_v29 = vpop.permute.xlu1 %3010  ;;  %v4338_v61 = vpop.permute.xlu0 %3005 }
 0x414   :  { %v3120_v44 = vmul.f32 %v4276_v43, %v2800_v46  ;;  %v3122_v9 = vmul.f32 %v4276_v43, %v2802_v35  ;;  %v2804_v41 = vmax.f32 %v2471_v33, 0.0  ;;  %v2806_v15 = vmax.f32 %v2664_v13, 0.0 }
 0x415   :  { %v3121_v27 = vmul.f32 %v4276_v43, %v2801_v36  ;;  %v3123_v19 = vmul.f32 %v4276_v43, %v2803_v39  ;;  %v2805_v17 = vmax.f32 %v2473_v37, 0.0  ;;  %v2807_v20 = vmax.f32 %v2666_v16, 0.0 }
 0x416   :  { %v3193_v48 = vadd.f32 %v3192_v12, %v3120_v44  ;;  %v3267_v21 = vadd.f32 %v3266_v55, %v3122_v9  ;;  %v3124_v62 = vmul.f32 %v4298_v11, %v2804_v41  ;;  %v3126_v22 = vmul.f32 %v4298_v11, %v2806_v15 }
 0x417   :  { %v3230_v45 = vadd.f32 %v3229_v38, %v3121_v27  ;;  %v3304_v23 = vadd.f32 %v3303_v34, %v3123_v19  ;;  %v3125_v58 = vmul.f32 %v4298_v11, %v2805_v17  ;;  %v3127_v24 = vmul.f32 %v4298_v11, %v2807_v20  ;;  %v2476_v56 = vpop.f32.mrb[104].mxu0  ;;  %v2669_v43 = vpop.f32.mrb[104].mxu1 }
 0x418   :  { %v3194_v59 = vadd.f32 %v3193_v48, %v3124_v62  ;;  %v3268_v52 = vadd.f32 %v3267_v21, %v3126_v22  ;;  %v2477_v54 = vadd.f32 %v2476_v56, %v4142_v10  ;;  %v2670_v47 = vadd.f32 %v2669_v43, %v4142_v10  ;;  %v2478_v31 = vpop.f32.mrb[105].mxu0  ;;  %v2671_v57 = vpop.f32.mrb[105].mxu1 }
 0x419   :  { %v3231_v51 = vadd.f32 %v3230_v45, %v3125_v58  ;;  %v3305_v14 = vadd.f32 %v3304_v23, %v3127_v24  ;;  %v2479_v12 = vadd.f32 %v2478_v31, %v4142_v10  ;;  %v2672_v55 = vadd.f32 %v2671_v57, %v4142_v10  ;;  %v2480_v53 = vpop.f32.mrb[106].mxu0  ;;  %v2673_v30 = vpop.f32.mrb[106].mxu1 }
 0x41a   :  { %v2808_v8 = vmax.f32 %v2477_v54, 0.0  ;;  %v2810_v11 = vmax.f32 %v2670_v47, 0.0  ;;  %v2481_v49 = vadd.f32 %v2480_v53, %v4140_v0  ;;  %v2674_v38 = vadd.f32 %v2673_v30, %v4140_v0  ;;  %v2482_v34 = vpop.f32.mrb[107].mxu0  ;;  %v2675_v42 = vpop.f32.mrb[107].mxu1 }
 0x41b   :  { %v2809_v32 = vmax.f32 %v2479_v12, 0.0  ;;  %v2811_v18 = vmax.f32 %v2672_v55, 0.0  ;;  %v2483_v25 = vadd.f32 %v2482_v34, %v4140_v0  ;;  %v2676_v46 = vadd.f32 %v2675_v42, %v4140_v0  ;;  %v4356_v37 = vpop.permute.xlu1 %3015  ;;  %v4358_v16 = vpop.permute.xlu0 %2159 }
 0x41c   :  { %v3128_v35 = vmul.f32 %v4296_v6, %v2808_v8  ;;  %v3130_v10 = vmul.f32 %v4296_v6, %v2810_v11  ;;  %v2812_v33 = vmax.f32 %v2481_v49, 0.0  ;;  %v2814_v13 = vmax.f32 %v2674_v38, 0.0 }
 0x41d   :  { %v3129_v40 = vmul.f32 %v4296_v6, %v2809_v32  ;;  %v3131_v28 = vmul.f32 %v4296_v6, %v2811_v18  ;;  %v2813_v36 = vmax.f32 %v2483_v25, 0.0  ;;  %v2815_v39 = vmax.f32 %v2676_v46, 0.0 }
 0x41e   :  { %v3195_v44 = vadd.f32 %v3194_v59, %v3128_v35  ;;  %v3269_v9 = vadd.f32 %v3268_v52, %v3130_v10  ;;  %v3132_v0 = vmul.f32 %v4318_v26, %v2812_v33  ;;  %v3134_v41 = vmul.f32 %v4318_v26, %v2814_v13 }
 0x41f   :  { %v3232_v15 = vadd.f32 %v3231_v51, %v3129_v40  ;;  %v3306_v27 = vadd.f32 %v3305_v14, %v3131_v28  ;;  %v3133_v19 = vmul.f32 %v4318_v26, %v2813_v36  ;;  %v3135_v17 = vmul.f32 %v4318_v26, %v2815_v39  ;;  %v2486_v20 = vpop.f32.mrb[108].mxu0  ;;  %v2679_v6 = vpop.f32.mrb[108].mxu1 }
 0x420   :  { %v3196_v48 = vadd.f32 %v3195_v44, %v3132_v0  ;;  %v3270_v21 = vadd.f32 %v3269_v9, %v3134_v41  ;;  %v2487_v62 = vadd.f32 %v2486_v20, %v4146_v2  ;;  %v2680_v22 = vadd.f32 %v2679_v6, %v4146_v2  ;;  %v2488_v45 = vpop.f32.mrb[109].mxu0  ;;  %v2681_v23 = vpop.f32.mrb[109].mxu1 }
 0x421   :  { %v3233_v58 = vadd.f32 %v3232_v15, %v3133_v19  ;;  %v3307_v24 = vadd.f32 %v3306_v27, %v3135_v17  ;;  %v2489_v56 = vadd.f32 %v2488_v45, %v4146_v2  ;;  %v2682_v43 = vadd.f32 %v2681_v23, %v4146_v2  ;;  %v2490_v59 = vpop.f32.mrb[110].mxu0  ;;  %v2683_v52 = vpop.f32.mrb[110].mxu1 }
 0x422   :  { %v2816_v54 = vmax.f32 %v2487_v62, 0.0  ;;  %v2818_v26 = vmax.f32 %v2680_v22, 0.0  ;;  %v2491_v47 = vadd.f32 %v2490_v59, %v4144_v1  ;;  %v2684_v31 = vadd.f32 %v2683_v52, %v4144_v1  ;;  %v2492_v57 = vpop.f32.mrb[111].mxu0  ;;  %v2685_v51 = vpop.f32.mrb[111].mxu1 }
 0x423   :  { %v2817_v14 = vmax.f32 %v2489_v56, 0.0  ;;  %v2819_v12 = vmax.f32 %v2682_v43, 0.0  ;;  %v2493_v55 = vadd.f32 %v2492_v57, %v4144_v1  ;;  %v2686_v53 = vadd.f32 %v2685_v51, %v4144_v1  ;;  %v4376_v32 = vpop.permute.xlu1 %3020  ;;  %v4378_v18 = vpop.permute.xlu0 %2164 }
 0x424   :  { %v3136_v30 = vmul.f32 %v4316_v50, %v2816_v54  ;;  %v3138_v2 = vmul.f32 %v4316_v50, %v2818_v26  ;;  %v2820_v8 = vmax.f32 %v2491_v47, 0.0  ;;  %v2822_v11 = vmax.f32 %v2684_v31, 0.0 }
 0x425   :  { %v3137_v49 = vmul.f32 %v4316_v50, %v2817_v14  ;;  %v3139_v38 = vmul.f32 %v4316_v50, %v2819_v12  ;;  %v2821_v34 = vmax.f32 %v2493_v55, 0.0  ;;  %v2823_v42 = vmax.f32 %v2686_v53, 0.0 }
 0x426   :  { %v3197_v25 = vadd.f32 %v3196_v48, %v3136_v30  ;;  %v3271_v46 = vadd.f32 %v3270_v21, %v3138_v2  ;;  %v3140_v1 = vmul.f32 %v4338_v61, %v2820_v8  ;;  %v3142_v35 = vmul.f32 %v4338_v61, %v2822_v11 }
 0x427   :  { %v3234_v10 = vadd.f32 %v3233_v58, %v3137_v49  ;;  %v3308_v33 = vadd.f32 %v3307_v24, %v3139_v38  ;;  %v3141_v13 = vmul.f32 %v4338_v61, %v2821_v34  ;;  %v3143_v40 = vmul.f32 %v4338_v61, %v2823_v42  ;;  %v2496_v28 = vpop.f32.mrb[112].mxu0  ;;  %v2689_v50 = vpop.f32.mrb[112].mxu1 }
 0x428   :  { %v3198_v36 = vadd.f32 %v3197_v25, %v3140_v1  ;;  %v3272_v39 = vadd.f32 %v3271_v46, %v3142_v35  ;;  %v2497_v44 = vadd.f32 %v2496_v28, %v4150_v5  ;;  %v2690_v9 = vadd.f32 %v2689_v50, %v4150_v5  ;;  %v2498_v0 = vpop.f32.mrb[113].mxu0  ;;  %v2691_v41 = vpop.f32.mrb[113].mxu1 }
 0x429   :  { %v3235_v15 = vadd.f32 %v3234_v10, %v3141_v13  ;;  %v3309_v27 = vadd.f32 %v3308_v33, %v3143_v40  ;;  %v2499_v19 = vadd.f32 %v2498_v0, %v4150_v5  ;;  %v2692_v17 = vadd.f32 %v2691_v41, %v4150_v5  ;;  %v2500_v20 = vpop.f32.mrb[114].mxu0  ;;  %v2693_v6 = vpop.f32.mrb[114].mxu1 }
 0x42a   :  { %v2824_v48 = vmax.f32 %v2497_v44, 0.0  ;;  %v2826_v61 = vmax.f32 %v2690_v9, 0.0  ;;  %v2501_v21 = vadd.f32 %v2500_v20, %v4148_v3  ;;  %v2694_v62 = vadd.f32 %v2693_v6, %v4148_v3  ;;  %v2502_v22 = vpop.f32.mrb[115].mxu0  ;;  %v2695_v45 = vpop.f32.mrb[115].mxu1 }
 0x42b   :  { %v2825_v23 = vmax.f32 %v2499_v19, 0.0  ;;  %v2827_v58 = vmax.f32 %v2692_v17, 0.0  ;;  %v2503_v24 = vadd.f32 %v2502_v22, %v4148_v3  ;;  %v2696_v56 = vadd.f32 %v2695_v45, %v4148_v3  ;;  %v3026_v57 = vpop.permute.xlu1 %3025  ;;  %v4396_v51 = vpop.permute.xlu0 %2169 }
 0x42c   :  { %v3144_v43 = vmul.f32 %v4336_v29, %v2824_v48  ;;  %v3146_v5 = vmul.f32 %v4336_v29, %v2826_v61  ;;  %v2828_v59 = vmax.f32 %v2501_v21, 0.0  ;;  %v2830_v52 = vmax.f32 %v2694_v62, 0.0 }
 0x42d   :  { %v3145_v54 = vmul.f32 %v4336_v29, %v2825_v23  ;;  %v3147_v26 = vmul.f32 %v4336_v29, %v2827_v58  ;;  %v2829_v47 = vmax.f32 %v2503_v24, 0.0  ;;  %v2831_v31 = vmax.f32 %v2696_v56, 0.0 }
 0x42e   :  { %v3199_v14 = vadd.f32 %v3198_v36, %v3144_v43  ;;  %v3273_v12 = vadd.f32 %v3272_v39, %v3146_v5  ;;  %v3148_v55 = vmul.f32 %v4356_v37, %v2828_v59  ;;  %v3150_v3 = vmul.f32 %v4356_v37, %v2830_v52 }
 0x42f   :  { %v3236_v53 = vadd.f32 %v3235_v15, %v3145_v54  ;;  %v3310_v30 = vadd.f32 %v3309_v27, %v3147_v26  ;;  %v3149_v2 = vmul.f32 %v4356_v37, %v2829_v47  ;;  %v3151_v8 = vmul.f32 %v4356_v37, %v2831_v31  ;;  %v2506_v11 = vpop.f32.mrb[116].mxu0  ;;  %v2699_v49 = vpop.f32.mrb[116].mxu1 }
 0x430   :  { %v3200_v29 = vadd.f32 %v3199_v14, %v3148_v55  ;;  %v3274_v38 = vadd.f32 %v3273_v12, %v3150_v3  ;;  %v2507_v34 = vadd.f32 %v2506_v11, %v4152_v7  ;;  %v2700_v42 = vadd.f32 %v2699_v49, %v4152_v7  ;;  %v2508_v25 = vpop.f32.mrb[117].mxu0  ;;  %v2701_v46 = vpop.f32.mrb[117].mxu1 }
 0x431   :  { %v3237_v1 = vadd.f32 %v3236_v53, %v3149_v2  ;;  %v3311_v35 = vadd.f32 %v3310_v30, %v3151_v8  ;;  %v2509_v10 = vadd.f32 %v2508_v25, %v4152_v7  ;;  %v2702_v33 = vadd.f32 %v2701_v46, %v4152_v7  ;;  %v2510_v13 = vpop.f32.mrb[118].mxu0  ;;  %v2703_v40 = vpop.f32.mrb[118].mxu1 }
 0x432   :  { %v2832_v28 = vmax.f32 %v2507_v34, 0.0  ;;  %v2834_v37 = vmax.f32 %v2700_v42, 0.0  ;;  %v2511_v50 = vadd.f32 %v2510_v13, %v4358_v16  ;;  %v2704_v36 = vadd.f32 %v2703_v40, %v4358_v16  ;;  %v2512_v39 = vpop.f32.mrb[119].mxu0  ;;  %v2705_v44 = vpop.f32.mrb[119].mxu1 }
 0x433   :  { %v2833_v9 = vmax.f32 %v2509_v10, 0.0  ;;  %v2835_v0 = vmax.f32 %v2702_v33, 0.0  ;;  %v2513_v41 = vadd.f32 %v2512_v39, %v4358_v16  ;;  %v2706_v15 = vadd.f32 %v2705_v44, %v4358_v16  ;;  %v3031_v21 = vpop.permute.xlu1 %3030  ;;  %v2175_v62 = vpop.permute.xlu0 %2174 }
 0x434   :  { %v3152_v27 = vmul.f32 %v4376_v32, %v2832_v28  ;;  %v3154_v7 = vmul.f32 %v4376_v32, %v2834_v37  ;;  %v2836_v19 = vmax.f32 %v2511_v50, 0.0  ;;  %v2838_v17 = vmax.f32 %v2704_v36, 0.0 }
 0x435   :  { %v3153_v20 = vmul.f32 %v4376_v32, %v2833_v9  ;;  %v3155_v6 = vmul.f32 %v4376_v32, %v2835_v0  ;;  %v2837_v48 = vmax.f32 %v2513_v41, 0.0  ;;  %v2839_v61 = vmax.f32 %v2706_v15, 0.0 }
 0x436   :  { %v3201_v22 = vadd.f32 %v3200_v29, %v3152_v27  ;;  %v3275_v45 = vadd.f32 %v3274_v38, %v3154_v7  ;;  %v3156_v23 = vmul.f32 %v3026_v57, %v2836_v19  ;;  %v3158_v58 = vmul.f32 %v3026_v57, %v2838_v17 }
 0x437   :  { %v3238_v24 = vadd.f32 %v3237_v1, %v3153_v20  ;;  %v3312_v16 = vadd.f32 %v3311_v35, %v3155_v6  ;;  %v3157_v56 = vmul.f32 %v3026_v57, %v2837_v48  ;;  %v3159_v43 = vmul.f32 %v3026_v57, %v2839_v61  ;;  %v2516_v5 = vpop.f32.mrb[120].mxu0  ;;  %v2709_v59 = vpop.f32.mrb[120].mxu1 }
 0x438   :  { %v3202_v52 = vadd.f32 %v3201_v22, %v3156_v23  ;;  %v3276_v54 = vadd.f32 %v3275_v45, %v3158_v58  ;;  %v2517_v26 = vadd.f32 %v2516_v5, %v4378_v18  ;;  %v2710_v32 = vadd.f32 %v2709_v59, %v4378_v18  ;;  %v2518_v47 = vpop.f32.mrb[121].mxu0  ;;  %v2711_v31 = vpop.f32.mrb[121].mxu1 }
 0x439   :  { %v3239_v14 = vadd.f32 %v3238_v24, %v3157_v56  ;;  %v3313_v12 = vadd.f32 %v3312_v16, %v3159_v43  ;;  %v2519_v55 = vadd.f32 %v2518_v47, %v4378_v18  ;;  %v2712_v3 = vadd.f32 %v2711_v31, %v4378_v18  ;;  %v2520_v53 = vpop.f32.mrb[122].mxu0  ;;  %v2713_v30 = vpop.f32.mrb[122].mxu1 }
 0x43a   :  { %v2840_v2 = vmax.f32 %v2517_v26, 0.0  ;;  %v2842_v57 = vmax.f32 %v2710_v32, 0.0  ;;  %v2521_v8 = vadd.f32 %v2520_v53, %v4396_v51  ;;  %v2714_v11 = vadd.f32 %v2713_v30, %v4396_v51  ;;  %v2522_v49 = vpop.f32.mrb[123].mxu0  ;;  %v2715_v29 = vpop.f32.mrb[123].mxu1 }
 0x43b   :  { %v2841_v38 = vmax.f32 %v2519_v55, 0.0  ;;  %v2843_v34 = vmax.f32 %v2712_v3, 0.0  ;;  %v2523_v42 = vadd.f32 %v2522_v49, %v4396_v51  ;;  %v2716_v25 = vadd.f32 %v2715_v29, %v4396_v51  ;;  %v3036_v10 = vpop.permute.xlu1 %3035  ;;  %v2180_v33 = vpop.permute.xlu0 %2179 }
 0x43c   :  { %v3160_v46 = vmul.f32 %v3031_v21, %v2840_v2  ;;  %v3162_v1 = vmul.f32 %v3031_v21, %v2842_v57  ;;  %v2844_v35 = vmax.f32 %v2521_v8, 0.0  ;;  %v2846_v18 = vmax.f32 %v2714_v11, 0.0 }
 0x43d   :  { %v3161_v13 = vmul.f32 %v3031_v21, %v2841_v38  ;;  %v3163_v40 = vmul.f32 %v3031_v21, %v2843_v34  ;;  %v2845_v28 = vmax.f32 %v2523_v42, 0.0  ;;  %v2847_v37 = vmax.f32 %v2716_v25, 0.0 }
 0x43e   :  { %v3203_v50 = vadd.f32 %v3202_v52, %v3160_v46  ;;  %v3277_v36 = vadd.f32 %v3276_v54, %v3162_v1  ;;  %v3164_v39 = vmul.f32 %v3036_v10, %v2844_v35  ;;  %v3166_v44 = vmul.f32 %v3036_v10, %v2846_v18 }
 0x43f   :  { %v3240_v9 = vadd.f32 %v3239_v14, %v3161_v13  ;;  %v3314_v0 = vadd.f32 %v3313_v12, %v3163_v40  ;;  %v3165_v41 = vmul.f32 %v3036_v10, %v2845_v28  ;;  %v3167_v15 = vmul.f32 %v3036_v10, %v2847_v37  ;;  %v2526_v27 = vpop.f32.mrb[124].mxu0  ;;  %v2719_v51 = vpop.f32.mrb[124].mxu1 }
 0x440   :  { %v3204_v7 = vadd.f32 %v3203_v50, %v3164_v39  ;;  %v3278_v19 = vadd.f32 %v3277_v36, %v3166_v44  ;;  %v2527_v17 = vadd.f32 %v2526_v27, %v2175_v62  ;;  %v2720_v20 = vadd.f32 %v2719_v51, %v2175_v62  ;;  %v2528_v6 = vpop.f32.mrb[125].mxu0  ;;  %v2721_v48 = vpop.f32.mrb[125].mxu1 }
 0x441   :  { %v3241_v61 = vadd.f32 %v3240_v9, %v3165_v41  ;;  %v3315_v21 = vadd.f32 %v3314_v0, %v3167_v15  ;;  %v2529_v22 = vadd.f32 %v2528_v6, %v2175_v62  ;;  %v2722_v45 = vadd.f32 %v2721_v48, %v2175_v62  ;;  %v2530_v23 = vpop.f32.mrb[126].mxu0  ;;  %v2723_v58 = vpop.f32.mrb[126].mxu1 }
 0x442   :  { %v2848_v24 = vmax.f32 %v2527_v17, 0.0  ;;  %v2850_v16 = vmax.f32 %v2720_v20, 0.0  ;;  %v2531_v56 = vadd.f32 %v2530_v23, %v2180_v33  ;;  %v2724_v43 = vadd.f32 %v2723_v58, %v2180_v33  ;;  %v2532_v5 = vpop.f32.mrb[127].mxu0  ;;  %v2725_v59 = vpop.f32.mrb[127].mxu1 }
 0x443   :  { %v3041_v52 = vpop.permute.xlu0 %3040  ;;  %v2849_v54 = vmax.f32 %v2529_v22, 0.0  ;;  %v2851_v26 = vmax.f32 %v2722_v45, 0.0  ;;  %v2533_v32 = vadd.f32 %v2532_v5, %v2180_v33  ;;  %v2726_v47 = vadd.f32 %v2725_v59, %v2180_v33  ;;  %v3046_v3 = vpop.permute.xlu1 %3045 }
 0x444   :  { %v3168_v31 = vmul.f32 %v3041_v52, %v2848_v24  ;;  %v3170_v14 = vmul.f32 %v3041_v52, %v2850_v16  ;;  %v2852_v12 = vmax.f32 %v2531_v56, 0.0  ;;  %v2854_v55 = vmax.f32 %v2724_v43, 0.0 }
 0x445   :  { %v3169_v53 = vmul.f32 %v3041_v52, %v2849_v54  ;;  %v3171_v62 = vmul.f32 %v3041_v52, %v2851_v26  ;;  %v2853_v30 = vmax.f32 %v2533_v32, 0.0  ;;  %v2855_v2 = vmax.f32 %v2726_v47, 0.0 }
 0x446   :  { %v3205_v57 = vadd.f32 %v3204_v7, %v3168_v31  ;;  %v3279_v8 = vadd.f32 %v3278_v19, %v3170_v14  ;;  %v3172_v11 = vmul.f32 %v3046_v3, %v2852_v12  ;;  %v3174_v49 = vmul.f32 %v3046_v3, %v2854_v55 }
 0x447   :  { %v3242_v29 = vadd.f32 %v3241_v61, %v3169_v53  ;;  %v3316_v38 = vadd.f32 %v3315_v21, %v3171_v62  ;;  %v3173_v34 = vmul.f32 %v3046_v3, %v2853_v30  ;;  %v3175_v42 = vmul.f32 %v3046_v3, %v2855_v2  ;;  %v3328_v51 = vpop.permute.xlu0 %3327 }
 0x448   :  { %v3206_v25 = vadd.f32 %v3205_v57, %v3172_v11  ;;  %v3280_v46 = vadd.f32 %v3279_v8, %v3174_v49  ;;  %v3787_v0 = vmov 1966171168   ;;  %v3333_v21 = vrot.slane %v3328_v51, %v338_v4 }
 0x449   :  { %v3243_v1 = vadd.f32 %v3242_v29, %v3173_v34  ;;  %v3317_v35 = vadd.f32 %v3316_v38, %v3175_v42  ;;  %v3345_v41 = vunpack.c.l.s4 %v3787_v0 }
 0x44a   :  { %v3207_v18 = vrot.slane %v3206_v25, 4  ;;  %v3281_v10 = vrot.slane %v3280_v46, 4 }
 0x44b   :  { %v3244_v33 = vrot.slane %v3243_v1, 4  ;;  %v3318_v13 = vrot.slane %v3317_v35, 4  ;;  %v3346_v61 = vunpack.c.0.s8 %v3345_v41 }
 0x44c   :  { %v3208_v40 = vadd.f32 %v3207_v18, %v3206_v25  ;;  %v3282_v28 = vadd.f32 %v3281_v10, %v3280_v46 }
 0x44d   :  { %v3245_v37 = vadd.f32 %v3244_v33, %v3243_v1  ;;  %v3319_v50 = vadd.f32 %v3318_v13, %v3317_v35  ;;  %v3349_v5 = vsub.s32 %v3346_v61, %v3960_v63 }
 0x44e   :  { %v3209_v36 = vrot.slane %v3208_v40, 2  ;;  %v3283_v39 = vrot.slane %v3282_v28, 2 }
 0x44f   :  { %v3246_v44 = vrot.slane %v3245_v37, 2  ;;  %v3320_v9 = vrot.slane %v3319_v50, 2 }
 0x450   :  { %v3210_v15 = vadd.f32 %v3209_v36, %v3208_v40  ;;  %v3284_v27 = vadd.f32 %v3283_v39, %v3282_v28 }
 0x451   :  { %v3247_v7 = vadd.f32 %v3246_v44, %v3245_v37  ;;  %v3321_v19 = vadd.f32 %v3320_v9, %v3319_v50 }
 0x452   :  { %v3211_v17 = vrot.slane %v3210_v15, 1  ;;  %v3285_v20 = vrot.slane %v3284_v27, 1 }
 0x453   :  { %v3248_v6 = vrot.slane %v3247_v7, 1  ;;  %v3322_v48 = vrot.slane %v3321_v19, 1 }
 0x454   :  { %v3212_v22 = vadd.f32 %v3211_v17, %v3210_v15  ;;  %v3286_v45 = vadd.f32 %v3285_v20, %v3284_v27 }
 0x455   :  { %v3249_v23 = vadd.f32 %v3248_v6, %v3247_v7  ;;  %v3323_v58 = vadd.f32 %v3322_v48, %v3321_v19 }
 0x456   :  { %v3334_v24 = vadd.f32 %v3333_v21, %v3212_v22  ;;  %v3336_v16 = vadd.f32 %v3333_v21, %v3286_v45 }
 0x457   :  { %v3335_v56 = vadd.f32 %v3333_v21, %v3249_v23  ;;  %v3337_v43 = vadd.f32 %v3333_v21, %v3323_v58 }
 0x459   :  { %v3342_v59 = vcombine.low %v3334_v24, %v3335_v56  ;;  %v3343_v52 = vcombine.low %v3336_v16, %v3337_v43 }
 0x45b   :  { %v3350_v54 = vrot.slane %v3342_v59, %v3349_v5  ;;  %v3357_v26 = vrot.slane %v3343_v52, %v3349_v5 }
 0x45d   :  { %v3358_v32 = vcombine.low %v3350_v54, %v3357_v26 }
 0x45f   :  { %v3365_v4 = vrot.slane %v3358_v32, %v3349_v5 }
 0x461   :  { %3371 = vst.msk [vmem:[#allocation17] sm:$0xf] %vm3369_vm0, %v3365_v4 }
 0x462   :  { %3753 = shalt.err (!%p3750_p12)
}
 0x463   :  { %s3754_s2 = scalar_lea.hbm %s4447_s9, 64 }
 0x464   :  { %p3755_p13 = scmp.ne.s32.totalorder %s4447_s9, %s3754_s2  ;;  %p3758_p0 = scmp.lt.u32.totalorder %s3754_s2, %s4447_s9 }
 0x466   :  { %p3760_p1 = pnand %p3758_p0, %p3755_p13 }
 0x468   :  { %3763 = shalt.err (!%p3760_p1)
}
 0x469   :  { %3381 = dma.vmem_to_hbm [thread:$0]  %s3379_s20, 64, %s4447_s9, [#allocation5]  }
 0x46a   :  { %3774 = dma.done.wait [#allocation5], 64  }
 0x46b   :  { %3775 = vsyncadd [#allocation5], 4294967232 }
 0x46c   :  { %3385 = vsyncpa [#allocation4], 1 }
 0x46d   :  { %3386 = vsyncpa [#allocation7], 1 }
 0x46e   :  { %3387 = vsyncpa [#allocation10], 1 }
 0x46f   :  { %3388 = vsyncpa [#allocation13], 1 }
 0x470   :  { %3389 = vsyncpa [#allocation16], 1 }
 0x471   :  { %3390 = vsyncpa [#allocation5], 1 }

</bundles_post_ra>
